<compile_context>
chip_gen: v5e
topology: v5e:2x2
jax: 0.10.0
libtpu: 0.0.40
codegen_flags: <defaults>
</compile_context>

<pallas_src>
import functools

import jax
import jax.numpy as jnp
from jax.experimental import pallas as pl
from jax.experimental.pallas import tpu as pltpu


# ---------------------------------------------------------------------------
# The fused kernel: conv1 + ReLU + conv2 + ReLU + flatten + fc1 + ReLU + fc2.
# ---------------------------------------------------------------------------
def _dqn_kernel(p1_ref, m2_ref, w1_ref, b1_ref, w2_ref, b2_ref,
                fc1b_ref, fc2w_ref, fc2b_ref, fc1w_hbm,
                o_ref, fc1w_vmem, dma_sem, *, n_img, hw, width):
    rows = n_img * hw

    # Start streaming the big (bf16) fc1 weight from HBM now; the conv stack
    # below runs while it is in flight.
    fc1_cp = pltpu.make_async_copy(fc1w_hbm, fc1w_vmem, dma_sem)
    fc1_cp.start()

    # ---- conv1 + ReLU: patches were im2col'd outside (input is tiny). ------
    h1 = jnp.dot(p1_ref[...], w1_ref[...], preferred_element_type=jnp.float32)
    h1 = jnp.maximum(h1 + b1_ref[...], 0.0)                     # (rows, 32)

    # ---- conv2 + ReLU: in-VMEM im2col (rolls + one concat + one mask mul). --
    taps = []
    for dy in (-1, 0, 1):
        for dx in (-1, 0, 1):
            s = dy * width + dx                                  # pixel shift
            if s == 0:
                taps.append(h1)
            else:
                # row r = p*n_img + n  ->  rolled[r] = h1[(p+s)*n_img + n];
                # rows that wrap are exactly the out-of-image taps -> masked.
                taps.append(pltpu.roll(h1, (-s * n_img) % rows, axis=0))
    patches2 = jnp.concatenate(taps, axis=1) * m2_ref[...]       # (rows, 288)
    h2 = jnp.dot(patches2, w2_ref[...], preferred_element_type=jnp.float32)
    h2 = jnp.maximum(h2 + b2_ref[...], 0.0)                      # (rows, 64)

    # ---- flatten: (rows=p-major, 64) -> (n_img, hw*64) via lane concat. -----
    slabs = [h2[p * n_img:(p + 1) * n_img, :] for p in range(hw)]
    if hw % 2 == 0:
        # Pair the 64-lane slabs so the outer concat is 128-lane aligned.
        slabs = [jnp.concatenate(slabs[2 * k:2 * k + 2], axis=1)
                 for k in range(hw // 2)]
    flat = jnp.concatenate(slabs, axis=1) if len(slabs) > 1 else slabs[0]

    # ---- fc1 + ReLU + fc2 (bf16 weights, f32 accumulation). ----------------
    fc1_cp.wait()
    hdn = jnp.dot(flat.astype(jnp.bfloat16), fc1w_vmem[...],
                  preferred_element_type=jnp.float32)
    hdn = jnp.maximum(hdn + fc1b_ref[...], 0.0)                  # (n_img, 256)
    out = jnp.dot(hdn.astype(jnp.bfloat16), fc2w_ref[...],
                  preferred_element_type=jnp.float32) + fc2b_ref[...]
    o_ref[...] = out                                             # (n_img, 128)


def _dqn_fused_pallas(patches1, mask2, w1, b1, w2, b2, fc1_b, fc2_w, fc2_b,
                      fc1_w, *, n, hw, width):
    npad = fc2_w.shape[1]
    vmem = pltpu.MemorySpace.VMEM
    kernel = functools.partial(_dqn_kernel, n_img=n, hw=hw, width=width)
    return pl.pallas_call(
        kernel,
        out_shape=jax.ShapeDtypeStruct((n, npad), jnp.float32),
        in_specs=[pl.BlockSpec(memory_space=vmem)] * 9
                 + [pl.BlockSpec(memory_space=pl.ANY)],          # fc1_w: raw HBM ref
        out_specs=pl.BlockSpec(memory_space=vmem),
        scratch_shapes=[
            pltpu.VMEM(fc1_w.shape, fc1_w.dtype),                # fc1_w landing buffer
            pltpu.SemaphoreType.DMA,                             # its completion sem
        ],
    )(patches1, mask2, w1, b1, w2, b2, fc1_b, fc2_w, fc2_b, fc1_w)


# ---------------------------------------------------------------------------
# Wrapper-side layout plumbing (tiny arrays, fused into the jit by XLA).
# ---------------------------------------------------------------------------
def _im2col_input(x_nchw):
    """(N, Cin, H, W) -> (H*W*N, 9*Cin) pixel-major rows, tap-major columns."""
    n, cin, h, w = x_nchw.shape
    xp = jnp.pad(x_nchw, ((0, 0), (0, 0), (1, 1), (1, 1)))
    taps = []
    for dy in (-1, 0, 1):
        for dx in (-1, 0, 1):
            taps.append(xp[:, :, 1 + dy:1 + dy + h, 1 + dx:1 + dx + w])
    pat = jnp.stack(taps, axis=0)                  # (9, N, Cin, H, W)
    pat = jnp.transpose(pat, (3, 4, 1, 0, 2))      # (H, W, N, 9, Cin)
    return pat.reshape(h * w * n, 9 * cin)


def dqn_forward(x_nchw, prep, *, n_actions):
    n, _, h, w = x_nchw.shape
    patches1 = _im2col_input(x_nchw)
    out_pad = _dqn_fused_pallas(
        patches1, prep["mask2"],
        prep["conv1_w"], prep["conv1_b"], prep["conv2_w"], prep["conv2_b"],
        prep["fc1_b"], prep["fc2_w"], prep["fc2_b"], prep["fc1_w"],
        n=n, hw=h * w, width=w)
    return out_pad[:, :n_actions]


# ---------------------------------------------------------------------------
# One-time parameter layout preparation (NOT in the forward path).
# ---------------------------------------------------------------------------
def _conv_weight_im2col(w_oihw):
    """(Cout, Cin, 3, 3) -> (9*Cin, Cout), row = (ky*3+kx)*Cin + cin."""
    cout, cin, kh, kw = w_oihw.shape
    return jnp.transpose(w_oihw, (2, 3, 1, 0)).reshape(kh * kw * cin, cout)


def prepare_params(params, grid_size, n_actions, n_batch):
    g = grid_size
    hw = g * g
    c1 = params["conv1_w"].shape[0]                      # 32

    # Border-validity mask for conv2 patches: (hw*n_batch, 9*c1), pixel-major
    # rows (row = p*n_batch + n), tap-major column blocks of c1 lanes.
    hh = jnp.arange(hw, dtype=jnp.int32) // g
    ww = jnp.arange(hw, dtype=jnp.int32) % g
    cols = []
    for dy in (-1, 0, 1):
        for dx in (-1, 0, 1):
            valid = (hh + dy >= 0) & (hh + dy < g) & (ww + dx >= 0) & (ww + dx < g)
            cols.append(valid.astype(jnp.float32))
    m9 = jnp.stack(cols, axis=1)                         # (hw, 9)
    mask2 = jnp.repeat(m9, c1, axis=1)                   # (hw, 9*c1)
    mask2 = jnp.repeat(mask2, n_batch, axis=0)           # (hw*n, 9*c1)

    # fc1: pre-permute once so it consumes the (pixel-major, channel-minor)
    # flatten produced by the kernel; store in bf16 (f32 accumulation in-kernel).
    fc1 = params["fc1_w"].reshape(256, 64, g, g)         # (out, c, h, w)
    fc1 = jnp.transpose(fc1, (2, 3, 1, 0)).reshape(hw * 64, 256)
    fc1 = fc1.astype(jnp.bfloat16)

    # fc2: zero-pad output lanes to a multiple of 128 so the final store is
    # lane-dense; real columns are sliced outside.
    npad = pl.cdiv(n_actions, 128) * 128
    fc2 = jnp.zeros((256, npad), jnp.float32).at[:, :n_actions].set(params["fc2_w"].T)
    fc2 = fc2.astype(jnp.bfloat16)
    fc2_b = jnp.zeros((1, npad), jnp.float32).at[0, :n_actions].set(params["fc2_b"])

    return {
        "mask2": mask2,
        "conv1_w": _conv_weight_im2col(params["conv1_w"]),
        "conv1_b": params["conv1_b"].reshape(1, -1),
        "conv2_w": _conv_weight_im2col(params["conv2_w"]),
        "conv2_b": params["conv2_b"].reshape(1, -1),
        "fc1_w": fc1,
        "fc1_b": params["fc1_b"].reshape(1, -1),
        "fc2_w": fc2,
        "fc2_b": fc2_b,
    }


# ---------------------------------------------------------------------------
# Deterministic parameter init (PyTorch module layout) + pure-JAX reference.
# ---------------------------------------------------------------------------
def init_params(key, grid_size, n_actions):
    ks = jax.random.split(key, 8)
    s = 0.05
    return {
        "conv1_w": s * jax.random.normal(ks[0], (32, 4, 3, 3), jnp.float32),
        "conv1_b": s * jax.random.normal(ks[1], (32,), jnp.float32),
        "conv2_w": s * jax.random.normal(ks[2], (64, 32, 3, 3), jnp.float32),
        "conv2_b": s * jax.random.normal(ks[3], (64,), jnp.float32),
        "fc1_w": s * jax.random.normal(ks[4], (256, 64 * grid_size * grid_size), jnp.float32),
        "fc1_b": s * jax.random.normal(ks[5], (256,), jnp.float32),
        "fc2_w": s * jax.random.normal(ks[6], (n_actions, 256), jnp.float32),
        "fc2_b": s * jax.random.normal(ks[7], (n_actions,), jnp.float32),
    }


def dqn_reference(x, params):
    y = jax.lax.conv_general_dilated(x, params["conv1_w"], (1, 1), ((1, 1), (1, 1)),
                                     dimension_numbers=("NCHW", "OIHW", "NCHW"))
    y = jax.nn.relu(y + params["conv1_b"][None, :, None, None])
    y = jax.lax.conv_general_dilated(y, params["conv2_w"], (1, 1), ((1, 1), (1, 1)),
                                     dimension_numbers=("NCHW", "OIHW", "NCHW"))
    y = jax.nn.relu(y + params["conv2_b"][None, :, None, None])
    y = y.reshape(y.shape[0], -1)
    y = jax.nn.relu(y @ params["fc1_w"].T + params["fc1_b"])
    return y @ params["fc2_w"].T + params["fc2_b"]


if __name__ == "__main__":
    grid_size = 8
    n_actions = 4
    batch = 2

    key = jax.random.PRNGKey(0)
    k_x, k_p = jax.random.split(key)
    x = jax.random.normal(k_x, (batch, 4, grid_size, grid_size), jnp.float32)
    params = init_params(k_p, grid_size, n_actions)
    prep = prepare_params(params, grid_size, n_actions, batch)   # one-time layout prep

    fwd = jax.jit(functools.partial(dqn_forward, n_actions=n_actions))
    out = fwd(x, prep)
    jax.block_until_ready(out)

    assert out.shape == (batch, n_actions), out.shape
    assert out.dtype == jnp.float32

    ref = dqn_reference(x, params)
    err = float(jnp.max(jnp.abs(out - ref)))
    assert err < 2e-2, f"mismatch vs reference: max abs err {err}"
    print("KERNEL_OK")
</pallas_src>

<mosaic_0001>
module attributes {stable_mosaic.version = 11 : i64} {
  func.func @_dqn_kernel(%arg0: memref<128x36xf32, #tpu.memory_space<vmem>>, %arg1: memref<128x288xf32, #tpu.memory_space<vmem>>, %arg2: memref<36x32xf32, #tpu.memory_space<vmem>>, %arg3: memref<1x32xf32, #tpu.memory_space<vmem>>, %arg4: memref<288x64xf32, #tpu.memory_space<vmem>>, %arg5: memref<1x64xf32, #tpu.memory_space<vmem>>, %arg6: memref<1x256xf32, #tpu.memory_space<vmem>>, %arg7: memref<256x128xbf16, #tpu.memory_space<vmem>>, %arg8: memref<1x128xf32, #tpu.memory_space<vmem>>, %arg9: memref<4096x256xbf16, #tpu.memory_space<any>>, %arg10: memref<2x128xf32, #tpu.memory_space<vmem>>, %arg11: memref<4096x256xbf16, #tpu.memory_space<vmem>>, %arg12: memref<!tpu.dma_semaphore, #tpu.memory_space<semaphore_mem>>) attributes {dimension_semantics = [], scalar_prefetch = 0 : i64, scratch_operands = 2 : i64, tpu.core_type = #tpu.core_type<tc>} {
    tpu.enqueue_dma source(%arg9 : memref<4096x256xbf16, #tpu.memory_space<any>>) target(%arg11 : memref<4096x256xbf16, #tpu.memory_space<vmem>>) target_semaphore(%arg12 : memref<!tpu.dma_semaphore, #tpu.memory_space<semaphore_mem>>)
    %c0 = arith.constant 0 : index
    %c0_0 = arith.constant 0 : index
    %0 = vector.load %arg0[%c0, %c0_0] : memref<128x36xf32, #tpu.memory_space<vmem>>, vector<128x36xf32>
    %c0_1 = arith.constant 0 : index
    %c0_2 = arith.constant 0 : index
    %1 = vector.load %arg2[%c0_1, %c0_2] : memref<36x32xf32, #tpu.memory_space<vmem>>, vector<36x32xf32>
    %cst = arith.constant dense<0.000000e+00> : vector<128x32xf32>
    %2 = tpu.matmul %0, %1, %cst {dimension_numbers = #tpu.dot_dimension_numbers<[1], [0], [0], [1], [0, 0, 1, 1], [], []>} : vector<128x36xf32>, vector<36x32xf32>, vector<128x32xf32> -> vector<128x32xf32>
    %c0_3 = arith.constant 0 : index
    %c0_4 = arith.constant 0 : index
    %3 = vector.load %arg3[%c0_3, %c0_4] : memref<1x32xf32, #tpu.memory_space<vmem>>, vector<1x32xf32>
    %4 = vector.broadcast %3 : vector<1x32xf32> to vector<128x32xf32>
    %5 = arith.addf %2, %4 : vector<128x32xf32>
    %cst_5 = arith.constant 0.000000e+00 : f32
    %6 = vector.broadcast %cst_5 : f32 to vector<128x32xf32>
    %7 = arith.maximumf %5, %6 : vector<128x32xf32>
    %c18_i32 = arith.constant 18 : i32
    %8 = tpu.dynamic_rotate %7 by %c18_i32 dim 0 : vector<128x32xf32>, i32 -> vector<128x32xf32>
    %c16_i32 = arith.constant 16 : i32
    %9 = tpu.dynamic_rotate %7 by %c16_i32 dim 0 : vector<128x32xf32>, i32 -> vector<128x32xf32>
    %c14_i32 = arith.constant 14 : i32
    %10 = tpu.dynamic_rotate %7 by %c14_i32 dim 0 : vector<128x32xf32>, i32 -> vector<128x32xf32>
    %c2_i32 = arith.constant 2 : i32
    %11 = tpu.dynamic_rotate %7 by %c2_i32 dim 0 : vector<128x32xf32>, i32 -> vector<128x32xf32>
    %c126_i32 = arith.constant 126 : i32
    %12 = tpu.dynamic_rotate %7 by %c126_i32 dim 0 : vector<128x32xf32>, i32 -> vector<128x32xf32>
    %c114_i32 = arith.constant 114 : i32
    %13 = tpu.dynamic_rotate %7 by %c114_i32 dim 0 : vector<128x32xf32>, i32 -> vector<128x32xf32>
    %c112_i32 = arith.constant 112 : i32
    %14 = tpu.dynamic_rotate %7 by %c112_i32 dim 0 : vector<128x32xf32>, i32 -> vector<128x32xf32>
    %c110_i32 = arith.constant 110 : i32
    %15 = tpu.dynamic_rotate %7 by %c110_i32 dim 0 : vector<128x32xf32>, i32 -> vector<128x32xf32>
    %16 = tpu.concatenate %8, %9, %10, %11, %7, %12, %13, %14, %15 in 1 : vector<128x32xf32>, vector<128x32xf32>, vector<128x32xf32>, vector<128x32xf32>, vector<128x32xf32>, vector<128x32xf32>, vector<128x32xf32>, vector<128x32xf32>, vector<128x32xf32> -> vector<128x288xf32>
    %c0_6 = arith.constant 0 : index
    %c0_7 = arith.constant 0 : index
    %17 = vector.load %arg1[%c0_6, %c0_7] : memref<128x288xf32, #tpu.memory_space<vmem>>, vector<128x288xf32>
    %18 = arith.mulf %16, %17 : vector<128x288xf32>
    %c0_8 = arith.constant 0 : index
    %c0_9 = arith.constant 0 : index
    %19 = vector.load %arg4[%c0_8, %c0_9] : memref<288x64xf32, #tpu.memory_space<vmem>>, vector<288x64xf32>
    %cst_10 = arith.constant dense<0.000000e+00> : vector<128x64xf32>
    %20 = tpu.matmul %18, %19, %cst_10 {dimension_numbers = #tpu.dot_dimension_numbers<[1], [0], [0], [1], [0, 0, 1, 1], [], []>} : vector<128x288xf32>, vector<288x64xf32>, vector<128x64xf32> -> vector<128x64xf32>
    %c0_11 = arith.constant 0 : index
    %c0_12 = arith.constant 0 : index
    %21 = vector.load %arg5[%c0_11, %c0_12] : memref<1x64xf32, #tpu.memory_space<vmem>>, vector<1x64xf32>
    %22 = vector.broadcast %21 : vector<1x64xf32> to vector<128x64xf32>
    %23 = arith.addf %20, %22 : vector<128x64xf32>
    %cst_13 = arith.constant 0.000000e+00 : f32
    %24 = vector.broadcast %cst_13 : f32 to vector<128x64xf32>
    %25 = arith.maximumf %23, %24 : vector<128x64xf32>
    %26 = vector.extract_strided_slice %25 {offsets = [0, 0], sizes = [2, 64], strides = [1, 1]} : vector<128x64xf32> to vector<2x64xf32>
    %27 = vector.extract_strided_slice %25 {offsets = [2, 0], sizes = [2, 64], strides = [1, 1]} : vector<128x64xf32> to vector<2x64xf32>
    %28 = vector.extract_strided_slice %25 {offsets = [4, 0], sizes = [2, 64], strides = [1, 1]} : vector<128x64xf32> to vector<2x64xf32>
    %29 = vector.extract_strided_slice %25 {offsets = [6, 0], sizes = [2, 64], strides = [1, 1]} : vector<128x64xf32> to vector<2x64xf32>
    %30 = vector.extract_strided_slice %25 {offsets = [8, 0], sizes = [2, 64], strides = [1, 1]} : vector<128x64xf32> to vector<2x64xf32>
    %31 = vector.extract_strided_slice %25 {offsets = [10, 0], sizes = [2, 64], strides = [1, 1]} : vector<128x64xf32> to vector<2x64xf32>
    %32 = vector.extract_strided_slice %25 {offsets = [12, 0], sizes = [2, 64], strides = [1, 1]} : vector<128x64xf32> to vector<2x64xf32>
    %33 = vector.extract_strided_slice %25 {offsets = [14, 0], sizes = [2, 64], strides = [1, 1]} : vector<128x64xf32> to vector<2x64xf32>
    %34 = vector.extract_strided_slice %25 {offsets = [16, 0], sizes = [2, 64], strides = [1, 1]} : vector<128x64xf32> to vector<2x64xf32>
    %35 = vector.extract_strided_slice %25 {offsets = [18, 0], sizes = [2, 64], strides = [1, 1]} : vector<128x64xf32> to vector<2x64xf32>
    %36 = vector.extract_strided_slice %25 {offsets = [20, 0], sizes = [2, 64], strides = [1, 1]} : vector<128x64xf32> to vector<2x64xf32>
    %37 = vector.extract_strided_slice %25 {offsets = [22, 0], sizes = [2, 64], strides = [1, 1]} : vector<128x64xf32> to vector<2x64xf32>
    %38 = vector.extract_strided_slice %25 {offsets = [24, 0], sizes = [2, 64], strides = [1, 1]} : vector<128x64xf32> to vector<2x64xf32>
    %39 = vector.extract_strided_slice %25 {offsets = [26, 0], sizes = [2, 64], strides = [1, 1]} : vector<128x64xf32> to vector<2x64xf32>
    %40 = vector.extract_strided_slice %25 {offsets = [28, 0], sizes = [2, 64], strides = [1, 1]} : vector<128x64xf32> to vector<2x64xf32>
    %41 = vector.extract_strided_slice %25 {offsets = [30, 0], sizes = [2, 64], strides = [1, 1]} : vector<128x64xf32> to vector<2x64xf32>
    %42 = vector.extract_strided_slice %25 {offsets = [32, 0], sizes = [2, 64], strides = [1, 1]} : vector<128x64xf32> to vector<2x64xf32>
    %43 = vector.extract_strided_slice %25 {offsets = [34, 0], sizes = [2, 64], strides = [1, 1]} : vector<128x64xf32> to vector<2x64xf32>
    %44 = vector.extract_strided_slice %25 {offsets = [36, 0], sizes = [2, 64], strides = [1, 1]} : vector<128x64xf32> to vector<2x64xf32>
    %45 = vector.extract_strided_slice %25 {offsets = [38, 0], sizes = [2, 64], strides = [1, 1]} : vector<128x64xf32> to vector<2x64xf32>
    %46 = vector.extract_strided_slice %25 {offsets = [40, 0], sizes = [2, 64], strides = [1, 1]} : vector<128x64xf32> to vector<2x64xf32>
    %47 = vector.extract_strided_slice %25 {offsets = [42, 0], sizes = [2, 64], strides = [1, 1]} : vector<128x64xf32> to vector<2x64xf32>
    %48 = vector.extract_strided_slice %25 {offsets = [44, 0], sizes = [2, 64], strides = [1, 1]} : vector<128x64xf32> to vector<2x64xf32>
    %49 = vector.extract_strided_slice %25 {offsets = [46, 0], sizes = [2, 64], strides = [1, 1]} : vector<128x64xf32> to vector<2x64xf32>
    %50 = vector.extract_strided_slice %25 {offsets = [48, 0], sizes = [2, 64], strides = [1, 1]} : vector<128x64xf32> to vector<2x64xf32>
    %51 = vector.extract_strided_slice %25 {offsets = [50, 0], sizes = [2, 64], strides = [1, 1]} : vector<128x64xf32> to vector<2x64xf32>
    %52 = vector.extract_strided_slice %25 {offsets = [52, 0], sizes = [2, 64], strides = [1, 1]} : vector<128x64xf32> to vector<2x64xf32>
    %53 = vector.extract_strided_slice %25 {offsets = [54, 0], sizes = [2, 64], strides = [1, 1]} : vector<128x64xf32> to vector<2x64xf32>
    %54 = vector.extract_strided_slice %25 {offsets = [56, 0], sizes = [2, 64], strides = [1, 1]} : vector<128x64xf32> to vector<2x64xf32>
    %55 = vector.extract_strided_slice %25 {offsets = [58, 0], sizes = [2, 64], strides = [1, 1]} : vector<128x64xf32> to vector<2x64xf32>
    %56 = vector.extract_strided_slice %25 {offsets = [60, 0], sizes = [2, 64], strides = [1, 1]} : vector<128x64xf32> to vector<2x64xf32>
    %57 = vector.extract_strided_slice %25 {offsets = [62, 0], sizes = [2, 64], strides = [1, 1]} : vector<128x64xf32> to vector<2x64xf32>
    %58 = vector.extract_strided_slice %25 {offsets = [64, 0], sizes = [2, 64], strides = [1, 1]} : vector<128x64xf32> to vector<2x64xf32>
    %59 = vector.extract_strided_slice %25 {offsets = [66, 0], sizes = [2, 64], strides = [1, 1]} : vector<128x64xf32> to vector<2x64xf32>
    %60 = vector.extract_strided_slice %25 {offsets = [68, 0], sizes = [2, 64], strides = [1, 1]} : vector<128x64xf32> to vector<2x64xf32>
    %61 = vector.extract_strided_slice %25 {offsets = [70, 0], sizes = [2, 64], strides = [1, 1]} : vector<128x64xf32> to vector<2x64xf32>
    %62 = vector.extract_strided_slice %25 {offsets = [72, 0], sizes = [2, 64], strides = [1, 1]} : vector<128x64xf32> to vector<2x64xf32>
    %63 = vector.extract_strided_slice %25 {offsets = [74, 0], sizes = [2, 64], strides = [1, 1]} : vector<128x64xf32> to vector<2x64xf32>
    %64 = vector.extract_strided_slice %25 {offsets = [76, 0], sizes = [2, 64], strides = [1, 1]} : vector<128x64xf32> to vector<2x64xf32>
    %65 = vector.extract_strided_slice %25 {offsets = [78, 0], sizes = [2, 64], strides = [1, 1]} : vector<128x64xf32> to vector<2x64xf32>
    %66 = vector.extract_strided_slice %25 {offsets = [80, 0], sizes = [2, 64], strides = [1, 1]} : vector<128x64xf32> to vector<2x64xf32>
    %67 = vector.extract_strided_slice %25 {offsets = [82, 0], sizes = [2, 64], strides = [1, 1]} : vector<128x64xf32> to vector<2x64xf32>
    %68 = vector.extract_strided_slice %25 {offsets = [84, 0], sizes = [2, 64], strides = [1, 1]} : vector<128x64xf32> to vector<2x64xf32>
    %69 = vector.extract_strided_slice %25 {offsets = [86, 0], sizes = [2, 64], strides = [1, 1]} : vector<128x64xf32> to vector<2x64xf32>
    %70 = vector.extract_strided_slice %25 {offsets = [88, 0], sizes = [2, 64], strides = [1, 1]} : vector<128x64xf32> to vector<2x64xf32>
    %71 = vector.extract_strided_slice %25 {offsets = [90, 0], sizes = [2, 64], strides = [1, 1]} : vector<128x64xf32> to vector<2x64xf32>
    %72 = vector.extract_strided_slice %25 {offsets = [92, 0], sizes = [2, 64], strides = [1, 1]} : vector<128x64xf32> to vector<2x64xf32>
    %73 = vector.extract_strided_slice %25 {offsets = [94, 0], sizes = [2, 64], strides = [1, 1]} : vector<128x64xf32> to vector<2x64xf32>
    %74 = vector.extract_strided_slice %25 {offsets = [96, 0], sizes = [2, 64], strides = [1, 1]} : vector<128x64xf32> to vector<2x64xf32>
    %75 = vector.extract_strided_slice %25 {offsets = [98, 0], sizes = [2, 64], strides = [1, 1]} : vector<128x64xf32> to vector<2x64xf32>
    %76 = vector.extract_strided_slice %25 {offsets = [100, 0], sizes = [2, 64], strides = [1, 1]} : vector<128x64xf32> to vector<2x64xf32>
    %77 = vector.extract_strided_slice %25 {offsets = [102, 0], sizes = [2, 64], strides = [1, 1]} : vector<128x64xf32> to vector<2x64xf32>
    %78 = vector.extract_strided_slice %25 {offsets = [104, 0], sizes = [2, 64], strides = [1, 1]} : vector<128x64xf32> to vector<2x64xf32>
    %79 = vector.extract_strided_slice %25 {offsets = [106, 0], sizes = [2, 64], strides = [1, 1]} : vector<128x64xf32> to vector<2x64xf32>
    %80 = vector.extract_strided_slice %25 {offsets = [108, 0], sizes = [2, 64], strides = [1, 1]} : vector<128x64xf32> to vector<2x64xf32>
    %81 = vector.extract_strided_slice %25 {offsets = [110, 0], sizes = [2, 64], strides = [1, 1]} : vector<128x64xf32> to vector<2x64xf32>
    %82 = vector.extract_strided_slice %25 {offsets = [112, 0], sizes = [2, 64], strides = [1, 1]} : vector<128x64xf32> to vector<2x64xf32>
    %83 = vector.extract_strided_slice %25 {offsets = [114, 0], sizes = [2, 64], strides = [1, 1]} : vector<128x64xf32> to vector<2x64xf32>
    %84 = vector.extract_strided_slice %25 {offsets = [116, 0], sizes = [2, 64], strides = [1, 1]} : vector<128x64xf32> to vector<2x64xf32>
    %85 = vector.extract_strided_slice %25 {offsets = [118, 0], sizes = [2, 64], strides = [1, 1]} : vector<128x64xf32> to vector<2x64xf32>
    %86 = vector.extract_strided_slice %25 {offsets = [120, 0], sizes = [2, 64], strides = [1, 1]} : vector<128x64xf32> to vector<2x64xf32>
    %87 = vector.extract_strided_slice %25 {offsets = [122, 0], sizes = [2, 64], strides = [1, 1]} : vector<128x64xf32> to vector<2x64xf32>
    %88 = vector.extract_strided_slice %25 {offsets = [124, 0], sizes = [2, 64], strides = [1, 1]} : vector<128x64xf32> to vector<2x64xf32>
    %89 = vector.extract_strided_slice %25 {offsets = [126, 0], sizes = [2, 64], strides = [1, 1]} : vector<128x64xf32> to vector<2x64xf32>
    %90 = tpu.concatenate %26, %27 in 1 : vector<2x64xf32>, vector<2x64xf32> -> vector<2x128xf32>
    %91 = tpu.concatenate %28, %29 in 1 : vector<2x64xf32>, vector<2x64xf32> -> vector<2x128xf32>
    %92 = tpu.concatenate %30, %31 in 1 : vector<2x64xf32>, vector<2x64xf32> -> vector<2x128xf32>
    %93 = tpu.concatenate %32, %33 in 1 : vector<2x64xf32>, vector<2x64xf32> -> vector<2x128xf32>
    %94 = tpu.concatenate %34, %35 in 1 : vector<2x64xf32>, vector<2x64xf32> -> vector<2x128xf32>
    %95 = tpu.concatenate %36, %37 in 1 : vector<2x64xf32>, vector<2x64xf32> -> vector<2x128xf32>
    %96 = tpu.concatenate %38, %39 in 1 : vector<2x64xf32>, vector<2x64xf32> -> vector<2x128xf32>
    %97 = tpu.concatenate %40, %41 in 1 : vector<2x64xf32>, vector<2x64xf32> -> vector<2x128xf32>
    %98 = tpu.concatenate %42, %43 in 1 : vector<2x64xf32>, vector<2x64xf32> -> vector<2x128xf32>
    %99 = tpu.concatenate %44, %45 in 1 : vector<2x64xf32>, vector<2x64xf32> -> vector<2x128xf32>
    %100 = tpu.concatenate %46, %47 in 1 : vector<2x64xf32>, vector<2x64xf32> -> vector<2x128xf32>
    %101 = tpu.concatenate %48, %49 in 1 : vector<2x64xf32>, vector<2x64xf32> -> vector<2x128xf32>
    %102 = tpu.concatenate %50, %51 in 1 : vector<2x64xf32>, vector<2x64xf32> -> vector<2x128xf32>
    %103 = tpu.concatenate %52, %53 in 1 : vector<2x64xf32>, vector<2x64xf32> -> vector<2x128xf32>
    %104 = tpu.concatenate %54, %55 in 1 : vector<2x64xf32>, vector<2x64xf32> -> vector<2x128xf32>
    %105 = tpu.concatenate %56, %57 in 1 : vector<2x64xf32>, vector<2x64xf32> -> vector<2x128xf32>
    %106 = tpu.concatenate %58, %59 in 1 : vector<2x64xf32>, vector<2x64xf32> -> vector<2x128xf32>
    %107 = tpu.concatenate %60, %61 in 1 : vector<2x64xf32>, vector<2x64xf32> -> vector<2x128xf32>
    %108 = tpu.concatenate %62, %63 in 1 : vector<2x64xf32>, vector<2x64xf32> -> vector<2x128xf32>
    %109 = tpu.concatenate %64, %65 in 1 : vector<2x64xf32>, vector<2x64xf32> -> vector<2x128xf32>
    %110 = tpu.concatenate %66, %67 in 1 : vector<2x64xf32>, vector<2x64xf32> -> vector<2x128xf32>
    %111 = tpu.concatenate %68, %69 in 1 : vector<2x64xf32>, vector<2x64xf32> -> vector<2x128xf32>
    %112 = tpu.concatenate %70, %71 in 1 : vector<2x64xf32>, vector<2x64xf32> -> vector<2x128xf32>
    %113 = tpu.concatenate %72, %73 in 1 : vector<2x64xf32>, vector<2x64xf32> -> vector<2x128xf32>
    %114 = tpu.concatenate %74, %75 in 1 : vector<2x64xf32>, vector<2x64xf32> -> vector<2x128xf32>
    %115 = tpu.concatenate %76, %77 in 1 : vector<2x64xf32>, vector<2x64xf32> -> vector<2x128xf32>
    %116 = tpu.concatenate %78, %79 in 1 : vector<2x64xf32>, vector<2x64xf32> -> vector<2x128xf32>
    %117 = tpu.concatenate %80, %81 in 1 : vector<2x64xf32>, vector<2x64xf32> -> vector<2x128xf32>
    %118 = tpu.concatenate %82, %83 in 1 : vector<2x64xf32>, vector<2x64xf32> -> vector<2x128xf32>
    %119 = tpu.concatenate %84, %85 in 1 : vector<2x64xf32>, vector<2x64xf32> -> vector<2x128xf32>
    %120 = tpu.concatenate %86, %87 in 1 : vector<2x64xf32>, vector<2x64xf32> -> vector<2x128xf32>
    %121 = tpu.concatenate %88, %89 in 1 : vector<2x64xf32>, vector<2x64xf32> -> vector<2x128xf32>
    %122 = tpu.concatenate %90, %91, %92, %93, %94, %95, %96, %97, %98, %99, %100, %101, %102, %103, %104, %105 in 1 : vector<2x128xf32>, vector<2x128xf32>, vector<2x128xf32>, vector<2x128xf32>, vector<2x128xf32>, vector<2x128xf32>, vector<2x128xf32>, vector<2x128xf32>, vector<2x128xf32>, vector<2x128xf32>, vector<2x128xf32>, vector<2x128xf32>, vector<2x128xf32>, vector<2x128xf32>, vector<2x128xf32>, vector<2x128xf32> -> vector<2x2048xf32>
    %123 = tpu.concatenate %106, %107, %108, %109, %110, %111, %112, %113, %114, %115, %116, %117, %118, %119, %120, %121 in 1 : vector<2x128xf32>, vector<2x128xf32>, vector<2x128xf32>, vector<2x128xf32>, vector<2x128xf32>, vector<2x128xf32>, vector<2x128xf32>, vector<2x128xf32>, vector<2x128xf32>, vector<2x128xf32>, vector<2x128xf32>, vector<2x128xf32>, vector<2x128xf32>, vector<2x128xf32>, vector<2x128xf32>, vector<2x128xf32> -> vector<2x2048xf32>
    %124 = tpu.concatenate %122, %123 in 1 : vector<2x2048xf32>, vector<2x2048xf32> -> vector<2x4096xf32>
    tpu.wait_dma2 semaphore(%arg12 : memref<!tpu.dma_semaphore, #tpu.memory_space<semaphore_mem>>) src(%arg9 : memref<4096x256xbf16, #tpu.memory_space<any>>) dst(%arg11 : memref<4096x256xbf16, #tpu.memory_space<vmem>>)
    %125 = arith.truncf %124 : vector<2x4096xf32> to vector<2x4096xbf16>
    %c0_14 = arith.constant 0 : index
    %c0_15 = arith.constant 0 : index
    %126 = vector.load %arg11[%c0_14, %c0_15] : memref<4096x256xbf16, #tpu.memory_space<vmem>>, vector<4096x256xbf16>
    %cst_16 = arith.constant dense<0.000000e+00> : vector<2x256xf32>
    %127 = tpu.matmul %125, %126, %cst_16 {dimension_numbers = #tpu.dot_dimension_numbers<[1], [0], [0], [1], [0, 0, 1, 1], [], []>} : vector<2x4096xbf16>, vector<4096x256xbf16>, vector<2x256xf32> -> vector<2x256xf32>
    %c0_17 = arith.constant 0 : index
    %c0_18 = arith.constant 0 : index
    %128 = vector.load %arg6[%c0_17, %c0_18] : memref<1x256xf32, #tpu.memory_space<vmem>>, vector<1x256xf32>
    %129 = vector.broadcast %128 : vector<1x256xf32> to vector<2x256xf32>
    %130 = arith.addf %127, %129 : vector<2x256xf32>
    %cst_19 = arith.constant 0.000000e+00 : f32
    %131 = vector.broadcast %cst_19 : f32 to vector<2x256xf32>
    %132 = arith.maximumf %130, %131 : vector<2x256xf32>
    %133 = arith.truncf %132 : vector<2x256xf32> to vector<2x256xbf16>
    %c0_20 = arith.constant 0 : index
    %c0_21 = arith.constant 0 : index
    %134 = vector.load %arg7[%c0_20, %c0_21] : memref<256x128xbf16, #tpu.memory_space<vmem>>, vector<256x128xbf16>
    %cst_22 = arith.constant dense<0.000000e+00> : vector<2x128xf32>
    %135 = tpu.matmul %133, %134, %cst_22 {dimension_numbers = #tpu.dot_dimension_numbers<[1], [0], [0], [1], [0, 0, 1, 1], [], []>} : vector<2x256xbf16>, vector<256x128xbf16>, vector<2x128xf32> -> vector<2x128xf32>
    %c0_23 = arith.constant 0 : index
    %c0_24 = arith.constant 0 : index
    %136 = vector.load %arg8[%c0_23, %c0_24] : memref<1x128xf32, #tpu.memory_space<vmem>>, vector<1x128xf32>
    %137 = vector.broadcast %136 : vector<1x128xf32> to vector<2x128xf32>
    %138 = arith.addf %135, %137 : vector<2x128xf32>
    %c0_25 = arith.constant 0 : index
    %c0_26 = arith.constant 0 : index
    %139 = vector.load %arg10[%c0_25, %c0_26] : memref<2x128xf32, #tpu.memory_space<vmem>>, vector<2x128xf32>
    tpu.vector_store %arg10[%c0_25, %c0_26], %138 {strides = array<i32>} : memref<2x128xf32, #tpu.memory_space<vmem>>, vector<2x128xf32>,
    return
  }
}

</mosaic_0001>

<bundles_post_ra>
// kernel: dqn_forward.1
= control target key start
LH: loop header
LB: loop body
LE: loop exit
PB: predicated region body
PF: predicated region fallthrough
CT: control target
= control target key end

     0   :  { %15 = vsyncpa [#allocation5], 0  ;;  %s12209_s0 = inlined_call_operand.vmem [shape: f32[128,36], index: 0, kind: input, shape index: {}]   ;;  %s12210_s1 = inlined_call_operand.vmem [shape: f32[128,288], index: 1, kind: input, shape index: {}]   ;;  %s12211_s2 = inlined_call_operand.vmem [shape: f32[36,32], index: 2, kind: input, shape index: {}]   ;;  %s12212_s3 = inlined_call_operand.vmem [shape: f32[1,32], index: 3, kind: input, shape index: {}]   ;;  %s12213_s4 = inlined_call_operand.vmem [shape: f32[288,64], index: 4, kind: input, shape index: {}]   ;;  %s12214_s5 = inlined_call_operand.vmem [shape: f32[1,64], index: 5, kind: input, shape index: {}]   ;;  %s12215_s6 = inlined_call_operand.vmem [shape: f32[1,256], index: 6, kind: input, shape index: {}]   ;;  %s12216_s7 = inlined_call_operand.vmem [shape: bf16[256,128], index: 7, kind: input, shape index: {}]   ;;  %s12217_s8 = inlined_call_operand.vmem [shape: f32[1,128], index: 8, kind: input, shape index: {}]   ;;  %s12218_s9 = inlined_call_operand.vmem [shape: bf16[4096,256], index: 9, kind: input, shape index: {}]   ;;  %s12219_s10 = inlined_call_operand.hbm [shape: f32[2,128], index: 10, kind: output, shape index: {}]  }
   0x1   :  { %v44_v0 = vld [vmem:[%s12218_s9] sm:$0xff]  ;;  %v46_v1 = vld [vmem:[%s12218_s9 + $0x8] sm:$0xff]  ;;  %v48_v2 = vld [vmem:[%s12218_s9 + $0x10] sm:$0xff] }
   0x2   :  { %45 = vst [vmem:[#allocation2] sm:$0xff] %v44_v0  ;;  %v50_v3 = vld [vmem:[%s12218_s9 + $0x18] sm:$0xff]  ;;  %v52_v4 = vld [vmem:[%s12218_s9 + $0x20] sm:$0xff]  ;;  %v54_v5 = vld [vmem:[%s12218_s9 + $0x28] sm:$0xff] }
   0x3   :  { %47 = vst [vmem:[#allocation2 + $0x8] sm:$0xff] %v46_v1  ;;  %v56_v6 = vld [vmem:[%s12218_s9 + $0x30] sm:$0xff]  ;;  %v58_v7 = vld [vmem:[%s12218_s9 + $0x38] sm:$0xff]  ;;  %v60_v8 = vld [vmem:[%s12218_s9 + $0x40] sm:$0xff] }
   0x4   :  { %49 = vst [vmem:[#allocation2 + $0x10] sm:$0xff] %v48_v2  ;;  %v62_v9 = vld [vmem:[%s12218_s9 + $0x48] sm:$0xff]  ;;  %v64_v10 = vld [vmem:[%s12218_s9 + $0x50] sm:$0xff]  ;;  %v66_v11 = vld [vmem:[%s12218_s9 + $0x58] sm:$0xff] }
   0x5   :  { %51 = vst [vmem:[#allocation2 + $0x18] sm:$0xff] %v50_v3  ;;  %v68_v12 = vld [vmem:[%s12218_s9 + $0x60] sm:$0xff]  ;;  %v70_v13 = vld [vmem:[%s12218_s9 + $0x68] sm:$0xff]  ;;  %v72_v14 = vld [vmem:[%s12218_s9 + $0x70] sm:$0xff] }
   0x6   :  { %53 = vst [vmem:[#allocation2 + $0x20] sm:$0xff] %v52_v4  ;;  %v74_v15 = vld [vmem:[%s12218_s9 + $0x78] sm:$0xff]  ;;  %v76_v16 = vld [vmem:[%s12218_s9 + $0x80] sm:$0xff]  ;;  %v78_v17 = vld [vmem:[%s12218_s9 + $0x88] sm:$0xff] }
   0x7   :  { %55 = vst [vmem:[#allocation2 + $0x28] sm:$0xff] %v54_v5  ;;  %v80_v18 = vld [vmem:[%s12218_s9 + $0x90] sm:$0xff]  ;;  %v82_v19 = vld [vmem:[%s12218_s9 + $0x98] sm:$0xff]  ;;  %v84_v20 = vld [vmem:[%s12218_s9 + $0xa0] sm:$0xff] }
   0x8   :  { %57 = vst [vmem:[#allocation2 + $0x30] sm:$0xff] %v56_v6  ;;  %v86_v21 = vld [vmem:[%s12218_s9 + $0xa8] sm:$0xff]  ;;  %v88_v22 = vld [vmem:[%s12218_s9 + $0xb0] sm:$0xff]  ;;  %v90_v23 = vld [vmem:[%s12218_s9 + $0xb8] sm:$0xff] }
   0x9   :  { %59 = vst [vmem:[#allocation2 + $0x38] sm:$0xff] %v58_v7  ;;  %v92_v24 = vld [vmem:[%s12218_s9 + $0xc0] sm:$0xff]  ;;  %v94_v25 = vld [vmem:[%s12218_s9 + $0xc8] sm:$0xff]  ;;  %v96_v26 = vld [vmem:[%s12218_s9 + $0xd0] sm:$0xff] }
   0xa   :  { %61 = vst [vmem:[#allocation2 + $0x40] sm:$0xff] %v60_v8  ;;  %v98_v27 = vld [vmem:[%s12218_s9 + $0xd8] sm:$0xff]  ;;  %v100_v28 = vld [vmem:[%s12218_s9 + $0xe0] sm:$0xff]  ;;  %v102_v29 = vld [vmem:[%s12218_s9 + $0xe8] sm:$0xff] }
   0xb   :  { %63 = vst [vmem:[#allocation2 + $0x48] sm:$0xff] %v62_v9  ;;  %v104_v30 = vld [vmem:[%s12218_s9 + $0xf0] sm:$0xff]  ;;  %v106_v31 = vld [vmem:[%s12218_s9 + $0xf8] sm:$0xff]  ;;  %v108_v32 = vld [vmem:[%s12218_s9 + $0x100] sm:$0xff] }
   0xc   :  { %65 = vst [vmem:[#allocation2 + $0x50] sm:$0xff] %v64_v10  ;;  %v110_v33 = vld [vmem:[%s12218_s9 + $0x108] sm:$0xff]  ;;  %v112_v34 = vld [vmem:[%s12218_s9 + $0x110] sm:$0xff]  ;;  %v114_v35 = vld [vmem:[%s12218_s9 + $0x118] sm:$0xff] }
   0xd   :  { %67 = vst [vmem:[#allocation2 + $0x58] sm:$0xff] %v66_v11  ;;  %v116_v36 = vld [vmem:[%s12218_s9 + $0x120] sm:$0xff]  ;;  %v118_v37 = vld [vmem:[%s12218_s9 + $0x128] sm:$0xff]  ;;  %v120_v38 = vld [vmem:[%s12218_s9 + $0x130] sm:$0xff] }
   0xe   :  { %69 = vst [vmem:[#allocation2 + $0x60] sm:$0xff] %v68_v12  ;;  %v122_v39 = vld [vmem:[%s12218_s9 + $0x138] sm:$0xff]  ;;  %v124_v40 = vld [vmem:[%s12218_s9 + $0x140] sm:$0xff]  ;;  %v126_v41 = vld [vmem:[%s12218_s9 + $0x148] sm:$0xff] }
   0xf   :  { %71 = vst [vmem:[#allocation2 + $0x68] sm:$0xff] %v70_v13  ;;  %v128_v42 = vld [vmem:[%s12218_s9 + $0x150] sm:$0xff]  ;;  %v130_v43 = vld [vmem:[%s12218_s9 + $0x158] sm:$0xff]  ;;  %v132_v44 = vld [vmem:[%s12218_s9 + $0x160] sm:$0xff] }
  0x10   :  { %73 = vst [vmem:[#allocation2 + $0x70] sm:$0xff] %v72_v14  ;;  %v134_v45 = vld [vmem:[%s12218_s9 + $0x168] sm:$0xff]  ;;  %v136_v46 = vld [vmem:[%s12218_s9 + $0x170] sm:$0xff]  ;;  %v138_v47 = vld [vmem:[%s12218_s9 + $0x178] sm:$0xff] }
  0x11   :  { %75 = vst [vmem:[#allocation2 + $0x78] sm:$0xff] %v74_v15  ;;  %v140_v48 = vld [vmem:[%s12218_s9 + $0x180] sm:$0xff]  ;;  %v142_v49 = vld [vmem:[%s12218_s9 + $0x188] sm:$0xff]  ;;  %v144_v50 = vld [vmem:[%s12218_s9 + $0x190] sm:$0xff] }
  0x12   :  { %77 = vst [vmem:[#allocation2 + $0x80] sm:$0xff] %v76_v16  ;;  %v146_v51 = vld [vmem:[%s12218_s9 + $0x198] sm:$0xff]  ;;  %v148_v52 = vld [vmem:[%s12218_s9 + $0x1a0] sm:$0xff]  ;;  %v150_v53 = vld [vmem:[%s12218_s9 + $0x1a8] sm:$0xff] }
  0x13   :  { %79 = vst [vmem:[#allocation2 + $0x88] sm:$0xff] %v78_v17  ;;  %v152_v54 = vld [vmem:[%s12218_s9 + $0x1b0] sm:$0xff]  ;;  %v154_v55 = vld [vmem:[%s12218_s9 + $0x1b8] sm:$0xff]  ;;  %v156_v56 = vld [vmem:[%s12218_s9 + $0x1c0] sm:$0xff] }
  0x14   :  { %81 = vst [vmem:[#allocation2 + $0x90] sm:$0xff] %v80_v18  ;;  %v158_v57 = vld [vmem:[%s12218_s9 + $0x1c8] sm:$0xff]  ;;  %v160_v58 = vld [vmem:[%s12218_s9 + $0x1d0] sm:$0xff]  ;;  %v162_v59 = vld [vmem:[%s12218_s9 + $0x1d8] sm:$0xff] }
  0x15   :  { %83 = vst [vmem:[#allocation2 + $0x98] sm:$0xff] %v82_v19  ;;  %v164_v60 = vld [vmem:[%s12218_s9 + $0x1e0] sm:$0xff]  ;;  %v166_v61 = vld [vmem:[%s12218_s9 + $0x1e8] sm:$0xff]  ;;  %v168_v62 = vld [vmem:[%s12218_s9 + $0x1f0] sm:$0xff] }
  0x16   :  { %85 = vst [vmem:[#allocation2 + $0xa0] sm:$0xff] %v84_v20  ;;  %v170_v63 = vld [vmem:[%s12218_s9 + $0x1f8] sm:$0xff]  ;;  %v172_v0 = vld [vmem:[%s12218_s9 + $0x200] sm:$0xff]  ;;  %v174_v1 = vld [vmem:[%s12218_s9 + $0x208] sm:$0xff] }
  0x17   :  { %87 = vst [vmem:[#allocation2 + $0xa8] sm:$0xff] %v86_v21  ;;  %v176_v2 = vld [vmem:[%s12218_s9 + $0x210] sm:$0xff]  ;;  %v178_v3 = vld [vmem:[%s12218_s9 + $0x218] sm:$0xff]  ;;  %v180_v4 = vld [vmem:[%s12218_s9 + $0x220] sm:$0xff] }
  0x18   :  { %89 = vst [vmem:[#allocation2 + $0xb0] sm:$0xff] %v88_v22  ;;  %v182_v5 = vld [vmem:[%s12218_s9 + $0x228] sm:$0xff]  ;;  %v184_v6 = vld [vmem:[%s12218_s9 + $0x230] sm:$0xff]  ;;  %v186_v7 = vld [vmem:[%s12218_s9 + $0x238] sm:$0xff] }
  0x19   :  { %91 = vst [vmem:[#allocation2 + $0xb8] sm:$0xff] %v90_v23  ;;  %v188_v8 = vld [vmem:[%s12218_s9 + $0x240] sm:$0xff]  ;;  %v190_v9 = vld [vmem:[%s12218_s9 + $0x248] sm:$0xff]  ;;  %v192_v10 = vld [vmem:[%s12218_s9 + $0x250] sm:$0xff] }
  0x1a   :  { %93 = vst [vmem:[#allocation2 + $0xc0] sm:$0xff] %v92_v24  ;;  %v194_v11 = vld [vmem:[%s12218_s9 + $0x258] sm:$0xff]  ;;  %v196_v12 = vld [vmem:[%s12218_s9 + $0x260] sm:$0xff]  ;;  %v198_v13 = vld [vmem:[%s12218_s9 + $0x268] sm:$0xff] }
  0x1b   :  { %95 = vst [vmem:[#allocation2 + $0xc8] sm:$0xff] %v94_v25  ;;  %v200_v14 = vld [vmem:[%s12218_s9 + $0x270] sm:$0xff]  ;;  %v202_v15 = vld [vmem:[%s12218_s9 + $0x278] sm:$0xff]  ;;  %v204_v16 = vld [vmem:[%s12218_s9 + $0x280] sm:$0xff] }
  0x1c   :  { %97 = vst [vmem:[#allocation2 + $0xd0] sm:$0xff] %v96_v26  ;;  %v206_v17 = vld [vmem:[%s12218_s9 + $0x288] sm:$0xff]  ;;  %v208_v18 = vld [vmem:[%s12218_s9 + $0x290] sm:$0xff]  ;;  %v210_v19 = vld [vmem:[%s12218_s9 + $0x298] sm:$0xff] }
  0x1d   :  { %99 = vst [vmem:[#allocation2 + $0xd8] sm:$0xff] %v98_v27  ;;  %v212_v20 = vld [vmem:[%s12218_s9 + $0x2a0] sm:$0xff]  ;;  %v214_v21 = vld [vmem:[%s12218_s9 + $0x2a8] sm:$0xff]  ;;  %v216_v22 = vld [vmem:[%s12218_s9 + $0x2b0] sm:$0xff] }
  0x1e   :  { %101 = vst [vmem:[#allocation2 + $0xe0] sm:$0xff] %v100_v28  ;;  %v218_v23 = vld [vmem:[%s12218_s9 + $0x2b8] sm:$0xff]  ;;  %v220_v24 = vld [vmem:[%s12218_s9 + $0x2c0] sm:$0xff]  ;;  %v222_v25 = vld [vmem:[%s12218_s9 + $0x2c8] sm:$0xff] }
  0x1f   :  { %103 = vst [vmem:[#allocation2 + $0xe8] sm:$0xff] %v102_v29  ;;  %v224_v26 = vld [vmem:[%s12218_s9 + $0x2d0] sm:$0xff]  ;;  %v226_v27 = vld [vmem:[%s12218_s9 + $0x2d8] sm:$0xff]  ;;  %v228_v28 = vld [vmem:[%s12218_s9 + $0x2e0] sm:$0xff] }
  0x20   :  { %105 = vst [vmem:[#allocation2 + $0xf0] sm:$0xff] %v104_v30  ;;  %v230_v29 = vld [vmem:[%s12218_s9 + $0x2e8] sm:$0xff]  ;;  %v232_v30 = vld [vmem:[%s12218_s9 + $0x2f0] sm:$0xff] }
  0x21   :  { %107 = vst [vmem:[#allocation2 + $0xf8] sm:$0xff] %v106_v31  ;;  %v234_v31 = vld [vmem:[%s12218_s9 + $0x2f8] sm:$0xff] }
  0x22   :  { %109 = vst [vmem:[#allocation2 + $0x100] sm:$0xff] %v108_v32  ;;  %v236_v32 = vld [vmem:[%s12218_s9 + $0x300] sm:$0xff] }
  0x23   :  { %111 = vst [vmem:[#allocation2 + $0x108] sm:$0xff] %v110_v33  ;;  %v238_v33 = vld [vmem:[%s12218_s9 + $0x308] sm:$0xff] }
  0x24   :  { %113 = vst [vmem:[#allocation2 + $0x110] sm:$0xff] %v112_v34  ;;  %v240_v34 = vld [vmem:[%s12218_s9 + $0x310] sm:$0xff] }
  0x25   :  { %115 = vst [vmem:[#allocation2 + $0x118] sm:$0xff] %v114_v35  ;;  %v242_v35 = vld [vmem:[%s12218_s9 + $0x318] sm:$0xff] }
  0x26   :  { %117 = vst [vmem:[#allocation2 + $0x120] sm:$0xff] %v116_v36  ;;  %v244_v36 = vld [vmem:[%s12218_s9 + $0x320] sm:$0xff] }
  0x27   :  { %119 = vst [vmem:[#allocation2 + $0x128] sm:$0xff] %v118_v37  ;;  %v246_v37 = vld [vmem:[%s12218_s9 + $0x328] sm:$0xff] }
  0x28   :  { %121 = vst [vmem:[#allocation2 + $0x130] sm:$0xff] %v120_v38  ;;  %v248_v38 = vld [vmem:[%s12218_s9 + $0x330] sm:$0xff] }
  0x29   :  { %123 = vst [vmem:[#allocation2 + $0x138] sm:$0xff] %v122_v39  ;;  %v250_v39 = vld [vmem:[%s12218_s9 + $0x338] sm:$0xff] }
  0x2a   :  { %125 = vst [vmem:[#allocation2 + $0x140] sm:$0xff] %v124_v40  ;;  %v252_v40 = vld [vmem:[%s12218_s9 + $0x340] sm:$0xff] }
  0x2b   :  { %127 = vst [vmem:[#allocation2 + $0x148] sm:$0xff] %v126_v41  ;;  %v254_v41 = vld [vmem:[%s12218_s9 + $0x348] sm:$0xff] }
  0x2c   :  { %129 = vst [vmem:[#allocation2 + $0x150] sm:$0xff] %v128_v42  ;;  %v256_v42 = vld [vmem:[%s12218_s9 + $0x350] sm:$0xff] }
  0x2d   :  { %131 = vst [vmem:[#allocation2 + $0x158] sm:$0xff] %v130_v43  ;;  %v258_v43 = vld [vmem:[%s12218_s9 + $0x358] sm:$0xff] }
  0x2e   :  { %133 = vst [vmem:[#allocation2 + $0x160] sm:$0xff] %v132_v44  ;;  %v260_v44 = vld [vmem:[%s12218_s9 + $0x360] sm:$0xff] }
  0x2f   :  { %135 = vst [vmem:[#allocation2 + $0x168] sm:$0xff] %v134_v45  ;;  %v262_v45 = vld [vmem:[%s12218_s9 + $0x368] sm:$0xff] }
  0x30   :  { %137 = vst [vmem:[#allocation2 + $0x170] sm:$0xff] %v136_v46  ;;  %v264_v46 = vld [vmem:[%s12218_s9 + $0x370] sm:$0xff] }
  0x31   :  { %139 = vst [vmem:[#allocation2 + $0x178] sm:$0xff] %v138_v47  ;;  %v266_v47 = vld [vmem:[%s12218_s9 + $0x378] sm:$0xff] }
  0x32   :  { %141 = vst [vmem:[#allocation2 + $0x180] sm:$0xff] %v140_v48  ;;  %v268_v48 = vld [vmem:[%s12218_s9 + $0x380] sm:$0xff] }
  0x33   :  { %143 = vst [vmem:[#allocation2 + $0x188] sm:$0xff] %v142_v49  ;;  %v270_v49 = vld [vmem:[%s12218_s9 + $0x388] sm:$0xff] }
  0x34   :  { %145 = vst [vmem:[#allocation2 + $0x190] sm:$0xff] %v144_v50  ;;  %v272_v50 = vld [vmem:[%s12218_s9 + $0x390] sm:$0xff] }
  0x35   :  { %147 = vst [vmem:[#allocation2 + $0x198] sm:$0xff] %v146_v51  ;;  %v274_v51 = vld [vmem:[%s12218_s9 + $0x398] sm:$0xff] }
  0x36   :  { %149 = vst [vmem:[#allocation2 + $0x1a0] sm:$0xff] %v148_v52  ;;  %v276_v52 = vld [vmem:[%s12218_s9 + $0x3a0] sm:$0xff] }
  0x37   :  { %151 = vst [vmem:[#allocation2 + $0x1a8] sm:$0xff] %v150_v53  ;;  %v278_v53 = vld [vmem:[%s12218_s9 + $0x3a8] sm:$0xff] }
  0x38   :  { %153 = vst [vmem:[#allocation2 + $0x1b0] sm:$0xff] %v152_v54  ;;  %v280_v54 = vld [vmem:[%s12218_s9 + $0x3b0] sm:$0xff] }
  0x39   :  { %155 = vst [vmem:[#allocation2 + $0x1b8] sm:$0xff] %v154_v55  ;;  %v282_v55 = vld [vmem:[%s12218_s9 + $0x3b8] sm:$0xff] }
  0x3a   :  { %157 = vst [vmem:[#allocation2 + $0x1c0] sm:$0xff] %v156_v56  ;;  %v284_v56 = vld [vmem:[%s12218_s9 + $0x3c0] sm:$0xff] }
  0x3b   :  { %159 = vst [vmem:[#allocation2 + $0x1c8] sm:$0xff] %v158_v57  ;;  %v286_v57 = vld [vmem:[%s12218_s9 + $0x3c8] sm:$0xff] }
  0x3c   :  { %161 = vst [vmem:[#allocation2 + $0x1d0] sm:$0xff] %v160_v58  ;;  %v288_v58 = vld [vmem:[%s12218_s9 + $0x3d0] sm:$0xff] }
  0x3d   :  { %163 = vst [vmem:[#allocation2 + $0x1d8] sm:$0xff] %v162_v59  ;;  %v290_v59 = vld [vmem:[%s12218_s9 + $0x3d8] sm:$0xff] }
  0x3e   :  { %165 = vst [vmem:[#allocation2 + $0x1e0] sm:$0xff] %v164_v60  ;;  %v292_v60 = vld [vmem:[%s12218_s9 + $0x3e0] sm:$0xff] }
  0x3f   :  { %167 = vst [vmem:[#allocation2 + $0x1e8] sm:$0xff] %v166_v61  ;;  %v294_v61 = vld [vmem:[%s12218_s9 + $0x3e8] sm:$0xff] }
  0x40   :  { %169 = vst [vmem:[#allocation2 + $0x1f0] sm:$0xff] %v168_v62  ;;  %v296_v62 = vld [vmem:[%s12218_s9 + $0x3f0] sm:$0xff] }
  0x41   :  { %171 = vst [vmem:[#allocation2 + $0x1f8] sm:$0xff] %v170_v63  ;;  %v298_v63 = vld [vmem:[%s12218_s9 + $0x3f8] sm:$0xff] }
  0x42   :  { %173 = vst [vmem:[#allocation2 + $0x200] sm:$0xff] %v172_v0  ;;  %v300_v0 = vld [vmem:[%s12218_s9 + $0x400] sm:$0xff] }
  0x43   :  { %175 = vst [vmem:[#allocation2 + $0x208] sm:$0xff] %v174_v1  ;;  %v302_v1 = vld [vmem:[%s12218_s9 + $0x408] sm:$0xff] }
  0x44   :  { %177 = vst [vmem:[#allocation2 + $0x210] sm:$0xff] %v176_v2  ;;  %v304_v2 = vld [vmem:[%s12218_s9 + $0x410] sm:$0xff] }
  0x45   :  { %179 = vst [vmem:[#allocation2 + $0x218] sm:$0xff] %v178_v3  ;;  %v306_v3 = vld [vmem:[%s12218_s9 + $0x418] sm:$0xff] }
  0x46   :  { %181 = vst [vmem:[#allocation2 + $0x220] sm:$0xff] %v180_v4  ;;  %v308_v4 = vld [vmem:[%s12218_s9 + $0x420] sm:$0xff] }
  0x47   :  { %183 = vst [vmem:[#allocation2 + $0x228] sm:$0xff] %v182_v5  ;;  %v310_v5 = vld [vmem:[%s12218_s9 + $0x428] sm:$0xff] }
  0x48   :  { %185 = vst [vmem:[#allocation2 + $0x230] sm:$0xff] %v184_v6  ;;  %v312_v6 = vld [vmem:[%s12218_s9 + $0x430] sm:$0xff] }
  0x49   :  { %187 = vst [vmem:[#allocation2 + $0x238] sm:$0xff] %v186_v7  ;;  %v314_v7 = vld [vmem:[%s12218_s9 + $0x438] sm:$0xff] }
  0x4a   :  { %189 = vst [vmem:[#allocation2 + $0x240] sm:$0xff] %v188_v8  ;;  %v316_v8 = vld [vmem:[%s12218_s9 + $0x440] sm:$0xff] }
  0x4b   :  { %191 = vst [vmem:[#allocation2 + $0x248] sm:$0xff] %v190_v9  ;;  %v318_v9 = vld [vmem:[%s12218_s9 + $0x448] sm:$0xff] }
  0x4c   :  { %193 = vst [vmem:[#allocation2 + $0x250] sm:$0xff] %v192_v10  ;;  %v320_v10 = vld [vmem:[%s12218_s9 + $0x450] sm:$0xff] }
  0x4d   :  { %195 = vst [vmem:[#allocation2 + $0x258] sm:$0xff] %v194_v11  ;;  %v322_v11 = vld [vmem:[%s12218_s9 + $0x458] sm:$0xff] }
  0x4e   :  { %197 = vst [vmem:[#allocation2 + $0x260] sm:$0xff] %v196_v12  ;;  %v324_v12 = vld [vmem:[%s12218_s9 + $0x460] sm:$0xff] }
  0x4f   :  { %199 = vst [vmem:[#allocation2 + $0x268] sm:$0xff] %v198_v13  ;;  %v326_v13 = vld [vmem:[%s12218_s9 + $0x468] sm:$0xff] }
  0x50   :  { %201 = vst [vmem:[#allocation2 + $0x270] sm:$0xff] %v200_v14  ;;  %v328_v14 = vld [vmem:[%s12218_s9 + $0x470] sm:$0xff] }
  0x51   :  { %203 = vst [vmem:[#allocation2 + $0x278] sm:$0xff] %v202_v15  ;;  %v330_v15 = vld [vmem:[%s12218_s9 + $0x478] sm:$0xff] }
  0x52   :  { %205 = vst [vmem:[#allocation2 + $0x280] sm:$0xff] %v204_v16  ;;  %v332_v16 = vld [vmem:[%s12218_s9 + $0x480] sm:$0xff] }
  0x53   :  { %207 = vst [vmem:[#allocation2 + $0x288] sm:$0xff] %v206_v17  ;;  %v334_v17 = vld [vmem:[%s12218_s9 + $0x488] sm:$0xff] }
  0x54   :  { %209 = vst [vmem:[#allocation2 + $0x290] sm:$0xff] %v208_v18  ;;  %v336_v18 = vld [vmem:[%s12218_s9 + $0x490] sm:$0xff] }
  0x55   :  { %211 = vst [vmem:[#allocation2 + $0x298] sm:$0xff] %v210_v19  ;;  %v338_v19 = vld [vmem:[%s12218_s9 + $0x498] sm:$0xff] }
  0x56   :  { %213 = vst [vmem:[#allocation2 + $0x2a0] sm:$0xff] %v212_v20  ;;  %v340_v20 = vld [vmem:[%s12218_s9 + $0x4a0] sm:$0xff] }
  0x57   :  { %215 = vst [vmem:[#allocation2 + $0x2a8] sm:$0xff] %v214_v21  ;;  %v342_v21 = vld [vmem:[%s12218_s9 + $0x4a8] sm:$0xff] }
  0x58   :  { %217 = vst [vmem:[#allocation2 + $0x2b0] sm:$0xff] %v216_v22  ;;  %v344_v22 = vld [vmem:[%s12218_s9 + $0x4b0] sm:$0xff] }
  0x59   :  { %219 = vst [vmem:[#allocation2 + $0x2b8] sm:$0xff] %v218_v23  ;;  %v346_v23 = vld [vmem:[%s12218_s9 + $0x4b8] sm:$0xff] }
  0x5a   :  { %221 = vst [vmem:[#allocation2 + $0x2c0] sm:$0xff] %v220_v24  ;;  %v348_v24 = vld [vmem:[%s12218_s9 + $0x4c0] sm:$0xff] }
  0x5b   :  { %223 = vst [vmem:[#allocation2 + $0x2c8] sm:$0xff] %v222_v25  ;;  %v350_v25 = vld [vmem:[%s12218_s9 + $0x4c8] sm:$0xff] }
  0x5c   :  { %225 = vst [vmem:[#allocation2 + $0x2d0] sm:$0xff] %v224_v26  ;;  %v352_v26 = vld [vmem:[%s12218_s9 + $0x4d0] sm:$0xff] }
  0x5d   :  { %227 = vst [vmem:[#allocation2 + $0x2d8] sm:$0xff] %v226_v27  ;;  %v354_v27 = vld [vmem:[%s12218_s9 + $0x4d8] sm:$0xff] }
  0x5e   :  { %229 = vst [vmem:[#allocation2 + $0x2e0] sm:$0xff] %v228_v28  ;;  %v356_v28 = vld [vmem:[%s12218_s9 + $0x4e0] sm:$0xff] }
  0x5f   :  { %231 = vst [vmem:[#allocation2 + $0x2e8] sm:$0xff] %v230_v29  ;;  %v358_v29 = vld [vmem:[%s12218_s9 + $0x4e8] sm:$0xff] }
  0x60   :  { %233 = vst [vmem:[#allocation2 + $0x2f0] sm:$0xff] %v232_v30  ;;  %v360_v30 = vld [vmem:[%s12218_s9 + $0x4f0] sm:$0xff] }
  0x61   :  { %235 = vst [vmem:[#allocation2 + $0x2f8] sm:$0xff] %v234_v31  ;;  %v362_v31 = vld [vmem:[%s12218_s9 + $0x4f8] sm:$0xff] }
  0x62   :  { %237 = vst [vmem:[#allocation2 + $0x300] sm:$0xff] %v236_v32  ;;  %v364_v32 = vld [vmem:[%s12218_s9 + $0x500] sm:$0xff] }
  0x63   :  { %239 = vst [vmem:[#allocation2 + $0x308] sm:$0xff] %v238_v33  ;;  %v366_v33 = vld [vmem:[%s12218_s9 + $0x508] sm:$0xff] }
  0x64   :  { %241 = vst [vmem:[#allocation2 + $0x310] sm:$0xff] %v240_v34  ;;  %v368_v34 = vld [vmem:[%s12218_s9 + $0x510] sm:$0xff] }
  0x65   :  { %243 = vst [vmem:[#allocation2 + $0x318] sm:$0xff] %v242_v35  ;;  %v370_v35 = vld [vmem:[%s12218_s9 + $0x518] sm:$0xff] }
  0x66   :  { %245 = vst [vmem:[#allocation2 + $0x320] sm:$0xff] %v244_v36  ;;  %v372_v36 = vld [vmem:[%s12218_s9 + $0x520] sm:$0xff] }
  0x67   :  { %247 = vst [vmem:[#allocation2 + $0x328] sm:$0xff] %v246_v37  ;;  %v374_v37 = vld [vmem:[%s12218_s9 + $0x528] sm:$0xff] }
  0x68   :  { %249 = vst [vmem:[#allocation2 + $0x330] sm:$0xff] %v248_v38  ;;  %v376_v38 = vld [vmem:[%s12218_s9 + $0x530] sm:$0xff] }
  0x69   :  { %251 = vst [vmem:[#allocation2 + $0x338] sm:$0xff] %v250_v39  ;;  %v378_v39 = vld [vmem:[%s12218_s9 + $0x538] sm:$0xff] }
  0x6a   :  { %253 = vst [vmem:[#allocation2 + $0x340] sm:$0xff] %v252_v40  ;;  %v380_v40 = vld [vmem:[%s12218_s9 + $0x540] sm:$0xff] }
  0x6b   :  { %255 = vst [vmem:[#allocation2 + $0x348] sm:$0xff] %v254_v41  ;;  %v382_v41 = vld [vmem:[%s12218_s9 + $0x548] sm:$0xff] }
  0x6c   :  { %257 = vst [vmem:[#allocation2 + $0x350] sm:$0xff] %v256_v42  ;;  %v384_v42 = vld [vmem:[%s12218_s9 + $0x550] sm:$0xff] }
  0x6d   :  { %259 = vst [vmem:[#allocation2 + $0x358] sm:$0xff] %v258_v43  ;;  %v386_v43 = vld [vmem:[%s12218_s9 + $0x558] sm:$0xff] }
  0x6e   :  { %261 = vst [vmem:[#allocation2 + $0x360] sm:$0xff] %v260_v44  ;;  %v388_v44 = vld [vmem:[%s12218_s9 + $0x560] sm:$0xff] }
  0x6f   :  { %263 = vst [vmem:[#allocation2 + $0x368] sm:$0xff] %v262_v45  ;;  %v390_v45 = vld [vmem:[%s12218_s9 + $0x568] sm:$0xff] }
  0x70   :  { %265 = vst [vmem:[#allocation2 + $0x370] sm:$0xff] %v264_v46  ;;  %v392_v46 = vld [vmem:[%s12218_s9 + $0x570] sm:$0xff] }
  0x71   :  { %267 = vst [vmem:[#allocation2 + $0x378] sm:$0xff] %v266_v47  ;;  %v394_v47 = vld [vmem:[%s12218_s9 + $0x578] sm:$0xff] }
  0x72   :  { %269 = vst [vmem:[#allocation2 + $0x380] sm:$0xff] %v268_v48  ;;  %v396_v48 = vld [vmem:[%s12218_s9 + $0x580] sm:$0xff] }
  0x73   :  { %271 = vst [vmem:[#allocation2 + $0x388] sm:$0xff] %v270_v49  ;;  %v398_v49 = vld [vmem:[%s12218_s9 + $0x588] sm:$0xff] }
  0x74   :  { %273 = vst [vmem:[#allocation2 + $0x390] sm:$0xff] %v272_v50  ;;  %v400_v50 = vld [vmem:[%s12218_s9 + $0x590] sm:$0xff] }
  0x75   :  { %275 = vst [vmem:[#allocation2 + $0x398] sm:$0xff] %v274_v51  ;;  %v402_v51 = vld [vmem:[%s12218_s9 + $0x598] sm:$0xff] }
  0x76   :  { %277 = vst [vmem:[#allocation2 + $0x3a0] sm:$0xff] %v276_v52  ;;  %v404_v52 = vld [vmem:[%s12218_s9 + $0x5a0] sm:$0xff] }
  0x77   :  { %279 = vst [vmem:[#allocation2 + $0x3a8] sm:$0xff] %v278_v53  ;;  %v406_v53 = vld [vmem:[%s12218_s9 + $0x5a8] sm:$0xff] }
  0x78   :  { %281 = vst [vmem:[#allocation2 + $0x3b0] sm:$0xff] %v280_v54  ;;  %v408_v54 = vld [vmem:[%s12218_s9 + $0x5b0] sm:$0xff] }
  0x79   :  { %283 = vst [vmem:[#allocation2 + $0x3b8] sm:$0xff] %v282_v55  ;;  %v410_v55 = vld [vmem:[%s12218_s9 + $0x5b8] sm:$0xff] }
  0x7a   :  { %285 = vst [vmem:[#allocation2 + $0x3c0] sm:$0xff] %v284_v56  ;;  %v412_v56 = vld [vmem:[%s12218_s9 + $0x5c0] sm:$0xff] }
  0x7b   :  { %287 = vst [vmem:[#allocation2 + $0x3c8] sm:$0xff] %v286_v57  ;;  %v414_v57 = vld [vmem:[%s12218_s9 + $0x5c8] sm:$0xff] }
  0x7c   :  { %289 = vst [vmem:[#allocation2 + $0x3d0] sm:$0xff] %v288_v58  ;;  %v416_v58 = vld [vmem:[%s12218_s9 + $0x5d0] sm:$0xff] }
  0x7d   :  { %291 = vst [vmem:[#allocation2 + $0x3d8] sm:$0xff] %v290_v59  ;;  %v418_v59 = vld [vmem:[%s12218_s9 + $0x5d8] sm:$0xff] }
  0x7e   :  { %293 = vst [vmem:[#allocation2 + $0x3e0] sm:$0xff] %v292_v60  ;;  %v420_v60 = vld [vmem:[%s12218_s9 + $0x5e0] sm:$0xff] }
  0x7f   :  { %295 = vst [vmem:[#allocation2 + $0x3e8] sm:$0xff] %v294_v61  ;;  %v422_v61 = vld [vmem:[%s12218_s9 + $0x5e8] sm:$0xff] }
  0x80   :  { %297 = vst [vmem:[#allocation2 + $0x3f0] sm:$0xff] %v296_v62  ;;  %v424_v62 = vld [vmem:[%s12218_s9 + $0x5f0] sm:$0xff] }
  0x81   :  { %299 = vst [vmem:[#allocation2 + $0x3f8] sm:$0xff] %v298_v63  ;;  %v426_v63 = vld [vmem:[%s12218_s9 + $0x5f8] sm:$0xff] }
  0x82   :  { %301 = vst [vmem:[#allocation2 + $0x400] sm:$0xff] %v300_v0  ;;  %v428_v0 = vld [vmem:[%s12218_s9 + $0x600] sm:$0xff] }
  0x83   :  { %303 = vst [vmem:[#allocation2 + $0x408] sm:$0xff] %v302_v1  ;;  %v430_v1 = vld [vmem:[%s12218_s9 + $0x608] sm:$0xff] }
  0x84   :  { %305 = vst [vmem:[#allocation2 + $0x410] sm:$0xff] %v304_v2  ;;  %v432_v2 = vld [vmem:[%s12218_s9 + $0x610] sm:$0xff] }
  0x85   :  { %307 = vst [vmem:[#allocation2 + $0x418] sm:$0xff] %v306_v3  ;;  %v434_v3 = vld [vmem:[%s12218_s9 + $0x618] sm:$0xff] }
  0x86   :  { %309 = vst [vmem:[#allocation2 + $0x420] sm:$0xff] %v308_v4  ;;  %v436_v4 = vld [vmem:[%s12218_s9 + $0x620] sm:$0xff] }
  0x87   :  { %311 = vst [vmem:[#allocation2 + $0x428] sm:$0xff] %v310_v5  ;;  %v438_v5 = vld [vmem:[%s12218_s9 + $0x628] sm:$0xff] }
  0x88   :  { %313 = vst [vmem:[#allocation2 + $0x430] sm:$0xff] %v312_v6  ;;  %v440_v6 = vld [vmem:[%s12218_s9 + $0x630] sm:$0xff] }
  0x89   :  { %315 = vst [vmem:[#allocation2 + $0x438] sm:$0xff] %v314_v7  ;;  %v442_v7 = vld [vmem:[%s12218_s9 + $0x638] sm:$0xff] }
  0x8a   :  { %317 = vst [vmem:[#allocation2 + $0x440] sm:$0xff] %v316_v8  ;;  %v444_v8 = vld [vmem:[%s12218_s9 + $0x640] sm:$0xff] }
  0x8b   :  { %319 = vst [vmem:[#allocation2 + $0x448] sm:$0xff] %v318_v9  ;;  %v446_v9 = vld [vmem:[%s12218_s9 + $0x648] sm:$0xff] }
  0x8c   :  { %321 = vst [vmem:[#allocation2 + $0x450] sm:$0xff] %v320_v10  ;;  %v448_v10 = vld [vmem:[%s12218_s9 + $0x650] sm:$0xff] }
  0x8d   :  { %323 = vst [vmem:[#allocation2 + $0x458] sm:$0xff] %v322_v11  ;;  %v450_v11 = vld [vmem:[%s12218_s9 + $0x658] sm:$0xff] }
  0x8e   :  { %325 = vst [vmem:[#allocation2 + $0x460] sm:$0xff] %v324_v12  ;;  %v452_v12 = vld [vmem:[%s12218_s9 + $0x660] sm:$0xff] }
  0x8f   :  { %327 = vst [vmem:[#allocation2 + $0x468] sm:$0xff] %v326_v13  ;;  %v454_v13 = vld [vmem:[%s12218_s9 + $0x668] sm:$0xff] }
  0x90   :  { %329 = vst [vmem:[#allocation2 + $0x470] sm:$0xff] %v328_v14  ;;  %v456_v14 = vld [vmem:[%s12218_s9 + $0x670] sm:$0xff] }
  0x91   :  { %331 = vst [vmem:[#allocation2 + $0x478] sm:$0xff] %v330_v15  ;;  %v458_v15 = vld [vmem:[%s12218_s9 + $0x678] sm:$0xff] }
  0x92   :  { %333 = vst [vmem:[#allocation2 + $0x480] sm:$0xff] %v332_v16  ;;  %v460_v16 = vld [vmem:[%s12218_s9 + $0x680] sm:$0xff] }
  0x93   :  { %335 = vst [vmem:[#allocation2 + $0x488] sm:$0xff] %v334_v17  ;;  %v462_v17 = vld [vmem:[%s12218_s9 + $0x688] sm:$0xff] }
  0x94   :  { %337 = vst [vmem:[#allocation2 + $0x490] sm:$0xff] %v336_v18  ;;  %v464_v18 = vld [vmem:[%s12218_s9 + $0x690] sm:$0xff] }
  0x95   :  { %339 = vst [vmem:[#allocation2 + $0x498] sm:$0xff] %v338_v19  ;;  %v466_v19 = vld [vmem:[%s12218_s9 + $0x698] sm:$0xff] }
  0x96   :  { %341 = vst [vmem:[#allocation2 + $0x4a0] sm:$0xff] %v340_v20  ;;  %v468_v20 = vld [vmem:[%s12218_s9 + $0x6a0] sm:$0xff] }
  0x97   :  { %343 = vst [vmem:[#allocation2 + $0x4a8] sm:$0xff] %v342_v21  ;;  %v470_v21 = vld [vmem:[%s12218_s9 + $0x6a8] sm:$0xff] }
  0x98   :  { %345 = vst [vmem:[#allocation2 + $0x4b0] sm:$0xff] %v344_v22  ;;  %v472_v22 = vld [vmem:[%s12218_s9 + $0x6b0] sm:$0xff] }
  0x99   :  { %347 = vst [vmem:[#allocation2 + $0x4b8] sm:$0xff] %v346_v23  ;;  %v474_v23 = vld [vmem:[%s12218_s9 + $0x6b8] sm:$0xff] }
  0x9a   :  { %349 = vst [vmem:[#allocation2 + $0x4c0] sm:$0xff] %v348_v24  ;;  %v476_v24 = vld [vmem:[%s12218_s9 + $0x6c0] sm:$0xff] }
  0x9b   :  { %351 = vst [vmem:[#allocation2 + $0x4c8] sm:$0xff] %v350_v25  ;;  %v478_v25 = vld [vmem:[%s12218_s9 + $0x6c8] sm:$0xff] }
  0x9c   :  { %353 = vst [vmem:[#allocation2 + $0x4d0] sm:$0xff] %v352_v26  ;;  %v480_v26 = vld [vmem:[%s12218_s9 + $0x6d0] sm:$0xff] }
  0x9d   :  { %355 = vst [vmem:[#allocation2 + $0x4d8] sm:$0xff] %v354_v27  ;;  %v482_v27 = vld [vmem:[%s12218_s9 + $0x6d8] sm:$0xff] }
  0x9e   :  { %357 = vst [vmem:[#allocation2 + $0x4e0] sm:$0xff] %v356_v28  ;;  %v484_v28 = vld [vmem:[%s12218_s9 + $0x6e0] sm:$0xff] }
  0x9f   :  { %359 = vst [vmem:[#allocation2 + $0x4e8] sm:$0xff] %v358_v29  ;;  %v486_v29 = vld [vmem:[%s12218_s9 + $0x6e8] sm:$0xff] }
  0xa0   :  { %361 = vst [vmem:[#allocation2 + $0x4f0] sm:$0xff] %v360_v30  ;;  %v488_v30 = vld [vmem:[%s12218_s9 + $0x6f0] sm:$0xff] }
  0xa1   :  { %363 = vst [vmem:[#allocation2 + $0x4f8] sm:$0xff] %v362_v31  ;;  %v490_v31 = vld [vmem:[%s12218_s9 + $0x6f8] sm:$0xff] }
  0xa2   :  { %365 = vst [vmem:[#allocation2 + $0x500] sm:$0xff] %v364_v32  ;;  %v492_v32 = vld [vmem:[%s12218_s9 + $0x700] sm:$0xff] }
  0xa3   :  { %367 = vst [vmem:[#allocation2 + $0x508] sm:$0xff] %v366_v33  ;;  %v494_v33 = vld [vmem:[%s12218_s9 + $0x708] sm:$0xff] }
  0xa4   :  { %369 = vst [vmem:[#allocation2 + $0x510] sm:$0xff] %v368_v34  ;;  %v496_v34 = vld [vmem:[%s12218_s9 + $0x710] sm:$0xff] }
  0xa5   :  { %371 = vst [vmem:[#allocation2 + $0x518] sm:$0xff] %v370_v35  ;;  %v498_v35 = vld [vmem:[%s12218_s9 + $0x718] sm:$0xff] }
  0xa6   :  { %373 = vst [vmem:[#allocation2 + $0x520] sm:$0xff] %v372_v36  ;;  %v500_v36 = vld [vmem:[%s12218_s9 + $0x720] sm:$0xff] }
  0xa7   :  { %375 = vst [vmem:[#allocation2 + $0x528] sm:$0xff] %v374_v37  ;;  %v502_v37 = vld [vmem:[%s12218_s9 + $0x728] sm:$0xff] }
  0xa8   :  { %377 = vst [vmem:[#allocation2 + $0x530] sm:$0xff] %v376_v38  ;;  %v504_v38 = vld [vmem:[%s12218_s9 + $0x730] sm:$0xff] }
  0xa9   :  { %379 = vst [vmem:[#allocation2 + $0x538] sm:$0xff] %v378_v39  ;;  %v506_v39 = vld [vmem:[%s12218_s9 + $0x738] sm:$0xff] }
  0xaa   :  { %381 = vst [vmem:[#allocation2 + $0x540] sm:$0xff] %v380_v40  ;;  %v508_v40 = vld [vmem:[%s12218_s9 + $0x740] sm:$0xff] }
  0xab   :  { %383 = vst [vmem:[#allocation2 + $0x548] sm:$0xff] %v382_v41  ;;  %v510_v41 = vld [vmem:[%s12218_s9 + $0x748] sm:$0xff] }
  0xac   :  { %385 = vst [vmem:[#allocation2 + $0x550] sm:$0xff] %v384_v42  ;;  %v512_v42 = vld [vmem:[%s12218_s9 + $0x750] sm:$0xff] }
  0xad   :  { %387 = vst [vmem:[#allocation2 + $0x558] sm:$0xff] %v386_v43  ;;  %v514_v43 = vld [vmem:[%s12218_s9 + $0x758] sm:$0xff] }
  0xae   :  { %389 = vst [vmem:[#allocation2 + $0x560] sm:$0xff] %v388_v44  ;;  %v516_v44 = vld [vmem:[%s12218_s9 + $0x760] sm:$0xff] }
  0xaf   :  { %391 = vst [vmem:[#allocation2 + $0x568] sm:$0xff] %v390_v45  ;;  %v518_v45 = vld [vmem:[%s12218_s9 + $0x768] sm:$0xff] }
  0xb0   :  { %393 = vst [vmem:[#allocation2 + $0x570] sm:$0xff] %v392_v46  ;;  %v520_v46 = vld [vmem:[%s12218_s9 + $0x770] sm:$0xff] }
  0xb1   :  { %395 = vst [vmem:[#allocation2 + $0x578] sm:$0xff] %v394_v47  ;;  %v522_v47 = vld [vmem:[%s12218_s9 + $0x778] sm:$0xff] }
  0xb2   :  { %397 = vst [vmem:[#allocation2 + $0x580] sm:$0xff] %v396_v48  ;;  %v524_v48 = vld [vmem:[%s12218_s9 + $0x780] sm:$0xff] }
  0xb3   :  { %399 = vst [vmem:[#allocation2 + $0x588] sm:$0xff] %v398_v49  ;;  %v526_v49 = vld [vmem:[%s12218_s9 + $0x788] sm:$0xff] }
  0xb4   :  { %401 = vst [vmem:[#allocation2 + $0x590] sm:$0xff] %v400_v50  ;;  %v528_v50 = vld [vmem:[%s12218_s9 + $0x790] sm:$0xff] }
  0xb5   :  { %403 = vst [vmem:[#allocation2 + $0x598] sm:$0xff] %v402_v51  ;;  %v530_v51 = vld [vmem:[%s12218_s9 + $0x798] sm:$0xff] }
  0xb6   :  { %405 = vst [vmem:[#allocation2 + $0x5a0] sm:$0xff] %v404_v52  ;;  %v532_v52 = vld [vmem:[%s12218_s9 + $0x7a0] sm:$0xff] }
  0xb7   :  { %407 = vst [vmem:[#allocation2 + $0x5a8] sm:$0xff] %v406_v53  ;;  %v534_v53 = vld [vmem:[%s12218_s9 + $0x7a8] sm:$0xff] }
  0xb8   :  { %409 = vst [vmem:[#allocation2 + $0x5b0] sm:$0xff] %v408_v54  ;;  %v536_v54 = vld [vmem:[%s12218_s9 + $0x7b0] sm:$0xff] }
  0xb9   :  { %411 = vst [vmem:[#allocation2 + $0x5b8] sm:$0xff] %v410_v55  ;;  %v538_v55 = vld [vmem:[%s12218_s9 + $0x7b8] sm:$0xff] }
  0xba   :  { %413 = vst [vmem:[#allocation2 + $0x5c0] sm:$0xff] %v412_v56  ;;  %v540_v56 = vld [vmem:[%s12218_s9 + $0x7c0] sm:$0xff] }
  0xbb   :  { %415 = vst [vmem:[#allocation2 + $0x5c8] sm:$0xff] %v414_v57  ;;  %v542_v57 = vld [vmem:[%s12218_s9 + $0x7c8] sm:$0xff] }
  0xbc   :  { %417 = vst [vmem:[#allocation2 + $0x5d0] sm:$0xff] %v416_v58  ;;  %v544_v58 = vld [vmem:[%s12218_s9 + $0x7d0] sm:$0xff] }
  0xbd   :  { %419 = vst [vmem:[#allocation2 + $0x5d8] sm:$0xff] %v418_v59  ;;  %v546_v59 = vld [vmem:[%s12218_s9 + $0x7d8] sm:$0xff] }
  0xbe   :  { %421 = vst [vmem:[#allocation2 + $0x5e0] sm:$0xff] %v420_v60  ;;  %v548_v60 = vld [vmem:[%s12218_s9 + $0x7e0] sm:$0xff] }
  0xbf   :  { %423 = vst [vmem:[#allocation2 + $0x5e8] sm:$0xff] %v422_v61  ;;  %v550_v61 = vld [vmem:[%s12218_s9 + $0x7e8] sm:$0xff] }
  0xc0   :  { %425 = vst [vmem:[#allocation2 + $0x5f0] sm:$0xff] %v424_v62  ;;  %v552_v62 = vld [vmem:[%s12218_s9 + $0x7f0] sm:$0xff] }
  0xc1   :  { %427 = vst [vmem:[#allocation2 + $0x5f8] sm:$0xff] %v426_v63  ;;  %v554_v63 = vld [vmem:[%s12218_s9 + $0x7f8] sm:$0xff] }
  0xc2   :  { %429 = vst [vmem:[#allocation2 + $0x600] sm:$0xff] %v428_v0  ;;  %v556_v0 = vld [vmem:[%s12218_s9 + $0x800] sm:$0xff] }
  0xc3   :  { %431 = vst [vmem:[#allocation2 + $0x608] sm:$0xff] %v430_v1  ;;  %v558_v1 = vld [vmem:[%s12218_s9 + $0x808] sm:$0xff] }
  0xc4   :  { %433 = vst [vmem:[#allocation2 + $0x610] sm:$0xff] %v432_v2  ;;  %v560_v2 = vld [vmem:[%s12218_s9 + $0x810] sm:$0xff] }
  0xc5   :  { %435 = vst [vmem:[#allocation2 + $0x618] sm:$0xff] %v434_v3  ;;  %v562_v3 = vld [vmem:[%s12218_s9 + $0x818] sm:$0xff] }
  0xc6   :  { %437 = vst [vmem:[#allocation2 + $0x620] sm:$0xff] %v436_v4  ;;  %v564_v4 = vld [vmem:[%s12218_s9 + $0x820] sm:$0xff] }
  0xc7   :  { %439 = vst [vmem:[#allocation2 + $0x628] sm:$0xff] %v438_v5  ;;  %v566_v5 = vld [vmem:[%s12218_s9 + $0x828] sm:$0xff] }
  0xc8   :  { %441 = vst [vmem:[#allocation2 + $0x630] sm:$0xff] %v440_v6  ;;  %v568_v6 = vld [vmem:[%s12218_s9 + $0x830] sm:$0xff] }
  0xc9   :  { %443 = vst [vmem:[#allocation2 + $0x638] sm:$0xff] %v442_v7  ;;  %v570_v7 = vld [vmem:[%s12218_s9 + $0x838] sm:$0xff] }
  0xca   :  { %445 = vst [vmem:[#allocation2 + $0x640] sm:$0xff] %v444_v8  ;;  %v572_v8 = vld [vmem:[%s12218_s9 + $0x840] sm:$0xff] }
  0xcb   :  { %447 = vst [vmem:[#allocation2 + $0x648] sm:$0xff] %v446_v9  ;;  %v574_v9 = vld [vmem:[%s12218_s9 + $0x848] sm:$0xff] }
  0xcc   :  { %449 = vst [vmem:[#allocation2 + $0x650] sm:$0xff] %v448_v10  ;;  %v576_v10 = vld [vmem:[%s12218_s9 + $0x850] sm:$0xff] }
  0xcd   :  { %451 = vst [vmem:[#allocation2 + $0x658] sm:$0xff] %v450_v11  ;;  %v578_v11 = vld [vmem:[%s12218_s9 + $0x858] sm:$0xff] }
  0xce   :  { %453 = vst [vmem:[#allocation2 + $0x660] sm:$0xff] %v452_v12  ;;  %v580_v12 = vld [vmem:[%s12218_s9 + $0x860] sm:$0xff] }
  0xcf   :  { %455 = vst [vmem:[#allocation2 + $0x668] sm:$0xff] %v454_v13  ;;  %v582_v13 = vld [vmem:[%s12218_s9 + $0x868] sm:$0xff] }
  0xd0   :  { %457 = vst [vmem:[#allocation2 + $0x670] sm:$0xff] %v456_v14  ;;  %v584_v14 = vld [vmem:[%s12218_s9 + $0x870] sm:$0xff] }
  0xd1   :  { %459 = vst [vmem:[#allocation2 + $0x678] sm:$0xff] %v458_v15  ;;  %v586_v15 = vld [vmem:[%s12218_s9 + $0x878] sm:$0xff] }
  0xd2   :  { %461 = vst [vmem:[#allocation2 + $0x680] sm:$0xff] %v460_v16  ;;  %v588_v16 = vld [vmem:[%s12218_s9 + $0x880] sm:$0xff] }
  0xd3   :  { %463 = vst [vmem:[#allocation2 + $0x688] sm:$0xff] %v462_v17  ;;  %v590_v17 = vld [vmem:[%s12218_s9 + $0x888] sm:$0xff] }
  0xd4   :  { %465 = vst [vmem:[#allocation2 + $0x690] sm:$0xff] %v464_v18  ;;  %v592_v18 = vld [vmem:[%s12218_s9 + $0x890] sm:$0xff] }
  0xd5   :  { %467 = vst [vmem:[#allocation2 + $0x698] sm:$0xff] %v466_v19  ;;  %v594_v19 = vld [vmem:[%s12218_s9 + $0x898] sm:$0xff] }
  0xd6   :  { %469 = vst [vmem:[#allocation2 + $0x6a0] sm:$0xff] %v468_v20  ;;  %v596_v20 = vld [vmem:[%s12218_s9 + $0x8a0] sm:$0xff] }
  0xd7   :  { %471 = vst [vmem:[#allocation2 + $0x6a8] sm:$0xff] %v470_v21  ;;  %v598_v21 = vld [vmem:[%s12218_s9 + $0x8a8] sm:$0xff] }
  0xd8   :  { %473 = vst [vmem:[#allocation2 + $0x6b0] sm:$0xff] %v472_v22  ;;  %v600_v22 = vld [vmem:[%s12218_s9 + $0x8b0] sm:$0xff] }
  0xd9   :  { %475 = vst [vmem:[#allocation2 + $0x6b8] sm:$0xff] %v474_v23  ;;  %v602_v23 = vld [vmem:[%s12218_s9 + $0x8b8] sm:$0xff] }
  0xda   :  { %477 = vst [vmem:[#allocation2 + $0x6c0] sm:$0xff] %v476_v24  ;;  %v604_v24 = vld [vmem:[%s12218_s9 + $0x8c0] sm:$0xff] }
  0xdb   :  { %479 = vst [vmem:[#allocation2 + $0x6c8] sm:$0xff] %v478_v25  ;;  %v606_v25 = vld [vmem:[%s12218_s9 + $0x8c8] sm:$0xff] }
  0xdc   :  { %481 = vst [vmem:[#allocation2 + $0x6d0] sm:$0xff] %v480_v26  ;;  %v608_v26 = vld [vmem:[%s12218_s9 + $0x8d0] sm:$0xff] }
  0xdd   :  { %483 = vst [vmem:[#allocation2 + $0x6d8] sm:$0xff] %v482_v27  ;;  %v610_v27 = vld [vmem:[%s12218_s9 + $0x8d8] sm:$0xff] }
  0xde   :  { %485 = vst [vmem:[#allocation2 + $0x6e0] sm:$0xff] %v484_v28  ;;  %v612_v28 = vld [vmem:[%s12218_s9 + $0x8e0] sm:$0xff] }
  0xdf   :  { %487 = vst [vmem:[#allocation2 + $0x6e8] sm:$0xff] %v486_v29  ;;  %v614_v29 = vld [vmem:[%s12218_s9 + $0x8e8] sm:$0xff] }
  0xe0   :  { %489 = vst [vmem:[#allocation2 + $0x6f0] sm:$0xff] %v488_v30  ;;  %v616_v30 = vld [vmem:[%s12218_s9 + $0x8f0] sm:$0xff] }
  0xe1   :  { %491 = vst [vmem:[#allocation2 + $0x6f8] sm:$0xff] %v490_v31  ;;  %v618_v31 = vld [vmem:[%s12218_s9 + $0x8f8] sm:$0xff] }
  0xe2   :  { %493 = vst [vmem:[#allocation2 + $0x700] sm:$0xff] %v492_v32  ;;  %v620_v32 = vld [vmem:[%s12218_s9 + $0x900] sm:$0xff] }
  0xe3   :  { %495 = vst [vmem:[#allocation2 + $0x708] sm:$0xff] %v494_v33  ;;  %v622_v33 = vld [vmem:[%s12218_s9 + $0x908] sm:$0xff] }
  0xe4   :  { %497 = vst [vmem:[#allocation2 + $0x710] sm:$0xff] %v496_v34  ;;  %v624_v34 = vld [vmem:[%s12218_s9 + $0x910] sm:$0xff] }
  0xe5   :  { %499 = vst [vmem:[#allocation2 + $0x718] sm:$0xff] %v498_v35  ;;  %v626_v35 = vld [vmem:[%s12218_s9 + $0x918] sm:$0xff] }
  0xe6   :  { %501 = vst [vmem:[#allocation2 + $0x720] sm:$0xff] %v500_v36  ;;  %v628_v36 = vld [vmem:[%s12218_s9 + $0x920] sm:$0xff] }
  0xe7   :  { %503 = vst [vmem:[#allocation2 + $0x728] sm:$0xff] %v502_v37  ;;  %v630_v37 = vld [vmem:[%s12218_s9 + $0x928] sm:$0xff] }
  0xe8   :  { %505 = vst [vmem:[#allocation2 + $0x730] sm:$0xff] %v504_v38  ;;  %v632_v38 = vld [vmem:[%s12218_s9 + $0x930] sm:$0xff] }
  0xe9   :  { %507 = vst [vmem:[#allocation2 + $0x738] sm:$0xff] %v506_v39  ;;  %v634_v39 = vld [vmem:[%s12218_s9 + $0x938] sm:$0xff] }
  0xea   :  { %509 = vst [vmem:[#allocation2 + $0x740] sm:$0xff] %v508_v40  ;;  %v636_v40 = vld [vmem:[%s12218_s9 + $0x940] sm:$0xff] }
  0xeb   :  { %511 = vst [vmem:[#allocation2 + $0x748] sm:$0xff] %v510_v41  ;;  %v638_v41 = vld [vmem:[%s12218_s9 + $0x948] sm:$0xff] }
  0xec   :  { %513 = vst [vmem:[#allocation2 + $0x750] sm:$0xff] %v512_v42  ;;  %v640_v42 = vld [vmem:[%s12218_s9 + $0x950] sm:$0xff] }
  0xed   :  { %515 = vst [vmem:[#allocation2 + $0x758] sm:$0xff] %v514_v43  ;;  %v642_v43 = vld [vmem:[%s12218_s9 + $0x958] sm:$0xff] }
  0xee   :  { %517 = vst [vmem:[#allocation2 + $0x760] sm:$0xff] %v516_v44  ;;  %v644_v44 = vld [vmem:[%s12218_s9 + $0x960] sm:$0xff] }
  0xef   :  { %519 = vst [vmem:[#allocation2 + $0x768] sm:$0xff] %v518_v45  ;;  %v646_v45 = vld [vmem:[%s12218_s9 + $0x968] sm:$0xff] }
  0xf0   :  { %521 = vst [vmem:[#allocation2 + $0x770] sm:$0xff] %v520_v46  ;;  %v648_v46 = vld [vmem:[%s12218_s9 + $0x970] sm:$0xff] }
  0xf1   :  { %523 = vst [vmem:[#allocation2 + $0x778] sm:$0xff] %v522_v47  ;;  %v650_v47 = vld [vmem:[%s12218_s9 + $0x978] sm:$0xff] }
  0xf2   :  { %525 = vst [vmem:[#allocation2 + $0x780] sm:$0xff] %v524_v48  ;;  %v652_v48 = vld [vmem:[%s12218_s9 + $0x980] sm:$0xff] }
  0xf3   :  { %527 = vst [vmem:[#allocation2 + $0x788] sm:$0xff] %v526_v49  ;;  %v654_v49 = vld [vmem:[%s12218_s9 + $0x988] sm:$0xff] }
  0xf4   :  { %529 = vst [vmem:[#allocation2 + $0x790] sm:$0xff] %v528_v50  ;;  %v656_v50 = vld [vmem:[%s12218_s9 + $0x990] sm:$0xff] }
  0xf5   :  { %531 = vst [vmem:[#allocation2 + $0x798] sm:$0xff] %v530_v51  ;;  %v658_v51 = vld [vmem:[%s12218_s9 + $0x998] sm:$0xff] }
  0xf6   :  { %533 = vst [vmem:[#allocation2 + $0x7a0] sm:$0xff] %v532_v52  ;;  %v660_v52 = vld [vmem:[%s12218_s9 + $0x9a0] sm:$0xff] }
  0xf7   :  { %535 = vst [vmem:[#allocation2 + $0x7a8] sm:$0xff] %v534_v53  ;;  %v662_v53 = vld [vmem:[%s12218_s9 + $0x9a8] sm:$0xff] }
  0xf8   :  { %537 = vst [vmem:[#allocation2 + $0x7b0] sm:$0xff] %v536_v54  ;;  %v664_v54 = vld [vmem:[%s12218_s9 + $0x9b0] sm:$0xff] }
  0xf9   :  { %539 = vst [vmem:[#allocation2 + $0x7b8] sm:$0xff] %v538_v55  ;;  %v666_v55 = vld [vmem:[%s12218_s9 + $0x9b8] sm:$0xff] }
  0xfa   :  { %541 = vst [vmem:[#allocation2 + $0x7c0] sm:$0xff] %v540_v56  ;;  %v668_v56 = vld [vmem:[%s12218_s9 + $0x9c0] sm:$0xff] }
  0xfb   :  { %543 = vst [vmem:[#allocation2 + $0x7c8] sm:$0xff] %v542_v57  ;;  %v670_v57 = vld [vmem:[%s12218_s9 + $0x9c8] sm:$0xff] }
  0xfc   :  { %545 = vst [vmem:[#allocation2 + $0x7d0] sm:$0xff] %v544_v58  ;;  %v672_v58 = vld [vmem:[%s12218_s9 + $0x9d0] sm:$0xff] }
  0xfd   :  { %547 = vst [vmem:[#allocation2 + $0x7d8] sm:$0xff] %v546_v59  ;;  %v674_v59 = vld [vmem:[%s12218_s9 + $0x9d8] sm:$0xff] }
  0xfe   :  { %549 = vst [vmem:[#allocation2 + $0x7e0] sm:$0xff] %v548_v60  ;;  %v676_v60 = vld [vmem:[%s12218_s9 + $0x9e0] sm:$0xff] }
  0xff   :  { %551 = vst [vmem:[#allocation2 + $0x7e8] sm:$0xff] %v550_v61  ;;  %v678_v61 = vld [vmem:[%s12218_s9 + $0x9e8] sm:$0xff] }
 0x100   :  { %553 = vst [vmem:[#allocation2 + $0x7f0] sm:$0xff] %v552_v62  ;;  %v680_v62 = vld [vmem:[%s12218_s9 + $0x9f0] sm:$0xff] }
 0x101   :  { %555 = vst [vmem:[#allocation2 + $0x7f8] sm:$0xff] %v554_v63  ;;  %v682_v63 = vld [vmem:[%s12218_s9 + $0x9f8] sm:$0xff] }
 0x102   :  { %557 = vst [vmem:[#allocation2 + $0x800] sm:$0xff] %v556_v0  ;;  %v684_v0 = vld [vmem:[%s12218_s9 + $0xa00] sm:$0xff] }
 0x103   :  { %559 = vst [vmem:[#allocation2 + $0x808] sm:$0xff] %v558_v1  ;;  %v686_v1 = vld [vmem:[%s12218_s9 + $0xa08] sm:$0xff] }
 0x104   :  { %561 = vst [vmem:[#allocation2 + $0x810] sm:$0xff] %v560_v2  ;;  %v688_v2 = vld [vmem:[%s12218_s9 + $0xa10] sm:$0xff] }
 0x105   :  { %563 = vst [vmem:[#allocation2 + $0x818] sm:$0xff] %v562_v3  ;;  %v690_v3 = vld [vmem:[%s12218_s9 + $0xa18] sm:$0xff] }
 0x106   :  { %565 = vst [vmem:[#allocation2 + $0x820] sm:$0xff] %v564_v4  ;;  %v692_v4 = vld [vmem:[%s12218_s9 + $0xa20] sm:$0xff] }
 0x107   :  { %567 = vst [vmem:[#allocation2 + $0x828] sm:$0xff] %v566_v5  ;;  %v694_v5 = vld [vmem:[%s12218_s9 + $0xa28] sm:$0xff] }
 0x108   :  { %569 = vst [vmem:[#allocation2 + $0x830] sm:$0xff] %v568_v6  ;;  %v696_v6 = vld [vmem:[%s12218_s9 + $0xa30] sm:$0xff] }
 0x109   :  { %571 = vst [vmem:[#allocation2 + $0x838] sm:$0xff] %v570_v7  ;;  %v698_v7 = vld [vmem:[%s12218_s9 + $0xa38] sm:$0xff] }
 0x10a   :  { %573 = vst [vmem:[#allocation2 + $0x840] sm:$0xff] %v572_v8  ;;  %v700_v8 = vld [vmem:[%s12218_s9 + $0xa40] sm:$0xff] }
 0x10b   :  { %575 = vst [vmem:[#allocation2 + $0x848] sm:$0xff] %v574_v9  ;;  %v702_v9 = vld [vmem:[%s12218_s9 + $0xa48] sm:$0xff] }
 0x10c   :  { %577 = vst [vmem:[#allocation2 + $0x850] sm:$0xff] %v576_v10  ;;  %v704_v10 = vld [vmem:[%s12218_s9 + $0xa50] sm:$0xff] }
 0x10d   :  { %579 = vst [vmem:[#allocation2 + $0x858] sm:$0xff] %v578_v11  ;;  %v706_v11 = vld [vmem:[%s12218_s9 + $0xa58] sm:$0xff] }
 0x10e   :  { %581 = vst [vmem:[#allocation2 + $0x860] sm:$0xff] %v580_v12  ;;  %v708_v12 = vld [vmem:[%s12218_s9 + $0xa60] sm:$0xff] }
 0x10f   :  { %583 = vst [vmem:[#allocation2 + $0x868] sm:$0xff] %v582_v13  ;;  %v710_v13 = vld [vmem:[%s12218_s9 + $0xa68] sm:$0xff] }
 0x110   :  { %585 = vst [vmem:[#allocation2 + $0x870] sm:$0xff] %v584_v14  ;;  %v712_v14 = vld [vmem:[%s12218_s9 + $0xa70] sm:$0xff] }
 0x111   :  { %587 = vst [vmem:[#allocation2 + $0x878] sm:$0xff] %v586_v15  ;;  %v714_v15 = vld [vmem:[%s12218_s9 + $0xa78] sm:$0xff] }
 0x112   :  { %589 = vst [vmem:[#allocation2 + $0x880] sm:$0xff] %v588_v16  ;;  %v716_v16 = vld [vmem:[%s12218_s9 + $0xa80] sm:$0xff] }
 0x113   :  { %591 = vst [vmem:[#allocation2 + $0x888] sm:$0xff] %v590_v17  ;;  %v718_v17 = vld [vmem:[%s12218_s9 + $0xa88] sm:$0xff] }
 0x114   :  { %593 = vst [vmem:[#allocation2 + $0x890] sm:$0xff] %v592_v18  ;;  %v720_v18 = vld [vmem:[%s12218_s9 + $0xa90] sm:$0xff] }
 0x115   :  { %595 = vst [vmem:[#allocation2 + $0x898] sm:$0xff] %v594_v19  ;;  %v722_v19 = vld [vmem:[%s12218_s9 + $0xa98] sm:$0xff] }
 0x116   :  { %597 = vst [vmem:[#allocation2 + $0x8a0] sm:$0xff] %v596_v20  ;;  %v724_v20 = vld [vmem:[%s12218_s9 + $0xaa0] sm:$0xff] }
 0x117   :  { %599 = vst [vmem:[#allocation2 + $0x8a8] sm:$0xff] %v598_v21  ;;  %v726_v21 = vld [vmem:[%s12218_s9 + $0xaa8] sm:$0xff] }
 0x118   :  { %601 = vst [vmem:[#allocation2 + $0x8b0] sm:$0xff] %v600_v22  ;;  %v728_v22 = vld [vmem:[%s12218_s9 + $0xab0] sm:$0xff] }
 0x119   :  { %603 = vst [vmem:[#allocation2 + $0x8b8] sm:$0xff] %v602_v23  ;;  %v730_v23 = vld [vmem:[%s12218_s9 + $0xab8] sm:$0xff] }
 0x11a   :  { %605 = vst [vmem:[#allocation2 + $0x8c0] sm:$0xff] %v604_v24  ;;  %v732_v24 = vld [vmem:[%s12218_s9 + $0xac0] sm:$0xff] }
 0x11b   :  { %607 = vst [vmem:[#allocation2 + $0x8c8] sm:$0xff] %v606_v25  ;;  %v734_v25 = vld [vmem:[%s12218_s9 + $0xac8] sm:$0xff] }
 0x11c   :  { %609 = vst [vmem:[#allocation2 + $0x8d0] sm:$0xff] %v608_v26  ;;  %v736_v26 = vld [vmem:[%s12218_s9 + $0xad0] sm:$0xff] }
 0x11d   :  { %611 = vst [vmem:[#allocation2 + $0x8d8] sm:$0xff] %v610_v27  ;;  %v738_v27 = vld [vmem:[%s12218_s9 + $0xad8] sm:$0xff] }
 0x11e   :  { %613 = vst [vmem:[#allocation2 + $0x8e0] sm:$0xff] %v612_v28  ;;  %v740_v28 = vld [vmem:[%s12218_s9 + $0xae0] sm:$0xff] }
 0x11f   :  { %615 = vst [vmem:[#allocation2 + $0x8e8] sm:$0xff] %v614_v29  ;;  %v742_v29 = vld [vmem:[%s12218_s9 + $0xae8] sm:$0xff] }
 0x120   :  { %617 = vst [vmem:[#allocation2 + $0x8f0] sm:$0xff] %v616_v30  ;;  %v744_v30 = vld [vmem:[%s12218_s9 + $0xaf0] sm:$0xff] }
 0x121   :  { %619 = vst [vmem:[#allocation2 + $0x8f8] sm:$0xff] %v618_v31  ;;  %v746_v31 = vld [vmem:[%s12218_s9 + $0xaf8] sm:$0xff] }
 0x122   :  { %621 = vst [vmem:[#allocation2 + $0x900] sm:$0xff] %v620_v32  ;;  %v748_v32 = vld [vmem:[%s12218_s9 + $0xb00] sm:$0xff] }
 0x123   :  { %623 = vst [vmem:[#allocation2 + $0x908] sm:$0xff] %v622_v33  ;;  %v750_v33 = vld [vmem:[%s12218_s9 + $0xb08] sm:$0xff] }
 0x124   :  { %625 = vst [vmem:[#allocation2 + $0x910] sm:$0xff] %v624_v34  ;;  %v752_v34 = vld [vmem:[%s12218_s9 + $0xb10] sm:$0xff] }
 0x125   :  { %627 = vst [vmem:[#allocation2 + $0x918] sm:$0xff] %v626_v35  ;;  %v754_v35 = vld [vmem:[%s12218_s9 + $0xb18] sm:$0xff] }
 0x126   :  { %629 = vst [vmem:[#allocation2 + $0x920] sm:$0xff] %v628_v36  ;;  %v756_v36 = vld [vmem:[%s12218_s9 + $0xb20] sm:$0xff] }
 0x127   :  { %631 = vst [vmem:[#allocation2 + $0x928] sm:$0xff] %v630_v37  ;;  %v758_v37 = vld [vmem:[%s12218_s9 + $0xb28] sm:$0xff] }
 0x128   :  { %633 = vst [vmem:[#allocation2 + $0x930] sm:$0xff] %v632_v38  ;;  %v760_v38 = vld [vmem:[%s12218_s9 + $0xb30] sm:$0xff] }
 0x129   :  { %635 = vst [vmem:[#allocation2 + $0x938] sm:$0xff] %v634_v39  ;;  %v762_v39 = vld [vmem:[%s12218_s9 + $0xb38] sm:$0xff] }
 0x12a   :  { %637 = vst [vmem:[#allocation2 + $0x940] sm:$0xff] %v636_v40  ;;  %v764_v40 = vld [vmem:[%s12218_s9 + $0xb40] sm:$0xff] }
 0x12b   :  { %639 = vst [vmem:[#allocation2 + $0x948] sm:$0xff] %v638_v41  ;;  %v766_v41 = vld [vmem:[%s12218_s9 + $0xb48] sm:$0xff] }
 0x12c   :  { %641 = vst [vmem:[#allocation2 + $0x950] sm:$0xff] %v640_v42  ;;  %v768_v42 = vld [vmem:[%s12218_s9 + $0xb50] sm:$0xff] }
 0x12d   :  { %643 = vst [vmem:[#allocation2 + $0x958] sm:$0xff] %v642_v43  ;;  %v770_v43 = vld [vmem:[%s12218_s9 + $0xb58] sm:$0xff] }
 0x12e   :  { %645 = vst [vmem:[#allocation2 + $0x960] sm:$0xff] %v644_v44  ;;  %v772_v44 = vld [vmem:[%s12218_s9 + $0xb60] sm:$0xff] }
 0x12f   :  { %647 = vst [vmem:[#allocation2 + $0x968] sm:$0xff] %v646_v45  ;;  %v774_v45 = vld [vmem:[%s12218_s9 + $0xb68] sm:$0xff] }
 0x130   :  { %649 = vst [vmem:[#allocation2 + $0x970] sm:$0xff] %v648_v46  ;;  %v776_v46 = vld [vmem:[%s12218_s9 + $0xb70] sm:$0xff] }
 0x131   :  { %651 = vst [vmem:[#allocation2 + $0x978] sm:$0xff] %v650_v47  ;;  %v778_v47 = vld [vmem:[%s12218_s9 + $0xb78] sm:$0xff] }
 0x132   :  { %653 = vst [vmem:[#allocation2 + $0x980] sm:$0xff] %v652_v48  ;;  %v780_v48 = vld [vmem:[%s12218_s9 + $0xb80] sm:$0xff] }
 0x133   :  { %655 = vst [vmem:[#allocation2 + $0x988] sm:$0xff] %v654_v49  ;;  %v782_v49 = vld [vmem:[%s12218_s9 + $0xb88] sm:$0xff] }
 0x134   :  { %657 = vst [vmem:[#allocation2 + $0x990] sm:$0xff] %v656_v50  ;;  %v784_v50 = vld [vmem:[%s12218_s9 + $0xb90] sm:$0xff] }
 0x135   :  { %659 = vst [vmem:[#allocation2 + $0x998] sm:$0xff] %v658_v51  ;;  %v786_v51 = vld [vmem:[%s12218_s9 + $0xb98] sm:$0xff] }
 0x136   :  { %661 = vst [vmem:[#allocation2 + $0x9a0] sm:$0xff] %v660_v52  ;;  %v788_v52 = vld [vmem:[%s12218_s9 + $0xba0] sm:$0xff] }
 0x137   :  { %663 = vst [vmem:[#allocation2 + $0x9a8] sm:$0xff] %v662_v53  ;;  %v790_v53 = vld [vmem:[%s12218_s9 + $0xba8] sm:$0xff] }
 0x138   :  { %665 = vst [vmem:[#allocation2 + $0x9b0] sm:$0xff] %v664_v54  ;;  %v792_v54 = vld [vmem:[%s12218_s9 + $0xbb0] sm:$0xff] }
 0x139   :  { %667 = vst [vmem:[#allocation2 + $0x9b8] sm:$0xff] %v666_v55  ;;  %v794_v55 = vld [vmem:[%s12218_s9 + $0xbb8] sm:$0xff] }
 0x13a   :  { %669 = vst [vmem:[#allocation2 + $0x9c0] sm:$0xff] %v668_v56  ;;  %v796_v56 = vld [vmem:[%s12218_s9 + $0xbc0] sm:$0xff] }
 0x13b   :  { %671 = vst [vmem:[#allocation2 + $0x9c8] sm:$0xff] %v670_v57  ;;  %v798_v57 = vld [vmem:[%s12218_s9 + $0xbc8] sm:$0xff] }
 0x13c   :  { %673 = vst [vmem:[#allocation2 + $0x9d0] sm:$0xff] %v672_v58  ;;  %v800_v58 = vld [vmem:[%s12218_s9 + $0xbd0] sm:$0xff] }
 0x13d   :  { %675 = vst [vmem:[#allocation2 + $0x9d8] sm:$0xff] %v674_v59  ;;  %v802_v59 = vld [vmem:[%s12218_s9 + $0xbd8] sm:$0xff] }
 0x13e   :  { %677 = vst [vmem:[#allocation2 + $0x9e0] sm:$0xff] %v676_v60  ;;  %v804_v60 = vld [vmem:[%s12218_s9 + $0xbe0] sm:$0xff] }
 0x13f   :  { %679 = vst [vmem:[#allocation2 + $0x9e8] sm:$0xff] %v678_v61  ;;  %v806_v61 = vld [vmem:[%s12218_s9 + $0xbe8] sm:$0xff] }
 0x140   :  { %681 = vst [vmem:[#allocation2 + $0x9f0] sm:$0xff] %v680_v62  ;;  %v808_v62 = vld [vmem:[%s12218_s9 + $0xbf0] sm:$0xff] }
 0x141   :  { %683 = vst [vmem:[#allocation2 + $0x9f8] sm:$0xff] %v682_v63  ;;  %v810_v63 = vld [vmem:[%s12218_s9 + $0xbf8] sm:$0xff] }
 0x142   :  { %685 = vst [vmem:[#allocation2 + $0xa00] sm:$0xff] %v684_v0  ;;  %v812_v0 = vld [vmem:[%s12218_s9 + $0xc00] sm:$0xff] }
 0x143   :  { %687 = vst [vmem:[#allocation2 + $0xa08] sm:$0xff] %v686_v1  ;;  %v814_v1 = vld [vmem:[%s12218_s9 + $0xc08] sm:$0xff] }
 0x144   :  { %689 = vst [vmem:[#allocation2 + $0xa10] sm:$0xff] %v688_v2  ;;  %v816_v2 = vld [vmem:[%s12218_s9 + $0xc10] sm:$0xff] }
 0x145   :  { %691 = vst [vmem:[#allocation2 + $0xa18] sm:$0xff] %v690_v3  ;;  %v818_v3 = vld [vmem:[%s12218_s9 + $0xc18] sm:$0xff] }
 0x146   :  { %693 = vst [vmem:[#allocation2 + $0xa20] sm:$0xff] %v692_v4  ;;  %v820_v4 = vld [vmem:[%s12218_s9 + $0xc20] sm:$0xff] }
 0x147   :  { %695 = vst [vmem:[#allocation2 + $0xa28] sm:$0xff] %v694_v5  ;;  %v822_v5 = vld [vmem:[%s12218_s9 + $0xc28] sm:$0xff] }
 0x148   :  { %697 = vst [vmem:[#allocation2 + $0xa30] sm:$0xff] %v696_v6  ;;  %v824_v6 = vld [vmem:[%s12218_s9 + $0xc30] sm:$0xff] }
 0x149   :  { %699 = vst [vmem:[#allocation2 + $0xa38] sm:$0xff] %v698_v7  ;;  %v826_v7 = vld [vmem:[%s12218_s9 + $0xc38] sm:$0xff] }
 0x14a   :  { %701 = vst [vmem:[#allocation2 + $0xa40] sm:$0xff] %v700_v8  ;;  %v828_v8 = vld [vmem:[%s12218_s9 + $0xc40] sm:$0xff] }
 0x14b   :  { %703 = vst [vmem:[#allocation2 + $0xa48] sm:$0xff] %v702_v9  ;;  %v830_v9 = vld [vmem:[%s12218_s9 + $0xc48] sm:$0xff] }
 0x14c   :  { %705 = vst [vmem:[#allocation2 + $0xa50] sm:$0xff] %v704_v10  ;;  %v832_v10 = vld [vmem:[%s12218_s9 + $0xc50] sm:$0xff] }
 0x14d   :  { %707 = vst [vmem:[#allocation2 + $0xa58] sm:$0xff] %v706_v11  ;;  %v834_v11 = vld [vmem:[%s12218_s9 + $0xc58] sm:$0xff] }
 0x14e   :  { %709 = vst [vmem:[#allocation2 + $0xa60] sm:$0xff] %v708_v12  ;;  %v836_v12 = vld [vmem:[%s12218_s9 + $0xc60] sm:$0xff] }
 0x14f   :  { %711 = vst [vmem:[#allocation2 + $0xa68] sm:$0xff] %v710_v13  ;;  %v838_v13 = vld [vmem:[%s12218_s9 + $0xc68] sm:$0xff] }
 0x150   :  { %713 = vst [vmem:[#allocation2 + $0xa70] sm:$0xff] %v712_v14  ;;  %v840_v14 = vld [vmem:[%s12218_s9 + $0xc70] sm:$0xff] }
 0x151   :  { %715 = vst [vmem:[#allocation2 + $0xa78] sm:$0xff] %v714_v15  ;;  %v842_v15 = vld [vmem:[%s12218_s9 + $0xc78] sm:$0xff] }
 0x152   :  { %717 = vst [vmem:[#allocation2 + $0xa80] sm:$0xff] %v716_v16  ;;  %v844_v16 = vld [vmem:[%s12218_s9 + $0xc80] sm:$0xff] }
 0x153   :  { %719 = vst [vmem:[#allocation2 + $0xa88] sm:$0xff] %v718_v17  ;;  %v846_v17 = vld [vmem:[%s12218_s9 + $0xc88] sm:$0xff] }
 0x154   :  { %721 = vst [vmem:[#allocation2 + $0xa90] sm:$0xff] %v720_v18  ;;  %v848_v18 = vld [vmem:[%s12218_s9 + $0xc90] sm:$0xff] }
 0x155   :  { %723 = vst [vmem:[#allocation2 + $0xa98] sm:$0xff] %v722_v19  ;;  %v850_v19 = vld [vmem:[%s12218_s9 + $0xc98] sm:$0xff] }
 0x156   :  { %725 = vst [vmem:[#allocation2 + $0xaa0] sm:$0xff] %v724_v20  ;;  %v852_v20 = vld [vmem:[%s12218_s9 + $0xca0] sm:$0xff] }
 0x157   :  { %727 = vst [vmem:[#allocation2 + $0xaa8] sm:$0xff] %v726_v21  ;;  %v854_v21 = vld [vmem:[%s12218_s9 + $0xca8] sm:$0xff] }
 0x158   :  { %729 = vst [vmem:[#allocation2 + $0xab0] sm:$0xff] %v728_v22  ;;  %v856_v22 = vld [vmem:[%s12218_s9 + $0xcb0] sm:$0xff] }
 0x159   :  { %731 = vst [vmem:[#allocation2 + $0xab8] sm:$0xff] %v730_v23  ;;  %v858_v23 = vld [vmem:[%s12218_s9 + $0xcb8] sm:$0xff] }
 0x15a   :  { %733 = vst [vmem:[#allocation2 + $0xac0] sm:$0xff] %v732_v24  ;;  %v860_v24 = vld [vmem:[%s12218_s9 + $0xcc0] sm:$0xff] }
 0x15b   :  { %735 = vst [vmem:[#allocation2 + $0xac8] sm:$0xff] %v734_v25  ;;  %v862_v25 = vld [vmem:[%s12218_s9 + $0xcc8] sm:$0xff] }
 0x15c   :  { %737 = vst [vmem:[#allocation2 + $0xad0] sm:$0xff] %v736_v26  ;;  %v864_v26 = vld [vmem:[%s12218_s9 + $0xcd0] sm:$0xff] }
 0x15d   :  { %739 = vst [vmem:[#allocation2 + $0xad8] sm:$0xff] %v738_v27  ;;  %v866_v27 = vld [vmem:[%s12218_s9 + $0xcd8] sm:$0xff] }
 0x15e   :  { %741 = vst [vmem:[#allocation2 + $0xae0] sm:$0xff] %v740_v28  ;;  %v868_v28 = vld [vmem:[%s12218_s9 + $0xce0] sm:$0xff] }
 0x15f   :  { %743 = vst [vmem:[#allocation2 + $0xae8] sm:$0xff] %v742_v29  ;;  %v870_v29 = vld [vmem:[%s12218_s9 + $0xce8] sm:$0xff] }
 0x160   :  { %745 = vst [vmem:[#allocation2 + $0xaf0] sm:$0xff] %v744_v30  ;;  %v872_v30 = vld [vmem:[%s12218_s9 + $0xcf0] sm:$0xff] }
 0x161   :  { %747 = vst [vmem:[#allocation2 + $0xaf8] sm:$0xff] %v746_v31  ;;  %v874_v31 = vld [vmem:[%s12218_s9 + $0xcf8] sm:$0xff] }
 0x162   :  { %749 = vst [vmem:[#allocation2 + $0xb00] sm:$0xff] %v748_v32  ;;  %v876_v32 = vld [vmem:[%s12218_s9 + $0xd00] sm:$0xff] }
 0x163   :  { %751 = vst [vmem:[#allocation2 + $0xb08] sm:$0xff] %v750_v33  ;;  %v878_v33 = vld [vmem:[%s12218_s9 + $0xd08] sm:$0xff] }
 0x164   :  { %753 = vst [vmem:[#allocation2 + $0xb10] sm:$0xff] %v752_v34  ;;  %v880_v34 = vld [vmem:[%s12218_s9 + $0xd10] sm:$0xff] }
 0x165   :  { %755 = vst [vmem:[#allocation2 + $0xb18] sm:$0xff] %v754_v35  ;;  %v882_v35 = vld [vmem:[%s12218_s9 + $0xd18] sm:$0xff] }
 0x166   :  { %757 = vst [vmem:[#allocation2 + $0xb20] sm:$0xff] %v756_v36  ;;  %v884_v36 = vld [vmem:[%s12218_s9 + $0xd20] sm:$0xff] }
 0x167   :  { %759 = vst [vmem:[#allocation2 + $0xb28] sm:$0xff] %v758_v37  ;;  %v886_v37 = vld [vmem:[%s12218_s9 + $0xd28] sm:$0xff] }
 0x168   :  { %761 = vst [vmem:[#allocation2 + $0xb30] sm:$0xff] %v760_v38  ;;  %v888_v38 = vld [vmem:[%s12218_s9 + $0xd30] sm:$0xff] }
 0x169   :  { %763 = vst [vmem:[#allocation2 + $0xb38] sm:$0xff] %v762_v39  ;;  %v890_v39 = vld [vmem:[%s12218_s9 + $0xd38] sm:$0xff] }
 0x16a   :  { %765 = vst [vmem:[#allocation2 + $0xb40] sm:$0xff] %v764_v40  ;;  %v892_v40 = vld [vmem:[%s12218_s9 + $0xd40] sm:$0xff] }
 0x16b   :  { %767 = vst [vmem:[#allocation2 + $0xb48] sm:$0xff] %v766_v41  ;;  %v894_v41 = vld [vmem:[%s12218_s9 + $0xd48] sm:$0xff] }
 0x16c   :  { %769 = vst [vmem:[#allocation2 + $0xb50] sm:$0xff] %v768_v42  ;;  %v896_v42 = vld [vmem:[%s12218_s9 + $0xd50] sm:$0xff] }
 0x16d   :  { %771 = vst [vmem:[#allocation2 + $0xb58] sm:$0xff] %v770_v43  ;;  %v898_v43 = vld [vmem:[%s12218_s9 + $0xd58] sm:$0xff] }
 0x16e   :  { %773 = vst [vmem:[#allocation2 + $0xb60] sm:$0xff] %v772_v44  ;;  %v900_v44 = vld [vmem:[%s12218_s9 + $0xd60] sm:$0xff] }
 0x16f   :  { %775 = vst [vmem:[#allocation2 + $0xb68] sm:$0xff] %v774_v45  ;;  %v902_v45 = vld [vmem:[%s12218_s9 + $0xd68] sm:$0xff] }
 0x170   :  { %777 = vst [vmem:[#allocation2 + $0xb70] sm:$0xff] %v776_v46  ;;  %v904_v46 = vld [vmem:[%s12218_s9 + $0xd70] sm:$0xff] }
 0x171   :  { %779 = vst [vmem:[#allocation2 + $0xb78] sm:$0xff] %v778_v47  ;;  %v906_v47 = vld [vmem:[%s12218_s9 + $0xd78] sm:$0xff] }
 0x172   :  { %781 = vst [vmem:[#allocation2 + $0xb80] sm:$0xff] %v780_v48  ;;  %v908_v48 = vld [vmem:[%s12218_s9 + $0xd80] sm:$0xff] }
 0x173   :  { %783 = vst [vmem:[#allocation2 + $0xb88] sm:$0xff] %v782_v49  ;;  %v910_v49 = vld [vmem:[%s12218_s9 + $0xd88] sm:$0xff] }
 0x174   :  { %785 = vst [vmem:[#allocation2 + $0xb90] sm:$0xff] %v784_v50  ;;  %v912_v50 = vld [vmem:[%s12218_s9 + $0xd90] sm:$0xff] }
 0x175   :  { %787 = vst [vmem:[#allocation2 + $0xb98] sm:$0xff] %v786_v51  ;;  %v914_v51 = vld [vmem:[%s12218_s9 + $0xd98] sm:$0xff] }
 0x176   :  { %789 = vst [vmem:[#allocation2 + $0xba0] sm:$0xff] %v788_v52  ;;  %v916_v52 = vld [vmem:[%s12218_s9 + $0xda0] sm:$0xff] }
 0x177   :  { %791 = vst [vmem:[#allocation2 + $0xba8] sm:$0xff] %v790_v53  ;;  %v918_v53 = vld [vmem:[%s12218_s9 + $0xda8] sm:$0xff] }
 0x178   :  { %793 = vst [vmem:[#allocation2 + $0xbb0] sm:$0xff] %v792_v54  ;;  %v920_v54 = vld [vmem:[%s12218_s9 + $0xdb0] sm:$0xff] }
 0x179   :  { %795 = vst [vmem:[#allocation2 + $0xbb8] sm:$0xff] %v794_v55  ;;  %v922_v55 = vld [vmem:[%s12218_s9 + $0xdb8] sm:$0xff] }
 0x17a   :  { %797 = vst [vmem:[#allocation2 + $0xbc0] sm:$0xff] %v796_v56  ;;  %v924_v56 = vld [vmem:[%s12218_s9 + $0xdc0] sm:$0xff] }
 0x17b   :  { %799 = vst [vmem:[#allocation2 + $0xbc8] sm:$0xff] %v798_v57  ;;  %v926_v57 = vld [vmem:[%s12218_s9 + $0xdc8] sm:$0xff] }
 0x17c   :  { %801 = vst [vmem:[#allocation2 + $0xbd0] sm:$0xff] %v800_v58  ;;  %v928_v58 = vld [vmem:[%s12218_s9 + $0xdd0] sm:$0xff] }
 0x17d   :  { %803 = vst [vmem:[#allocation2 + $0xbd8] sm:$0xff] %v802_v59  ;;  %v930_v59 = vld [vmem:[%s12218_s9 + $0xdd8] sm:$0xff] }
 0x17e   :  { %805 = vst [vmem:[#allocation2 + $0xbe0] sm:$0xff] %v804_v60  ;;  %v932_v60 = vld [vmem:[%s12218_s9 + $0xde0] sm:$0xff] }
 0x17f   :  { %807 = vst [vmem:[#allocation2 + $0xbe8] sm:$0xff] %v806_v61  ;;  %v934_v61 = vld [vmem:[%s12218_s9 + $0xde8] sm:$0xff] }
 0x180   :  { %809 = vst [vmem:[#allocation2 + $0xbf0] sm:$0xff] %v808_v62  ;;  %v936_v62 = vld [vmem:[%s12218_s9 + $0xdf0] sm:$0xff] }
 0x181   :  { %811 = vst [vmem:[#allocation2 + $0xbf8] sm:$0xff] %v810_v63  ;;  %v938_v63 = vld [vmem:[%s12218_s9 + $0xdf8] sm:$0xff] }
 0x182   :  { %813 = vst [vmem:[#allocation2 + $0xc00] sm:$0xff] %v812_v0  ;;  %v940_v0 = vld [vmem:[%s12218_s9 + $0xe00] sm:$0xff] }
 0x183   :  { %815 = vst [vmem:[#allocation2 + $0xc08] sm:$0xff] %v814_v1  ;;  %v942_v1 = vld [vmem:[%s12218_s9 + $0xe08] sm:$0xff] }
 0x184   :  { %817 = vst [vmem:[#allocation2 + $0xc10] sm:$0xff] %v816_v2  ;;  %v944_v2 = vld [vmem:[%s12218_s9 + $0xe10] sm:$0xff] }
 0x185   :  { %819 = vst [vmem:[#allocation2 + $0xc18] sm:$0xff] %v818_v3  ;;  %v946_v3 = vld [vmem:[%s12218_s9 + $0xe18] sm:$0xff] }
 0x186   :  { %821 = vst [vmem:[#allocation2 + $0xc20] sm:$0xff] %v820_v4  ;;  %v948_v4 = vld [vmem:[%s12218_s9 + $0xe20] sm:$0xff] }
 0x187   :  { %823 = vst [vmem:[#allocation2 + $0xc28] sm:$0xff] %v822_v5  ;;  %v950_v5 = vld [vmem:[%s12218_s9 + $0xe28] sm:$0xff] }
 0x188   :  { %825 = vst [vmem:[#allocation2 + $0xc30] sm:$0xff] %v824_v6  ;;  %v952_v6 = vld [vmem:[%s12218_s9 + $0xe30] sm:$0xff] }
 0x189   :  { %827 = vst [vmem:[#allocation2 + $0xc38] sm:$0xff] %v826_v7  ;;  %v954_v7 = vld [vmem:[%s12218_s9 + $0xe38] sm:$0xff] }
 0x18a   :  { %829 = vst [vmem:[#allocation2 + $0xc40] sm:$0xff] %v828_v8  ;;  %v956_v8 = vld [vmem:[%s12218_s9 + $0xe40] sm:$0xff] }
 0x18b   :  { %831 = vst [vmem:[#allocation2 + $0xc48] sm:$0xff] %v830_v9  ;;  %v958_v9 = vld [vmem:[%s12218_s9 + $0xe48] sm:$0xff] }
 0x18c   :  { %833 = vst [vmem:[#allocation2 + $0xc50] sm:$0xff] %v832_v10  ;;  %v960_v10 = vld [vmem:[%s12218_s9 + $0xe50] sm:$0xff] }
 0x18d   :  { %835 = vst [vmem:[#allocation2 + $0xc58] sm:$0xff] %v834_v11  ;;  %v962_v11 = vld [vmem:[%s12218_s9 + $0xe58] sm:$0xff] }
 0x18e   :  { %837 = vst [vmem:[#allocation2 + $0xc60] sm:$0xff] %v836_v12  ;;  %v964_v12 = vld [vmem:[%s12218_s9 + $0xe60] sm:$0xff] }
 0x18f   :  { %839 = vst [vmem:[#allocation2 + $0xc68] sm:$0xff] %v838_v13  ;;  %v966_v13 = vld [vmem:[%s12218_s9 + $0xe68] sm:$0xff] }
 0x190   :  { %841 = vst [vmem:[#allocation2 + $0xc70] sm:$0xff] %v840_v14  ;;  %v968_v14 = vld [vmem:[%s12218_s9 + $0xe70] sm:$0xff] }
 0x191   :  { %843 = vst [vmem:[#allocation2 + $0xc78] sm:$0xff] %v842_v15  ;;  %v970_v15 = vld [vmem:[%s12218_s9 + $0xe78] sm:$0xff] }
 0x192   :  { %845 = vst [vmem:[#allocation2 + $0xc80] sm:$0xff] %v844_v16  ;;  %v972_v16 = vld [vmem:[%s12218_s9 + $0xe80] sm:$0xff] }
 0x193   :  { %847 = vst [vmem:[#allocation2 + $0xc88] sm:$0xff] %v846_v17  ;;  %v974_v17 = vld [vmem:[%s12218_s9 + $0xe88] sm:$0xff] }
 0x194   :  { %849 = vst [vmem:[#allocation2 + $0xc90] sm:$0xff] %v848_v18  ;;  %v976_v18 = vld [vmem:[%s12218_s9 + $0xe90] sm:$0xff] }
 0x195   :  { %851 = vst [vmem:[#allocation2 + $0xc98] sm:$0xff] %v850_v19  ;;  %v978_v19 = vld [vmem:[%s12218_s9 + $0xe98] sm:$0xff] }
 0x196   :  { %853 = vst [vmem:[#allocation2 + $0xca0] sm:$0xff] %v852_v20  ;;  %v980_v20 = vld [vmem:[%s12218_s9 + $0xea0] sm:$0xff] }
 0x197   :  { %855 = vst [vmem:[#allocation2 + $0xca8] sm:$0xff] %v854_v21  ;;  %v982_v21 = vld [vmem:[%s12218_s9 + $0xea8] sm:$0xff] }
 0x198   :  { %857 = vst [vmem:[#allocation2 + $0xcb0] sm:$0xff] %v856_v22  ;;  %v984_v22 = vld [vmem:[%s12218_s9 + $0xeb0] sm:$0xff] }
 0x199   :  { %859 = vst [vmem:[#allocation2 + $0xcb8] sm:$0xff] %v858_v23  ;;  %v986_v23 = vld [vmem:[%s12218_s9 + $0xeb8] sm:$0xff] }
 0x19a   :  { %861 = vst [vmem:[#allocation2 + $0xcc0] sm:$0xff] %v860_v24  ;;  %v988_v24 = vld [vmem:[%s12218_s9 + $0xec0] sm:$0xff] }
 0x19b   :  { %863 = vst [vmem:[#allocation2 + $0xcc8] sm:$0xff] %v862_v25  ;;  %v990_v25 = vld [vmem:[%s12218_s9 + $0xec8] sm:$0xff] }
 0x19c   :  { %865 = vst [vmem:[#allocation2 + $0xcd0] sm:$0xff] %v864_v26  ;;  %v992_v26 = vld [vmem:[%s12218_s9 + $0xed0] sm:$0xff] }
 0x19d   :  { %867 = vst [vmem:[#allocation2 + $0xcd8] sm:$0xff] %v866_v27  ;;  %v994_v27 = vld [vmem:[%s12218_s9 + $0xed8] sm:$0xff] }
 0x19e   :  { %869 = vst [vmem:[#allocation2 + $0xce0] sm:$0xff] %v868_v28  ;;  %v996_v28 = vld [vmem:[%s12218_s9 + $0xee0] sm:$0xff] }
 0x19f   :  { %871 = vst [vmem:[#allocation2 + $0xce8] sm:$0xff] %v870_v29  ;;  %v998_v29 = vld [vmem:[%s12218_s9 + $0xee8] sm:$0xff] }
 0x1a0   :  { %873 = vst [vmem:[#allocation2 + $0xcf0] sm:$0xff] %v872_v30  ;;  %v1000_v30 = vld [vmem:[%s12218_s9 + $0xef0] sm:$0xff] }
 0x1a1   :  { %875 = vst [vmem:[#allocation2 + $0xcf8] sm:$0xff] %v874_v31  ;;  %v1002_v31 = vld [vmem:[%s12218_s9 + $0xef8] sm:$0xff] }
 0x1a2   :  { %877 = vst [vmem:[#allocation2 + $0xd00] sm:$0xff] %v876_v32  ;;  %v1004_v32 = vld [vmem:[%s12218_s9 + $0xf00] sm:$0xff] }
 0x1a3   :  { %879 = vst [vmem:[#allocation2 + $0xd08] sm:$0xff] %v878_v33  ;;  %v1006_v33 = vld [vmem:[%s12218_s9 + $0xf08] sm:$0xff] }
 0x1a4   :  { %881 = vst [vmem:[#allocation2 + $0xd10] sm:$0xff] %v880_v34  ;;  %v1008_v34 = vld [vmem:[%s12218_s9 + $0xf10] sm:$0xff] }
 0x1a5   :  { %883 = vst [vmem:[#allocation2 + $0xd18] sm:$0xff] %v882_v35  ;;  %v1010_v35 = vld [vmem:[%s12218_s9 + $0xf18] sm:$0xff] }
 0x1a6   :  { %885 = vst [vmem:[#allocation2 + $0xd20] sm:$0xff] %v884_v36  ;;  %v1012_v36 = vld [vmem:[%s12218_s9 + $0xf20] sm:$0xff] }
 0x1a7   :  { %887 = vst [vmem:[#allocation2 + $0xd28] sm:$0xff] %v886_v37  ;;  %v1014_v37 = vld [vmem:[%s12218_s9 + $0xf28] sm:$0xff] }
 0x1a8   :  { %889 = vst [vmem:[#allocation2 + $0xd30] sm:$0xff] %v888_v38  ;;  %v1016_v38 = vld [vmem:[%s12218_s9 + $0xf30] sm:$0xff] }
 0x1a9   :  { %891 = vst [vmem:[#allocation2 + $0xd38] sm:$0xff] %v890_v39  ;;  %v1018_v39 = vld [vmem:[%s12218_s9 + $0xf38] sm:$0xff] }
 0x1aa   :  { %893 = vst [vmem:[#allocation2 + $0xd40] sm:$0xff] %v892_v40  ;;  %v1020_v40 = vld [vmem:[%s12218_s9 + $0xf40] sm:$0xff] }
 0x1ab   :  { %895 = vst [vmem:[#allocation2 + $0xd48] sm:$0xff] %v894_v41  ;;  %v1022_v41 = vld [vmem:[%s12218_s9 + $0xf48] sm:$0xff] }
 0x1ac   :  { %897 = vst [vmem:[#allocation2 + $0xd50] sm:$0xff] %v896_v42  ;;  %v1024_v42 = vld [vmem:[%s12218_s9 + $0xf50] sm:$0xff] }
 0x1ad   :  { %899 = vst [vmem:[#allocation2 + $0xd58] sm:$0xff] %v898_v43  ;;  %v1026_v43 = vld [vmem:[%s12218_s9 + $0xf58] sm:$0xff] }
 0x1ae   :  { %901 = vst [vmem:[#allocation2 + $0xd60] sm:$0xff] %v900_v44  ;;  %v1028_v44 = vld [vmem:[%s12218_s9 + $0xf60] sm:$0xff] }
 0x1af   :  { %903 = vst [vmem:[#allocation2 + $0xd68] sm:$0xff] %v902_v45  ;;  %v1030_v45 = vld [vmem:[%s12218_s9 + $0xf68] sm:$0xff] }
 0x1b0   :  { %905 = vst [vmem:[#allocation2 + $0xd70] sm:$0xff] %v904_v46  ;;  %v1032_v46 = vld [vmem:[%s12218_s9 + $0xf70] sm:$0xff] }
 0x1b1   :  { %907 = vst [vmem:[#allocation2 + $0xd78] sm:$0xff] %v906_v47  ;;  %v1034_v47 = vld [vmem:[%s12218_s9 + $0xf78] sm:$0xff] }
 0x1b2   :  { %909 = vst [vmem:[#allocation2 + $0xd80] sm:$0xff] %v908_v48  ;;  %v1036_v48 = vld [vmem:[%s12218_s9 + $0xf80] sm:$0xff] }
 0x1b3   :  { %911 = vst [vmem:[#allocation2 + $0xd88] sm:$0xff] %v910_v49  ;;  %v1038_v49 = vld [vmem:[%s12218_s9 + $0xf88] sm:$0xff] }
 0x1b4   :  { %913 = vst [vmem:[#allocation2 + $0xd90] sm:$0xff] %v912_v50  ;;  %v1040_v50 = vld [vmem:[%s12218_s9 + $0xf90] sm:$0xff] }
 0x1b5   :  { %915 = vst [vmem:[#allocation2 + $0xd98] sm:$0xff] %v914_v51  ;;  %v1042_v51 = vld [vmem:[%s12218_s9 + $0xf98] sm:$0xff] }
 0x1b6   :  { %917 = vst [vmem:[#allocation2 + $0xda0] sm:$0xff] %v916_v52  ;;  %v1044_v52 = vld [vmem:[%s12218_s9 + $0xfa0] sm:$0xff] }
 0x1b7   :  { %919 = vst [vmem:[#allocation2 + $0xda8] sm:$0xff] %v918_v53  ;;  %v1046_v53 = vld [vmem:[%s12218_s9 + $0xfa8] sm:$0xff] }
 0x1b8   :  { %921 = vst [vmem:[#allocation2 + $0xdb0] sm:$0xff] %v920_v54  ;;  %v1048_v54 = vld [vmem:[%s12218_s9 + $0xfb0] sm:$0xff] }
 0x1b9   :  { %923 = vst [vmem:[#allocation2 + $0xdb8] sm:$0xff] %v922_v55  ;;  %v1050_v55 = vld [vmem:[%s12218_s9 + $0xfb8] sm:$0xff] }
 0x1ba   :  { %925 = vst [vmem:[#allocation2 + $0xdc0] sm:$0xff] %v924_v56  ;;  %v1052_v56 = vld [vmem:[%s12218_s9 + $0xfc0] sm:$0xff] }
 0x1bb   :  { %927 = vst [vmem:[#allocation2 + $0xdc8] sm:$0xff] %v926_v57  ;;  %v1054_v57 = vld [vmem:[%s12218_s9 + $0xfc8] sm:$0xff] }
 0x1bc   :  { %929 = vst [vmem:[#allocation2 + $0xdd0] sm:$0xff] %v928_v58  ;;  %v1056_v58 = vld [vmem:[%s12218_s9 + $0xfd0] sm:$0xff] }
 0x1bd   :  { %931 = vst [vmem:[#allocation2 + $0xdd8] sm:$0xff] %v930_v59  ;;  %v1058_v59 = vld [vmem:[%s12218_s9 + $0xfd8] sm:$0xff] }
 0x1be   :  { %933 = vst [vmem:[#allocation2 + $0xde0] sm:$0xff] %v932_v60  ;;  %v1060_v60 = vld [vmem:[%s12218_s9 + $0xfe0] sm:$0xff] }
 0x1bf   :  { %935 = vst [vmem:[#allocation2 + $0xde8] sm:$0xff] %v934_v61  ;;  %v1062_v61 = vld [vmem:[%s12218_s9 + $0xfe8] sm:$0xff] }
 0x1c0   :  { %937 = vst [vmem:[#allocation2 + $0xdf0] sm:$0xff] %v936_v62  ;;  %v1064_v62 = vld [vmem:[%s12218_s9 + $0xff0] sm:$0xff] }
 0x1c1   :  { %939 = vst [vmem:[#allocation2 + $0xdf8] sm:$0xff] %v938_v63  ;;  %v1066_v63 = vld [vmem:[%s12218_s9 + $0xff8] sm:$0xff] }
 0x1c2   :  { %941 = vst [vmem:[#allocation2 + $0xe00] sm:$0xff] %v940_v0 }
 0x1c3   :  { %943 = vst [vmem:[#allocation2 + $0xe08] sm:$0xff] %v942_v1 }
 0x1c4   :  { %945 = vst [vmem:[#allocation2 + $0xe10] sm:$0xff] %v944_v2 }
 0x1c5   :  { %947 = vst [vmem:[#allocation2 + $0xe18] sm:$0xff] %v946_v3 }
 0x1c6   :  { %949 = vst [vmem:[#allocation2 + $0xe20] sm:$0xff] %v948_v4 }
 0x1c7   :  { %951 = vst [vmem:[#allocation2 + $0xe28] sm:$0xff] %v950_v5 }
 0x1c8   :  { %953 = vst [vmem:[#allocation2 + $0xe30] sm:$0xff] %v952_v6 }
 0x1c9   :  { %955 = vst [vmem:[#allocation2 + $0xe38] sm:$0xff] %v954_v7 }
 0x1ca   :  { %957 = vst [vmem:[#allocation2 + $0xe40] sm:$0xff] %v956_v8 }
 0x1cb   :  { %959 = vst [vmem:[#allocation2 + $0xe48] sm:$0xff] %v958_v9 }
 0x1cc   :  { %961 = vst [vmem:[#allocation2 + $0xe50] sm:$0xff] %v960_v10 }
 0x1cd   :  { %963 = vst [vmem:[#allocation2 + $0xe58] sm:$0xff] %v962_v11 }
 0x1ce   :  { %965 = vst [vmem:[#allocation2 + $0xe60] sm:$0xff] %v964_v12 }
 0x1cf   :  { %967 = vst [vmem:[#allocation2 + $0xe68] sm:$0xff] %v966_v13 }
 0x1d0   :  { %969 = vst [vmem:[#allocation2 + $0xe70] sm:$0xff] %v968_v14 }
 0x1d1   :  { %971 = vst [vmem:[#allocation2 + $0xe78] sm:$0xff] %v970_v15 }
 0x1d2   :  { %973 = vst [vmem:[#allocation2 + $0xe80] sm:$0xff] %v972_v16 }
 0x1d3   :  { %975 = vst [vmem:[#allocation2 + $0xe88] sm:$0xff] %v974_v17 }
 0x1d4   :  { %977 = vst [vmem:[#allocation2 + $0xe90] sm:$0xff] %v976_v18 }
 0x1d5   :  { %979 = vst [vmem:[#allocation2 + $0xe98] sm:$0xff] %v978_v19 }
 0x1d6   :  { %981 = vst [vmem:[#allocation2 + $0xea0] sm:$0xff] %v980_v20 }
 0x1d7   :  { %983 = vst [vmem:[#allocation2 + $0xea8] sm:$0xff] %v982_v21 }
 0x1d8   :  { %985 = vst [vmem:[#allocation2 + $0xeb0] sm:$0xff] %v984_v22 }
 0x1d9   :  { %987 = vst [vmem:[#allocation2 + $0xeb8] sm:$0xff] %v986_v23 }
 0x1da   :  { %989 = vst [vmem:[#allocation2 + $0xec0] sm:$0xff] %v988_v24 }
 0x1db   :  { %991 = vst [vmem:[#allocation2 + $0xec8] sm:$0xff] %v990_v25 }
 0x1dc   :  { %993 = vst [vmem:[#allocation2 + $0xed0] sm:$0xff] %v992_v26 }
 0x1dd   :  { %995 = vst [vmem:[#allocation2 + $0xed8] sm:$0xff] %v994_v27 }
 0x1de   :  { %997 = vst [vmem:[#allocation2 + $0xee0] sm:$0xff] %v996_v28 }
 0x1df   :  { %999 = vst [vmem:[#allocation2 + $0xee8] sm:$0xff] %v998_v29 }
 0x1e0   :  { %1001 = vst [vmem:[#allocation2 + $0xef0] sm:$0xff] %v1000_v30 }
 0x1e1   :  { %1003 = vst [vmem:[#allocation2 + $0xef8] sm:$0xff] %v1002_v31 }
 0x1e2   :  { %1005 = vst [vmem:[#allocation2 + $0xf00] sm:$0xff] %v1004_v32 }
 0x1e3   :  { %1007 = vst [vmem:[#allocation2 + $0xf08] sm:$0xff] %v1006_v33 }
 0x1e4   :  { %1009 = vst [vmem:[#allocation2 + $0xf10] sm:$0xff] %v1008_v34 }
 0x1e5   :  { %1011 = vst [vmem:[#allocation2 + $0xf18] sm:$0xff] %v1010_v35 }
 0x1e6   :  { %1013 = vst [vmem:[#allocation2 + $0xf20] sm:$0xff] %v1012_v36 }
 0x1e7   :  { %1015 = vst [vmem:[#allocation2 + $0xf28] sm:$0xff] %v1014_v37 }
 0x1e8   :  { %1017 = vst [vmem:[#allocation2 + $0xf30] sm:$0xff] %v1016_v38 }
 0x1e9   :  { %1019 = vst [vmem:[#allocation2 + $0xf38] sm:$0xff] %v1018_v39 }
 0x1ea   :  { %1021 = vst [vmem:[#allocation2 + $0xf40] sm:$0xff] %v1020_v40 }
 0x1eb   :  { %1023 = vst [vmem:[#allocation2 + $0xf48] sm:$0xff] %v1022_v41 }
 0x1ec   :  { %1025 = vst [vmem:[#allocation2 + $0xf50] sm:$0xff] %v1024_v42 }
 0x1ed   :  { %1027 = vst [vmem:[#allocation2 + $0xf58] sm:$0xff] %v1026_v43 }
 0x1ee   :  { %1029 = vst [vmem:[#allocation2 + $0xf60] sm:$0xff] %v1028_v44 }
 0x1ef   :  { %1031 = vst [vmem:[#allocation2 + $0xf68] sm:$0xff] %v1030_v45 }
 0x1f0   :  { %1033 = vst [vmem:[#allocation2 + $0xf70] sm:$0xff] %v1032_v46 }
 0x1f1   :  { %1035 = vst [vmem:[#allocation2 + $0xf78] sm:$0xff] %v1034_v47 }
 0x1f2   :  { %1037 = vst [vmem:[#allocation2 + $0xf80] sm:$0xff] %v1036_v48 }
 0x1f3   :  { %1039 = vst [vmem:[#allocation2 + $0xf88] sm:$0xff] %v1038_v49 }
 0x1f4   :  { %1041 = vst [vmem:[#allocation2 + $0xf90] sm:$0xff] %v1040_v50 }
 0x1f5   :  { %1043 = vst [vmem:[#allocation2 + $0xf98] sm:$0xff] %v1042_v51 }
 0x1f6   :  { %1045 = vst [vmem:[#allocation2 + $0xfa0] sm:$0xff] %v1044_v52 }
 0x1f7   :  { %1047 = vst [vmem:[#allocation2 + $0xfa8] sm:$0xff] %v1046_v53 }
 0x1f8   :  { %1049 = vst [vmem:[#allocation2 + $0xfb0] sm:$0xff] %v1048_v54 }
 0x1f9   :  { %1051 = vst [vmem:[#allocation2 + $0xfb8] sm:$0xff] %v1050_v55 }
 0x1fa   :  { %1053 = vst [vmem:[#allocation2 + $0xfc0] sm:$0xff] %v1052_v56 }
 0x1fb   :  { %1055 = vst [vmem:[#allocation2 + $0xfc8] sm:$0xff] %v1054_v57 }
 0x1fc   :  { %1057 = vst [vmem:[#allocation2 + $0xfd0] sm:$0xff] %v1056_v58 }
 0x1fd   :  { %1059 = vst [vmem:[#allocation2 + $0xfd8] sm:$0xff] %v1058_v59 }
 0x1fe   :  { %1061 = vst [vmem:[#allocation2 + $0xfe0] sm:$0xff] %v1060_v60 }
 0x1ff   :  { %1063 = vst [vmem:[#allocation2 + $0xfe8] sm:$0xff] %v1062_v61 }
 0x200   :  { %1065 = vst [vmem:[#allocation2 + $0xff0] sm:$0xff] %v1064_v62 }
 0x201   :  { %1067 = vst [vmem:[#allocation2 + $0xff8] sm:$0xff] %v1066_v63 }
 0x202   :  { %1073 = vsyncadd [#allocation3], 65536  ;;  %v1094_v0 = vld [vmem:[%s12211_s2 + $0x20] sm:$0xf]  ;;  %vm1148_vm0 = vcmask 1043456   ;;  %v1093_v1 = vld [vmem:[%s12211_s2 + $0x18] sm:$0xff]  ;;  %v1249_v29 = vlaneseq }
 0x203   :  { %6410 = vmatpush.msk.msra.mxu0 %vm1148_vm0, %v1094_v0  ;;  %v1092_v2 = vld [vmem:[%s12211_s2 + $0x10] sm:$0xff]  ;;  %v1091_v3 = vld [vmem:[%s12211_s2 + $0x8] sm:$0xff]  ;;  %v1090_v4 = vld [vmem:[%s12211_s2] sm:$0xff]  ;;  %vm1099_vm1 = vcmask 293888   ;;  %s9160_s23 = smov 32   ;;  %s9162_s24 = smov 96  }
 0x204   :  { %v1074_v5 = vld [vmem:[%s12209_s0] sm:$0xff]  ;;  %v1075_v6 = vld [vmem:[%s12209_s0 + $0x8] sm:$0xff]  ;;  %v1076_v7 = vld [vmem:[%s12209_s0 + $0x10] sm:$0xff]  ;;  %v10856_v31 = vshrl.u32 %v1249_v29, 7  ;;  %vm1637_vm4 = vcmask 261120   ;;  %vm1654_vm5 = vcmask 523264  }
 0x205   :  { %1164 = vmatpush.msra.mxu0 %v1093_v1  ;;  %v1077_v8 = vld [vmem:[%s12209_s0 + $0x18] sm:$0xff]  ;;  %v1078_v9 = vld [vmem:[%s12209_s0 + $0x20] sm:$0xff]  ;;  %v1079_v10 = vld [vmem:[%s12209_s0 + $0x28] sm:$0xff]  ;;  %vm1671_vm6 = vcmask 785408  }
 0x206   :  { %v1080_v11 = vld [vmem:[%s12209_s0 + $0x30] sm:$0xff]  ;;  %v1081_v12 = vld [vmem:[%s12209_s0 + $0x38] sm:$0xff]  ;;  %v1082_v13 = vld [vmem:[%s12209_s0 + $0x40] sm:$0xff]  ;;  %vm1284_vm2 = vcmp.lt.s32.totalorder %v10856_v31, 6  ;;  %vm1251_vm3 = vcmp.lt.s32.totalorder %v10856_v31, 2 }
 0x207   :  { %1165 = vmatpush.msra.mxu0 %v1092_v2  ;;  %v1083_v14 = vld [vmem:[%s12209_s0 + $0x48] sm:$0xff]  ;;  %v1084_v15 = vld [vmem:[%s12209_s0 + $0x50] sm:$0xff]  ;;  %v1085_v16 = vld [vmem:[%s12209_s0 + $0x58] sm:$0xff] }
 0x208   :  { %v1086_v17 = vld [vmem:[%s12209_s0 + $0x60] sm:$0xff]  ;;  %v1087_v18 = vld [vmem:[%s12209_s0 + $0x68] sm:$0xff]  ;;  %v1088_v19 = vld [vmem:[%s12209_s0 + $0x70] sm:$0xff] }
 0x209   :  { %1166 = vmatpush.msra.mxu0 %v1091_v3  ;;  %v1089_v20 = vld [vmem:[%s12209_s0 + $0x78] sm:$0xff]  ;;  %v1866_v22 = vld [vmem:[%s12213_s4 + $0x110] sm:$0xff]  ;;  %v10843_v23 = vld [vmem:[%s12212_s3] ss:$0 sm:$0xff]  ;;  %s9161_s3 = smov 64  }
 0x20a   :  { %v1867_v21 = vld [vmem:[%s12213_s4 + $0x118] sm:$0xff]  ;;  %v1865_v24 = vld [vmem:[%s12213_s4 + $0x108] sm:$0xff]  ;;  %v1864_v26 = vld [vmem:[%s12213_s4 + $0x100] sm:$0xff] }
 0x20b   :  { %1167 = vmatpush.msra.mxu0 %v1090_v4  ;;  %2062 = vmatpush.msra.mxu3 %v1867_v21  ;;  %v1738_v50 = vld [vmem:[%s12210_s1 + $0x10] sm:$0xff]  ;;  %v1741_v59 = vld [vmem:[%s12210_s1 + $0x28] sm:$0xff]  ;;  %v1744_v3 = vld [vmem:[%s12210_s1 + $0x40] sm:$0xff] }
 0x20c   :  { %6411 = vmatmul.msk.f32.vlgmr.msra.gmra.mxu0 %vm1099_vm1, %v1074_v5  ;;  %v1753_v29 = vld [vmem:[%s12210_s1 + $0x88] sm:$0xff] }
 0x20d   :  { %2063 = vmatpush.msra.mxu3 %v1866_v22 }
 0x20f   :  { %2064 = vmatpush.msra.mxu3 %v1865_v24 }
 0x211   :  { %2065 = vmatpush.msra.mxu3 %v1864_v26 }
 0x214   :  { %6412 = vmatmul.msk.f32.gmra.mxu0 %vm1099_vm1, %v1075_v6 }
 0x21c   :  { %6413 = vmatmul.msk.f32.gmra.mxu0 %vm1099_vm1, %v1076_v7 }
 0x224   :  { %6414 = vmatmul.msk.f32.gmra.mxu0 %vm1099_vm1, %v1077_v8 }
 0x22c   :  { %6415 = vmatmul.msk.f32.gmra.mxu0 %vm1099_vm1, %v1078_v9 }
 0x234   :  { %6416 = vmatmul.msk.f32.gmra.mxu0 %vm1099_vm1, %v1079_v10 }
 0x23c   :  { %6417 = vmatmul.msk.f32.gmra.mxu0 %vm1099_vm1, %v1080_v11  ;;  %v1747_v11 = vld [vmem:[%s12210_s1 + $0x58] sm:$0xff] }
 0x244   :  { %6418 = vmatmul.msk.f32.gmra.mxu0 %vm1099_vm1, %v1081_v12 }
 0x24c   :  { %6419 = vmatmul.msk.f32.gmra.mxu0 %vm1099_vm1, %v1082_v13 }
 0x254   :  { %6420 = vmatmul.msk.f32.gmra.mxu0 %vm1099_vm1, %v1083_v14 }
 0x25c   :  { %6421 = vmatmul.msk.f32.gmra.mxu0 %vm1099_vm1, %v1084_v15 }
 0x264   :  { %6422 = vmatmul.msk.f32.gmra.mxu0 %vm1099_vm1, %v1085_v16 }
 0x26c   :  { %6423 = vmatmul.msk.f32.gmra.mxu0 %vm1099_vm1, %v1086_v17 }
 0x274   :  { %6424 = vmatmul.msk.f32.gmra.mxu0 %vm1099_vm1, %v1087_v18 }
 0x27c   :  { %6425 = vmatmul.msk.f32.gmra.mxu0 %vm1099_vm1, %v1088_v19  ;;  %v1750_v19 = vld [vmem:[%s12210_s1 + $0x70] sm:$0xff] }
 0x284   :  { %6426 = vmatmul.msk.f32.gmra.mxu0 %vm1099_vm1, %v1089_v20 }
 0x289   :  { %v1169_v25 = vpop.f32.mrf.mxu0 }
 0x28a   :  { %v1170_v27 = vadd.f32 %v10843_v23, %v1169_v25 }
 0x28c   :  { %v10852_v28 = vmax.f32 %v1170_v27, 0.0 }
 0x28e   :  { %1321 = vrot.lane.b32.xlu0 %v10852_v28, %s9160_s23  ;;  %v1268_v34 = vrot.slane %v10852_v28, 2  ;;  %v1233_v36 = vrot.slane %v10852_v28, 6 }
 0x291   :  { %v1172_v30 = vpop.f32.mrf.mxu0 }
 0x292   :  { %v1173_v32 = vadd.f32 %v10843_v23, %v1172_v30 }
 0x294   :  { %v10859_v33 = vmax.f32 %v1173_v32, 0.0 }
 0x296   :  { %1323 = vrot.lane.b32.xlu0 %v10859_v33, %s9160_s23  ;;  %v1269_v35 = vrot.slane %v10859_v33, 2  ;;  %v1234_v37 = vrot.slane %v10859_v33, 6 }
 0x298   :  { %v10873_v38 = vsel %vm1284_vm2, %v1268_v34, %v1269_v35  ;;  %v10879_v39 = vsel %vm1251_vm3, %v1233_v36, %v1234_v37 }
 0x299   :  { %v1175_v40 = vpop.f32.mrf.mxu0  ;;  %1385 = vrot.lane.b32.xlu1 %v10873_v38, %s9161_s3  ;;  %1447 = vrot.lane.b32.xlu2 %v10879_v39, %s9162_s24 }
 0x29a   :  { %v1176_v41 = vadd.f32 %v10843_v23, %v1175_v40 }
 0x29c   :  { %v10886_v42 = vmax.f32 %v1176_v41, 0.0 }
 0x29e   :  { %1493 = vrot.lane.b32.xlu0 %v10873_v38, %s9160_s23  ;;  %v1235_v43 = vrot.slane %v10886_v42, 6  ;;  %v1270_v48 = vrot.slane %v10886_v42, 2 }
 0x2a0   :  { %v10893_v44 = vsel %vm1251_vm3, %v1234_v37, %v1235_v43  ;;  %v10911_v51 = vsel %vm1284_vm2, %v1269_v35, %v1270_v48 }
 0x2a1   :  { %v1178_v45 = vpop.f32.mrf.mxu0  ;;  %1589 = vrot.lane.b32.xlu1 %v10886_v42, %s9162_s24  ;;  %1449 = vrot.lane.b32.xlu2 %v10893_v44, %s9162_s24 }
 0x2a2   :  { %v1179_v46 = vadd.f32 %v10843_v23, %v1178_v45  ;;  %v1756_v45 = vld [vmem:[%s12210_s1 + $0xa0] sm:$0xff] }
 0x2a4   :  { %v10900_v47 = vmax.f32 %v1179_v46, 0.0 }
 0x2a6   :  { %1325 = vrot.lane.b32.xlu0 %v10886_v42, %s9160_s23  ;;  %v1271_v49 = vrot.slane %v10900_v47, 2  ;;  %v1236_v57 = vrot.slane %v10900_v47, 6 }
 0x2a8   :  { %v1297_v52 = vsel %vm1284_vm2, %v1270_v48, %v1271_v49  ;;  %v10932_v60 = vsel %vm1251_vm3, %v1235_v43, %v1236_v57 }
 0x2a9   :  { %v1181_v53 = vpop.f32.mrf.mxu0  ;;  %1387 = vrot.lane.b32.xlu1 %v10911_v51, %s9161_s3  ;;  %1591 = vrot.lane.b32.xlu2 %v10900_v47, %s9162_s24  ;;  %v1786_v54 = vmul.f32 %v1738_v50, %v1297_v52 }
 0x2aa   :  { %v1182_v55 = vadd.f32 %v10843_v23, %v1181_v53 }
 0x2ab   :  { %6427 = vmatmul.msk.f32.vlgmr.msra.gmra.mxu3 %vm1637_vm4, %v1786_v54 }
 0x2ac   :  { %v10921_v56 = vmax.f32 %v1182_v55, 0.0  ;;  %v1759_v55 = vld [vmem:[%s12210_s1 + $0xb8] sm:$0xff] }
 0x2ae   :  { %1541 = vrot.lane.b32.xlu0 %v10893_v44, %s9161_s3  ;;  %v1272_v58 = vrot.slane %v10921_v56, 2  ;;  %v1237_v9 = vrot.slane %v10921_v56, 6 }
 0x2b0   :  { %v1296_v61 = vsel %vm1284_vm2, %v1271_v49, %v1272_v58  ;;  %v10971_v12 = vsel %vm1251_vm3, %v1236_v57, %v1237_v9 }
 0x2b1   :  { %v1184_v62 = vpop.f32.mrf.mxu0  ;;  %1543 = vrot.lane.b32.xlu1 %v10932_v60, %s9161_s3  ;;  %1451 = vrot.lane.b32.xlu2 %v10932_v60, %s9162_s24  ;;  %v1789_v63 = vmul.f32 %v1741_v59, %v1296_v61 }
 0x2b2   :  { %v1185_v0 = vadd.f32 %v10843_v23, %v1184_v62 }
 0x2b3   :  { %6428 = vmatmul.msk.f32.gmra.mxu3 %vm1637_vm4, %v1789_v63 }
 0x2b4   :  { %v10942_v1 = vmax.f32 %v1185_v0, 0.0  ;;  %v1863_v0 = vld [vmem:[%s12213_s4 + $0xf8] sm:$0xff] }
 0x2b5   :  { %1985 = vmatpush.msra.mxu2 %v1863_v0 }
 0x2b6   :  { %1495 = vrot.lane.b32.xlu0 %v10911_v51, %s9160_s23  ;;  %v1273_v2 = vrot.slane %v10942_v1, 2  ;;  %v1238_v26 = vrot.slane %v10942_v1, 6 }
 0x2b8   :  { %v10952_v4 = vsel %vm1284_vm2, %v1272_v58, %v1273_v2  ;;  %v11012_v30 = vsel %vm1251_vm3, %v1237_v9, %v1238_v26  ;;  %v1861_v9 = vld [vmem:[%s12213_s4 + $0xe8] sm:$0xff] }
 0x2b9   :  { %v1187_v5 = vpop.f32.mrf.mxu0  ;;  %1389 = vrot.lane.b32.xlu1 %v1297_v52, %s9161_s3  ;;  %1593 = vrot.lane.b32.xlu2 %v10921_v56, %s9162_s24  ;;  %v1792_v6 = vmul.f32 %v1744_v3, %v10952_v4  ;;  %v1762_v3 = vld [vmem:[%s12210_s1 + $0xd0] sm:$0xff] }
 0x2ba   :  { %v1188_v7 = vadd.f32 %v10843_v23, %v1187_v5  ;;  %v1862_v5 = vld [vmem:[%s12213_s4 + $0xf0] sm:$0xff] }
 0x2bb   :  { %6429 = vmatmul.msk.f32.gmra.mxu3 %vm1637_vm4, %v1792_v6  ;;  %1986 = vmatpush.msra.mxu2 %v1862_v5  ;;  %v1852_v5 = vld [vmem:[%s12213_s4 + $0xa0] sm:$0xff] }
 0x2bc   :  { %v10960_v8 = vmax.f32 %v1188_v7, 0.0 }
 0x2bd   :  { %1987 = vmatpush.msra.mxu2 %v1861_v9  ;;  %v1771_v9 = vld [vmem:[%s12210_s1 + $0x118] sm:$0xff] }
 0x2be   :  { %1327 = vrot.lane.b32.xlu0 %v10900_v47, %s9160_s23  ;;  %v1274_v10 = vrot.slane %v10960_v8, 2  ;;  %v1239_v53 = vrot.slane %v10960_v8, 6 }
 0x2c0   :  { %v10975_v13 = vsel %vm1284_vm2, %v1273_v2, %v1274_v10  ;;  %v11054_v57 = vsel %vm1251_vm3, %v1238_v26, %v1239_v53 }
 0x2c1   :  { %v1190_v14 = vpop.f32.mrf.mxu0  ;;  %1545 = vrot.lane.b32.xlu1 %v10971_v12, %s9161_s3  ;;  %1453 = vrot.lane.b32.xlu2 %v10971_v12, %s9162_s24  ;;  %v1795_v15 = vmul.f32 %v1747_v11, %v10975_v13  ;;  %v1860_v11 = vld [vmem:[%s12213_s4 + $0xe0] sm:$0xff] }
 0x2c2   :  { %v1191_v16 = vadd.f32 %v10843_v23, %v1190_v14  ;;  %1988 = vmatpush.msra.mxu2 %v1860_v11 }
 0x2c3   :  { %6430 = vmatmul.msk.f32.gmra.mxu3 %vm1637_vm4, %v1795_v15 }
 0x2c4   :  { %v10984_v17 = vmax.f32 %v1191_v16, 0.0  ;;  %v1859_v16 = vld [vmem:[%s12213_s4 + $0xd8] sm:$0xff] }
 0x2c5   :  { %1989 = vmatpush.msra.mxu2 %v1859_v16 }
 0x2c6   :  { %1497 = vrot.lane.b32.xlu0 %v1297_v52, %s9160_s23  ;;  %v1275_v18 = vrot.slane %v10984_v17, 2  ;;  %v1240_v15 = vrot.slane %v10984_v17, 6 }
 0x2c8   :  { %v10993_v20 = vsel %vm1284_vm2, %v1274_v10, %v1275_v18 }
 0x2c9   :  { %v1193_v21 = vpop.f32.mrf.mxu0  ;;  %1391 = vrot.lane.b32.xlu1 %v1296_v61, %s9161_s3  ;;  %1595 = vrot.lane.b32.xlu2 %v10942_v1, %s9162_s24  ;;  %v1798_v22 = vmul.f32 %v1750_v19, %v10993_v20  ;;  %v1765_v19 = vld [vmem:[%s12210_s1 + $0xe8] sm:$0xff] }
 0x2ca   :  { %v1194_v24 = vadd.f32 %v10843_v23, %v1193_v21  ;;  %v1858_v21 = vld [vmem:[%s12213_s4 + $0xd0] sm:$0xff] }
 0x2cb   :  { %6431 = vmatmul.msk.f32.gmra.mxu3 %vm1637_vm4, %v1798_v22  ;;  %v11115_v22 = vsel %vm1251_vm3, %v1239_v53, %v1240_v15  ;;  %1990 = vmatpush.msra.mxu2 %v1858_v21  ;;  %v1854_v53 = vld [vmem:[%s12213_s4 + $0xb0] sm:$0xff]  ;;  %v1849_v21 = vld [vmem:[%s12213_s4 + $0x88] sm:$0xff] }
 0x2cc   :  { %v11001_v25 = vmax.f32 %v1194_v24, 0.0 }
 0x2ce   :  { %1329 = vrot.lane.b32.xlu0 %v10921_v56, %s9160_s23  ;;  %v1276_v27 = vrot.slane %v11001_v25, 2 }
 0x2d0   :  { %v11016_v32 = vsel %vm1284_vm2, %v1275_v18, %v1276_v27 }
 0x2d1   :  { %v1196_v35 = vpop.f32.mrf.mxu0  ;;  %1547 = vrot.lane.b32.xlu1 %v11012_v30, %s9161_s3  ;;  %1455 = vrot.lane.b32.xlu2 %v11012_v30, %s9162_s24  ;;  %v1801_v37 = vmul.f32 %v1753_v29, %v11016_v32  ;;  %v1857_v29 = vld [vmem:[%s12213_s4 + $0xc8] sm:$0xff] }
 0x2d2   :  { %v1197_v40 = vadd.f32 %v10843_v23, %v1196_v35  ;;  %1991 = vmatpush.msra.mxu2 %v1857_v29  ;;  %v1848_v29 = vld [vmem:[%s12213_s4 + $0x80] sm:$0xff] }
 0x2d3   :  { %6432 = vmatmul.msk.f32.gmra.mxu3 %vm1637_vm4, %v1801_v37 }
 0x2d4   :  { %v11025_v41 = vmax.f32 %v1197_v40, 0.0  ;;  %v1856_v40 = vld [vmem:[%s12213_s4 + $0xc0] sm:$0xff] }
 0x2d5   :  { %1992 = vmatpush.msra.mxu2 %v1856_v40 }
 0x2d6   :  { %1499 = vrot.lane.b32.xlu0 %v1296_v61, %s9160_s23  ;;  %v1277_v43 = vrot.slane %v11025_v41, 2 }
 0x2d8   :  { %v11034_v46 = vsel %vm1284_vm2, %v1276_v27, %v1277_v43 }
 0x2d9   :  { %v1199_v48 = vpop.f32.mrf.mxu0  ;;  %1393 = vrot.lane.b32.xlu1 %v10952_v4, %s9161_s3  ;;  %1597 = vrot.lane.b32.xlu2 %v10960_v8, %s9162_s24  ;;  %v1804_v49 = vmul.f32 %v1756_v45, %v11034_v46 }
 0x2da   :  { %v1200_v50 = vadd.f32 %v10843_v23, %v1199_v48  ;;  %v1241_v48 = vrot.slane %v11001_v25, 6 }
 0x2db   :  { %6433 = vmatmul.msk.f32.gmra.mxu3 %vm1637_vm4, %v1804_v49 }
 0x2dc   :  { %v11043_v52 = vmax.f32 %v1200_v50, 0.0  ;;  %v1768_v50 = vld [vmem:[%s12210_s1 + $0x100] sm:$0xff] }
 0x2de   :  { %1331 = vrot.lane.b32.xlu0 %v10942_v1, %s9160_s23  ;;  %v1278_v54 = vrot.slane %v11043_v52, 2  ;;  %v1243_v40 = vrot.slane %v11043_v52, 6 }
 0x2e0   :  { %v11058_v58 = vsel %vm1284_vm2, %v1277_v43, %v1278_v54  ;;  %v1855_v43 = vld [vmem:[%s12213_s4 + $0xb8] sm:$0xff] }
 0x2e1   :  { %v1202_v59 = vpop.f32.mrf.mxu0  ;;  %1549 = vrot.lane.b32.xlu1 %v11054_v57, %s9161_s3  ;;  %1457 = vrot.lane.b32.xlu2 %v11054_v57, %s9162_s24  ;;  %v1807_v61 = vmul.f32 %v1759_v55, %v11058_v58 }
 0x2e2   :  { %v1203_v62 = vadd.f32 %v10843_v23, %v1202_v59  ;;  %1993 = vmatpush.msra.mxu2 %v1855_v43 }
 0x2e3   :  { %6434 = vmatmul.msk.f32.gmra.mxu3 %vm1637_vm4, %v1807_v61  ;;  %v1853_v61 = vld [vmem:[%s12213_s4 + $0xa8] sm:$0xff] }
 0x2e4   :  { %v11067_v63 = vmax.f32 %v1203_v62, 0.0  ;;  %1994 = vmatpush.msra.mxu2 %v1854_v53 }
 0x2e6   :  { %1501 = vrot.lane.b32.xlu0 %v10952_v4, %s9160_s23  ;;  %v1279_v2 = vrot.slane %v11067_v63, 2  ;;  %1995 = vmatpush.msra.mxu2 %v1853_v61 }
 0x2e8   :  { %v11083_v6 = vsel %vm1284_vm2, %v1278_v54, %v1279_v2  ;;  %v11153_v54 = vsel %vm1251_vm3, %v1240_v15, %v1241_v48  ;;  %1996 = vmatpush.msra.mxu2 %v1852_v5 }
 0x2e9   :  { %v1205_v7 = vpop.f32.mrf.mxu0  ;;  %1395 = vrot.lane.b32.xlu1 %v10975_v13, %s9161_s3  ;;  %1599 = vrot.lane.b32.xlu2 %v10984_v17, %s9162_s24  ;;  %v1810_v4 = vmul.f32 %v1762_v3, %v11083_v6  ;;  %v1242_v3 = vrot.slane %v11025_v41, 6 }
 0x2ea   :  { %v1206_v10 = vadd.f32 %v10843_v23, %v1205_v7  ;;  %v1851_v7 = vld [vmem:[%s12213_s4 + $0x98] sm:$0xff] }
 0x2eb   :  { %6435 = vmatmul.msk.f32.gmra.mxu3 %vm1637_vm4, %v1810_v4  ;;  %1997 = vmatpush.msra.mxu2 %v1851_v7  ;;  %v11189_v15 = vsel %vm1251_vm3, %v1241_v48, %v1242_v3 }
 0x2ec   :  { %v11098_v14 = vmax.f32 %v1206_v10, 0.0  ;;  %v1850_v10 = vld [vmem:[%s12213_s4 + $0x90] sm:$0xff] }
 0x2ed   :  { %1998 = vmatpush.msra.mxu2 %v1850_v10 }
 0x2ee   :  { %1333 = vrot.lane.b32.xlu0 %v10960_v8, %s9160_s23  ;;  %v1280_v18 = vrot.slane %v11098_v14, 2 }
 0x2ef   :  { %1999 = vmatpush.msra.mxu2 %v1849_v21 }
 0x2f0   :  { %v11119_v24 = vsel %vm1284_vm2, %v1279_v2, %v1280_v18 }
 0x2f1   :  { %v1208_v26 = vpop.f32.mrf.mxu0  ;;  %1551 = vrot.lane.b32.xlu1 %v11115_v22, %s9161_s3  ;;  %1459 = vrot.lane.b32.xlu2 %v11115_v22, %s9162_s24  ;;  %v1813_v27 = vmul.f32 %v1765_v19, %v11119_v24 }
 0x2f2   :  { %v1209_v35 = vadd.f32 %v10843_v23, %v1208_v26  ;;  %2000 = vmatpush.msra.mxu2 %v1848_v29 }
 0x2f3   :  { %6436 = vmatmul.msk.f32.gmra.mxu3 %vm1637_vm4, %v1813_v27  ;;  %v11131_v37 = vpop.permute.xlu2 %1447 }
 0x2f4   :  { %v11139_v45 = vmax.f32 %v1209_v35, 0.0 }
 0x2f6   :  { %1503 = vrot.lane.b32.xlu0 %v10975_v13, %s9160_s23  ;;  %v1281_v49 = vrot.slane %v11139_v45, 2 }
 0x2f8   :  { %v11157_v55 = vsel %vm1284_vm2, %v1280_v18, %v1281_v49 }
 0x2f9   :  { %v1211_v13 = vpop.f32.mrf.mxu0  ;;  %1553 = vrot.lane.b32.xlu1 %v11153_v54, %s9161_s3  ;;  %1601 = vrot.lane.b32.xlu2 %v11001_v25, %s9162_s24  ;;  %v1816_v59 = vmul.f32 %v1768_v50, %v11157_v55  ;;  %v11224_v50 = vsel %vm1251_vm3, %v1242_v3, %v1243_v40 }
 0x2fa   :  { %v1212_v62 = vadd.f32 %v10843_v23, %v1211_v13 }
 0x2fb   :  { %6437 = vmatmul.msk.f32.gmra.mxu3 %vm1637_vm4, %v1816_v59  ;;  %v1450_v0 = vpop.permute.xlu2 %1449 }
 0x2fc   :  { %v11169_v2 = vmax.f32 %v1212_v62, 0.0 }
 0x2fe   :  { %1505 = vrot.lane.b32.xlu0 %v10993_v20, %s9160_s23  ;;  %v1282_v4 = vrot.slane %v11169_v2, 2 }
 0x300   :  { %v1322_v11 = vpop.permute.xlu0 %1321  ;;  %v11193_v16 = vsel %vm1284_vm2, %v1281_v49, %v1282_v4 }
 0x301   :  { %v1214_v18 = vpop.f32.mrf.mxu0  ;;  %1555 = vrot.lane.b32.xlu1 %v11189_v15, %s9161_s3  ;;  %1603 = vrot.lane.b32.xlu2 %v11025_v41, %s9162_s24  ;;  %v1819_v19 = vmul.f32 %v1771_v9, %v11193_v16 }
 0x302   :  { %v1215_v26 = vadd.f32 %v10843_v23, %v1214_v18  ;;  %v1774_v23 = vld [vmem:[%s12210_s1 + $0x130] sm:$0xff] }
 0x303   :  { %6438 = vmatmul.msk.f32.gmra.mxu3 %vm1637_vm4, %v1819_v19  ;;  %v11205_v27 = vpop.permute.xlu2 %1591 }
 0x304   :  { %v11210_v35 = vmax.f32 %v1215_v26, 0.0 }
 0x306   :  { %1507 = vrot.lane.b32.xlu0 %v11016_v32, %s9160_s23  ;;  %v1283_v43 = vrot.slane %v11210_v35, 2  ;;  %v1248_v48 = vrot.slane %v11210_v35, 6 }
 0x308   :  { %v1324_v49 = vpop.permute.xlu0 %1323  ;;  %v11228_v53 = vsel %vm1284_vm2, %v1282_v4, %v1283_v43  ;;  %v11236_v13 = vsel %vm1251_vm3, %v1248_v48, %v1233_v36  ;;  %v11256_v7 = vsel %vm1284_vm2, %v1283_v43, %v1268_v34  ;;  %v1777_v4 = vld [vmem:[%s12210_s1 + $0x148] sm:$0xff]  ;;  %v1780_v34 = vld [vmem:[%s12210_s1 + $0x160] sm:$0xff] }
 0x309   :  { %1557 = vrot.lane.b32.xlu1 %v11224_v50, %s9161_s3  ;;  %1605 = vrot.lane.b32.xlu2 %v11043_v52, %s9162_s24  ;;  %v1822_v59 = vmul.f32 %v1774_v23, %v11228_v53  ;;  %v1640_v62 = vsel %vm1637_vm4, %v11236_v13, %v1322_v11  ;;  %v1828_v19 = vmul.f32 %v1780_v34, %v10873_v38 }
 0x30a   :  { %v1641_v21 = vsel %vm1637_vm4, %v10879_v39, %v1324_v49 }
 0x30b   :  { %6439 = vmatmul.msk.f32.gmra.mxu3 %vm1637_vm4, %v1822_v59  ;;  %v1386_v61 = vpop.permute.xlu1 %1385  ;;  %v1452_v3 = vpop.permute.xlu2 %1451  ;;  %v1737_v59 = vld [vmem:[%s12210_s1 + $0x8] sm:$0xff] }
 0x30c   :  { %v1657_v36 = vsel %vm1654_vm5, %v1640_v62, %v1386_v61 }
 0x30d   :  { %v11248_v5 = vsel %vm1671_vm6, %v1657_v36, %v1450_v0  ;;  %v1825_v0 = vmul.f32 %v1777_v4, %v11256_v7 }
 0x30e   :  { %1509 = vrot.lane.b32.xlu0 %v11034_v46, %s9160_s23 }
 0x310   :  { %v1494_v9 = vpop.permute.xlu0 %1493 }
 0x311   :  { %1317 = vrot.lane.b32.xlu1 %v11169_v2, %s9160_s23  ;;  %1381 = vrot.lane.b32.xlu2 %v11228_v53, %s9161_s3  ;;  %v1688_v38 = vsel %vm1637_vm4, %v10852_v28, %v1494_v9 }
 0x313   :  { %6440 = vmatmul.msk.f32.gmra.mxu3 %vm1637_vm4, %v1825_v0  ;;  %v1590_v10 = vpop.permute.xlu1 %1589  ;;  %v11267_v11 = vpop.permute.xlu2 %1593  ;;  %v1244_v0 = vrot.slane %v11067_v63, 6 }
 0x316   :  { %1319 = vrot.lane.b32.xlu0 %v11210_v35, %s9160_s23 }
 0x318   :  { %v1326_v18 = vpop.permute.xlu0 %1325 }
 0x319   :  { %1397 = vrot.lane.b32.xlu1 %v10993_v20, %s9161_s3  ;;  %1445 = vrot.lane.b32.xlu2 %v11236_v13, %s9162_s24  ;;  %v1783_v20 = vld [vmem:[%s12210_s1 + $0x178] sm:$0xff] }
 0x31a   :  { %v1831_v62 = vmul.f32 %v1783_v20, %v10911_v51  ;;  %v11313_v51 = vsel %vm1251_vm3, %v1243_v40, %v1244_v0 }
 0x31b   :  { %v1388_v26 = vpop.permute.xlu1 %1387  ;;  %6441 = vmatmul.msk.f32.gmra.mxu3 %vm1637_vm4, %v1828_v19  ;;  %v1454_v29 = vpop.permute.xlu2 %1453  ;;  %v1740_v19 = vld [vmem:[%s12210_s1 + $0x20] sm:$0xff] }
 0x31c   :  { %v1658_v43 = vsel %vm1654_vm5, %v1641_v21, %v1388_v26  ;;  %v1642_v26 = vsel %vm1637_vm4, %v10893_v44, %v1326_v18 }
 0x31d   :  { %v11284_v23 = vsel %vm1671_vm6, %v1658_v43, %v1452_v3 }
 0x31e   :  { %1511 = vrot.lane.b32.xlu0 %v11058_v58, %s9160_s23 }
 0x320   :  { %v1542_v49 = vpop.permute.xlu0 %1541 }
 0x321   :  { %v1704_v61 = vsel %vm1654_vm5, %v1688_v38, %v1542_v49  ;;  %1383 = vrot.lane.b32.xlu1 %v11256_v7, %s9161_s3  ;;  %1461 = vrot.lane.b32.xlu2 %v11153_v54, %s9162_s24 }
 0x322   :  { %v1720_v3 = vsel %vm1671_vm6, %v1704_v61, %v1590_v10 }
 0x323   :  { %v1544_v36 = vpop.permute.xlu1 %1543  ;;  %6442 = vmatmul.msk.f32.gmra.mxu3 %vm1637_vm4, %v1831_v62  ;;  %v11304_v4 = vpop.permute.xlu2 %1595  ;;  %v1785_v9 = vmul.f32 %v1737_v59, %v1720_v3 }
 0x325   :  { %2001 = vmatmul.f32.vlgmr.msra.gmra.mxu2 %v1785_v9 }
 0x326   :  { %1335 = vrot.lane.b32.xlu0 %v10984_v17, %s9160_s23 }
 0x328   :  { %v1496_v34 = vpop.permute.xlu0 %1495 }
 0x329   :  { %v1689_v10 = vsel %vm1637_vm4, %v10859_v33, %v1496_v34  ;;  %1559 = vrot.lane.b32.xlu1 %v11313_v51, %s9161_s3  ;;  %1607 = vrot.lane.b32.xlu2 %v11067_v63, %s9162_s24 }
 0x32a   :  { %v1705_v21 = vsel %vm1654_vm5, %v1689_v10, %v1544_v36 }
 0x32b   :  { %v1390_v40 = vpop.permute.xlu1 %1389  ;;  %v1456_v43 = vpop.permute.xlu2 %1455  ;;  %v1721_v20 = vsel %vm1671_vm6, %v1705_v21, %v11205_v27  ;;  %v1245_v27 = vrot.slane %v11098_v14, 6 }
 0x32c   :  { %v1659_v38 = vsel %vm1654_vm5, %v1642_v26, %v1390_v40  ;;  %v1788_v49 = vmul.f32 %v1740_v19, %v1721_v20 }
 0x32d   :  { %v11331_v59 = vsel %vm1671_vm6, %v1659_v38, %v1454_v29  ;;  %v11346_v62 = vsel %vm1251_vm3, %v1244_v0, %v1245_v27 }
 0x32e   :  { %1513 = vrot.lane.b32.xlu0 %v11083_v6, %s9160_s23  ;;  %2004 = vmatmul.f32.gmra.mxu2 %v1788_v49 }
 0x330   :  { %v1328_v61 = vpop.permute.xlu0 %1327 }
 0x331   :  { %1399 = vrot.lane.b32.xlu1 %v11016_v32, %s9161_s3  ;;  %1463 = vrot.lane.b32.xlu2 %v11189_v15, %s9162_s24  ;;  %v1743_v32 = vld [vmem:[%s12210_s1 + $0x38] sm:$0xff]  ;;  %v1643_v9 = vsel %vm1637_vm4, %v10932_v60, %v1328_v61 }
 0x332   :  { %v1847_v61 = vld [vmem:[%s12213_s4 + $0x78] sm:$0xff] }
 0x333   :  { %v1546_v44 = vpop.permute.xlu1 %1545  ;;  %v11339_v18 = vpop.permute.xlu2 %1597  ;;  %1920 = vmatpush.msra.mxu1 %v1847_v61 }
 0x336   :  { %1337 = vrot.lane.b32.xlu0 %v11001_v25, %s9160_s23 }
 0x338   :  { %v1498_v29 = vpop.permute.xlu0 %1497 }
 0x339   :  { %v1690_v3 = vsel %vm1637_vm4, %v10886_v42, %v1498_v29  ;;  %1561 = vrot.lane.b32.xlu1 %v11346_v62, %s9161_s3  ;;  %1609 = vrot.lane.b32.xlu2 %v11098_v14, %s9162_s24 }
 0x33a   :  { %v1706_v36 = vsel %vm1654_vm5, %v1690_v3, %v1546_v44  ;;  %v1846_v3 = vld [vmem:[%s12213_s4 + $0x70] sm:$0xff] }
 0x33b   :  { %v1392_v0 = vpop.permute.xlu1 %1391  ;;  %v1458_v34 = vpop.permute.xlu2 %1457  ;;  %v1722_v42 = vsel %vm1671_vm6, %v1706_v36, %v11267_v11  ;;  %v1246_v11 = vrot.slane %v11139_v45, 6  ;;  %1921 = vmatpush.msra.mxu1 %v1846_v3 }
 0x33c   :  { %v1660_v10 = vsel %vm1654_vm5, %v1643_v9, %v1392_v0  ;;  %v1791_v19 = vmul.f32 %v1743_v32, %v1722_v42  ;;  %v1845_v9 = vld [vmem:[%s12213_s4 + $0x68] sm:$0xff] }
 0x33d   :  { %v11364_v21 = vsel %vm1671_vm6, %v1660_v10, %v1456_v43  ;;  %v11379_v20 = vsel %vm1251_vm3, %v1245_v27, %v1246_v11  ;;  %1922 = vmatpush.msra.mxu1 %v1845_v9 }
 0x33e   :  { %1515 = vrot.lane.b32.xlu0 %v11119_v24, %s9160_s23  ;;  %2007 = vmatmul.f32.gmra.mxu2 %v1791_v19  ;;  %v1842_v19 = vld [vmem:[%s12213_s4 + $0x50] sm:$0xff] }
 0x340   :  { %v1330_v26 = vpop.permute.xlu0 %1329 }
 0x341   :  { %1401 = vrot.lane.b32.xlu1 %v11034_v46, %s9161_s3  ;;  %1465 = vrot.lane.b32.xlu2 %v11224_v50, %s9162_s24  ;;  %v1746_v46 = vld [vmem:[%s12210_s1 + $0x50] sm:$0xff]  ;;  %v1644_v44 = vsel %vm1637_vm4, %v10971_v12, %v1330_v26  ;;  %v1247_v26 = vrot.slane %v11169_v2, 6 }
 0x343   :  { %v1548_v60 = vpop.permute.xlu1 %1547  ;;  %v11372_v40 = vpop.permute.xlu2 %1599 }
 0x346   :  { %1339 = vrot.lane.b32.xlu0 %v11025_v41, %s9160_s23 }
 0x348   :  { %v1500_v43 = vpop.permute.xlu0 %1499 }
 0x349   :  { %v1691_v38 = vsel %vm1637_vm4, %v10900_v47, %v1500_v43  ;;  %1563 = vrot.lane.b32.xlu1 %v11379_v20, %s9161_s3  ;;  %1611 = vrot.lane.b32.xlu2 %v11139_v45, %s9162_s24 }
 0x34a   :  { %v1707_v49 = vsel %vm1654_vm5, %v1691_v38, %v1548_v60  ;;  %v1840_v60 = vld [vmem:[%s12213_s4 + $0x40] sm:$0xff]  ;;  %v11438_v38 = vsel %vm1251_vm3, %v1246_v11, %v1247_v26  ;;  %v1839_v11 = vld [vmem:[%s12213_s4 + $0x38] sm:$0xff] }
 0x34b   :  { %v1394_v47 = vpop.permute.xlu1 %1393  ;;  %v1460_v27 = vpop.permute.xlu2 %1459  ;;  %v1723_v29 = vsel %vm1671_vm6, %v1707_v49, %v11304_v4  ;;  %v1844_v4 = vld [vmem:[%s12213_s4 + $0x60] sm:$0xff]  ;;  %v1749_v49 = vld [vmem:[%s12210_s1 + $0x68] sm:$0xff] }
 0x34c   :  { %v1661_v32 = vsel %vm1654_vm5, %v1644_v44, %v1394_v47  ;;  %v1794_v36 = vmul.f32 %v1746_v46, %v1723_v29  ;;  %1923 = vmatpush.msra.mxu1 %v1844_v4 }
 0x34d   :  { %v11406_v12 = vsel %vm1671_vm6, %v1661_v32, %v1458_v34  ;;  %v1843_v34 = vld [vmem:[%s12213_s4 + $0x58] sm:$0xff] }
 0x34e   :  { %1517 = vrot.lane.b32.xlu0 %v11157_v55, %s9160_s23  ;;  %2010 = vmatmul.f32.gmra.mxu2 %v1794_v36  ;;  %v1838_v36 = vld [vmem:[%s12213_s4 + $0x30] sm:$0xff] }
 0x34f   :  { %1924 = vmatpush.msra.mxu1 %v1843_v34  ;;  %v1835_v34 = vld [vmem:[%s12213_s4 + $0x18] sm:$0xff] }
 0x350   :  { %v1332_v0 = vpop.permute.xlu0 %1331 }
 0x351   :  { %1403 = vrot.lane.b32.xlu1 %v11058_v58, %s9161_s3  ;;  %1467 = vrot.lane.b32.xlu2 %v11313_v51, %s9162_s24  ;;  %v1841_v58 = vld [vmem:[%s12213_s4 + $0x48] sm:$0xff] }
 0x352   :  { %1925 = vmatpush.msra.mxu1 %v1842_v19 }
 0x353   :  { %v1550_v42 = vpop.permute.xlu1 %1549  ;;  %v11420_v10 = vpop.permute.xlu2 %1601 }
 0x354   :  { %1926 = vmatpush.msra.mxu1 %v1841_v58 }
 0x356   :  { %1341 = vrot.lane.b32.xlu0 %v11043_v52, %s9160_s23  ;;  %1927 = vmatpush.msra.mxu1 %v1840_v60  ;;  %v1752_v60 = vld [vmem:[%s12210_s1 + $0x80] sm:$0xff] }
 0x358   :  { %v1502_v43 = vpop.permute.xlu0 %1501  ;;  %1928 = vmatpush.msra.mxu1 %v1839_v11 }
 0x359   :  { %v1692_v46 = vsel %vm1637_vm4, %v10921_v56, %v1502_v43  ;;  %1565 = vrot.lane.b32.xlu1 %v11438_v38, %s9161_s3  ;;  %1613 = vrot.lane.b32.xlu2 %v11169_v2, %s9162_s24  ;;  %v1645_v56 = vsel %vm1637_vm4, %v11012_v30, %v1332_v0  ;;  %v1837_v30 = vld [vmem:[%s12213_s4 + $0x28] sm:$0xff]  ;;  %v1832_v43 = vld [vmem:[%s12213_s4] sm:$0xff] }
 0x35a   :  { %v1708_v61 = vsel %vm1654_vm5, %v1692_v46, %v1550_v42  ;;  %1929 = vmatpush.msra.mxu1 %v1838_v36  ;;  %v1834_v42 = vld [vmem:[%s12213_s4 + $0x10] sm:$0xff] }
 0x35b   :  { %v1396_v44 = vpop.permute.xlu1 %1395  ;;  %v1604_v47 = vpop.permute.xlu2 %1603  ;;  %v1724_v29 = vsel %vm1671_vm6, %v1708_v61, %v11339_v18 }
 0x35c   :  { %v1662_v3 = vsel %vm1654_vm5, %v1645_v56, %v1396_v44  ;;  %v1797_v32 = vmul.f32 %v1749_v49, %v1724_v29  ;;  %1930 = vmatpush.msra.mxu1 %v1837_v30 }
 0x35d   :  { %v11462_v9 = vsel %vm1671_vm6, %v1662_v3, %v1460_v27  ;;  %v1836_v27 = vld [vmem:[%s12213_s4 + $0x20] sm:$0xff] }
 0x35e   :  { %1519 = vrot.lane.b32.xlu0 %v11193_v16, %s9160_s23  ;;  %2013 = vmatmul.f32.gmra.mxu2 %v1797_v32 }
 0x35f   :  { %1931 = vmatpush.msra.mxu1 %v1836_v27 }
 0x360   :  { %v11469_v18 = vpop.permute.xlu0 %1333 }
 0x361   :  { %1405 = vrot.lane.b32.xlu1 %v11083_v6, %s9161_s3  ;;  %1469 = vrot.lane.b32.xlu2 %v11346_v62, %s9162_s24  ;;  %v1833_v6 = vld [vmem:[%s12213_s4 + $0x8] sm:$0xff] }
 0x362   :  { %1932 = vmatpush.msra.mxu1 %v1835_v34 }
 0x363   :  { %v1552_v4 = vpop.permute.xlu1 %1551  ;;  %v1606_v0 = vpop.permute.xlu2 %1605 }
 0x364   :  { %1933 = vmatpush.msra.mxu1 %v1834_v42 }
 0x366   :  { %1343 = vrot.lane.b32.xlu0 %v11067_v63, %s9160_s23  ;;  %1934 = vmatpush.msra.mxu1 %v1833_v6 }
 0x368   :  { %v1504_v19 = vpop.permute.xlu0 %1503  ;;  %1935 = vmatpush.msra.mxu1 %v1832_v43 }
 0x369   :  { %v1693_v58 = vsel %vm1637_vm4, %v10942_v1, %v1504_v19  ;;  %1407 = vrot.lane.b32.xlu1 %v11119_v24, %s9161_s3  ;;  %1615 = vrot.lane.b32.xlu2 %v11210_v35, %s9162_s24 }
 0x36a   :  { %v1709_v46 = vsel %vm1654_vm5, %v1693_v58, %v1552_v4 }
 0x36b   :  { %v1554_v49 = vpop.permute.xlu1 %1553  ;;  %v1382_v61 = vpop.permute.xlu2 %1381  ;;  %v1725_v1 = vsel %vm1671_vm6, %v1709_v46, %v11372_v40  ;;  %v1755_v40 = vld [vmem:[%s12210_s1 + $0x98] sm:$0xff] }
 0x36c   :  { %v1800_v24 = vmul.f32 %v1752_v60, %v1725_v1  ;;  %v1739_v1 = vld [vmem:[%s12210_s1 + $0x18] sm:$0xff] }
 0x36e   :  { %1345 = vrot.lane.b32.xlu0 %v11098_v14, %s9160_s23  ;;  %2016 = vmatmul.f32.gmra.mxu2 %v1800_v24 }
 0x370   :  { %v1506_v11 = vpop.permute.xlu0 %1505 }
 0x371   :  { %v1694_v56 = vsel %vm1637_vm4, %v10960_v8, %v1506_v11  ;;  %1409 = vrot.lane.b32.xlu1 %v11157_v55, %s9161_s3  ;;  %1471 = vrot.lane.b32.xlu2 %v11379_v20, %s9162_s24  ;;  %v1252_v55 = vsel %vm1251_vm3, %v1247_v26, %v1248_v48  ;;  %v1761_v26 = vld [vmem:[%s12210_s1 + $0xc8] sm:$0xff] }
 0x372   :  { %v1710_v44 = vsel %vm1654_vm5, %v1694_v56, %v1554_v49 }
 0x373   :  { %v1556_v29 = vpop.permute.xlu1 %1555  ;;  %v1446_v3 = vpop.permute.xlu2 %1445  ;;  %v1726_v32 = vsel %vm1671_vm6, %v1710_v44, %v11420_v10  ;;  %v1742_v44 = vld [vmem:[%s12210_s1 + $0x30] sm:$0xff] }
 0x374   :  { %v1803_v36 = vmul.f32 %v1755_v40, %v1726_v32  ;;  %v1790_v32 = vmul.f32 %v1742_v44, %v11248_v5 }
 0x376   :  { %1521 = vrot.lane.b32.xlu0 %v11228_v53, %s9160_s23  ;;  %2019 = vmatmul.f32.gmra.mxu2 %v1803_v36  ;;  %v1758_v53 = vld [vmem:[%s12210_s1 + $0xb0] sm:$0xff] }
 0x378   :  { %v1508_v8 = vpop.permute.xlu0 %1507 }
 0x379   :  { %v1695_v30 = vsel %vm1637_vm4, %v10984_v17, %v1508_v8  ;;  %1567 = vrot.lane.b32.xlu1 %v1252_v55, %s9161_s3  ;;  %1617 = vrot.lane.b32.xlu2 %v10852_v28, %s9162_s24 }
 0x37a   :  { %v1711_v10 = vsel %vm1654_vm5, %v1695_v30, %v1556_v29  ;;  %v1764_v29 = vld [vmem:[%s12210_s1 + $0xe0] sm:$0xff]  ;;  %v1745_v30 = vld [vmem:[%s12210_s1 + $0x48] sm:$0xff] }
 0x37b   :  { %v1558_v27 = vpop.permute.xlu1 %1557  ;;  %v11535_v4 = vpop.permute.xlu2 %1461  ;;  %v1727_v31 = vsel %vm1671_vm6, %v1711_v10, %v1604_v47 }
 0x37c   :  { %v1806_v48 = vmul.f32 %v1758_v53, %v1727_v31  ;;  %v1793_v53 = vmul.f32 %v1745_v30, %v11284_v23 }
 0x37e   :  { %1523 = vrot.lane.b32.xlu0 %v11256_v7, %s9160_s23  ;;  %2022 = vmatmul.f32.gmra.mxu2 %v1806_v48  ;;  %v1748_v48 = vld [vmem:[%s12210_s1 + $0x60] sm:$0xff] }
 0x37f   :  { %v1796_v23 = vmul.f32 %v1748_v48, %v11331_v59  ;;  %v1754_v59 = vld [vmem:[%s12210_s1 + $0x90] sm:$0xff] }
 0x380   :  { %v1510_v17 = vpop.permute.xlu0 %1509 }
 0x381   :  { %v1696_v28 = vsel %vm1637_vm4, %v11001_v25, %v1510_v17  ;;  %1569 = vrot.lane.b32.xlu1 %v11236_v13, %s9161_s3  ;;  %1473 = vrot.lane.b32.xlu2 %v11438_v38, %s9162_s24  ;;  %v1736_v13 = vld [vmem:[%s12210_s1] sm:$0xff]  ;;  %v1767_v17 = vld [vmem:[%s12210_s1 + $0xf8] sm:$0xff] }
 0x382   :  { %v1712_v47 = vsel %vm1654_vm5, %v1696_v28, %v1558_v27 }
 0x383   :  { %v1318_v34 = vpop.permute.xlu1 %1317  ;;  %v1608_v42 = vpop.permute.xlu2 %1607  ;;  %v1728_v7 = vsel %vm1671_vm6, %v1712_v47, %v1606_v0 }
 0x384   :  { %v1638_v6 = vsel %vm1637_vm4, %v11438_v38, %v1318_v34  ;;  %v1809_v25 = vmul.f32 %v1761_v26, %v1728_v7  ;;  %v1646_v38 = vsel %vm1637_vm4, %v11054_v57, %v11469_v18 }
 0x385   :  { %v1655_v19 = vsel %vm1654_vm5, %v1638_v6, %v1382_v61 }
 0x386   :  { %1347 = vrot.lane.b32.xlu0 %v11139_v45, %s9160_s23  ;;  %2025 = vmatmul.f32.gmra.mxu2 %v1809_v25  ;;  %v1672_v58 = vsel %vm1671_vm6, %v1655_v19, %v1446_v3 }
 0x387   :  { %v1784_v60 = vmul.f32 %v1736_v13, %v1672_v58  ;;  %v1770_v58 = vld [vmem:[%s12210_s1 + $0x110] sm:$0xff] }
 0x388   :  { %v1320_v43 = vpop.permute.xlu0 %1319 }
 0x389   :  { %1571 = vrot.lane.b32.xlu1 %v10879_v39, %s9161_s3  ;;  %1619 = vrot.lane.b32.xlu2 %v10859_v33, %s9162_s24  ;;  %v1639_v39 = vsel %vm1637_vm4, %v1252_v55, %v1320_v43 }
 0x38a   :  { %1936 = vmatmul.f32.vlgmr.msra.gmra.mxu1 %v1784_v60 }
 0x38b   :  { %v1398_v0 = vpop.permute.xlu1 %1397  ;;  %v11570_v49 = vpop.permute.xlu2 %1463 }
 0x38c   :  { %v11568_v46 = vsel %vm1654_vm5, %v1646_v38, %v1398_v0 }
 0x390   :  { %v1512_v61 = vpop.permute.xlu0 %1511 }
 0x391   :  { %1411 = vrot.lane.b32.xlu1 %v11193_v16, %s9161_s3  ;;  %1475 = vrot.lane.b32.xlu2 %v1252_v55, %s9162_s24  ;;  %v1697_v16 = vsel %vm1637_vm4, %v11025_v41, %v1512_v61 }
 0x393   :  { %v1384_v33 = vpop.permute.xlu1 %1383  ;;  %v1610_v24 = vpop.permute.xlu2 %1609 }
 0x394   :  { %v1656_v57 = vsel %vm1654_vm5, %v1639_v39, %v1384_v33  ;;  %v1757_v39 = vld [vmem:[%s12210_s1 + $0xa8] sm:$0xff] }
 0x395   :  { %v1673_v18 = vsel %vm1671_vm6, %v1656_v57, %v11131_v37  ;;  %v1805_v33 = vmul.f32 %v1757_v39, %v11462_v9 }
 0x396   :  { %v1787_v11 = vmul.f32 %v1739_v1, %v1673_v18 }
 0x398   :  { %v11582_v56 = vpop.permute.xlu0 %1335  ;;  %1939 = vmatmul.f32.gmra.mxu1 %v1787_v11  ;;  %v1760_v11 = vld [vmem:[%s12210_s1 + $0xc0] sm:$0xff] }
 0x39b   :  { %v1560_v40 = vpop.permute.xlu1 %1559  ;;  %v11595_v8 = vpop.permute.xlu2 %1465 }
 0x39c   :  { %v1713_v3 = vsel %vm1654_vm5, %v1697_v16, %v1560_v40  ;;  %v1773_v16 = vld [vmem:[%s12210_s1 + $0x128] sm:$0xff] }
 0x39d   :  { %v1729_v37 = vsel %vm1671_vm6, %v1713_v3, %v1608_v42  ;;  %v1751_v42 = vld [vmem:[%s12210_s1 + $0x78] sm:$0xff] }
 0x39e   :  { %v1812_v36 = vmul.f32 %v1764_v29, %v1729_v37  ;;  %v1799_v6 = vmul.f32 %v1751_v42, %v11364_v21  ;;  %v1802_v21 = vmul.f32 %v1754_v59, %v11406_v12  ;;  %v1680_v12 = vsel %vm1671_vm6, %v11568_v46, %v11535_v4  ;;  %v1772_v42 = vld [vmem:[%s12210_s1 + $0x120] sm:$0xff] }
 0x39f   :  { %v1808_v44 = vmul.f32 %v1760_v11, %v1680_v12 }
 0x3a0   :  { %v1514_v55 = vpop.permute.xlu0 %1513  ;;  %1942 = vmatmul.f32.gmra.mxu1 %v1790_v32  ;;  %2028 = vmatmul.f32.gmra.mxu2 %v1812_v36  ;;  %v1763_v36 = vld [vmem:[%s12210_s1 + $0xd8] sm:$0xff] }
 0x3a1   :  { %v1698_v31 = vsel %vm1637_vm4, %v11043_v52, %v1514_v55 }
 0x3a3   :  { %v1400_v41 = vpop.permute.xlu1 %1399  ;;  %v1612_v27 = vpop.permute.xlu2 %1611 }
 0x3a8   :  { %v1338_v10 = vpop.permute.xlu0 %1337  ;;  %1945 = vmatmul.f32.gmra.mxu1 %v1793_v53 }
 0x3a9   :  { %v1648_v30 = vsel %vm1637_vm4, %v11153_v54, %v1338_v10 }
 0x3ab   :  { %v1562_v5 = vpop.permute.xlu1 %1561  ;;  %v1468_v7 = vpop.permute.xlu2 %1467 }
 0x3ac   :  { %v1714_v28 = vsel %vm1654_vm5, %v1698_v31, %v1562_v5 }
 0x3ad   :  { %v1730_v26 = vsel %vm1671_vm6, %v1714_v28, %v1610_v24 }
 0x3ae   :  { %v1815_v47 = vmul.f32 %v1767_v17, %v1730_v26 }
 0x3b0   :  { %v1516_v34 = vpop.permute.xlu0 %1515  ;;  %1948 = vmatmul.f32.gmra.mxu1 %v1796_v23  ;;  %2031 = vmatmul.f32.gmra.mxu2 %v1815_v47 }
 0x3b1   :  { %v1699_v13 = vsel %vm1637_vm4, %v11067_v63, %v1516_v34 }
 0x3b3   :  { %v1402_v52 = vpop.permute.xlu1 %1401  ;;  %v1614_v38 = vpop.permute.xlu2 %1613 }
 0x3b8   :  { %v1340_v25 = vpop.permute.xlu0 %1339  ;;  %1951 = vmatmul.f32.gmra.mxu1 %v1799_v6 }
 0x3b9   :  { %v1649_v5 = vsel %vm1637_vm4, %v11189_v15, %v1340_v25 }
 0x3bb   :  { %v1564_v19 = vpop.permute.xlu1 %1563  ;;  %v1470_v1 = vpop.permute.xlu2 %1469 }
 0x3bc   :  { %v1715_v60 = vsel %vm1654_vm5, %v1699_v13, %v1564_v19 }
 0x3bd   :  { %v1731_v43 = vsel %vm1671_vm6, %v1715_v60, %v1612_v27  ;;  %v2067_v60 = vpop.f32.mrf.mxu3 }
 0x3be   :  { %v1818_v0 = vmul.f32 %v1770_v58, %v1731_v43 }
 0x3c0   :  { %v1518_v61 = vpop.permute.xlu0 %1517  ;;  %1954 = vmatmul.f32.gmra.mxu1 %v1802_v21  ;;  %2034 = vmatmul.f32.gmra.mxu2 %v1818_v0  ;;  %v1775_v0 = vld [vmem:[%s12210_s1 + $0x138] sm:$0xff] }
 0x3c1   :  { %v1700_v18 = vsel %vm1637_vm4, %v11098_v14, %v1518_v61  ;;  %v1647_v14 = vsel %vm1637_vm4, %v11115_v22, %v11582_v56  ;;  %v1665_v22 = vsel %vm1654_vm5, %v1648_v30, %v1402_v52 }
 0x3c2   :  { %v1664_v4 = vsel %vm1654_vm5, %v1647_v14, %v1400_v41  ;;  %v1682_v53 = vsel %vm1671_vm6, %v1665_v22, %v11595_v8  ;;  %v1769_v8 = vld [vmem:[%s12210_s1 + $0x108] sm:$0xff] }
 0x3c3   :  { %v1404_v63 = vpop.permute.xlu1 %1403  ;;  %v1616_v3 = vpop.permute.xlu2 %1615  ;;  %v1681_v32 = vsel %vm1671_vm6, %v1664_v4, %v11570_v49  ;;  %v1766_v49 = vld [vmem:[%s12210_s1 + $0xf0] sm:$0xff] }
 0x3c4   :  { %v1811_v55 = vmul.f32 %v1763_v36, %v1681_v32  ;;  %v1814_v31 = vmul.f32 %v1766_v49, %v1682_v53  ;;  %v1666_v48 = vsel %vm1654_vm5, %v1649_v5, %v1404_v63 }
 0x3c5   :  { %v1683_v17 = vsel %vm1671_vm6, %v1666_v48, %v1468_v7  ;;  %v1776_v7 = vld [vmem:[%s12210_s1 + $0x140] sm:$0xff] }
 0x3c6   :  { %v1817_v26 = vmul.f32 %v1769_v8, %v1683_v17 }
 0x3c8   :  { %v1342_v57 = vpop.permute.xlu0 %1341  ;;  %1957 = vmatmul.f32.gmra.mxu1 %v1805_v33 }
 0x3c9   :  { %v1650_v23 = vsel %vm1637_vm4, %v11224_v50, %v1342_v57 }
 0x3cb   :  { %v1566_v24 = vpop.permute.xlu1 %1565  ;;  %v1472_v27 = vpop.permute.xlu2 %1471 }
 0x3cc   :  { %v1716_v9 = vsel %vm1654_vm5, %v1700_v18, %v1566_v24 }
 0x3cd   :  { %v1732_v40 = vsel %vm1671_vm6, %v1716_v9, %v1614_v38  ;;  %v1782_v9 = vld [vmem:[%s12210_s1 + $0x170] sm:$0xff] }
 0x3ce   :  { %v1821_v29 = vmul.f32 %v1773_v16, %v1732_v40  ;;  %v1778_v16 = vld [vmem:[%s12210_s1 + $0x150] sm:$0xff] }
 0x3d0   :  { %v1520_v46 = vpop.permute.xlu0 %1519  ;;  %1960 = vmatmul.f32.gmra.mxu1 %v1808_v44  ;;  %2037 = vmatmul.f32.gmra.mxu2 %v1821_v29 }
 0x3d1   :  { %v1701_v15 = vsel %vm1637_vm4, %v11139_v45, %v1520_v46 }
 0x3d3   :  { %v1406_v37 = vpop.permute.xlu1 %1405  ;;  %v1618_v28 = vpop.permute.xlu2 %1617 }
 0x3d4   :  { %v1667_v47 = vsel %vm1654_vm5, %v1650_v23, %v1406_v37  ;;  %v1781_v37 = vld [vmem:[%s12210_s1 + $0x168] sm:$0xff] }
 0x3d5   :  { %v1684_v52 = vsel %vm1671_vm6, %v1667_v47, %v1470_v1 }
 0x3d6   :  { %v1820_v13 = vmul.f32 %v1772_v42, %v1684_v52 }
 0x3d8   :  { %v1344_v56 = vpop.permute.xlu0 %1343  ;;  %1963 = vmatmul.f32.gmra.mxu1 %v1811_v55 }
 0x3d9   :  { %v1651_v45 = vsel %vm1637_vm4, %v11313_v51, %v1344_v56  ;;  %v1779_v51 = vld [vmem:[%s12210_s1 + $0x158] sm:$0xff]  ;;  %v11720_v56 = vld [vmem:[%s12214_s5] ss:$0 sm:$0xff] }
 0x3db   :  { %v1408_v41 = vpop.permute.xlu1 %1407  ;;  %v1474_v58 = vpop.permute.xlu2 %1473 }
 0x3dc   :  { %v1668_v59 = vsel %vm1654_vm5, %v1651_v45, %v1408_v41 }
 0x3dd   :  { %v1685_v21 = vsel %vm1671_vm6, %v1668_v59, %v1472_v27 }
 0x3de   :  { %v1823_v33 = vmul.f32 %v1775_v0, %v1685_v21 }
 0x3e0   :  { %1966 = vmatmul.f32.gmra.mxu1 %v1814_v31  ;;  %v1346_v54 = vpop.permute.xlu0 %1345 }
 0x3e3   :  { %v1410_v10 = vpop.permute.xlu1 %1409  ;;  %v1620_v18 = vpop.permute.xlu2 %1619 }
 0x3e8   :  { %1969 = vmatmul.f32.gmra.mxu1 %v1817_v26  ;;  %v1522_v6 = vpop.permute.xlu0 %1521 }
 0x3e9   :  { %v1702_v43 = vsel %vm1637_vm4, %v11169_v2, %v1522_v6  ;;  %v1652_v2 = vsel %vm1637_vm4, %v11346_v62, %v1346_v54  ;;  %v2070_v62 = vpop.f32.mrf.mxu3 }
 0x3ea   :  { %v1669_v57 = vsel %vm1654_vm5, %v1652_v2, %v1410_v10 }
 0x3eb   :  { %v1568_v34 = vpop.permute.xlu1 %1567  ;;  %v1686_v11 = vsel %vm1671_vm6, %v1669_v57, %v1474_v58  ;;  %v1476_v32 = vpop.permute.xlu2 %1475 }
 0x3ec   :  { %v1717_v50 = vsel %vm1654_vm5, %v1701_v15, %v1568_v34  ;;  %v1826_v29 = vmul.f32 %v1778_v16, %v1686_v11 }
 0x3ed   :  { %v1733_v25 = vsel %vm1671_vm6, %v1717_v50, %v1616_v3 }
 0x3ee   :  { %v1824_v19 = vmul.f32 %v1776_v7, %v1733_v25 }
 0x3f0   :  { %1972 = vmatmul.f32.gmra.mxu1 %v1820_v13  ;;  %2040 = vmatmul.f32.gmra.mxu2 %v1824_v19  ;;  %v1524_v39 = vpop.permute.xlu0 %1523 }
 0x3f1   :  { %v1703_v24 = vsel %vm1637_vm4, %v11210_v35, %v1524_v39  ;;  %v2002_v35 = vpop.f32.mrf.mxu2  ;;  %v2073_v30 = vpop.f32.mrf.mxu3 }
 0x3f3   :  { %v1570_v38 = vpop.permute.xlu1 %1569 }
 0x3f4   :  { %v1718_v61 = vsel %vm1654_vm5, %v1702_v43, %v1570_v38 }
 0x3f5   :  { %v1734_v63 = vsel %vm1671_vm6, %v1718_v61, %v1618_v28 }
 0x3f6   :  { %v1827_v1 = vmul.f32 %v1779_v51, %v1734_v63 }
 0x3f8   :  { %1975 = vmatmul.f32.gmra.mxu1 %v1823_v33  ;;  %2043 = vmatmul.f32.gmra.mxu2 %v1827_v1  ;;  %v1348_v4 = vpop.permute.xlu0 %1347 }
 0x3f9   :  { %v1653_v46 = vsel %vm1637_vm4, %v11379_v20, %v1348_v4  ;;  %v2005_v20 = vpop.f32.mrf.mxu2  ;;  %v2076_v49 = vpop.f32.mrf.mxu3 }
 0x3fb   :  { %v1572_v12 = vpop.permute.xlu1 %1571 }
 0x3fc   :  { %v1719_v40 = vsel %vm1654_vm5, %v1703_v24, %v1572_v12 }
 0x3fd   :  { %v1735_v44 = vsel %vm1671_vm6, %v1719_v40, %v1620_v18 }
 0x3fe   :  { %v1830_v14 = vmul.f32 %v1782_v9, %v1735_v44 }
 0x400   :  { %1978 = vmatmul.f32.gmra.mxu1 %v1826_v29  ;;  %2046 = vmatmul.f32.gmra.mxu2 %v1830_v14 }
 0x401   :  { %v2008_v31 = vpop.f32.mrf.mxu2  ;;  %v2079_v17 = vpop.f32.mrf.mxu3 }
 0x403   :  { %v1412_v3 = vpop.permute.xlu1 %1411 }
 0x404   :  { %v1670_v36 = vsel %vm1654_vm5, %v1653_v46, %v1412_v3 }
 0x405   :  { %v1687_v55 = vsel %vm1671_vm6, %v1670_v36, %v1476_v32 }
 0x406   :  { %v1829_v22 = vmul.f32 %v1781_v37, %v1687_v55 }
 0x407   :  { %v1937_v41 = vpop.f32.mrf.mxu1 }
 0x408   :  { %1981 = vmatmul.f32.gmra.mxu1 %v1829_v22  ;;  %v1938_v53 = vadd.f32 %v11720_v56, %v1937_v41 }
 0x409   :  { %v2011_v23 = vpop.f32.mrf.mxu2  ;;  %v2082_v6 = vpop.f32.mrf.mxu3 }
 0x40a   :  { %v2003_v27 = vadd.f32 %v2002_v35, %v1938_v53 }
 0x40c   :  { %v11723_v48 = vadd.f32 %v2067_v60, %v2003_v27 }
 0x40e   :  { %v2115_v8 = vmax.f32 %v11723_v48, 0.0 }
 0x410   :  { %v2132_v34 = vrot.slane %v2115_v8, 2 }
 0x411   :  { %v2014_v50 = vpop.f32.mrf.mxu2  ;;  %v2085_v61 = vpop.f32.mrf.mxu3 }
 0x415   :  { %v1940_v5 = vpop.f32.mrf.mxu1 }
 0x416   :  { %v1941_v54 = vadd.f32 %v11720_v56, %v1940_v5 }
 0x418   :  { %v2006_v10 = vadd.f32 %v2005_v20, %v1941_v54 }
 0x419   :  { %v2017_v43 = vpop.f32.mrf.mxu2  ;;  %v2088_v24 = vpop.f32.mrf.mxu3 }
 0x41a   :  { %v11727_v28 = vadd.f32 %v2070_v62, %v2006_v10 }
 0x41c   :  { %v2116_v26 = vmax.f32 %v11727_v28, 0.0 }
 0x41d   :  { %v1943_v47 = vpop.f32.mrf.mxu1 }
 0x41e   :  { %v1944_v15 = vadd.f32 %v11720_v56, %v1943_v47  ;;  %v2138_v52 = vrot.slane %v2116_v26, 2 }
 0x420   :  { %v9088_v42 = vpack.i.bf16 %v2138_v52, %v2132_v34  ;;  %v2009_v7 = vadd.f32 %v2008_v31, %v1944_v15 }
 0x421   :  { %v2020_v57 = vpop.f32.mrf.mxu2  ;;  %v2091_v35 = vpop.f32.mrf.mxu3 }
 0x422   :  { %9089 = vrot.lane.b32.xlu0 %v9088_v42, %s9161_s3  ;;  %v11736_v13 = vadd.f32 %v2073_v30, %v2009_v7 }
 0x424   :  { %v2117_v59 = vmax.f32 %v11736_v13, 0.0 }
 0x425   :  { %v1946_v25 = vpop.f32.mrf.mxu1 }
 0x426   :  { %v1947_v19 = vadd.f32 %v11720_v56, %v1946_v25  ;;  %v2144_v0 = vrot.slane %v2117_v59, 2 }
 0x428   :  { %v2012_v45 = vadd.f32 %v2011_v23, %v1947_v19 }
 0x429   :  { %v2023_v14 = vpop.f32.mrf.mxu2  ;;  %v2094_v41 = vpop.f32.mrf.mxu3 }
 0x42a   :  { %v11740_v58 = vadd.f32 %v2076_v49, %v2012_v45 }
 0x42c   :  { %v2118_v60 = vmax.f32 %v11740_v58, 0.0 }
 0x42d   :  { %v1949_v38 = vpop.f32.mrf.mxu1 }
 0x42e   :  { %v1950_v21 = vadd.f32 %v11720_v56, %v1949_v38  ;;  %v2150_v51 = vrot.slane %v2118_v60, 2 }
 0x430   :  { %v9093_v63 = vpack.i.bf16 %v2150_v51, %v2144_v0  ;;  %v2015_v39 = vadd.f32 %v2014_v50, %v1950_v21 }
 0x431   :  { %v2026_v30 = vpop.f32.mrf.mxu2  ;;  %v2097_v47 = vpop.f32.mrf.mxu3 }
 0x432   :  { %9094 = vrot.lane.b32.xlu1 %v9093_v63, %s9161_s3  ;;  %v11749_v1 = vadd.f32 %v2079_v17, %v2015_v39 }
 0x434   :  { %v2119_v12 = vmax.f32 %v11749_v1, 0.0 }
 0x435   :  { %v1952_v33 = vpop.f32.mrf.mxu1 }
 0x436   :  { %v1953_v2 = vadd.f32 %v11720_v56, %v1952_v33  ;;  %v2156_v40 = vrot.slane %v2119_v12, 2 }
 0x438   :  { %v2018_v18 = vadd.f32 %v2017_v43, %v1953_v2 }
 0x439   :  { %v2029_v54 = vpop.f32.mrf.mxu2  ;;  %v2100_v43 = vpop.f32.mrf.mxu3 }
 0x43a   :  { %v11753_v11 = vadd.f32 %v2082_v6, %v2018_v18 }
 0x43c   :  { %v2120_v16 = vmax.f32 %v11753_v11, 0.0 }
 0x43d   :  { %v1955_v9 = vpop.f32.mrf.mxu1 }
 0x43e   :  { %v1956_v62 = vadd.f32 %v11720_v56, %v1955_v9  ;;  %v2162_v44 = vrot.slane %v2120_v16, 2 }
 0x440   :  { %v9098_v29 = vpack.i.bf16 %v2162_v44, %v2156_v40  ;;  %v2021_v4 = vadd.f32 %v2020_v57, %v1956_v62 }
 0x441   :  { %v2032_v42 = vpop.f32.mrf.mxu2  ;;  %v2103_v2 = vpop.f32.mrf.mxu3 }
 0x442   :  { %9099 = vrot.lane.b32.xlu2 %v9098_v29, %s9161_s3  ;;  %v11762_v3 = vadd.f32 %v2085_v61, %v2021_v4 }
 0x444   :  { %v2121_v36 = vmax.f32 %v11762_v3, 0.0 }
 0x445   :  { %v1958_v46 = vpop.f32.mrf.mxu1 }
 0x446   :  { %v1959_v37 = vadd.f32 %v11720_v56, %v1958_v46  ;;  %v2168_v49 = vrot.slane %v2121_v36, 2 }
 0x448   :  { %v2024_v32 = vadd.f32 %v2023_v14, %v1959_v37 }
 0x449   :  { %v2035_v21 = vpop.f32.mrf.mxu2  ;;  %v2106_v4 = vpop.f32.mrf.mxu3 }
 0x44a   :  { %v11766_v55 = vadd.f32 %v2088_v24, %v2024_v32 }
 0x44c   :  { %v2122_v22 = vmax.f32 %v11766_v55, 0.0 }
 0x44d   :  { %v1961_v20 = vpop.f32.mrf.mxu1 }
 0x44e   :  { %v1962_v53 = vadd.f32 %v11720_v56, %v1961_v20  ;;  %v2174_v27 = vrot.slane %v2122_v22, 2 }
 0x450   :  { %v9103_v31 = vpack.i.bf16 %v2174_v27, %v2168_v49  ;;  %v2027_v5 = vadd.f32 %v2026_v30, %v1962_v53 }
 0x452   :  { %9104 = vrot.lane.b32.xlu0 %v9103_v31, %s9161_s3  ;;  %v11775_v17 = vadd.f32 %v2091_v35, %v2027_v5 }
 0x453   :  { %v2038_v57 = vpop.f32.mrf.mxu2 }
 0x454   :  { %v2123_v34 = vmax.f32 %v11775_v17, 0.0 }
 0x455   :  { %v1964_v10 = vpop.f32.mrf.mxu1 }
 0x456   :  { %v1965_v23 = vadd.f32 %v11720_v56, %v1964_v10  ;;  %v2180_v25 = vrot.slane %v2123_v34, 2 }
 0x458   :  { %v2030_v15 = vadd.f32 %v2029_v54, %v1965_v23  ;;  %v2109_v54 = vpop.f32.mrf.mxu3 }
 0x45a   :  { %v11779_v52 = vadd.f32 %v2094_v41, %v2030_v15 }
 0x45c   :  { %v2124_v7 = vmax.f32 %v11779_v52, 0.0 }
 0x45d   :  { %v1967_v6 = vpop.f32.mrf.mxu1 }
 0x45e   :  { %v1968_v50 = vadd.f32 %v11720_v56, %v1967_v6  ;;  %v2186_v19 = vrot.slane %v2124_v7, 2 }
 0x460   :  { %v9108_v45 = vpack.i.bf16 %v2186_v19, %v2180_v25  ;;  %v2033_v38 = vadd.f32 %v2032_v42, %v1968_v50  ;;  %v2112_v25 = vpop.f32.mrf.mxu3 }
 0x462   :  { %9109 = vrot.lane.b32.xlu1 %v9108_v45, %s9161_s3  ;;  %v11788_v51 = vadd.f32 %v2097_v47, %v2033_v38 }
 0x464   :  { %v2125_v39 = vmax.f32 %v11788_v51, 0.0 }
 0x465   :  { %v1970_v0 = vpop.f32.mrf.mxu1 }
 0x466   :  { %v1971_v61 = vadd.f32 %v11720_v56, %v1970_v0  ;;  %v2192_v62 = vrot.slane %v2125_v39, 2 }
 0x468   :  { %v2036_v63 = vadd.f32 %v2035_v21, %v1971_v61 }
 0x46a   :  { %v11792_v33 = vadd.f32 %v2100_v43, %v2036_v63 }
 0x46c   :  { %v2126_v18 = vmax.f32 %v11792_v33, 0.0 }
 0x46d   :  { %v1973_v24 = vpop.f32.mrf.mxu1 }
 0x46e   :  { %v1974_v9 = vadd.f32 %v11720_v56, %v1973_v24  ;;  %v2198_v40 = vrot.slane %v2126_v18, 2 }
 0x470   :  { %v9113_v44 = vpack.i.bf16 %v2198_v40, %v2192_v62  ;;  %v2039_v29 = vadd.f32 %v2038_v57, %v1974_v9 }
 0x472   :  { %9114 = vrot.lane.b32.xlu2 %v9113_v44, %s9161_s3  ;;  %v11801_v46 = vadd.f32 %v2103_v2, %v2039_v29 }
 0x473   :  { %v2041_v14 = vpop.f32.mrf.mxu2 }
 0x474   :  { %v2127_v30 = vmax.f32 %v11801_v46, 0.0 }
 0x475   :  { %v1976_v35 = vpop.f32.mrf.mxu1 }
 0x476   :  { %v1977_v37 = vadd.f32 %v11720_v56, %v1976_v35  ;;  %v2204_v31 = vrot.slane %v2127_v30, 2 }
 0x478   :  { %v2042_v32 = vadd.f32 %v2041_v14, %v1977_v37 }
 0x47a   :  { %v11805_v41 = vadd.f32 %v2106_v4, %v2042_v32 }
 0x47b   :  { %v2044_v53 = vpop.f32.mrf.mxu2 }
 0x47c   :  { %v2128_v20 = vmax.f32 %v11805_v41, 0.0 }
 0x47d   :  { %v1979_v49 = vpop.f32.mrf.mxu1 }
 0x47e   :  { %v1980_v27 = vadd.f32 %v11720_v56, %v1979_v49  ;;  %v2210_v5 = vrot.slane %v2128_v20, 2 }
 0x480   :  { %v9118_v10 = vpack.i.bf16 %v2210_v5, %v2204_v31  ;;  %v2045_v23 = vadd.f32 %v2044_v53, %v1980_v27 }
 0x482   :  { %9119 = vrot.lane.b32.xlu0 %v9118_v10, %s9161_s3  ;;  %v11814_v15 = vadd.f32 %v2109_v54, %v2045_v23 }
 0x483   :  { %v2047_v6 = vpop.f32.mrf.mxu2 }
 0x484   :  { %v2129_v19 = vmax.f32 %v11814_v15, 0.0 }
 0x485   :  { %v1982_v47 = vpop.f32.mrf.mxu1 }
 0x486   :  { %v1983_v42 = vadd.f32 %v11720_v56, %v1982_v47  ;;  %v2216_v38 = vrot.slane %v2129_v19, 2 }
 0x488   :  { %v2048_v50 = vadd.f32 %v2047_v6, %v1983_v42 }
 0x48a   :  { %v2113_v45 = vadd.f32 %v2112_v25, %v2048_v50 }
 0x48c   :  { %v2130_v43 = vmax.f32 %v2113_v45, 0.0 }
 0x48e   :  { %v2222_v21 = vrot.slane %v2130_v43, 2 }
 0x490   :  { %v9123_v0 = vpack.i.bf16 %v2222_v21, %v2216_v38 }
 0x492   :  { %9124 = vrot.lane.b32.xlu1 %v9123_v0, %s9161_s3 }
 0x494   :  { %v9090_v61 = vpop.permute.xlu0 %9089 }
 0x495   :  { %v9092_v63 = vunpack.i.h.bf16 %v9090_v61  ;;  %v9091_v2 = vunpack.i.l.bf16 %v9090_v61 }
 0x497   :  { %v11822_v57 = vsel %vm1654_vm5, %v2116_v26, %v9092_v63  ;;  %v11827_v56 = vsel %vm1654_vm5, %v2115_v8, %v9091_v2 }
 0x498   :  { %v2231_v24 = vrot.slane %v11822_v57, 4  ;;  %v2228_v9 = vrot.slane %v11827_v56, 4 }
 0x49c   :  { %v9100_v62 = vpop.permute.xlu2 %9099 }
 0x49d   :  { %v9102_v40 = vunpack.i.h.bf16 %v9100_v62  ;;  %v9101_v44 = vunpack.i.l.bf16 %v9100_v62 }
 0x49f   :  { %v11834_v29 = vsel %vm1654_vm5, %v2120_v16, %v9102_v40  ;;  %v11839_v28 = vsel %vm1654_vm5, %v2119_v12, %v9101_v44 }
 0x4a0   :  { %v2243_v48 = vrot.slane %v11834_v29, 4  ;;  %v2240_v8 = vrot.slane %v11839_v28, 4 }
 0x4a4   :  { %v9095_v26 = vpop.permute.xlu1 %9094 }
 0x4a5   :  { %v9097_v14 = vunpack.i.h.bf16 %v9095_v26  ;;  %v9096_v4 = vunpack.i.l.bf16 %v9095_v26 }
 0x4a7   :  { %v11846_v35 = vsel %vm1654_vm5, %v2118_v60, %v9097_v14  ;;  %v11851_v11 = vsel %vm1654_vm5, %v2117_v59, %v9096_v4 }
 0x4a8   :  { %v2237_v1 = vrot.slane %v11846_v35, 4  ;;  %v2234_v12 = vrot.slane %v11851_v11, 4 }
 0x4c4   :  { %v9105_v16 = vpop.permute.xlu0 %9104 }
 0x4c5   :  { %v9107_v37 = vunpack.i.h.bf16 %v9105_v16  ;;  %v9106_v32 = vunpack.i.l.bf16 %v9105_v16 }
 0x4c7   :  { %v11858_v53 = vsel %vm1654_vm5, %v2122_v22, %v9107_v37  ;;  %v11863_v58 = vsel %vm1654_vm5, %v2121_v36, %v9106_v32 }
 0x4c8   :  { %v2249_v13 = vrot.slane %v11858_v53, 4  ;;  %v2246_v59 = vrot.slane %v11863_v58, 4 }
 0x4cc   :  { %v9115_v60 = vpop.permute.xlu2 %9114 }
 0x4cd   :  { %v9117_v49 = vunpack.i.h.bf16 %v9115_v60  ;;  %v9116_v27 = vunpack.i.l.bf16 %v9115_v60 }
 0x4cf   :  { %v11870_v31 = vsel %vm1654_vm5, %v2126_v18, %v9117_v49  ;;  %v11875_v55 = vsel %vm1654_vm5, %v2125_v39, %v9116_v27 }
 0x4d0   :  { %v2261_v3 = vrot.slane %v11870_v31, 4  ;;  %v2258_v36 = vrot.slane %v11875_v55, 4 }
 0x4d4   :  { %v9110_v22 = vpop.permute.xlu1 %9109 }
 0x4d5   :  { %v9112_v5 = vunpack.i.h.bf16 %v9110_v22  ;;  %v9111_v54 = vunpack.i.l.bf16 %v9110_v22 }
 0x4d7   :  { %v11882_v10 = vsel %vm1654_vm5, %v2124_v7, %v9112_v5  ;;  %v11887_v33 = vsel %vm1654_vm5, %v2123_v34, %v9111_v54 }
 0x4d8   :  { %v2255_v51 = vrot.slane %v11882_v10, 4  ;;  %v2252_v39 = vrot.slane %v11887_v33, 4 }
 0x4f4   :  { %v9120_v18 = vpop.permute.xlu0 %9119 }
 0x4f5   :  { %v9122_v23 = vunpack.i.h.bf16 %v9120_v18  ;;  %v9121_v47 = vunpack.i.l.bf16 %v9120_v18 }
 0x4f7   :  { %v11894_v15 = vsel %vm1654_vm5, %v2128_v20, %v9122_v23  ;;  %v11899_v52 = vsel %vm1654_vm5, %v2127_v30, %v9121_v47 }
 0x4f8   :  { %v2267_v17 = vrot.slane %v11894_v15, 4  ;;  %v2264_v34 = vrot.slane %v11899_v52, 4 }
 0x504   :  { %v9125_v7 = vpop.permute.xlu1 %9124 }
 0x505   :  { %v9127_v42 = vunpack.i.h.bf16 %v9125_v7  ;;  %v9126_v6 = vunpack.i.l.bf16 %v9125_v7 }
 0x507   :  { %v11904_v50 = vsel %vm1654_vm5, %v2130_v43, %v9127_v42  ;;  %v11907_v41 = vsel %vm1654_vm5, %v2129_v19, %v9126_v6 }
 0x508   :  { %v2273_v20 = vrot.slane %v11904_v50, 4 }
 0x509   :  { %9156 = dma.done.wait [#allocation3], 65536 }
 0x50a   :  { %9157 = vsyncadd [#allocation3], 4294901760  ;;  %v6501_v30 = vld [vmem:[#allocation2 + $0x70] sm:$0xf]  ;;  %v8571_v25 = vld [vmem:[#allocation2 + $0x74] sm:$0xf0] }
 0x50b   :  { %v6565_v45 = vld [vmem:[#allocation2 + $0xf0] sm:$0xf]  ;;  %v6502_v38 = vor.u32 %v8571_v25, %v6501_v30  ;;  %v8587_v21 = vld [vmem:[#allocation2 + $0xf4] sm:$0xf0]  ;;  %v6493_v40 = vld [vmem:[#allocation2 + $0x60] sm:$0xf] }
 0x50c   :  { %v6693_v0 = vld [vmem:[#allocation2 + $0x1f0] sm:$0xf]  ;;  %v8619_v61 = vld [vmem:[#allocation2 + $0x1f4] sm:$0xf0]  ;;  %v6566_v63 = vor.u32 %v8587_v21, %v6565_v45  ;;  %v8569_v44 = vld [vmem:[#allocation2 + $0x64] sm:$0xf0] }
 0x50d   :  { %v6694_v2 = vor.u32 %v8619_v61, %v6693_v0  ;;  %v6629_v43 = vld [vmem:[#allocation2 + $0x170] sm:$0xf]  ;;  %v8603_v62 = vld [vmem:[#allocation2 + $0x174] sm:$0xf0]  ;;  %5389 = vmatpush.bf16.msrb.mxu3 %v6502_v38  ;;  %v6557_v26 = vld [vmem:[#allocation2 + $0xe0] sm:$0xf]  ;;  %v6494_v4 = vor.u32 %v8569_v44, %v6493_v40 }
 0x50e   :  { %v6630_v19 = vor.u32 %v8603_v62, %v6629_v43  ;;  %v8585_v14 = vld [vmem:[#allocation2 + $0xe4] sm:$0xf0]  ;;  %5402 = vmatpush.bf16.msrb.mxu0 %v6566_v63  ;;  %v6685_v37 = vld [vmem:[#allocation2 + $0x1e0] sm:$0xf]  ;;  %v6485_v22 = vld [vmem:[#allocation2 + $0x50] sm:$0xf] }
 0x50f   :  { %5428 = vmatpush.bf16.msrb.mxu2 %v6694_v2  ;;  %v6558_v16 = vor.u32 %v8585_v14, %v6557_v26  ;;  %v8617_v32 = vld [vmem:[#allocation2 + $0x1e4] sm:$0xf0]  ;;  %v6621_v60 = vld [vmem:[#allocation2 + $0x160] sm:$0xf]  ;;  %v8567_v5 = vld [vmem:[#allocation2 + $0x54] sm:$0xf0] }
 0x510   :  { %5415 = vmatpush.bf16.msrb.mxu1 %v6630_v19  ;;  %v6686_v49 = vor.u32 %v8617_v32, %v6685_v37  ;;  %v8601_v27 = vld [vmem:[#allocation2 + $0x164] sm:$0xf0]  ;;  %v6549_v18 = vld [vmem:[#allocation2 + $0xd0] sm:$0xf]  ;;  %v8583_v23 = vld [vmem:[#allocation2 + $0xd4] sm:$0xf0]  ;;  %v6486_v7 = vor.u32 %v8567_v5, %v6485_v22 }
 0x511   :  { %v6622_v54 = vor.u32 %v8601_v27, %v6621_v60  ;;  %v6677_v47 = vld [vmem:[#allocation2 + $0x1d0] sm:$0xf]  ;;  %5390 = vmatpush.bf16.msrb.mxu3 %v6494_v4  ;;  %v8615_v42 = vld [vmem:[#allocation2 + $0x1d4] sm:$0xf0]  ;;  %v6550_v25 = vor.u32 %v8583_v23, %v6549_v18  ;;  %v6477_v38 = vld [vmem:[#allocation2 + $0x40] sm:$0xf] }
 0x512   :  { %v6613_v6 = vld [vmem:[#allocation2 + $0x150] sm:$0xf]  ;;  %v8599_v30 = vld [vmem:[#allocation2 + $0x154] sm:$0xf0]  ;;  %5403 = vmatpush.bf16.msrb.mxu0 %v6558_v16  ;;  %v6678_v45 = vor.u32 %v8615_v42, %v6677_v47  ;;  %v8565_v21 = vld [vmem:[#allocation2 + $0x44] sm:$0xf0] }
 0x513   :  { %5429 = vmatpush.bf16.msrb.mxu2 %v6686_v49  ;;  %v6541_v0 = vld [vmem:[#allocation2 + $0xc0] sm:$0xf]  ;;  %v6614_v61 = vor.u32 %v8599_v30, %v6613_v6  ;;  %v8581_v63 = vld [vmem:[#allocation2 + $0xc4] sm:$0xf0]  ;;  %v6478_v19 = vor.u32 %v8565_v21, %v6477_v38  ;;  %v6469_v14 = vld [vmem:[#allocation2 + $0x30] sm:$0xf] }
 0x514   :  { %5416 = vmatpush.bf16.msrb.mxu1 %v6622_v54  ;;  %v6669_v2 = vld [vmem:[#allocation2 + $0x1c0] sm:$0xf]  ;;  %v8613_v43 = vld [vmem:[#allocation2 + $0x1c4] sm:$0xf0]  ;;  %v6542_v44 = vor.u32 %v8581_v63, %v6541_v0  ;;  %v8563_v4 = vld [vmem:[#allocation2 + $0x34] sm:$0xf0] }
 0x515   :  { %v6605_v62 = vld [vmem:[#allocation2 + $0x140] sm:$0xf]  ;;  %v8597_v40 = vld [vmem:[#allocation2 + $0x144] sm:$0xf0]  ;;  %5391 = vmatpush.bf16.msrb.mxu3 %v6486_v7  ;;  %v6670_v26 = vor.u32 %v8613_v43, %v6669_v2  ;;  %v6533_v16 = vld [vmem:[#allocation2 + $0xb0] sm:$0xf]  ;;  %v6470_v5 = vor.u32 %v8563_v4, %v6469_v14 }
 0x516   :  { %5404 = vmatpush.bf16.msrb.mxu0 %v6550_v25  ;;  %v6606_v37 = vor.u32 %v8597_v40, %v6605_v62  ;;  %v8579_v32 = vld [vmem:[#allocation2 + $0xb4] sm:$0xf0]  ;;  %v6661_v60 = vld [vmem:[#allocation2 + $0x1b0] sm:$0xf]  ;;  %v6461_v23 = vld [vmem:[#allocation2 + $0x20] sm:$0xf] }
 0x517   :  { %5430 = vmatpush.bf16.msrb.mxu2 %v6678_v45  ;;  %v8611_v49 = vld [vmem:[#allocation2 + $0x1b4] sm:$0xf0]  ;;  %v6597_v27 = vld [vmem:[#allocation2 + $0x130] sm:$0xf]  ;;  %v6534_v54 = vor.u32 %v8579_v32, %v6533_v16  ;;  %v8561_v47 = vld [vmem:[#allocation2 + $0x24] sm:$0xf0] }
 0x518   :  { %5417 = vmatpush.bf16.msrb.mxu1 %v6614_v61  ;;  %v8595_v22 = vld [vmem:[#allocation2 + $0x134] sm:$0xf0]  ;;  %v6662_v18 = vor.u32 %v8611_v49, %v6661_v60  ;;  %v6525_v7 = vld [vmem:[#allocation2 + $0xa0] sm:$0xf]  ;;  %v8577_v6 = vld [vmem:[#allocation2 + $0xa4] sm:$0xf0]  ;;  %v6462_v21 = vor.u32 %v8561_v47, %v6461_v23 }
 0x519   :  { %5392 = vmatpush.bf16.msrb.mxu3 %v6478_v19  ;;  %v6598_v42 = vor.u32 %v8595_v22, %v6597_v27  ;;  %v6653_v30 = vld [vmem:[#allocation2 + $0x1a0] sm:$0xf]  ;;  %v8609_v25 = vld [vmem:[#allocation2 + $0x1a4] sm:$0xf0]  ;;  %v6526_v0 = vor.u32 %v8577_v6, %v6525_v7  ;;  %v6453_v63 = vld [vmem:[#allocation2 + $0x10] sm:$0xf] }
 0x51a   :  { %5405 = vmatpush.bf16.msrb.mxu0 %v6542_v44  ;;  %v6589_v45 = vld [vmem:[#allocation2 + $0x120] sm:$0xf]  ;;  %v8593_v38 = vld [vmem:[#allocation2 + $0x124] sm:$0xf0]  ;;  %v6654_v61 = vor.u32 %v8609_v25, %v6653_v30  ;;  %v8559_v2 = vld [vmem:[#allocation2 + $0x14] sm:$0xf0] }
 0x51b   :  { %5431 = vmatpush.bf16.msrb.mxu2 %v6670_v26  ;;  %v6517_v43 = vld [vmem:[#allocation2 + $0x90] sm:$0xf]  ;;  %v6590_v62 = vor.u32 %v8593_v38, %v6589_v45  ;;  %v8575_v40 = vld [vmem:[#allocation2 + $0x94] sm:$0xf0]  ;;  %v6454_v4 = vor.u32 %v8559_v2, %v6453_v63  ;;  %v6445_v16 = vld [vmem:[#allocation2] sm:$0xf] }
 0x51c   :  { %5418 = vmatpush.bf16.msrb.mxu1 %v6606_v37  ;;  %v6645_v19 = vld [vmem:[#allocation2 + $0x190] sm:$0xf]  ;;  %v8607_v44 = vld [vmem:[#allocation2 + $0x194] sm:$0xf0]  ;;  %v8557_v37 = vld [vmem:[#allocation2 + $0x4] sm:$0xf0]  ;;  %v6518_v32 = vor.u32 %v8575_v40, %v6517_v43 }
 0x51d   :  { %5393 = vmatpush.bf16.msrb.mxu3 %v6470_v5  ;;  %v6581_v26 = vld [vmem:[#allocation2 + $0x110] sm:$0xf]  ;;  %v8591_v14 = vld [vmem:[#allocation2 + $0x114] sm:$0xf0]  ;;  %v6646_v60 = vor.u32 %v8607_v44, %v6645_v19  ;;  %v6509_v49 = vld [vmem:[#allocation2 + $0x80] sm:$0xf]  ;;  %v6446_v6 = vor.u32 %v8557_v37, %v6445_v16  ;;  %v11913_v37 = vpack.c.bf16 %v11827_v56, %v11827_v56 }
 0x51e   :  { %5406 = vmatpush.bf16.msrb.mxu0 %v6534_v54  ;;  %v8573_v27 = vld [vmem:[#allocation2 + $0x84] sm:$0xf0]  ;;  %v6637_v22 = vld [vmem:[#allocation2 + $0x180] sm:$0xf]  ;;  %v6582_v5 = vor.u32 %v8591_v14, %v6581_v26  ;;  %v8635_v23 = vld [vmem:[#allocation2 + $0x274] sm:$0xf0] }
 0x51f   :  { %5432 = vmatpush.bf16.msrb.mxu2 %v6662_v18  ;;  %v8605_v54 = vld [vmem:[#allocation2 + $0x184] sm:$0xf0]  ;;  %v6757_v18 = vld [vmem:[#allocation2 + $0x270] sm:$0xf]  ;;  %v8651_v7 = vld [vmem:[#allocation2 + $0x2f4] sm:$0xf0]  ;;  %v6510_v38 = vor.u32 %v8573_v27, %v6509_v49  ;;  %v11918_v49 = vpack.c.bf16 %v2231_v24, %v2231_v24  ;;  %v11923_v27 = vpack.c.bf16 %v2228_v9, %v2228_v9  ;;  %v11927_v24 = vpack.c.bf16 %v11822_v57, %v11822_v57 }
 0x520   :  { %5419 = vmatpush.bf16.msrb.mxu1 %v6598_v42  ;;  %v6821_v47 = vld [vmem:[#allocation2 + $0x2f0] sm:$0xf]  ;;  %v8683_v30 = vld [vmem:[#allocation2 + $0x3f4] sm:$0xf0]  ;;  %v6573_v25 = vld [vmem:[#allocation2 + $0x100] sm:$0xf]  ;;  %v6758_v63 = vor.u32 %v8635_v23, %v6757_v18 }
 0x521   :  { %5394 = vmatpush.bf16.msrb.mxu3 %v6462_v21  ;;  %v6949_v42 = vld [vmem:[#allocation2 + $0x3f0] sm:$0xf]  ;;  %v8589_v45 = vld [vmem:[#allocation2 + $0x104] sm:$0xf0]  ;;  %v6638_v21 = vor.u32 %v8605_v54, %v6637_v22  ;;  %v6822_v2 = vor.u32 %v8651_v7, %v6821_v47  ;;  %v6749_v43 = vld [vmem:[#allocation2 + $0x260] sm:$0xf] }
 0x522   :  { %5407 = vmatpush.bf16.msrb.mxu0 %v6526_v0  ;;  %v6885_v0 = vld [vmem:[#allocation2 + $0x370] sm:$0xf]  ;;  %v6574_v40 = vor.u32 %v8589_v45, %v6573_v25  ;;  %v8633_v19 = vld [vmem:[#allocation2 + $0x264] sm:$0xf0]  ;;  %v6813_v44 = vld [vmem:[#allocation2 + $0x2e0] sm:$0xf] }
 0x523   :  { %5433 = vmatpush.bf16.msrb.mxu2 %v6654_v61  ;;  %v8667_v61 = vld [vmem:[#allocation2 + $0x374] sm:$0xf0]  ;;  %v8649_v26 = vld [vmem:[#allocation2 + $0x2e4] sm:$0xf0]  ;;  %v6750_v22 = vor.u32 %v8633_v19, %v6749_v43  ;;  %v6741_v54 = vld [vmem:[#allocation2 + $0x250] sm:$0xf] }
 0x524   :  { %5420 = vmatpush.bf16.msrb.mxu1 %v6590_v62  ;;  %v6950_v62 = vor.u32 %v8683_v30, %v6949_v42  ;;  %v6886_v14 = vor.u32 %v8667_v61, %v6885_v0  ;;  %v8681_v16 = vld [vmem:[#allocation2 + $0x3e4] sm:$0xf0]  ;;  %v8631_v23 = vld [vmem:[#allocation2 + $0x254] sm:$0xf0]  ;;  %v6805_v47 = vld [vmem:[#allocation2 + $0x2d0] sm:$0xf] }
 0x525   :  { %5395 = vmatpush.bf16.msrb.mxu3 %v6454_v4  ;;  %v6941_v4 = vld [vmem:[#allocation2 + $0x3e0] sm:$0xf]  ;;  %v8647_v7 = vld [vmem:[#allocation2 + $0x2d4] sm:$0xf0]  ;;  %v6933_v42 = vld [vmem:[#allocation2 + $0x3d0] sm:$0xf]  ;;  %v6742_v25 = vor.u32 %v8631_v23, %v6741_v54 }
 0x526   :  { %5408 = vmatpush.bf16.msrb.mxu0 %v6518_v32  ;;  %v6877_v32 = vld [vmem:[#allocation2 + $0x360] sm:$0xf]  ;;  %v6942_v18 = vor.u32 %v8681_v16, %v6941_v4  ;;  %v8679_v9 = vld [vmem:[#allocation2 + $0x3d4] sm:$0xf0]  ;;  %v6806_v45 = vor.u32 %v8647_v7, %v6805_v47  ;;  %v8645_v61 = vld [vmem:[#allocation2 + $0x2c4] sm:$0xf0] }
 0x527   :  { %5434 = vmatpush.bf16.msrb.mxu2 %v6646_v60  ;;  %v8665_v60 = vld [vmem:[#allocation2 + $0x364] sm:$0xf0]  ;;  %v8663_v30 = vld [vmem:[#allocation2 + $0x354] sm:$0xf0]  ;;  %v6934_v57 = vor.u32 %v8679_v9, %v6933_v42  ;;  %v6797_v0 = vld [vmem:[#allocation2 + $0x2c0] sm:$0xf] }
 0x528   :  { %5421 = vmatpush.bf16.msrb.mxu1 %v6582_v5  ;;  %v6814_v5 = vor.u32 %v8649_v26, %v6813_v44  ;;  %v6878_v56 = vor.u32 %v8665_v60, %v6877_v32  ;;  %v8677_v43 = vld [vmem:[#allocation2 + $0x3c4] sm:$0xf0]  ;;  %v6798_v44 = vor.u32 %v8645_v61, %v6797_v0  ;;  %v6725_v26 = vld [vmem:[#allocation2 + $0x230] sm:$0xf]  ;;  %v8627_v4 = vld [vmem:[#allocation2 + $0x234] sm:$0xf0] }
 0x529   :  { %5396 = vmatpush.bf16.msrb.mxu3 %v6446_v6  ;;  %v6869_v6 = vld [vmem:[#allocation2 + $0x350] sm:$0xf]  ;;  %v8643_v32 = vld [vmem:[#allocation2 + $0x2b4] sm:$0xf0]  ;;  %v6726_v23 = vor.u32 %v8627_v4, %v6725_v26  ;;  %v6717_v7 = vld [vmem:[#allocation2 + $0x220] sm:$0xf] }
 0x52a   :  { %5409 = vmatpush.bf16.msrb.mxu0 %v6510_v38  ;;  %v6733_v38 = vld [vmem:[#allocation2 + $0x240] sm:$0xf]  ;;  %v6789_v16 = vld [vmem:[#allocation2 + $0x2b0] sm:$0xf]  ;;  %v8625_v42 = vld [vmem:[#allocation2 + $0x224] sm:$0xf0] }
 0x52b   :  { %5435 = vmatpush.bf16.msrb.mxu2 %v6638_v21  ;;  %v8629_v21 = vld [vmem:[#allocation2 + $0x244] sm:$0xf0]  ;;  %v6853_v54 = vld [vmem:[#allocation2 + $0x330] sm:$0xf]  ;;  %v6790_v47 = vor.u32 %v8643_v32, %v6789_v16  ;;  %v6781_v9 = vld [vmem:[#allocation2 + $0x2a0] sm:$0xf] }
 0x52c   :  { %5422 = vmatpush.bf16.msrb.mxu1 %v6574_v40  ;;  %5397 = vmatmul.bf16.vlgmr.msrb.gmra.mxu3 %v11913_v37  ;;  %v8661_v40 = vld [vmem:[#allocation2 + $0x344] sm:$0xf0]  ;;  %v6734_v19 = vor.u32 %v8629_v21, %v6733_v38  ;;  %v6845_v38 = vld [vmem:[#allocation2 + $0x320] sm:$0xf]  ;;  %v6718_v21 = vor.u32 %v8625_v42, %v6717_v7  ;;  %v6709_v61 = vld [vmem:[#allocation2 + $0x210] sm:$0xf] }
 0x52d   :  { %5441 = vmatpush.bf16.msra.mxu3 %v6758_v63  ;;  %5410 = vmatmul.bf16.vlgmr.msrb.gmra.mxu0 %v11923_v27  ;;  %v6870_v63 = vor.u32 %v8663_v30, %v6869_v6  ;;  %v8641_v6 = vld [vmem:[#allocation2 + $0x2a4] sm:$0xf0]  ;;  %v6837_v26 = vld [vmem:[#allocation2 + $0x310] sm:$0xf]  ;;  %v6701_v32 = vld [vmem:[#allocation2 + $0x200] sm:$0xf] }
 0x52e   :  { %5454 = vmatpush.bf16.msra.mxu0 %v6822_v2  ;;  %5436 = vmatmul.bf16.vlgmr.msrb.gmra.mxu2 %v11918_v49  ;;  %v6925_v2 = vld [vmem:[#allocation2 + $0x3c0] sm:$0xf]  ;;  %v6782_v0 = vor.u32 %v8641_v6, %v6781_v9  ;;  %v7013_v7 = vld [vmem:[#allocation2 + $0x470] sm:$0xf]  ;;  %v8715_v9 = vld [vmem:[#allocation2 + $0x4f4] sm:$0xf0] }
 0x52f   :  { %5480 = vmatpush.bf16.msra.mxu2 %v6950_v62  ;;  %5423 = vmatmul.bf16.vlgmr.msrb.gmra.mxu1 %v11927_v24  ;;  %v6861_v62 = vld [vmem:[#allocation2 + $0x340] sm:$0xf]  ;;  %v7077_v42 = vld [vmem:[#allocation2 + $0x4f0] sm:$0xf]  ;;  %s9163_s15 = smov [#allocation4]   ;;  %s6391_s19 = sshll.u32 %s12219_s10, 4  ;;  %s6392_s19 = int_to_ptr.hbm [resolvable:$true] %s6391_s19 }
 0x530   :  { %5467 = vmatpush.bf16.msra.mxu1 %v6886_v14  ;;  %v6926_v14 = vor.u32 %v8677_v43, %v6925_v2  ;;  %v6862_v60 = vor.u32 %v8661_v40, %v6861_v62  ;;  %v8623_v2 = vld [vmem:[#allocation2 + $0x214] sm:$0xf0]  ;;  %v6773_v43 = vld [vmem:[#allocation2 + $0x290] sm:$0xf]  ;;  %s6389_s16 = sshll.u32 %s9163_s15, 4  ;;  %s6390_s16 = int_to_ptr.vmem [resolvable:$true] %s6389_s16 }
 0x531   :  { %5442 = vmatpush.bf16.msra.mxu3 %v6750_v22  ;;  %v6917_v22 = vld [vmem:[#allocation2 + $0x3b0] sm:$0xf]  ;;  %v8639_v62 = vld [vmem:[#allocation2 + $0x294] sm:$0xf0]  ;;  %v6710_v4 = vor.u32 %v8623_v2, %v6709_v61  ;;  %v7078_v2 = vor.u32 %v8715_v9, %v7077_v42 }
 0x532   :  { %5455 = vmatpush.bf16.msra.mxu0 %v6814_v5  ;;  %v8675_v5 = vld [vmem:[#allocation2 + $0x3b4] sm:$0xf0]  ;;  %v6774_v16 = vor.u32 %v8639_v62, %v6773_v43  ;;  %v7205_v6 = vld [vmem:[#allocation2 + $0x5f0] sm:$0xf]  ;;  %v7005_v62 = vld [vmem:[#allocation2 + $0x460] sm:$0xf] }
 0x533   :  { %5481 = vmatpush.bf16.msra.mxu2 %v6942_v18  ;;  %v8659_v18 = vld [vmem:[#allocation2 + $0x334] sm:$0xf0]  ;;  %v7141_v61 = vld [vmem:[#allocation2 + $0x570] sm:$0xf] }
 0x534   :  { %5468 = vmatpush.bf16.msra.mxu1 %v6878_v56  ;;  %v6918_v56 = vor.u32 %v8675_v5, %v6917_v22  ;;  %v6854_v30 = vor.u32 %v8659_v18, %v6853_v54  ;;  %v6765_v22 = vld [vmem:[#allocation2 + $0x280] sm:$0xf]  ;;  %v8637_v54 = vld [vmem:[#allocation2 + $0x284] sm:$0xf0]  ;;  %v7061_v42 = vld [vmem:[#allocation2 + $0x4d0] sm:$0xf] }
 0x535   :  { %5443 = vmatpush.bf16.msra.mxu3 %v6742_v25  ;;  %v6909_v25 = vld [vmem:[#allocation2 + $0x3a0] sm:$0xf]  ;;  %v7189_v9 = vld [vmem:[#allocation2 + $0x5d0] sm:$0xf] }
 0x536   :  { %5456 = vmatpush.bf16.msra.mxu0 %v6806_v45  ;;  %v8673_v45 = vld [vmem:[#allocation2 + $0x3a4] sm:$0xf0]  ;;  %v6893_v18 = vld [vmem:[#allocation2 + $0x380] sm:$0xf] }
 0x537   :  { %5482 = vmatpush.bf16.msra.mxu2 %v6934_v57  ;;  %v8657_v57 = vld [vmem:[#allocation2 + $0x324] sm:$0xf0] }
 0x538   :  { %5469 = vmatpush.bf16.msra.mxu1 %v6870_v63  ;;  %v6910_v63 = vor.u32 %v8673_v45, %v6909_v25  ;;  %v6846_v40 = vor.u32 %v8657_v57, %v6845_v38  ;;  %v6766_v45 = vor.u32 %v8637_v54, %v6765_v22  ;;  %v6829_v38 = vld [vmem:[#allocation2 + $0x300] sm:$0xf]  ;;  %v8653_v57 = vld [vmem:[#allocation2 + $0x304] sm:$0xf0] }
 0x539   :  { %5444 = vmatpush.bf16.msra.mxu3 %v6734_v19  ;;  %v6901_v19 = vld [vmem:[#allocation2 + $0x390] sm:$0xf]  ;;  %v8729_v54 = vld [vmem:[#allocation2 + $0x564] sm:$0xf0] }
 0x53a   :  { %5457 = vmatpush.bf16.msra.mxu0 %v6798_v44  ;;  %v8671_v44 = vld [vmem:[#allocation2 + $0x394] sm:$0xf0] }
 0x53b   :  { %5483 = vmatpush.bf16.msra.mxu2 %v6926_v14  ;;  %v8655_v14 = vld [vmem:[#allocation2 + $0x314] sm:$0xf0]  ;;  %v6902_v5 = vor.u32 %v8671_v44, %v6901_v19  ;;  %v7069_v19 = vld [vmem:[#allocation2 + $0x4e0] sm:$0xf]  ;;  %v6830_v44 = vor.u32 %v8653_v57, %v6829_v38 }
 0x53c   :  { %5470 = vmatpush.bf16.msra.mxu1 %v6862_v60  ;;  %v8621_v60 = vld [vmem:[#allocation2 + $0x204] sm:$0xf0] }
 0x53d   :  { %5445 = vmatpush.bf16.msra.mxu3 %v6726_v23  ;;  %v8669_v23 = vld [vmem:[#allocation2 + $0x384] sm:$0xf0]  ;;  %v6702_v25 = vor.u32 %v8621_v60, %v6701_v32  ;;  %v11940_v60 = vpack.c.bf16 %v2237_v1, %v2237_v1  ;;  %v8711_v1 = vld [vmem:[#allocation2 + $0x4d4] sm:$0xf0] }
 0x53e   :  { %5458 = vmatpush.bf16.msra.mxu0 %v6790_v47  ;;  %v6838_v47 = vor.u32 %v8655_v14, %v6837_v26  ;;  %v8713_v26 = vld [vmem:[#allocation2 + $0x4e4] sm:$0xf0]  ;;  %v7197_v14 = vld [vmem:[#allocation2 + $0x5e0] sm:$0xf]  ;;  %v7062_v38 = vor.u32 %v8711_v1, %v7061_v42 }
 0x53f   :  { %5484 = vmatpush.bf16.msra.mxu2 %v6918_v56  ;;  %v8699_v56 = vld [vmem:[#allocation2 + $0x474] sm:$0xf0] }
 0x540   :  { %5471 = vmatpush.bf16.msra.mxu1 %v6854_v30  ;;  %v8747_v30 = vld [vmem:[#allocation2 + $0x5f4] sm:$0xf0] }
 0x541   :  { %5446 = vmatpush.bf16.msra.mxu3 %v6718_v21  ;;  %v6894_v21 = vor.u32 %v8669_v23, %v6893_v18  ;;  %v7206_v43 = vor.u32 %v8747_v30, %v7205_v6  ;;  %v11945_v18 = vpack.c.bf16 %v2234_v12, %v2234_v12  ;;  %v7070_v23 = vor.u32 %v8713_v26, %v7069_v19  ;;  %v8743_v6 = vld [vmem:[#allocation2 + $0x5d4] sm:$0xf0]  ;;  %v8725_v19 = vld [vmem:[#allocation2 + $0x544] sm:$0xf0] }
 0x542   :  { %5459 = vmatpush.bf16.msra.mxu0 %v6782_v0  ;;  %v7014_v0 = vor.u32 %v8699_v56, %v7013_v7  ;;  %v6997_v7 = vld [vmem:[#allocation2 + $0x450] sm:$0xf]  ;;  %v8695_v56 = vld [vmem:[#allocation2 + $0x454] sm:$0xf0]  ;;  %v11950_v30 = vpack.c.bf16 %v11846_v35, %v11846_v35  ;;  %v7190_v57 = vor.u32 %v8743_v6, %v7189_v9  ;;  %v7181_v35 = vld [vmem:[#allocation2 + $0x5c0] sm:$0xf] }
 0x543   :  { %5485 = vmatpush.bf16.msra.mxu2 %v6910_v63  ;;  %v8731_v63 = vld [vmem:[#allocation2 + $0x574] sm:$0xf0]  ;;  %v6998_v12 = vor.u32 %v8695_v56, %v6997_v7  ;;  %v7109_v7 = vld [vmem:[#allocation2 + $0x530] sm:$0xf]  ;;  %v6973_v9 = vld [vmem:[#allocation2 + $0x420] sm:$0xf] }
 0x544   :  { %5472 = vmatpush.bf16.msra.mxu1 %v6846_v40  ;;  %v8697_v40 = vld [vmem:[#allocation2 + $0x464] sm:$0xf0]  ;;  %v7142_v32 = vor.u32 %v8731_v63, %v7141_v61  ;;  %v7053_v61 = vld [vmem:[#allocation2 + $0x4c0] sm:$0xf]  ;;  %v8723_v56 = vld [vmem:[#allocation2 + $0x534] sm:$0xf0] }
 0x545   :  { %5447 = vmatpush.bf16.msra.mxu3 %v6710_v4  ;;  %v8745_v4 = vld [vmem:[#allocation2 + $0x5e4] sm:$0xf0]  ;;  %v7006_v22 = vor.u32 %v8697_v40, %v7005_v62  ;;  %v7117_v40 = vld [vmem:[#allocation2 + $0x540] sm:$0xf] }
 0x546   :  { %5460 = vmatpush.bf16.msra.mxu0 %v6774_v16  ;;  %v11935_v16 = vpack.c.bf16 %v11851_v11, %v11851_v11  ;;  %v8709_v63 = vld [vmem:[#allocation2 + $0x4c4] sm:$0xf0] }
 0x547   :  { %5486 = vmatpush.bf16.msra.mxu2 %v6902_v5  ;;  %v7133_v5 = vld [vmem:[#allocation2 + $0x560] sm:$0xf]  ;;  %v8689_v6 = vld [vmem:[#allocation2 + $0x424] sm:$0xf0] }
 0x548   :  { %5473 = vmatpush.bf16.msra.mxu1 %v6838_v47  ;;  %v7198_v47 = vor.u32 %v8745_v4, %v7197_v14  ;;  %v7134_v11 = vor.u32 %v8729_v54, %v7133_v5  ;;  %v6981_v14 = vld [vmem:[#allocation2 + $0x430] sm:$0xf]  ;;  %v8691_v4 = vld [vmem:[#allocation2 + $0x434] sm:$0xf0] }
 0x549   :  { %5448 = vmatpush.bf16.msra.mxu3 %v6702_v25  ;;  %v7125_v25 = vld [vmem:[#allocation2 + $0x550] sm:$0xf]  ;;  %v8739_v54 = vld [vmem:[#allocation2 + $0x5b4] sm:$0xf0] }
 0x54a   :  { %5461 = vmatpush.bf16.msra.mxu0 %v6766_v45  ;;  %v8727_v45 = vld [vmem:[#allocation2 + $0x554] sm:$0xf0]  ;;  %v7173_v5 = vld [vmem:[#allocation2 + $0x5b0] sm:$0xf] }
 0x54b   :  { %5487 = vmatpush.bf16.msra.mxu2 %v6894_v21  ;;  %v6989_v21 = vld [vmem:[#allocation2 + $0x440] sm:$0xf]  ;;  %v7174_v1 = vor.u32 %v8739_v54, %v7173_v5 }
 0x54c   :  { %5474 = vmatpush.bf16.msra.mxu1 %v6830_v44  ;;  %5449 = vmatmul.bf16.vlgmr.msra.gmra.mxu3 %v11935_v16  ;;  %v7054_v44 = vor.u32 %v8709_v63, %v7053_v61 }
 0x54d   :  { %5493 = vmatpush.bf16.msrb.mxu3 %v7014_v0  ;;  %5462 = vmatmul.bf16.vlgmr.msra.gmra.mxu0 %v11945_v18  ;;  %v8693_v0 = vld [vmem:[#allocation2 + $0x444] sm:$0xf0] }
 0x54e   :  { %5506 = vmatpush.bf16.msrb.mxu0 %v7078_v2  ;;  %5488 = vmatmul.bf16.vlgmr.msra.gmra.mxu2 %v11940_v60  ;;  %v8741_v2 = vld [vmem:[#allocation2 + $0x5c4] sm:$0xf0]  ;;  %v6990_v62 = vor.u32 %v8693_v0, %v6989_v21  ;;  %v7101_v21 = vld [vmem:[#allocation2 + $0x520] sm:$0xf] }
 0x54f   :  { %5532 = vmatpush.bf16.msrb.mxu2 %v7206_v43  ;;  %5475 = vmatmul.bf16.vlgmr.msra.gmra.mxu1 %v11950_v30  ;;  %v7126_v43 = vor.u32 %v8727_v45, %v7125_v25  ;;  %v7182_v26 = vor.u32 %v8741_v2, %v7181_v35  ;;  %v7165_v25 = vld [vmem:[#allocation2 + $0x5a0] sm:$0xf]  ;;  %v8737_v45 = vld [vmem:[#allocation2 + $0x5a4] sm:$0xf0]  ;;  %v6965_v35 = vld [vmem:[#allocation2 + $0x410] sm:$0xf] }
 0x550   :  { %5519 = vmatpush.bf16.msrb.mxu1 %v7142_v32  ;;  %v7045_v32 = vld [vmem:[#allocation2 + $0x4b0] sm:$0xf]  ;;  %v8721_v0 = vld [vmem:[#allocation2 + $0x524] sm:$0xf0]  ;;  %v7166_v63 = vor.u32 %v8737_v45, %v7165_v25  ;;  %v8687_v2 = vld [vmem:[#allocation2 + $0x414] sm:$0xf0] }
 0x551   :  { %5494 = vmatpush.bf16.msrb.mxu3 %v7006_v22  ;;  %v8707_v22 = vld [vmem:[#allocation2 + $0x4b4] sm:$0xf0] }
 0x552   :  { %5507 = vmatpush.bf16.msrb.mxu0 %v7070_v23  ;;  %v7118_v23 = vor.u32 %v8725_v19, %v7117_v40  ;;  %v7046_v42 = vor.u32 %v8707_v22, %v7045_v32  ;;  %v7157_v40 = vld [vmem:[#allocation2 + $0x590] sm:$0xf]  ;;  %v8735_v19 = vld [vmem:[#allocation2 + $0x594] sm:$0xf0]  ;;  %v6957_v32 = vld [vmem:[#allocation2 + $0x400] sm:$0xf] }
 0x553   :  { %5533 = vmatpush.bf16.msrb.mxu2 %v7198_v47  ;;  %v6982_v47 = vor.u32 %v8691_v4, %v6981_v14  ;;  %v6966_v14 = vor.u32 %v8687_v2, %v6965_v35  ;;  %v8719_v4 = vld [vmem:[#allocation2 + $0x514] sm:$0xf0]  ;;  %v8685_v22 = vld [vmem:[#allocation2 + $0x404] sm:$0xf0]  ;;  %v7158_v54 = vor.u32 %v8735_v19, %v7157_v40 }
 0x554   :  { %5520 = vmatpush.bf16.msrb.mxu1 %v7134_v11  ;;  %v7037_v11 = vld [vmem:[#allocation2 + $0x4a0] sm:$0xf]  ;;  %v6958_v25 = vor.u32 %v8685_v22, %v6957_v32  ;;  %v8811_v45 = vld [vmem:[#allocation2 + $0x7f4] sm:$0xf0]  ;;  %v8761_v19 = vld [vmem:[#allocation2 + $0x664] sm:$0xf0] }
 0x555   :  { %5495 = vmatpush.bf16.msrb.mxu3 %v6998_v12  ;;  %v8705_v12 = vld [vmem:[#allocation2 + $0x4a4] sm:$0xf0]  ;;  %v7453_v32 = vld [vmem:[#allocation2 + $0x7e0] sm:$0xf] }
 0x556   :  { %5508 = vmatpush.bf16.msrb.mxu0 %v7062_v38  ;;  %v7110_v38 = vor.u32 %v8723_v56, %v7109_v7  ;;  %v7038_v61 = vor.u32 %v8705_v12, %v7037_v11  ;;  %v7149_v7 = vld [vmem:[#allocation2 + $0x580] sm:$0xf]  ;;  %v8733_v56 = vld [vmem:[#allocation2 + $0x584] sm:$0xf0]  ;;  %v8779_v11 = vld [vmem:[#allocation2 + $0x6f4] sm:$0xf0] }
 0x557   :  { %5534 = vmatpush.bf16.msrb.mxu2 %v7190_v57  ;;  %v6974_v57 = vor.u32 %v8689_v6, %v6973_v9  ;;  %v7333_v6 = vld [vmem:[#allocation2 + $0x6f0] sm:$0xf]  ;;  %v8809_v22 = vld [vmem:[#allocation2 + $0x7e4] sm:$0xf0] }
 0x558   :  { %5521 = vmatpush.bf16.msrb.mxu1 %v7126_v43  ;;  %v7029_v43 = vld [vmem:[#allocation2 + $0x490] sm:$0xf]  ;;  %v7334_v2 = vor.u32 %v8779_v11, %v7333_v6  ;;  %v8775_v11 = vld [vmem:[#allocation2 + $0x6d4] sm:$0xf0] }
 0x559   :  { %5496 = vmatpush.bf16.msrb.mxu3 %v6990_v62  ;;  %v8703_v62 = vld [vmem:[#allocation2 + $0x494] sm:$0xf0]  ;;  %v7461_v12 = vld [vmem:[#allocation2 + $0x7f0] sm:$0xf] }
 0x55a   :  { %5509 = vmatpush.bf16.msrb.mxu0 %v7054_v44  ;;  %v7102_v44 = vor.u32 %v8721_v0, %v7101_v21  ;;  %v7030_v5 = vor.u32 %v8703_v62, %v7029_v43  ;;  %v7150_v0 = vor.u32 %v8733_v56, %v7149_v7  ;;  %v7261_v43 = vld [vmem:[#allocation2 + $0x660] sm:$0xf]  ;;  %v7462_v62 = vor.u32 %v8811_v45, %v7461_v12  ;;  %v7317_v6 = vld [vmem:[#allocation2 + $0x6d0] sm:$0xf]  ;;  %v8807_v12 = vld [vmem:[#allocation2 + $0x7d4] sm:$0xf0] }
 0x55b   :  { %5535 = vmatpush.bf16.msrb.mxu2 %v7182_v26  ;;  %v7093_v26 = vld [vmem:[#allocation2 + $0x510] sm:$0xf]  ;;  %v7262_v7 = vor.u32 %v8761_v19, %v7261_v43  ;;  %v8791_v45 = vld [vmem:[#allocation2 + $0x754] sm:$0xf0]  ;;  %v8805_v43 = vld [vmem:[#allocation2 + $0x7c4] sm:$0xf0] }
 0x55c   :  { %5522 = vmatpush.bf16.msrb.mxu1 %v7118_v23  ;;  %v7021_v23 = vld [vmem:[#allocation2 + $0x480] sm:$0xf]  ;;  %v7094_v9 = vor.u32 %v8719_v4, %v7093_v26  ;;  %v8777_v26 = vld [vmem:[#allocation2 + $0x6e4] sm:$0xf0] }
 0x55d   :  { %5497 = vmatpush.bf16.msrb.mxu3 %v6982_v47  ;;  %v8701_v47 = vld [vmem:[#allocation2 + $0x484] sm:$0xf0] }
 0x55e   :  { %5510 = vmatpush.bf16.msrb.mxu0 %v7046_v42  ;;  %v7269_v42 = vld [vmem:[#allocation2 + $0x670] sm:$0xf]  ;;  %v7022_v21 = vor.u32 %v8701_v47, %v7021_v23  ;;  %v11962_v23 = vpack.c.bf16 %v2243_v48, %v2243_v48  ;;  %v11967_v47 = vpack.c.bf16 %v2240_v8, %v2240_v8  ;;  %v11971_v48 = vpack.c.bf16 %v11834_v29, %v11834_v29 }
 0x55f   :  { %5536 = vmatpush.bf16.msrb.mxu2 %v7174_v1  ;;  %v8763_v1 = vld [vmem:[#allocation2 + $0x674] sm:$0xf0]  ;;  %v7445_v8 = vld [vmem:[#allocation2 + $0x7d0] sm:$0xf] }
 0x560   :  { %5523 = vmatpush.bf16.msrb.mxu1 %v7110_v38  ;;  %v7085_v38 = vld [vmem:[#allocation2 + $0x500] sm:$0xf]  ;;  %v7270_v35 = vor.u32 %v8763_v1, %v7269_v42  ;;  %v7253_v42 = vld [vmem:[#allocation2 + $0x650] sm:$0xf]  ;;  %v7454_v1 = vor.u32 %v8809_v22, %v7453_v32  ;;  %v7446_v29 = vor.u32 %v8807_v12, %v7445_v8  ;;  %v8755_v32 = vld [vmem:[#allocation2 + $0x634] sm:$0xf0] }
 0x561   :  { %5498 = vmatpush.bf16.msrb.mxu3 %v6974_v57  ;;  %v8717_v57 = vld [vmem:[#allocation2 + $0x504] sm:$0xf0]  ;;  %v7301_v22 = vld [vmem:[#allocation2 + $0x6b0] sm:$0xf]  ;;  %v7293_v12 = vld [vmem:[#allocation2 + $0x6a0] sm:$0xf] }
 0x562   :  { %5511 = vmatpush.bf16.msrb.mxu0 %v7038_v61  ;;  %v7397_v61 = vld [vmem:[#allocation2 + $0x770] sm:$0xf]  ;;  %v7086_v40 = vor.u32 %v8717_v57, %v7085_v38  ;;  %v7318_v57 = vor.u32 %v8775_v11, %v7317_v6  ;;  %v7229_v11 = vld [vmem:[#allocation2 + $0x620] sm:$0xf]  ;;  %v8753_v8 = vld [vmem:[#allocation2 + $0x624] sm:$0xf0] }
 0x563   :  { %5537 = vmatpush.bf16.msrb.mxu2 %v7166_v63  ;;  %v8795_v63 = vld [vmem:[#allocation2 + $0x774] sm:$0xf0] }
 0x564   :  { %5524 = vmatpush.bf16.msrb.mxu1 %v7102_v44  ;;  %v7325_v44 = vld [vmem:[#allocation2 + $0x6e0] sm:$0xf]  ;;  %v7398_v4 = vor.u32 %v8795_v63, %v7397_v61  ;;  %v8773_v63 = vld [vmem:[#allocation2 + $0x6c4] sm:$0xf0] }
 0x565   :  { %5499 = vmatpush.bf16.msrb.mxu3 %v6966_v14  ;;  %v11957_v14 = vpack.c.bf16 %v11839_v28, %v11839_v28  ;;  %v7326_v56 = vor.u32 %v8777_v26, %v7325_v44  ;;  %v7309_v61 = vld [vmem:[#allocation2 + $0x6c0] sm:$0xf]  ;;  %v7237_v26 = vld [vmem:[#allocation2 + $0x630] sm:$0xf] }
 0x566   :  { %5512 = vmatpush.bf16.msrb.mxu0 %v7030_v5  ;;  %v7389_v5 = vld [vmem:[#allocation2 + $0x760] sm:$0xf]  ;;  %v7310_v44 = vor.u32 %v8773_v63, %v7309_v61  ;;  %v7221_v63 = vld [vmem:[#allocation2 + $0x610] sm:$0xf] }
 0x567   :  { %5538 = vmatpush.bf16.msrb.mxu2 %v7158_v54  ;;  %v8793_v54 = vld [vmem:[#allocation2 + $0x764] sm:$0xf0] }
 0x568   :  { %5525 = vmatpush.bf16.msrb.mxu1 %v7094_v9  ;;  %v8759_v9 = vld [vmem:[#allocation2 + $0x654] sm:$0xf0]  ;;  %v7390_v28 = vor.u32 %v8793_v54, %v7389_v5 }
 0x569   :  { %5500 = vmatpush.bf16.msrb.mxu3 %v6958_v25  ;;  %v7381_v25 = vld [vmem:[#allocation2 + $0x750] sm:$0xf]  ;;  %v7254_v38 = vor.u32 %v8759_v9, %v7253_v42  ;;  %v8771_v5 = vld [vmem:[#allocation2 + $0x6b4] sm:$0xf0]  ;;  %v7238_v9 = vor.u32 %v8755_v32, %v7237_v26 }
 0x56a   :  { %5513 = vmatpush.bf16.msrb.mxu0 %v7022_v21  ;;  %v7245_v21 = vld [vmem:[#allocation2 + $0x640] sm:$0xf]  ;;  %v7365_v42 = vld [vmem:[#allocation2 + $0x730] sm:$0xf]  ;;  %v7302_v6 = vor.u32 %v8771_v5, %v7301_v22 }
 0x56b   :  { %5539 = vmatpush.bf16.msrb.mxu2 %v7150_v0  ;;  %v8757_v0 = vld [vmem:[#allocation2 + $0x644] sm:$0xf0]  ;;  %v7349_v26 = vld [vmem:[#allocation2 + $0x710] sm:$0xf]  ;;  %v7213_v5 = vld [vmem:[#allocation2 + $0x600] sm:$0xf] }
 0x56c   :  { %5526 = vmatpush.bf16.msrb.mxu1 %v7086_v40  ;;  %5501 = vmatmul.bf16.vlgmr.msrb.gmra.mxu3 %v11957_v14  ;;  %v8789_v40 = vld [vmem:[#allocation2 + $0x744] sm:$0xf0]  ;;  %v7246_v19 = vor.u32 %v8757_v0, %v7245_v21  ;;  %v7357_v21 = vld [vmem:[#allocation2 + $0x720] sm:$0xf]  ;;  %v7230_v0 = vor.u32 %v8753_v8, %v7229_v11  ;;  %v7525_v11 = vld [vmem:[#allocation2 + $0x870] sm:$0xf] }
 0x56d   :  { %5545 = vmatpush.bf16.msra.mxu3 %v7270_v35  ;;  %5514 = vmatmul.bf16.vlgmr.msrb.gmra.mxu0 %v11967_v47  ;;  %v7382_v35 = vor.u32 %v8791_v45, %v7381_v25  ;;  %v8769_v25 = vld [vmem:[#allocation2 + $0x6a4] sm:$0xf0]  ;;  %v7589_v8 = vld [vmem:[#allocation2 + $0x8f0] sm:$0xf] }
 0x56e   :  { %5558 = vmatpush.bf16.msra.mxu0 %v7334_v2  ;;  %5540 = vmatmul.bf16.vlgmr.msrb.gmra.mxu2 %v11962_v23  ;;  %v7437_v2 = vld [vmem:[#allocation2 + $0x7c0] sm:$0xf]  ;;  %v7294_v61 = vor.u32 %v8769_v25, %v7293_v12  ;;  %v8843_v12 = vld [vmem:[#allocation2 + $0x8f4] sm:$0xf0]  ;;  %v7717_v25 = vld [vmem:[#allocation2 + $0x9f0] sm:$0xf] }
 0x56f   :  { %5584 = vmatpush.bf16.msra.mxu2 %v7462_v62  ;;  %5527 = vmatmul.bf16.vlgmr.msrb.gmra.mxu1 %v11971_v48  ;;  %v7373_v62 = vld [vmem:[#allocation2 + $0x740] sm:$0xf] }
 0x570   :  { %5571 = vmatpush.bf16.msra.mxu1 %v7398_v4  ;;  %v7438_v4 = vor.u32 %v8805_v43, %v7437_v2  ;;  %v7374_v54 = vor.u32 %v8789_v40, %v7373_v62  ;;  %v8751_v2 = vld [vmem:[#allocation2 + $0x614] sm:$0xf0]  ;;  %v7285_v43 = vld [vmem:[#allocation2 + $0x690] sm:$0xf] }
 0x571   :  { %5546 = vmatpush.bf16.msra.mxu3 %v7262_v7  ;;  %v7429_v7 = vld [vmem:[#allocation2 + $0x7b0] sm:$0xf]  ;;  %v8767_v62 = vld [vmem:[#allocation2 + $0x694] sm:$0xf0]  ;;  %v7222_v32 = vor.u32 %v8751_v2, %v7221_v63  ;;  %v7590_v2 = vor.u32 %v8843_v12, %v7589_v8 }
 0x572   :  { %5559 = vmatpush.bf16.msra.mxu0 %v7326_v56  ;;  %v8803_v56 = vld [vmem:[#allocation2 + $0x7b4] sm:$0xf0]  ;;  %v7286_v22 = vor.u32 %v8767_v62, %v7285_v43  ;;  %v7653_v63 = vld [vmem:[#allocation2 + $0x970] sm:$0xf]  ;;  %v7517_v62 = vld [vmem:[#allocation2 + $0x860] sm:$0xf] }
 0x573   :  { %5585 = vmatpush.bf16.msra.mxu2 %v7454_v1  ;;  %v8787_v1 = vld [vmem:[#allocation2 + $0x734] sm:$0xf0]  ;;  %v7573_v8 = vld [vmem:[#allocation2 + $0x8d0] sm:$0xf] }
 0x574   :  { %5572 = vmatpush.bf16.msra.mxu1 %v7390_v28  ;;  %v7430_v28 = vor.u32 %v8803_v56, %v7429_v7  ;;  %v7366_v45 = vor.u32 %v8787_v1, %v7365_v42  ;;  %v7277_v7 = vld [vmem:[#allocation2 + $0x680] sm:$0xf]  ;;  %v8765_v42 = vld [vmem:[#allocation2 + $0x684] sm:$0xf0]  ;;  %v7701_v12 = vld [vmem:[#allocation2 + $0x9d0] sm:$0xf] }
 0x575   :  { %5547 = vmatpush.bf16.msra.mxu3 %v7254_v38  ;;  %v7421_v38 = vld [vmem:[#allocation2 + $0x7a0] sm:$0xf] }
 0x576   :  { %5560 = vmatpush.bf16.msra.mxu0 %v7318_v57  ;;  %v8801_v57 = vld [vmem:[#allocation2 + $0x7a4] sm:$0xf0]  ;;  %v7405_v1 = vld [vmem:[#allocation2 + $0x780] sm:$0xf] }
 0x577   :  { %5586 = vmatpush.bf16.msra.mxu2 %v7446_v29  ;;  %v8785_v29 = vld [vmem:[#allocation2 + $0x724] sm:$0xf0] }
 0x578   :  { %5573 = vmatpush.bf16.msra.mxu1 %v7382_v35  ;;  %v7422_v35 = vor.u32 %v8801_v57, %v7421_v38  ;;  %v7358_v40 = vor.u32 %v8785_v29, %v7357_v21  ;;  %v7278_v57 = vor.u32 %v8765_v42, %v7277_v7  ;;  %v7341_v21 = vld [vmem:[#allocation2 + $0x700] sm:$0xf]  ;;  %v8781_v29 = vld [vmem:[#allocation2 + $0x704] sm:$0xf0] }
 0x579   :  { %5548 = vmatpush.bf16.msra.mxu3 %v7246_v19  ;;  %v7413_v19 = vld [vmem:[#allocation2 + $0x790] sm:$0xf]  ;;  %v8857_v42 = vld [vmem:[#allocation2 + $0x964] sm:$0xf0] }
 0x57a   :  { %5561 = vmatpush.bf16.msra.mxu0 %v7310_v44  ;;  %v8799_v44 = vld [vmem:[#allocation2 + $0x794] sm:$0xf0] }
 0x57b   :  { %5587 = vmatpush.bf16.msra.mxu2 %v7438_v4  ;;  %v8783_v4 = vld [vmem:[#allocation2 + $0x714] sm:$0xf0]  ;;  %v7414_v56 = vor.u32 %v8799_v44, %v7413_v19  ;;  %v7581_v19 = vld [vmem:[#allocation2 + $0x8e0] sm:$0xf]  ;;  %v7342_v44 = vor.u32 %v8781_v29, %v7341_v21 }
 0x57c   :  { %5574 = vmatpush.bf16.msra.mxu1 %v7374_v54  ;;  %v8749_v54 = vld [vmem:[#allocation2 + $0x604] sm:$0xf0] }
 0x57d   :  { %5549 = vmatpush.bf16.msra.mxu3 %v7238_v9  ;;  %v8797_v9 = vld [vmem:[#allocation2 + $0x784] sm:$0xf0]  ;;  %v7214_v38 = vor.u32 %v8749_v54, %v7213_v5  ;;  %v11984_v54 = vpack.c.bf16 %v2249_v13, %v2249_v13  ;;  %v8839_v13 = vld [vmem:[#allocation2 + $0x8d4] sm:$0xf0] }
 0x57e   :  { %5562 = vmatpush.bf16.msra.mxu0 %v7302_v6  ;;  %v7350_v6 = vor.u32 %v8783_v4, %v7349_v26  ;;  %v11979_v26 = vpack.c.bf16 %v11863_v58, %v11863_v58  ;;  %v8841_v4 = vld [vmem:[#allocation2 + $0x8e4] sm:$0xf0]  ;;  %v7574_v21 = vor.u32 %v8839_v13, %v7573_v8 }
 0x57f   :  { %5588 = vmatpush.bf16.msra.mxu2 %v7430_v28  ;;  %v8827_v28 = vld [vmem:[#allocation2 + $0x874] sm:$0xf0] }
 0x580   :  { %5575 = vmatpush.bf16.msra.mxu1 %v7366_v45  ;;  %v8875_v45 = vld [vmem:[#allocation2 + $0x9f4] sm:$0xf0] }
 0x581   :  { %5550 = vmatpush.bf16.msra.mxu3 %v7230_v0  ;;  %v7406_v0 = vor.u32 %v8797_v9, %v7405_v1  ;;  %v7718_v43 = vor.u32 %v8875_v45, %v7717_v25  ;;  %v11989_v1 = vpack.c.bf16 %v2246_v59, %v2246_v59  ;;  %v7582_v9 = vor.u32 %v8841_v4, %v7581_v19  ;;  %v8871_v25 = vld [vmem:[#allocation2 + $0x9d4] sm:$0xf0]  ;;  %v8853_v19 = vld [vmem:[#allocation2 + $0x944] sm:$0xf0] }
 0x582   :  { %5563 = vmatpush.bf16.msra.mxu0 %v7294_v61  ;;  %v7526_v61 = vor.u32 %v8827_v28, %v7525_v11  ;;  %v7509_v11 = vld [vmem:[#allocation2 + $0x850] sm:$0xf]  ;;  %v8823_v28 = vld [vmem:[#allocation2 + $0x854] sm:$0xf0]  ;;  %v11994_v45 = vpack.c.bf16 %v11858_v53, %v11858_v53  ;;  %v7702_v29 = vor.u32 %v8871_v25, %v7701_v12  ;;  %v8837_v53 = vld [vmem:[#allocation2 + $0x8c4] sm:$0xf0] }
 0x583   :  { %5589 = vmatpush.bf16.msra.mxu2 %v7422_v35  ;;  %v8859_v35 = vld [vmem:[#allocation2 + $0x974] sm:$0xf0]  ;;  %v7510_v59 = vor.u32 %v8823_v28, %v7509_v11  ;;  %v7621_v11 = vld [vmem:[#allocation2 + $0x930] sm:$0xf]  ;;  %v7485_v12 = vld [vmem:[#allocation2 + $0x820] sm:$0xf] }
 0x584   :  { %5576 = vmatpush.bf16.msra.mxu1 %v7358_v40  ;;  %v8825_v40 = vld [vmem:[#allocation2 + $0x864] sm:$0xf0]  ;;  %v7654_v5 = vor.u32 %v8859_v35, %v7653_v63  ;;  %v7565_v63 = vld [vmem:[#allocation2 + $0x8c0] sm:$0xf]  ;;  %v8851_v28 = vld [vmem:[#allocation2 + $0x934] sm:$0xf0] }
 0x585   :  { %5551 = vmatpush.bf16.msra.mxu3 %v7222_v32  ;;  %v7709_v32 = vld [vmem:[#allocation2 + $0x9e0] sm:$0xf]  ;;  %v7518_v7 = vor.u32 %v8825_v40, %v7517_v62  ;;  %v8817_v25 = vld [vmem:[#allocation2 + $0x824] sm:$0xf0] }
 0x586   :  { %5564 = vmatpush.bf16.msra.mxu0 %v7286_v22  ;;  %v8873_v22 = vld [vmem:[#allocation2 + $0x9e4] sm:$0xf0]  ;;  %v7693_v35 = vld [vmem:[#allocation2 + $0x9c0] sm:$0xf] }
 0x587   :  { %5590 = vmatpush.bf16.msra.mxu2 %v7414_v56  ;;  %v7645_v56 = vld [vmem:[#allocation2 + $0x960] sm:$0xf] }
 0x588   :  { %5577 = vmatpush.bf16.msra.mxu1 %v7350_v6  ;;  %v7710_v6 = vor.u32 %v8873_v22, %v7709_v32  ;;  %v7646_v58 = vor.u32 %v8857_v42, %v7645_v56  ;;  %v7629_v40 = vld [vmem:[#allocation2 + $0x940] sm:$0xf]  ;;  %v7493_v32 = vld [vmem:[#allocation2 + $0x830] sm:$0xf]  ;;  %v8819_v22 = vld [vmem:[#allocation2 + $0x834] sm:$0xf0] }
 0x589   :  { %5552 = vmatpush.bf16.msra.mxu3 %v7214_v38  ;;  %v7637_v38 = vld [vmem:[#allocation2 + $0x950] sm:$0xf]  ;;  %v8867_v42 = vld [vmem:[#allocation2 + $0x9b4] sm:$0xf0] }
 0x58a   :  { %5565 = vmatpush.bf16.msra.mxu0 %v7278_v57  ;;  %v8855_v57 = vld [vmem:[#allocation2 + $0x954] sm:$0xf0]  ;;  %v7685_v56 = vld [vmem:[#allocation2 + $0x9b0] sm:$0xf] }
 0x58b   :  { %5591 = vmatpush.bf16.msra.mxu2 %v7406_v0  ;;  %v7501_v0 = vld [vmem:[#allocation2 + $0x840] sm:$0xf]  ;;  %v7686_v13 = vor.u32 %v8867_v42, %v7685_v56 }
 0x58c   :  { %5578 = vmatpush.bf16.msra.mxu1 %v7342_v44  ;;  %5553 = vmatmul.bf16.vlgmr.msra.gmra.mxu3 %v11979_v26  ;;  %v7566_v44 = vor.u32 %v8837_v53, %v7565_v63 }
 0x58d   :  { %5597 = vmatpush.bf16.msrb.mxu3 %v7526_v61  ;;  %5566 = vmatmul.bf16.vlgmr.msra.gmra.mxu0 %v11989_v1  ;;  %v8821_v61 = vld [vmem:[#allocation2 + $0x844] sm:$0xf0] }
 0x58e   :  { %5610 = vmatpush.bf16.msrb.mxu0 %v7590_v2  ;;  %5592 = vmatmul.bf16.vlgmr.msra.gmra.mxu2 %v11984_v54  ;;  %v8869_v2 = vld [vmem:[#allocation2 + $0x9c4] sm:$0xf0]  ;;  %v7502_v62 = vor.u32 %v8821_v61, %v7501_v0  ;;  %v7613_v0 = vld [vmem:[#allocation2 + $0x920] sm:$0xf] }
 0x58f   :  { %5636 = vmatpush.bf16.msrb.mxu2 %v7718_v43  ;;  %5579 = vmatmul.bf16.vlgmr.msra.gmra.mxu1 %v11994_v45  ;;  %v7638_v43 = vor.u32 %v8855_v57, %v7637_v38  ;;  %v7694_v4 = vor.u32 %v8869_v2, %v7693_v35  ;;  %v7677_v38 = vld [vmem:[#allocation2 + $0x9a0] sm:$0xf]  ;;  %v8865_v57 = vld [vmem:[#allocation2 + $0x9a4] sm:$0xf0]  ;;  %v7477_v35 = vld [vmem:[#allocation2 + $0x810] sm:$0xf] }
 0x590   :  { %5623 = vmatpush.bf16.msrb.mxu1 %v7654_v5  ;;  %v7557_v5 = vld [vmem:[#allocation2 + $0x8b0] sm:$0xf]  ;;  %v8849_v61 = vld [vmem:[#allocation2 + $0x924] sm:$0xf0]  ;;  %v7678_v53 = vor.u32 %v8865_v57, %v7677_v38  ;;  %v8815_v2 = vld [vmem:[#allocation2 + $0x814] sm:$0xf0] }
 0x591   :  { %5598 = vmatpush.bf16.msrb.mxu3 %v7518_v7  ;;  %v8835_v7 = vld [vmem:[#allocation2 + $0x8b4] sm:$0xf0] }
 0x592   :  { %5611 = vmatpush.bf16.msrb.mxu0 %v7582_v9  ;;  %v7630_v9 = vor.u32 %v8853_v19, %v7629_v40  ;;  %v7558_v8 = vor.u32 %v8835_v7, %v7557_v5  ;;  %v7669_v40 = vld [vmem:[#allocation2 + $0x990] sm:$0xf]  ;;  %v8863_v19 = vld [vmem:[#allocation2 + $0x994] sm:$0xf0]  ;;  %v7469_v5 = vld [vmem:[#allocation2 + $0x800] sm:$0xf] }
 0x593   :  { %5637 = vmatpush.bf16.msrb.mxu2 %v7710_v6  ;;  %v7494_v6 = vor.u32 %v8819_v22, %v7493_v32  ;;  %v7478_v32 = vor.u32 %v8815_v2, %v7477_v35  ;;  %v8847_v22 = vld [vmem:[#allocation2 + $0x914] sm:$0xf0]  ;;  %v8813_v7 = vld [vmem:[#allocation2 + $0x804] sm:$0xf0]  ;;  %v7670_v42 = vor.u32 %v8863_v19, %v7669_v40 }
 0x594   :  { %5624 = vmatpush.bf16.msrb.mxu1 %v7646_v58  ;;  %v7549_v58 = vld [vmem:[#allocation2 + $0x8a0] sm:$0xf]  ;;  %v7470_v38 = vor.u32 %v8813_v7, %v7469_v5  ;;  %v8939_v57 = vld [vmem:[#allocation2 + $0xbf4] sm:$0xf0]  ;;  %v8889_v19 = vld [vmem:[#allocation2 + $0xa64] sm:$0xf0] }
 0x595   :  { %5599 = vmatpush.bf16.msrb.mxu3 %v7510_v59  ;;  %v8833_v59 = vld [vmem:[#allocation2 + $0x8a4] sm:$0xf0]  ;;  %v7965_v5 = vld [vmem:[#allocation2 + $0xbe0] sm:$0xf] }
 0x596   :  { %5612 = vmatpush.bf16.msrb.mxu0 %v7574_v21  ;;  %v7622_v21 = vor.u32 %v8851_v28, %v7621_v11  ;;  %v7550_v63 = vor.u32 %v8833_v59, %v7549_v58  ;;  %v7661_v11 = vld [vmem:[#allocation2 + $0x980] sm:$0xf]  ;;  %v8861_v28 = vld [vmem:[#allocation2 + $0x984] sm:$0xf0]  ;;  %v8907_v58 = vld [vmem:[#allocation2 + $0xaf4] sm:$0xf0] }
 0x597   :  { %5638 = vmatpush.bf16.msrb.mxu2 %v7702_v29  ;;  %v7486_v29 = vor.u32 %v8817_v25, %v7485_v12  ;;  %v7845_v25 = vld [vmem:[#allocation2 + $0xaf0] sm:$0xf]  ;;  %v8937_v7 = vld [vmem:[#allocation2 + $0xbe4] sm:$0xf0] }
 0x598   :  { %5625 = vmatpush.bf16.msrb.mxu1 %v7638_v43  ;;  %v7541_v43 = vld [vmem:[#allocation2 + $0x890] sm:$0xf]  ;;  %v7846_v2 = vor.u32 %v8907_v58, %v7845_v25  ;;  %v8903_v58 = vld [vmem:[#allocation2 + $0xad4] sm:$0xf0] }
 0x599   :  { %5600 = vmatpush.bf16.msrb.mxu3 %v7502_v62  ;;  %v8831_v62 = vld [vmem:[#allocation2 + $0x894] sm:$0xf0]  ;;  %v7973_v59 = vld [vmem:[#allocation2 + $0xbf0] sm:$0xf] }
 0x59a   :  { %5613 = vmatpush.bf16.msrb.mxu0 %v7566_v44  ;;  %v7614_v44 = vor.u32 %v8849_v61, %v7613_v0  ;;  %v7542_v56 = vor.u32 %v8831_v62, %v7541_v43  ;;  %v7662_v61 = vor.u32 %v8861_v28, %v7661_v11  ;;  %v7773_v43 = vld [vmem:[#allocation2 + $0xa60] sm:$0xf]  ;;  %v7974_v62 = vor.u32 %v8939_v57, %v7973_v59  ;;  %v7829_v25 = vld [vmem:[#allocation2 + $0xad0] sm:$0xf]  ;;  %v8935_v59 = vld [vmem:[#allocation2 + $0xbd4] sm:$0xf0] }
 0x59b   :  { %5639 = vmatpush.bf16.msrb.mxu2 %v7694_v4  ;;  %v7605_v4 = vld [vmem:[#allocation2 + $0x910] sm:$0xf]  ;;  %v7774_v11 = vor.u32 %v8889_v19, %v7773_v43  ;;  %v8919_v57 = vld [vmem:[#allocation2 + $0xb54] sm:$0xf0]  ;;  %v8933_v43 = vld [vmem:[#allocation2 + $0xbc4] sm:$0xf0] }
 0x59c   :  { %5626 = vmatpush.bf16.msrb.mxu1 %v7630_v9  ;;  %v7533_v9 = vld [vmem:[#allocation2 + $0x880] sm:$0xf]  ;;  %v7606_v12 = vor.u32 %v8847_v22, %v7605_v4  ;;  %v8905_v4 = vld [vmem:[#allocation2 + $0xae4] sm:$0xf0] }
 0x59d   :  { %5601 = vmatpush.bf16.msrb.mxu3 %v7494_v6  ;;  %v8829_v6 = vld [vmem:[#allocation2 + $0x884] sm:$0xf0] }
 0x59e   :  { %5614 = vmatpush.bf16.msrb.mxu0 %v7558_v8  ;;  %v7781_v8 = vld [vmem:[#allocation2 + $0xa70] sm:$0xf]  ;;  %v7534_v0 = vor.u32 %v8829_v6, %v7533_v9  ;;  %v12006_v9 = vpack.c.bf16 %v2255_v51, %v2255_v51  ;;  %v12011_v6 = vpack.c.bf16 %v2252_v39, %v2252_v39  ;;  %v12015_v51 = vpack.c.bf16 %v11882_v10, %v11882_v10 }
 0x59f   :  { %5640 = vmatpush.bf16.msrb.mxu2 %v7686_v13  ;;  %v8891_v13 = vld [vmem:[#allocation2 + $0xa74] sm:$0xf0]  ;;  %v7957_v39 = vld [vmem:[#allocation2 + $0xbd0] sm:$0xf] }
 0x5a0   :  { %5627 = vmatpush.bf16.msrb.mxu1 %v7622_v21  ;;  %v7597_v21 = vld [vmem:[#allocation2 + $0x900] sm:$0xf]  ;;  %v7782_v35 = vor.u32 %v8891_v13, %v7781_v8  ;;  %v7765_v8 = vld [vmem:[#allocation2 + $0xa50] sm:$0xf]  ;;  %v7966_v13 = vor.u32 %v8937_v7, %v7965_v5  ;;  %v7958_v10 = vor.u32 %v8935_v59, %v7957_v39 }
 0x5a1   :  { %5602 = vmatpush.bf16.msrb.mxu3 %v7486_v29  ;;  %v8845_v29 = vld [vmem:[#allocation2 + $0x904] sm:$0xf0]  ;;  %v7813_v7 = vld [vmem:[#allocation2 + $0xab0] sm:$0xf]  ;;  %v7741_v39 = vld [vmem:[#allocation2 + $0xa20] sm:$0xf] }
 0x5a2   :  { %5615 = vmatpush.bf16.msrb.mxu0 %v7550_v63  ;;  %v7909_v63 = vld [vmem:[#allocation2 + $0xb70] sm:$0xf]  ;;  %v7598_v40 = vor.u32 %v8845_v29, %v7597_v21  ;;  %v7830_v29 = vor.u32 %v8903_v58, %v7829_v25  ;;  %v8915_v25 = vld [vmem:[#allocation2 + $0xb34] sm:$0xf0] }
 0x5a3   :  { %5641 = vmatpush.bf16.msrb.mxu2 %v7678_v53  ;;  %v8923_v53 = vld [vmem:[#allocation2 + $0xb74] sm:$0xf0] }
 0x5a4   :  { %5628 = vmatpush.bf16.msrb.mxu1 %v7614_v44  ;;  %v7837_v44 = vld [vmem:[#allocation2 + $0xae0] sm:$0xf]  ;;  %v7910_v22 = vor.u32 %v8923_v53, %v7909_v63  ;;  %v8901_v53 = vld [vmem:[#allocation2 + $0xac4] sm:$0xf0] }
 0x5a5   :  { %5603 = vmatpush.bf16.msrb.mxu3 %v7478_v32  ;;  %v12001_v32 = vpack.c.bf16 %v11887_v33, %v11887_v33  ;;  %v7838_v28 = vor.u32 %v8905_v4, %v7837_v44  ;;  %v7821_v63 = vld [vmem:[#allocation2 + $0xac0] sm:$0xf]  ;;  %v7749_v4 = vld [vmem:[#allocation2 + $0xa30] sm:$0xf] }
 0x5a6   :  { %5616 = vmatpush.bf16.msrb.mxu0 %v7542_v56  ;;  %v7901_v56 = vld [vmem:[#allocation2 + $0xb60] sm:$0xf]  ;;  %v7822_v44 = vor.u32 %v8901_v53, %v7821_v63  ;;  %v8929_v63 = vld [vmem:[#allocation2 + $0xba4] sm:$0xf0] }
 0x5a7   :  { %5642 = vmatpush.bf16.msrb.mxu2 %v7670_v42  ;;  %v8921_v42 = vld [vmem:[#allocation2 + $0xb64] sm:$0xf0]  ;;  %v7869_v53 = vld [vmem:[#allocation2 + $0xb20] sm:$0xf] }
 0x5a8   :  { %5629 = vmatpush.bf16.msrb.mxu1 %v7606_v12  ;;  %v8887_v12 = vld [vmem:[#allocation2 + $0xa54] sm:$0xf0]  ;;  %v7902_v33 = vor.u32 %v8921_v42, %v7901_v56  ;;  %v2823_v42 = vld [vmem:[%s12215_s6] sm:$0x3] }
 0x5a9   :  { %5604 = vmatpush.bf16.msrb.mxu3 %v7470_v38  ;;  %v7893_v38 = vld [vmem:[#allocation2 + $0xb50] sm:$0xf]  ;;  %v7766_v21 = vor.u32 %v8887_v12, %v7765_v8  ;;  %v8899_v56 = vld [vmem:[#allocation2 + $0xab4] sm:$0xf0]  ;;  %v2825_v59 = vperm.slane %v2823_v42, 0 }
 0x5aa   :  { %5617 = vmatpush.bf16.msrb.mxu0 %v7534_v0  ;;  %v7757_v0 = vld [vmem:[#allocation2 + $0xa40] sm:$0xf]  ;;  %v8931_v8 = vld [vmem:[#allocation2 + $0xbb4] sm:$0xf0]  ;;  %v7877_v12 = vld [vmem:[#allocation2 + $0xb30] sm:$0xf] }
 0x5ab   :  { %5643 = vmatpush.bf16.msrb.mxu2 %v7662_v61  ;;  %v8885_v61 = vld [vmem:[#allocation2 + $0xa44] sm:$0xf0]  ;;  %v7925_v42 = vld [vmem:[#allocation2 + $0xb90] sm:$0xf] }
 0x5ac   :  { %5630 = vmatpush.bf16.msrb.mxu1 %v7598_v40  ;;  %5605 = vmatmul.bf16.vlgmr.msrb.gmra.mxu3 %v12001_v32  ;;  %v8917_v40 = vld [vmem:[#allocation2 + $0xb44] sm:$0xf0]  ;;  %v7758_v19 = vor.u32 %v8885_v61, %v7757_v0  ;;  %v7933_v61 = vld [vmem:[#allocation2 + $0xba0] sm:$0xf] }
 0x5ad   :  { %5649 = vmatpush.bf16.msra.mxu3 %v7782_v35  ;;  %5618 = vmatmul.bf16.vlgmr.msrb.gmra.mxu0 %v12011_v6  ;;  %v7894_v35 = vor.u32 %v8919_v57, %v7893_v38  ;;  %v5424_v38 = vpop.f32.mrf.mxu1  ;;  %v8897_v0 = vld [vmem:[#allocation2 + $0xaa4] sm:$0xf0] }
 0x5ae   :  { %5662 = vmatpush.bf16.msra.mxu0 %v7846_v2  ;;  %5644 = vmatmul.bf16.vlgmr.msrb.gmra.mxu2 %v12006_v9  ;;  %v7949_v2 = vld [vmem:[#allocation2 + $0xbc0] sm:$0xf] }
 0x5af   :  { %5688 = vmatpush.bf16.msra.mxu2 %v7974_v62  ;;  %5631 = vmatmul.bf16.vlgmr.msrb.gmra.mxu1 %v12015_v51  ;;  %v7885_v62 = vld [vmem:[#allocation2 + $0xb40] sm:$0xf]  ;;  %v7950_v5 = vor.u32 %v8933_v43, %v7949_v2  ;;  %v5398_v2 = vpop.f32.mrf.mxu3 }
 0x5b0   :  { %5675 = vmatpush.bf16.msra.mxu1 %v7910_v22  ;;  %v8883_v22 = vld [vmem:[#allocation2 + $0xa34] sm:$0xf0] }
 0x5b1   :  { %5650 = vmatpush.bf16.msra.mxu3 %v7774_v11  ;;  %v7886_v11 = vor.u32 %v8917_v40, %v7885_v62  ;;  %v7750_v58 = vor.u32 %v8883_v22, %v7749_v4  ;;  %v7733_v40 = vld [vmem:[#allocation2 + $0xa10] sm:$0xf]  ;;  %v7934_v4 = vor.u32 %v8929_v63, %v7933_v61  ;;  %v8879_v22 = vld [vmem:[#allocation2 + $0xa14] sm:$0xf0]  ;;  %v8893_v61 = vld [vmem:[#allocation2 + $0xa84] sm:$0xf0] }
 0x5b2   :  { %5663 = vmatpush.bf16.msra.mxu0 %v7838_v28  ;;  %v7941_v28 = vld [vmem:[#allocation2 + $0xbb0] sm:$0xf]  ;;  %v8925_v63 = vld [vmem:[#allocation2 + $0xb84] sm:$0xf0] }
 0x5b3   :  { %5689 = vmatpush.bf16.msra.mxu2 %v7966_v13  ;;  %v5411_v13 = vpop.f32.mrf.mxu0  ;;  %v7942_v57 = vor.u32 %v8931_v8, %v7941_v28 }
 0x5b4   :  { %5676 = vmatpush.bf16.msra.mxu1 %v7902_v33  ;;  %v7814_v33 = vor.u32 %v8899_v56, %v7813_v7  ;;  %v8895_v7 = vld [vmem:[#allocation2 + $0xa94] sm:$0xf0] }
 0x5b5   :  { %5651 = vmatpush.bf16.msra.mxu3 %v7766_v21  ;;  %v8881_v21 = vld [vmem:[#allocation2 + $0xa24] sm:$0xf0] }
 0x5b6   :  { %5664 = vmatpush.bf16.msra.mxu0 %v7830_v29  ;;  %v7805_v29 = vld [vmem:[#allocation2 + $0xaa0] sm:$0xf]  ;;  %v7742_v43 = vor.u32 %v8881_v21, %v7741_v39 }
 0x5b7   :  { %5690 = vmatpush.bf16.msra.mxu2 %v7958_v10  ;;  %v7878_v10 = vor.u32 %v8915_v25, %v7877_v12  ;;  %v7806_v62 = vor.u32 %v8897_v0, %v7805_v29  ;;  %v7861_v12 = vld [vmem:[#allocation2 + $0xb10] sm:$0xf]  ;;  %v8911_v25 = vld [vmem:[#allocation2 + $0xb14] sm:$0xf0]  ;;  %v7725_v39 = vld [vmem:[#allocation2 + $0xa00] sm:$0xf]  ;;  %v5426_v29 = vpop.f32.mrf.mxu1 }
 0x5b8   :  { %5677 = vmatpush.bf16.msra.mxu1 %v7894_v35  ;;  %v8913_v35 = vld [vmem:[#allocation2 + $0xb24] sm:$0xf0]  ;;  %v7789_v21 = vld [vmem:[#allocation2 + $0xa80] sm:$0xf] }
 0x5b9   :  { %5652 = vmatpush.bf16.msra.mxu3 %v7758_v19  ;;  %v5399_v19 = vadd.f32 %v5398_v2, %v2825_v59  ;;  %v7870_v56 = vor.u32 %v8913_v35, %v7869_v53  ;;  %v8877_v59 = vld [vmem:[#allocation2 + $0xa04] sm:$0xf0]  ;;  %v7862_v53 = vor.u32 %v8911_v25, %v7861_v12  ;;  %v8955_v35 = vld [vmem:[#allocation2 + $0xc74] sm:$0xf0]  ;;  %v8101_v2 = vld [vmem:[#allocation2 + $0xcf0] sm:$0xf] }
 0x5ba   :  { %5665 = vmatpush.bf16.msra.mxu0 %v7822_v44  ;;  %v5437_v44 = vpop.f32.mrf.mxu2  ;;  %v8029_v25 = vld [vmem:[#allocation2 + $0xc60] sm:$0xf] }
 0x5bb   :  { %5691 = vmatpush.bf16.msra.mxu2 %v7950_v5  ;;  %v7797_v5 = vld [vmem:[#allocation2 + $0xa90] sm:$0xf]  ;;  %v5412_v28 = vadd.f32 %v5411_v13, %v5399_v19  ;;  %v5413_v8 = vpop.f32.mrf.mxu0  ;;  %v8093_v29 = vld [vmem:[#allocation2 + $0xce0] sm:$0xf] }
 0x5bc   :  { %5678 = vmatpush.bf16.msra.mxu1 %v7886_v11  ;;  %v8927_v11 = vld [vmem:[#allocation2 + $0xb94] sm:$0xf0]  ;;  %v8037_v13 = vld [vmem:[#allocation2 + $0xc70] sm:$0xf] }
 0x5bd   :  { %5653 = vmatpush.bf16.msra.mxu3 %v7750_v58  ;;  %v7734_v58 = vor.u32 %v8879_v22, %v7733_v40  ;;  %v7926_v0 = vor.u32 %v8927_v11, %v7925_v42  ;;  %v9003_v40 = vld [vmem:[#allocation2 + $0xdf4] sm:$0xf0]  ;;  %v5400_v22 = vpop.f32.mrf.mxu3 }
 0x5be   :  { %5666 = vmatpush.bf16.msra.mxu0 %v7814_v33  ;;  %v7798_v33 = vor.u32 %v8895_v7, %v7797_v5  ;;  %v7790_v5 = vor.u32 %v8893_v61, %v7789_v21  ;;  %v8909_v7 = vld [vmem:[#allocation2 + $0xb04] sm:$0xf0]  ;;  %v8987_v8 = vld [vmem:[#allocation2 + $0xd74] sm:$0xf0] }
 0x5bf   :  { %5692 = vmatpush.bf16.msra.mxu2 %v7942_v57  ;;  %v5425_v57 = vadd.f32 %v5424_v38, %v5412_v28  ;;  %v7726_v38 = vor.u32 %v8877_v59, %v7725_v39  ;;  %v8165_v28 = vld [vmem:[#allocation2 + $0xd70] sm:$0xf]  ;;  %v8221_v39 = vld [vmem:[#allocation2 + $0xde0] sm:$0xf]  ;;  %v9001_v59 = vld [vmem:[#allocation2 + $0xde4] sm:$0xf0] }
 0x5c0   :  { %5679 = vmatpush.bf16.msra.mxu1 %v7878_v10  ;;  %v7917_v10 = vld [vmem:[#allocation2 + $0xb80] sm:$0xf]  ;;  %v8166_v21 = vor.u32 %v8987_v8, %v8165_v28  ;;  %v8999_v22 = vld [vmem:[#allocation2 + $0xdd4] sm:$0xf0]  ;;  %v8997_v8 = vld [vmem:[#allocation2 + $0xdc4] sm:$0xf0] }
 0x5c1   :  { %5654 = vmatpush.bf16.msra.mxu3 %v7742_v43  ;;  %v12024_v19 = vadd.f32 %v5437_v44, %v5425_v57  ;;  %v8971_v43 = vld [vmem:[#allocation2 + $0xcf4] sm:$0xf0]  ;;  %v7918_v11 = vor.u32 %v8925_v63, %v7917_v10  ;;  %v8953_v57 = vld [vmem:[#allocation2 + $0xc64] sm:$0xf0]  ;;  %v8157_v10 = vld [vmem:[#allocation2 + $0xd60] sm:$0xf] }
 0x5c2   :  { %5667 = vmatpush.bf16.msra.mxu0 %v7806_v62  ;;  %v8229_v62 = vld [vmem:[#allocation2 + $0xdf0] sm:$0xf]  ;;  %v5439_v42 = vpop.f32.mrf.mxu2  ;;  %v8102_v12 = vor.u32 %v8971_v43, %v8101_v2  ;;  %v8030_v61 = vor.u32 %v8953_v57, %v8029_v25  ;;  %v8985_v63 = vld [vmem:[#allocation2 + $0xd64] sm:$0xf0]  ;;  %v8951_v43 = vld [vmem:[#allocation2 + $0xc54] sm:$0xf0] }
 0x5c3   :  { %5693 = vmatpush.bf16.msra.mxu2 %v7934_v4  ;;  %v7853_v4 = vld [vmem:[#allocation2 + $0xb00] sm:$0xf]  ;;  %v8230_v44 = vor.u32 %v9003_v40, %v8229_v62  ;;  %v8021_v2 = vld [vmem:[#allocation2 + $0xc50] sm:$0xf]  ;;  %v8981_v57 = vld [vmem:[#allocation2 + $0xd44] sm:$0xf0] }
 0x5c4   :  { %5680 = vmatpush.bf16.msra.mxu1 %v7870_v56  ;;  %v8038_v56 = vor.u32 %v8955_v35, %v8037_v13  ;;  %v7854_v46 = vor.u32 %v8909_v7, %v7853_v4  ;;  %v8222_v35 = vor.u32 %v9001_v59, %v8221_v39  ;;  %v8085_v62 = vld [vmem:[#allocation2 + $0xcd0] sm:$0xf]  ;;  %v8983_v4 = vld [vmem:[#allocation2 + $0xd54] sm:$0xf0]  ;;  %v8013_v42 = vld [vmem:[#allocation2 + $0xc40] sm:$0xf] }
 0x5c5   :  { %5655 = vmatpush.bf16.msra.mxu3 %v7734_v58  ;;  %v12028_v58 = vpack.c.bf16 %v11875_v55, %v11875_v55  ;;  %v8213_v40 = vld [vmem:[#allocation2 + $0xdd0] sm:$0xf]  ;;  %v8158_v55 = vor.u32 %v8985_v63, %v8157_v10  ;;  %v8205_v28 = vld [vmem:[#allocation2 + $0xdc0] sm:$0xf]  ;;  %v8947_v59 = vld [vmem:[#allocation2 + $0xc34] sm:$0xf0] }
 0x5c6   :  { %5668 = vmatpush.bf16.msra.mxu0 %v7798_v33  ;;  %v8969_v33 = vld [vmem:[#allocation2 + $0xce4] sm:$0xf0]  ;;  %v8214_v7 = vor.u32 %v8999_v22, %v8213_v40  ;;  %v8141_v25 = vld [vmem:[#allocation2 + $0xd40] sm:$0xf]  ;;  %v8005_v39 = vld [vmem:[#allocation2 + $0xc30] sm:$0xf] }
 0x5c7   :  { %5694 = vmatpush.bf16.msra.mxu2 %v7926_v0  ;;  %v12033_v0 = vpack.c.bf16 %v2261_v3, %v2261_v3  ;;  %v8094_v13 = vor.u32 %v8969_v33, %v8093_v29  ;;  %v8967_v3 = vld [vmem:[#allocation2 + $0xcd4] sm:$0xf0]  ;;  %v8206_v33 = vor.u32 %v8997_v8, %v8205_v28  ;;  %v8197_v10 = vld [vmem:[#allocation2 + $0xdb0] sm:$0xf]  ;;  %v7997_v22 = vld [vmem:[#allocation2 + $0xc20] sm:$0xf] }
 0x5c8   :  { %5681 = vmatpush.bf16.msra.mxu1 %v7862_v53  ;;  %v12038_v53 = vpack.c.bf16 %v2258_v36, %v2258_v36  ;;  %v8022_v36 = vor.u32 %v8951_v43, %v8021_v2  ;;  %v8995_v63 = vld [vmem:[#allocation2 + $0xdb4] sm:$0xf0]  ;;  %v8006_v2 = vor.u32 %v8947_v59, %v8005_v39  ;;  %v8133_v43 = vld [vmem:[#allocation2 + $0xd30] sm:$0xf]  ;;  %v8977_v28 = vld [vmem:[#allocation2 + $0xd24] sm:$0xf0] }
 0x5c9   :  { %5656 = vmatpush.bf16.msra.mxu3 %v7726_v38  ;;  %v12043_v38 = vpack.c.bf16 %v11870_v31, %v11870_v31  ;;  %v8965_v31 = vld [vmem:[#allocation2 + $0xcc4] sm:$0xf0]  ;;  %v8198_v40 = vor.u32 %v8995_v63, %v8197_v10  ;;  %v8959_v39 = vld [vmem:[#allocation2 + $0xc94] sm:$0xf0]  ;;  %v8181_v59 = vld [vmem:[#allocation2 + $0xd90] sm:$0xf] }
 0x5ca   :  { %5669 = vmatpush.bf16.msra.mxu0 %v7790_v5  ;;  %v8149_v5 = vld [vmem:[#allocation2 + $0xd50] sm:$0xf] }
 0x5cb   :  { %5695 = vmatpush.bf16.msra.mxu2 %v7918_v11  ;;  %v8949_v11 = vld [vmem:[#allocation2 + $0xc44] sm:$0xf0]  ;;  %v8117_v63 = vld [vmem:[#allocation2 + $0xd10] sm:$0xf] }
 0x5cc   :  { %5682 = vmatpush.bf16.msra.mxu1 %v7854_v46  ;;  %5657 = vmatmul.bf16.vlgmr.msra.gmra.mxu3 %v12028_v58  ;;  %v8086_v46 = vor.u32 %v8967_v3, %v8085_v62  ;;  %v8979_v62 = vld [vmem:[#allocation2 + $0xd34] sm:$0xf0] }
 0x5cd   :  { %5701 = vmatpush.bf16.msrb.mxu3 %v8038_v56  ;;  %5670 = vmatmul.bf16.vlgmr.msra.gmra.mxu0 %v12038_v53  ;;  %v8077_v56 = vld [vmem:[#allocation2 + $0xcc0] sm:$0xf] }
 0x5ce   :  { %5714 = vmatpush.bf16.msrb.mxu0 %v8102_v12  ;;  %5696 = vmatmul.bf16.vlgmr.msra.gmra.mxu2 %v12033_v0  ;;  %v8150_v12 = vor.u32 %v8983_v4, %v8149_v5  ;;  %v8078_v29 = vor.u32 %v8965_v31, %v8077_v56  ;;  %v5476_v5 = vpop.f32.mrf.mxu1  ;;  %v8961_v4 = vld [vmem:[#allocation2 + $0xca4] sm:$0xf0]  ;;  %v8125_v31 = vld [vmem:[#allocation2 + $0xd20] sm:$0xf] }
 0x5cf   :  { %5740 = vmatpush.bf16.msrb.mxu2 %v8230_v44  ;;  %5683 = vmatmul.bf16.vlgmr.msra.gmra.mxu1 %v12043_v38  ;;  %v8014_v44 = vor.u32 %v8949_v11, %v8013_v42  ;;  %v8134_v42 = vor.u32 %v8979_v62, %v8133_v43  ;;  %v5450_v11 = vpop.f32.mrf.mxu3  ;;  %v8126_v10 = vor.u32 %v8977_v28, %v8125_v31  ;;  %v8975_v43 = vld [vmem:[#allocation2 + $0xd14] sm:$0xf0]  ;;  %v7981_v62 = vld [vmem:[#allocation2 + $0xc00] sm:$0xf]  ;;  %v8357_v31 = vld [vmem:[#allocation2 + $0xef0] sm:$0xf] }
 0x5d0   :  { %5727 = vmatpush.bf16.msrb.mxu1 %v8166_v21  ;;  %v8069_v21 = vld [vmem:[#allocation2 + $0xcb0] sm:$0xf]  ;;  %v5451_v8 = vadd.f32 %v5450_v11, %v12024_v19  ;;  %v9019_v11 = vld [vmem:[#allocation2 + $0xe74] sm:$0xf0] }
 0x5d1   :  { %5702 = vmatpush.bf16.msrb.mxu3 %v8030_v61  ;;  %v8963_v61 = vld [vmem:[#allocation2 + $0xcb4] sm:$0xf0] }
 0x5d2   :  { %5715 = vmatpush.bf16.msrb.mxu0 %v8094_v13  ;;  %v8142_v13 = vor.u32 %v8981_v57, %v8141_v25  ;;  %v8070_v3 = vor.u32 %v8963_v61, %v8069_v21  ;;  %v7989_v57 = vld [vmem:[#allocation2 + $0xc10] sm:$0xf]  ;;  %v8991_v21 = vld [vmem:[#allocation2 + $0xd94] sm:$0xf0] }
 0x5d3   :  { %5741 = vmatpush.bf16.msrb.mxu2 %v8222_v35  ;;  %v5463_v35 = vpop.f32.mrf.mxu0  ;;  %v9035_v28 = vld [vmem:[#allocation2 + $0xef4] sm:$0xf0] }
 0x5d4   :  { %5728 = vmatpush.bf16.msrb.mxu1 %v8158_v55  ;;  %v8945_v55 = vld [vmem:[#allocation2 + $0xc24] sm:$0xf0]  ;;  %v5464_v61 = vadd.f32 %v5463_v35, %v5451_v8 }
 0x5d5   :  { %5703 = vmatpush.bf16.msrb.mxu3 %v8022_v36  ;;  %v8061_v36 = vld [vmem:[#allocation2 + $0xca0] sm:$0xf]  ;;  %v7998_v56 = vor.u32 %v8945_v55, %v7997_v22  ;;  %v8182_v22 = vor.u32 %v8991_v21, %v8181_v59  ;;  %v9051_v21 = vld [vmem:[#allocation2 + $0xf74] sm:$0xf0] }
 0x5d6   :  { %5716 = vmatpush.bf16.msrb.mxu0 %v8086_v46  ;;  %v8189_v46 = vld [vmem:[#allocation2 + $0xda0] sm:$0xf]  ;;  %v5477_v19 = vadd.f32 %v5476_v5, %v5464_v61  ;;  %v8485_v5 = vld [vmem:[#allocation2 + $0xff0] sm:$0xf] }
 0x5d7   :  { %5742 = vmatpush.bf16.msrb.mxu2 %v8214_v7  ;;  %v8993_v7 = vld [vmem:[#allocation2 + $0xda4] sm:$0xf0]  ;;  %v8045_v55 = vld [vmem:[#allocation2 + $0xc80] sm:$0xf]  ;;  %v5452_v8 = vpop.f32.mrf.mxu3 }
 0x5d8   :  { %5729 = vmatpush.bf16.msrb.mxu1 %v8150_v12  ;;  %v5489_v12 = vpop.f32.mrf.mxu2  ;;  %v8190_v25 = vor.u32 %v8993_v7, %v8189_v46  ;;  %v5478_v46 = vpop.f32.mrf.mxu1  ;;  %v8989_v7 = vld [vmem:[#allocation2 + $0xd84] sm:$0xf0]  ;;  %v9031_v8 = vld [vmem:[#allocation2 + $0xed4] sm:$0xf0] }
 0x5d9   :  { %5704 = vmatpush.bf16.msrb.mxu3 %v8014_v44  ;;  %v8062_v44 = vor.u32 %v8961_v4, %v8061_v36  ;;  %v8957_v36 = vld [vmem:[#allocation2 + $0xc84] sm:$0xf0]  ;;  %v8173_v4 = vld [vmem:[#allocation2 + $0xd80] sm:$0xf]  ;;  %v12049_v35 = vadd.f32 %v5489_v12, %v5477_v19  ;;  %v8421_v12 = vld [vmem:[#allocation2 + $0xf70] sm:$0xf] }
 0x5da   :  { %5717 = vmatpush.bf16.msrb.mxu0 %v8078_v29  ;;  %v8943_v29 = vld [vmem:[#allocation2 + $0xc14] sm:$0xf0]  ;;  %v8174_v59 = vor.u32 %v8989_v7, %v8173_v4  ;;  %v9017_v19 = vld [vmem:[#allocation2 + $0xe64] sm:$0xf0]  ;;  %v8349_v46 = vld [vmem:[#allocation2 + $0xee0] sm:$0xf]  ;;  %v12058_v4 = vpack.c.bf16 %v2267_v17, %v2267_v17  ;;  %v12063_v7 = vpack.c.bf16 %v2264_v34, %v2264_v34  ;;  %v12067_v17 = vpack.c.bf16 %v11894_v15, %v11894_v15 }
 0x5db   :  { %5743 = vmatpush.bf16.msrb.mxu2 %v8206_v33  ;;  %v8053_v33 = vld [vmem:[#allocation2 + $0xc90] sm:$0xf] }
 0x5dc   :  { %5730 = vmatpush.bf16.msrb.mxu1 %v8142_v13  ;;  %v5465_v13 = vpop.f32.mrf.mxu0  ;;  %v8469_v34 = vld [vmem:[#allocation2 + $0xfd0] sm:$0xf] }
 0x5dd   :  { %5705 = vmatpush.bf16.msrb.mxu3 %v8006_v2  ;;  %v7990_v2 = vor.u32 %v8943_v29, %v7989_v57  ;;  %v8109_v57 = vld [vmem:[#allocation2 + $0xd00] sm:$0xf]  ;;  %v8973_v29 = vld [vmem:[#allocation2 + $0xd04] sm:$0xf0]  ;;  %v8358_v13 = vor.u32 %v9035_v28, %v8357_v31  ;;  %v9015_v28 = vld [vmem:[#allocation2 + $0xe54] sm:$0xf0] }
 0x5de   :  { %5718 = vmatpush.bf16.msrb.mxu0 %v8070_v3  ;;  %v8941_v3 = vld [vmem:[#allocation2 + $0xc04] sm:$0xf0] }
 0x5df   :  { %5744 = vmatpush.bf16.msrb.mxu2 %v8198_v40  ;;  %v8054_v40 = vor.u32 %v8959_v39, %v8053_v33  ;;  %v8046_v39 = vor.u32 %v8957_v36, %v8045_v55  ;;  %v8413_v55 = vld [vmem:[#allocation2 + $0xf60] sm:$0xf]  ;;  %v9049_v36 = vld [vmem:[#allocation2 + $0xf64] sm:$0xf0] }
 0x5e0   :  { %5731 = vmatpush.bf16.msrb.mxu1 %v8134_v42  ;;  %v8293_v42 = vld [vmem:[#allocation2 + $0xe70] sm:$0xf]  ;;  %v5491_v33 = vpop.f32.mrf.mxu2 }
 0x5e1   :  { %5706 = vmatpush.bf16.msrb.mxu3 %v7998_v56  ;;  %v8118_v56 = vor.u32 %v8975_v43, %v8117_v63  ;;  %v8294_v61 = vor.u32 %v9019_v11, %v8293_v42  ;;  %v8110_v43 = vor.u32 %v8973_v29, %v8109_v57  ;;  %v9047_v57 = vld [vmem:[#allocation2 + $0xf54] sm:$0xf0] }
 0x5e2   :  { %5719 = vmatpush.bf16.msrb.mxu0 %v8062_v44  ;;  %v7982_v44 = vor.u32 %v8941_v3, %v7981_v62  ;;  %v12053_v62 = vpack.c.bf16 %v11899_v52, %v11899_v52  ;;  %v8422_v3 = vor.u32 %v9051_v21, %v8421_v12  ;;  %v8414_v52 = vor.u32 %v9049_v36, %v8413_v55  ;;  %v8333_v12 = vld [vmem:[#allocation2 + $0xec0] sm:$0xf]  ;;  %v9029_v21 = vld [vmem:[#allocation2 + $0xec4] sm:$0xf0]  ;;  %v9027_v55 = vld [vmem:[#allocation2 + $0xeb4] sm:$0xf0] }
 0x5e3   :  { %5745 = vmatpush.bf16.msrb.mxu2 %v8190_v25  ;;  %v9067_v25 = vld [vmem:[#allocation2 + $0xff4] sm:$0xf0] }
 0x5e4   :  { %5732 = vmatpush.bf16.msrb.mxu1 %v8126_v10  ;;  %v8285_v10 = vld [vmem:[#allocation2 + $0xe60] sm:$0xf]  ;;  %v8486_v63 = vor.u32 %v9067_v25, %v8485_v5  ;;  %v8341_v5 = vld [vmem:[#allocation2 + $0xed0] sm:$0xf] }
 0x5e5   :  { %5707 = vmatpush.bf16.msrb.mxu3 %v7990_v2  ;;  %v9033_v2 = vld [vmem:[#allocation2 + $0xee4] sm:$0xf0]  ;;  %v8286_v42 = vor.u32 %v9017_v19, %v8285_v10  ;;  %v8405_v25 = vld [vmem:[#allocation2 + $0xf50] sm:$0xf]  ;;  %v8342_v33 = vor.u32 %v9031_v8, %v8341_v5 }
 0x5e6   :  { %5720 = vmatpush.bf16.msrb.mxu0 %v8054_v40  ;;  %v8477_v40 = vld [vmem:[#allocation2 + $0xfe0] sm:$0xf]  ;;  %v8350_v11 = vor.u32 %v9033_v2, %v8349_v46  ;;  %v9061_v10 = vld [vmem:[#allocation2 + $0xfc4] sm:$0xf0]  ;;  %v8334_v46 = vor.u32 %v9029_v21, %v8333_v12  ;;  %v8261_v2 = vld [vmem:[#allocation2 + $0xe30] sm:$0xf] }
 0x5e7   :  { %5746 = vmatpush.bf16.msrb.mxu2 %v8182_v22  ;;  %v9065_v22 = vld [vmem:[#allocation2 + $0xfe4] sm:$0xf0]  ;;  %v8381_v12 = vld [vmem:[#allocation2 + $0xf20] sm:$0xf] }
 0x5e8   :  { %5733 = vmatpush.bf16.msrb.mxu1 %v8118_v56  ;;  %v8277_v56 = vld [vmem:[#allocation2 + $0xe50] sm:$0xf]  ;;  %v8478_v31 = vor.u32 %v9065_v22, %v8477_v40  ;;  %v9011_v40 = vld [vmem:[#allocation2 + $0xe34] sm:$0xf0]  ;;  %v9041_v21 = vld [vmem:[#allocation2 + $0xf24] sm:$0xf0] }
 0x5e9   :  { %5708 = vmatpush.bf16.msrb.mxu3 %v7982_v44  ;;  %v9063_v44 = vld [vmem:[#allocation2 + $0xfd4] sm:$0xf0]  ;;  %v8278_v29 = vor.u32 %v9015_v28, %v8277_v56  ;;  %v8325_v22 = vld [vmem:[#allocation2 + $0xeb0] sm:$0xf]  ;;  %v8262_v5 = vor.u32 %v9011_v40, %v8261_v2 }
 0x5ea   :  { %5721 = vmatpush.bf16.msrb.mxu0 %v8046_v39  ;;  %v8269_v39 = vld [vmem:[#allocation2 + $0xe40] sm:$0xf]  ;;  %v8470_v15 = vor.u32 %v9063_v44, %v8469_v34  ;;  %v5515_v56 = vpop.f32.mrf.mxu0  ;;  %v9043_v28 = vld [vmem:[#allocation2 + $0xf34] sm:$0xf0]  ;;  %v8326_v8 = vor.u32 %v9027_v55, %v8325_v22  ;;  %v8309_v2 = vld [vmem:[#allocation2 + $0xe90] sm:$0xf]  ;;  %v8382_v22 = vor.u32 %v9041_v21, %v8381_v12 }
 0x5eb   :  { %5747 = vmatpush.bf16.msrb.mxu2 %v8174_v59  ;;  %v9013_v59 = vld [vmem:[#allocation2 + $0xe44] sm:$0xf0]  ;;  %v8437_v55 = vld [vmem:[#allocation2 + $0xf90] sm:$0xf]  ;;  %v6503_v12 = vld [vmem:[#allocation2 + $0x78] sm:$0xf0] }
 0x5ec   :  { %5734 = vmatpush.bf16.msrb.mxu1 %v8110_v43  ;;  %5709 = vmatmul.bf16.vlgmr.msrb.gmra.mxu3 %v12053_v62  ;;  %v9045_v43 = vld [vmem:[#allocation2 + $0xf44] sm:$0xf0]  ;;  %v8270_v19 = vor.u32 %v9013_v59, %v8269_v39  ;;  %v5528_v34 = vpop.f32.mrf.mxu1  ;;  %v8445_v39 = vld [vmem:[#allocation2 + $0xfa0] sm:$0xf]  ;;  %v8586_v21 = vld [vmem:[#allocation2 + $0xf4] sm:$0xf] }
 0x5ed   :  { %5753 = vmatpush.bf16.msra.mxu3 %v8294_v61  ;;  %5722 = vmatmul.bf16.vlgmr.msrb.gmra.mxu0 %v12063_v7  ;;  %v8406_v61 = vor.u32 %v9047_v57, %v8405_v25  ;;  %v9009_v25 = vld [vmem:[#allocation2 + $0xe24] sm:$0xf0]  ;;  %v8317_v57 = vld [vmem:[#allocation2 + $0xea0] sm:$0xf] }
 0x5ee   :  { %5766 = vmatpush.bf16.msra.mxu0 %v8358_v13  ;;  %5748 = vmatmul.bf16.vlgmr.msrb.gmra.mxu2 %v12058_v4  ;;  %v8461_v13 = vld [vmem:[#allocation2 + $0xfc0] sm:$0xf] }
 0x5ef   :  { %5792 = vmatpush.bf16.msra.mxu2 %v8486_v63  ;;  %5735 = vmatmul.bf16.vlgmr.msrb.gmra.mxu1 %v12067_v17  ;;  %v8397_v63 = vld [vmem:[#allocation2 + $0xf40] sm:$0xf]  ;;  %v5502_v59 = vpop.f32.mrf.mxu3 }
 0x5f0   :  { %5779 = vmatpush.bf16.msra.mxu1 %v8422_v3  ;;  %v8462_v3 = vor.u32 %v9061_v10, %v8461_v13  ;;  %v8398_v36 = vor.u32 %v9045_v43, %v8397_v63  ;;  %v8245_v43 = vld [vmem:[#allocation2 + $0xe10] sm:$0xf] }
 0x5f1   :  { %5754 = vmatpush.bf16.msra.mxu3 %v8286_v42  ;;  %v8453_v42 = vld [vmem:[#allocation2 + $0xfb0] sm:$0xf]  ;;  %v5541_v63 = vpop.f32.mrf.mxu2 }
 0x5f2   :  { %5767 = vmatpush.bf16.msra.mxu0 %v8350_v11  ;;  %v9059_v11 = vld [vmem:[#allocation2 + $0xfb4] sm:$0xf0] }
 0x5f3   :  { %5793 = vmatpush.bf16.msra.mxu2 %v8478_v31  ;;  %v8389_v31 = vld [vmem:[#allocation2 + $0xf30] sm:$0xf]  ;;  %v8454_v44 = vor.u32 %v9059_v11, %v8453_v42  ;;  %v5517_v42 = vpop.f32.mrf.mxu0 }
 0x5f4   :  { %5780 = vmatpush.bf16.msra.mxu1 %v8414_v52  ;;  %v8253_v52 = vld [vmem:[#allocation2 + $0xe20] sm:$0xf]  ;;  %v8373_v11 = vld [vmem:[#allocation2 + $0xf10] sm:$0xf] }
 0x5f5   :  { %5755 = vmatpush.bf16.msra.mxu3 %v8278_v29  ;;  %v9025_v29 = vld [vmem:[#allocation2 + $0xea4] sm:$0xf0]  ;;  %v8254_v13 = vor.u32 %v9009_v25, %v8253_v52  ;;  %v5530_v25 = vpop.f32.mrf.mxu1 }
 0x5f6   :  { %5768 = vmatpush.bf16.msra.mxu0 %v8342_v33  ;;  %v8390_v33 = vor.u32 %v9043_v28, %v8389_v31  ;;  %v8318_v10 = vor.u32 %v9025_v29, %v8317_v57  ;;  %v9039_v31 = vld [vmem:[#allocation2 + $0xf14] sm:$0xf0]  ;;  %v9005_v52 = vld [vmem:[#allocation2 + $0xe04] sm:$0xf0] }
 0x5f7   :  { %5794 = vmatpush.bf16.msra.mxu2 %v8470_v15  ;;  %v9057_v15 = vld [vmem:[#allocation2 + $0xfa4] sm:$0xf0] }
 0x5f8   :  { %5781 = vmatpush.bf16.msra.mxu1 %v8406_v61  ;;  %v5503_v61 = vadd.f32 %v5502_v59, %v12049_v35  ;;  %v9021_v29 = vld [vmem:[#allocation2 + $0xe84] sm:$0xf0]  ;;  %v8570_v59 = vld [vmem:[#allocation2 + $0x74] sm:$0xf] }
 0x5f9   :  { %5756 = vmatpush.bf16.msra.mxu3 %v8270_v19  ;;  %v8446_v19 = vor.u32 %v9057_v15, %v8445_v39  ;;  %v8374_v15 = vor.u32 %v9039_v31, %v8373_v11  ;;  %v8568_v11 = vld [vmem:[#allocation2 + $0x64] sm:$0xf]  ;;  %v6495_v31 = vld [vmem:[#allocation2 + $0x68] sm:$0xf0] }
 0x5fa   :  { %5769 = vmatpush.bf16.msra.mxu0 %v8334_v46  ;;  %v9007_v46 = vld [vmem:[#allocation2 + $0xe14] sm:$0xf0]  ;;  %v5516_v40 = vadd.f32 %v5515_v56, %v5503_v61  ;;  %v9053_v56 = vld [vmem:[#allocation2 + $0xf84] sm:$0xf0]  ;;  %v6567_v61 = vld [vmem:[#allocation2 + $0xf8] sm:$0xf0] }
 0x5fb   :  { %5795 = vmatpush.bf16.msra.mxu2 %v8462_v3  ;;  %v9023_v3 = vld [vmem:[#allocation2 + $0xe94] sm:$0xf0]  ;;  %v8246_v28 = vor.u32 %v9007_v46, %v8245_v43 }
 0x5fc   :  { %5782 = vmatpush.bf16.msra.mxu1 %v8398_v36  ;;  %v9055_v36 = vld [vmem:[#allocation2 + $0xf94] sm:$0xf0]  ;;  %v5529_v35 = vadd.f32 %v5528_v34, %v5516_v40  ;;  %v8618_v34 = vld [vmem:[#allocation2 + $0x1f4] sm:$0xf] }
 0x5fd   :  { %5757 = vmatpush.bf16.msra.mxu3 %v8262_v5  ;;  %v8310_v5 = vor.u32 %v9023_v3, %v8309_v2  ;;  %v8438_v57 = vor.u32 %v9055_v36, %v8437_v55  ;;  %v9037_v2 = vld [vmem:[#allocation2 + $0xf04] sm:$0xf0]  ;;  %v5543_v3 = vpop.f32.mrf.mxu2  ;;  %v6631_v55 = vld [vmem:[#allocation2 + $0x178] sm:$0xf0]  ;;  %v6570_v36 = vor.u32 %v8586_v21, %v6567_v61  ;;  %v8566_v61 = vld [vmem:[#allocation2 + $0x54] sm:$0xf] }
 0x5fe   :  { %5770 = vmatpush.bf16.msra.mxu0 %v8326_v8  ;;  %v8237_v8 = vld [vmem:[#allocation2 + $0xe00] sm:$0xf]  ;;  %v12074_v39 = vadd.f32 %v5541_v63, %v5529_v35  ;;  %v8602_v63 = vld [vmem:[#allocation2 + $0x174] sm:$0xf]  ;;  %v8584_v35 = vld [vmem:[#allocation2 + $0xe4] sm:$0xf] }
 0x5ff   :  { %5796 = vmatpush.bf16.msra.mxu2 %v8454_v44  ;;  %v8301_v44 = vld [vmem:[#allocation2 + $0xe80] sm:$0xf]  ;;  %v8238_v43 = vor.u32 %v9005_v52, %v8237_v8  ;;  %v8616_v8 = vld [vmem:[#allocation2 + $0x1e4] sm:$0xf]  ;;  %v6687_v52 = vld [vmem:[#allocation2 + $0x1e8] sm:$0xf0] }
 0x600   :  { %5783 = vmatpush.bf16.msra.mxu1 %v8390_v33  ;;  %v8429_v33 = vld [vmem:[#allocation2 + $0xf80] sm:$0xf]  ;;  %v8302_v46 = vor.u32 %v9021_v29, %v8301_v44  ;;  %v6634_v44 = vor.u32 %v8602_v63, %v6631_v55  ;;  %v6498_v29 = vor.u32 %v8568_v11, %v6495_v31  ;;  %v6690_v21 = vor.u32 %v8616_v8, %v6687_v52  ;;  %v6615_v3 = vld [vmem:[#allocation2 + $0x158] sm:$0xf0]  ;;  %v8564_v63 = vld [vmem:[#allocation2 + $0x44] sm:$0xf] }
 0x601   :  { %5758 = vmatpush.bf16.msra.mxu3 %v8254_v13  ;;  %v6695_v13 = vld [vmem:[#allocation2 + $0x1f8] sm:$0xf0]  ;;  %v8430_v40 = vor.u32 %v9053_v56, %v8429_v33  ;;  %v8600_v33 = vld [vmem:[#allocation2 + $0x164] sm:$0xf]  ;;  %v6623_v56 = vld [vmem:[#allocation2 + $0x168] sm:$0xf0] }
 0x602   :  { %5771 = vmatpush.bf16.msra.mxu0 %v8318_v10  ;;  %v5504_v10 = vpop.f32.mrf.mxu3  ;;  %v6698_v42 = vor.u32 %v8618_v34, %v6695_v13  ;;  %v6487_v34 = vld [vmem:[#allocation2 + $0x58] sm:$0xf0]  ;;  %v8582_v13 = vld [vmem:[#allocation2 + $0xd4] sm:$0xf]  ;;  %v6479_v55 = vld [vmem:[#allocation2 + $0x48] sm:$0xf0] }
 0x603   :  { %5797 = vmatpush.bf16.msra.mxu2 %v8446_v19  ;;  %v8365_v19 = vld [vmem:[#allocation2 + $0xf00] sm:$0xf]  ;;  %v8614_v10 = vld [vmem:[#allocation2 + $0x1d4] sm:$0xf]  ;;  %v6671_v11 = vld [vmem:[#allocation2 + $0x1c8] sm:$0xf0] }
 0x604   :  { %5784 = vmatpush.bf16.msra.mxu1 %v8382_v22  ;;  %v6506_v22 = vor.u32 %v8570_v59, %v6503_v12  ;;  %v8366_v25 = vor.u32 %v9037_v2, %v8365_v19  ;;  %v6490_v19 = vor.u32 %v8566_v61, %v6487_v34  ;;  %v8598_v2 = vld [vmem:[#allocation2 + $0x154] sm:$0xf] }
 0x605   :  { %5759 = vmatpush.bf16.msra.mxu3 %v8246_v28  ;;  %v12078_v28 = vpack.c.bf16 %v11907_v41, %v11907_v41  ;;  %v6618_v31 = vor.u32 %v8598_v2, %v6615_v3  ;;  %v8576_v2 = vld [vmem:[#allocation2 + $0xa4] sm:$0xf] }
 0x606   :  { %5772 = vmatpush.bf16.msra.mxu0 %v8310_v5  ;;  %v6559_v5 = vld [vmem:[#allocation2 + $0xe8] sm:$0xf0] }
 0x607   :  { %5798 = vmatpush.bf16.msra.mxu2 %v8438_v57  ;;  %v12083_v57 = vpack.c.bf16 %v2273_v20, %v2273_v20  ;;  %v6562_v12 = vor.u32 %v8584_v35, %v6559_v5  ;;  %v6551_v20 = vld [vmem:[#allocation2 + $0xd8] sm:$0xf0]  ;;  %v6482_v35 = vor.u32 %v8564_v63, %v6479_v55  ;;  %v6607_v5 = vld [vmem:[#allocation2 + $0x148] sm:$0xf0] }
 0x608   :  { %5785 = vmatpush.bf16.msra.mxu1 %v8374_v15  ;;  %v12221_v15 = vrot.slane %v11907_v41, 4  ;;  %v6626_v41 = vor.u32 %v8600_v33, %v6623_v56  ;;  %v8578_v33 = vld [vmem:[#allocation2 + $0xb4] sm:$0xf]  ;;  %v6535_v56 = vld [vmem:[#allocation2 + $0xb8] sm:$0xf0] }
 0x609   :  { %5760 = vmatpush.bf16.msra.mxu3 %v8238_v43  ;;  %v6679_v43 = vld [vmem:[#allocation2 + $0x1d8] sm:$0xf0]  ;;  %v6655_v63 = vld [vmem:[#allocation2 + $0x1a8] sm:$0xf0] }
 0x60a   :  { %5773 = vmatpush.bf16.msra.mxu0 %v8302_v46  ;;  %v12088_v59 = vpack.c.bf16 %v12221_v15, %v12221_v15  ;;  %v12093_v46 = vpack.c.bf16 %v11904_v50, %v11904_v50  ;;  %v6543_v50 = vld [vmem:[#allocation2 + $0xc8] sm:$0xf0]  ;;  %v8610_v15 = vld [vmem:[#allocation2 + $0x1b4] sm:$0xf]  ;;  %v5567_v61 = vpop.f32.mrf.mxu0 }
 0x60b   :  { %5799 = vmatpush.bf16.msra.mxu2 %v8430_v40  ;;  %v6554_v40 = vor.u32 %v8582_v13, %v6551_v20  ;;  %v8594_v13 = vld [vmem:[#allocation2 + $0x134] sm:$0xf]  ;;  %v6599_v20 = vld [vmem:[#allocation2 + $0x138] sm:$0xf0] }
 0x60c   :  { %5786 = vmatpush.bf16.msra.mxu1 %v8366_v25  ;;  %5761 = vmatmul.bf16.vlgmr.msra.gmra.mxu3 %v12078_v28  ;;  %12222 = vst [vmem:[#allocation9_spill] sm:$0xff] %v12093_v46  ;;  %v8596_v25 = vld [vmem:[#allocation2 + $0x144] sm:$0xf]  ;;  %v5580_v3 = vpop.f32.mrf.mxu1 }
 0x60d   :  { %5805 = vmatpush.bf16.msrb.mxu3 %v6506_v22  ;;  %5774 = vmatmul.bf16.vlgmr.msra.gmra.mxu0 %v12088_v59  ;;  %v6682_v22 = vor.u32 %v8614_v10, %v6679_v43  ;;  %v6538_v10 = vor.u32 %v8578_v33, %v6535_v56  ;;  %v6519_v33 = vld [vmem:[#allocation2 + $0x98] sm:$0xf0]  ;;  %v8606_v56 = vld [vmem:[#allocation2 + $0x194] sm:$0xf] }
 0x60e   :  { %5818 = vmatpush.bf16.msrb.mxu0 %v6570_v36  ;;  %5800 = vmatmul.bf16.vlgmr.msra.gmra.mxu2 %v12083_v57  ;;  %v8580_v36 = vld [vmem:[#allocation2 + $0xc4] sm:$0xf] }
 0x60f   :  { %5844 = vmatpush.bf16.msrb.mxu2 %v6698_v42  ;;  %5787 = vmatmul.bf16.vlgmr.msra.gmra.mxu1 %v12093_v46  ;;  %v8612_v42 = vld [vmem:[#allocation2 + $0x1c4] sm:$0xf]  ;;  %v6546_v8 = vor.u32 %v8580_v36, %v6543_v50  ;;  %v5554_v55 = vpop.f32.mrf.mxu3  ;;  %v6602_v36 = vor.u32 %v8594_v13, %v6599_v20  ;;  %v6583_v20 = vld [vmem:[#allocation2 + $0x118] sm:$0xf0]  ;;  %v6943_v46 = vld [vmem:[#allocation2 + $0x3e8] sm:$0xf0] }
 0x610   :  { %5831 = vmatpush.bf16.msrb.mxu1 %v6634_v44  ;;  %v6674_v52 = vor.u32 %v8612_v42, %v6671_v11  ;;  %v8562_v44 = vld [vmem:[#allocation2 + $0x34] sm:$0xf]  ;;  %v5555_v50 = vadd.f32 %v5554_v55, %v12074_v39  ;;  %v8592_v11 = vld [vmem:[#allocation2 + $0x124] sm:$0xf]  ;;  %v6639_v55 = vld [vmem:[#allocation2 + $0x188] sm:$0xf0] }
 0x611   :  { %5806 = vmatpush.bf16.msrb.mxu3 %v6498_v29  ;;  %v6471_v29 = vld [vmem:[#allocation2 + $0x38] sm:$0xf0] }
 0x612   :  { %5819 = vmatpush.bf16.msrb.mxu0 %v6562_v12  ;;  %v6663_v12 = vld [vmem:[#allocation2 + $0x1b8] sm:$0xf0]  ;;  %v6474_v34 = vor.u32 %v8562_v44, %v6471_v29  ;;  %v8574_v44 = vld [vmem:[#allocation2 + $0x94] sm:$0xf]  ;;  %v5568_v29 = vadd.f32 %v5567_v61, %v5555_v50  ;;  %v8604_v61 = vld [vmem:[#allocation2 + $0x184] sm:$0xf] }
 0x613   :  { %5845 = vmatpush.bf16.msrb.mxu2 %v6690_v21  ;;  %v6610_v21 = vor.u32 %v8596_v25, %v6607_v5  ;;  %v6666_v43 = vor.u32 %v8610_v15, %v6663_v12  ;;  %v6647_v15 = vld [vmem:[#allocation2 + $0x198] sm:$0xf0] }
 0x614   :  { %5832 = vmatpush.bf16.msrb.mxu1 %v6626_v41  ;;  %v8560_v41 = vld [vmem:[#allocation2 + $0x24] sm:$0xf]  ;;  %v5581_v39 = vadd.f32 %v5580_v3, %v5568_v29  ;;  %v6759_v50 = vld [vmem:[#allocation2 + $0x278] sm:$0xf0]  ;;  %v8650_v3 = vld [vmem:[#allocation2 + $0x2f4] sm:$0xf] }
 0x615   :  { %5807 = vmatpush.bf16.msrb.mxu3 %v6490_v19  ;;  %v6463_v19 = vld [vmem:[#allocation2 + $0x28] sm:$0xf0] }
 0x616   :  { %5820 = vmatpush.bf16.msrb.mxu0 %v6554_v40  ;;  %v6527_v40 = vld [vmem:[#allocation2 + $0xa8] sm:$0xf0]  ;;  %v6466_v42 = vor.u32 %v8560_v41, %v6463_v19  ;;  %v8556_v41 = vld [vmem:[#allocation2 + $0x4] sm:$0xf]  ;;  %v6650_v19 = vor.u32 %v8606_v56, %v6647_v15  ;;  %v8666_v56 = vld [vmem:[#allocation2 + $0x374] sm:$0xf] }
 0x617   :  { %5846 = vmatpush.bf16.msrb.mxu2 %v6682_v22  ;;  %v8608_v22 = vld [vmem:[#allocation2 + $0x1a4] sm:$0xf]  ;;  %v6530_v25 = vor.u32 %v8576_v2, %v6527_v40  ;;  %v6511_v40 = vld [vmem:[#allocation2 + $0x88] sm:$0xf0]  ;;  %v6887_v15 = vld [vmem:[#allocation2 + $0x378] sm:$0xf0] }
 0x618   :  { %5833 = vmatpush.bf16.msrb.mxu1 %v6618_v31  ;;  %v6591_v31 = vld [vmem:[#allocation2 + $0x128] sm:$0xf0]  ;;  %v6658_v5 = vor.u32 %v8608_v22, %v6655_v63  ;;  %v8572_v2 = vld [vmem:[#allocation2 + $0x84] sm:$0xf]  ;;  %v5582_v22 = vpop.f32.mrf.mxu1 }
 0x619   :  { %5808 = vmatpush.bf16.msrb.mxu3 %v6482_v35  ;;  %v5593_v35 = vpop.f32.mrf.mxu2  ;;  %v6594_v12 = vor.u32 %v8592_v11, %v6591_v31  ;;  %v6823_v11 = vld [vmem:[#allocation2 + $0x2f8] sm:$0xf0]  ;;  %v8682_v31 = vld [vmem:[#allocation2 + $0x3f4] sm:$0xf]  ;;  %v6751_v22 = vld [vmem:[#allocation2 + $0x268] sm:$0xf0] }
 0x61a   :  { %5821 = vmatpush.bf16.msrb.mxu0 %v6546_v8  ;;  %v8558_v8 = vld [vmem:[#allocation2 + $0x14] sm:$0xf]  ;;  %v12099_v63 = vadd.f32 %v5593_v35, %v5581_v39  ;;  %v6642_v35 = vor.u32 %v8604_v61, %v6639_v55  ;;  %v6826_v39 = vor.u32 %v8650_v3, %v6823_v11 }
 0x61b   :  { %5847 = vmatpush.bf16.msrb.mxu2 %v6674_v52  ;;  %v6455_v52 = vld [vmem:[#allocation2 + $0x18] sm:$0xf0]  ;;  %v8630_v61 = vld [vmem:[#allocation2 + $0x254] sm:$0xf] }
 0x61c   :  { %5834 = vmatpush.bf16.msrb.mxu1 %v6610_v21  ;;  %v8590_v21 = vld [vmem:[#allocation2 + $0x114] sm:$0xf]  ;;  %v6458_v13 = vor.u32 %v8558_v8, %v6455_v52  ;;  %v5556_v8 = vpop.f32.mrf.mxu3  ;;  %v8588_v52 = vld [vmem:[#allocation2 + $0x104] sm:$0xf] }
 0x61d   :  { %5809 = vmatpush.bf16.msrb.mxu3 %v6474_v34  ;;  %v5569_v34 = vpop.f32.mrf.mxu0  ;;  %v8648_v8 = vld [vmem:[#allocation2 + $0x2e4] sm:$0xf]  ;;  %v8678_v11 = vld [vmem:[#allocation2 + $0x3d4] sm:$0xf] }
 0x61e   :  { %5822 = vmatpush.bf16.msrb.mxu0 %v6538_v10  ;;  %v6447_v10 = vld [vmem:[#allocation2 + $0x8] sm:$0xf0] }
 0x61f   :  { %5848 = vmatpush.bf16.msrb.mxu2 %v6666_v43  ;;  %v6522_v43 = vor.u32 %v8574_v44, %v6519_v33  ;;  %v6575_v44 = vld [vmem:[#allocation2 + $0x108] sm:$0xf0]  ;;  %v6514_v33 = vor.u32 %v8572_v2, %v6511_v40 }
 0x620   :  { %5835 = vmatpush.bf16.msrb.mxu1 %v6602_v36  ;;  %v8634_v36 = vld [vmem:[#allocation2 + $0x274] sm:$0xf] }
 0x621   :  { %5810 = vmatpush.bf16.msrb.mxu3 %v6466_v42  ;;  %v6586_v42 = vor.u32 %v8590_v21, %v6583_v20  ;;  %v5595_v29 = vpop.f32.mrf.mxu2  ;;  %v6762_v34 = vor.u32 %v8634_v36, %v6759_v50  ;;  %v6578_v20 = vor.u32 %v8588_v52, %v6575_v44  ;;  %v6743_v36 = vld [vmem:[#allocation2 + $0x258] sm:$0xf0]  ;;  %v8646_v50 = vld [vmem:[#allocation2 + $0x2d4] sm:$0xf] }
 0x622   :  { %5823 = vmatpush.bf16.msrb.mxu0 %v6530_v25  ;;  %v6450_v25 = vor.u32 %v8556_v41, %v6447_v10  ;;  %v6890_v41 = vor.u32 %v8666_v56, %v6887_v15  ;;  %v8680_v10 = vld [vmem:[#allocation2 + $0x3e4] sm:$0xf]  ;;  %v6746_v52 = vor.u32 %v8630_v61, %v6743_v36  ;;  %v6799_v56 = vld [vmem:[#allocation2 + $0x2c8] sm:$0xf0] }
 0x623   :  { %5849 = vmatpush.bf16.msrb.mxu2 %v6658_v5  ;;  %v6951_v5 = vld [vmem:[#allocation2 + $0x3f8] sm:$0xf0]  ;;  %v6946_v55 = vor.u32 %v8680_v10, %v6943_v46  ;;  %v8628_v46 = vld [vmem:[#allocation2 + $0x244] sm:$0xf]  ;;  %v8674_v10 = vld [vmem:[#allocation2 + $0x3b4] sm:$0xf] }
 0x624   :  { %5836 = vmatpush.bf16.msrb.mxu1 %v6594_v12  ;;  %v8632_v12 = vld [vmem:[#allocation2 + $0x264] sm:$0xf]  ;;  %v6954_v21 = vor.u32 %v8682_v31, %v6951_v5  ;;  %v6935_v31 = vld [vmem:[#allocation2 + $0x3d8] sm:$0xf0] }
 0x625   :  { %5811 = vmatpush.bf16.msrb.mxu3 %v6458_v13  ;;  %v6815_v13 = vld [vmem:[#allocation2 + $0x2e8] sm:$0xf0]  ;;  %v6754_v2 = vor.u32 %v8632_v12, %v6751_v22  ;;  %v6871_v5 = vld [vmem:[#allocation2 + $0x358] sm:$0xf0]  ;;  %v6938_v29 = vor.u32 %v8678_v11, %v6935_v31  ;;  %v8676_v15 = vld [vmem:[#allocation2 + $0x3c4] sm:$0xf] }
 0x626   :  { %5824 = vmatpush.bf16.msrb.mxu0 %v6522_v43  ;;  %v8664_v43 = vld [vmem:[#allocation2 + $0x364] sm:$0xf]  ;;  %v6818_v40 = vor.u32 %v8648_v8, %v6815_v13  ;;  %v6727_v22 = vld [vmem:[#allocation2 + $0x238] sm:$0xf0]  ;;  %v8642_v8 = vld [vmem:[#allocation2 + $0x2b4] sm:$0xf] }
 0x627   :  { %5850 = vmatpush.bf16.msrb.mxu2 %v6650_v19  ;;  %v6879_v19 = vld [vmem:[#allocation2 + $0x368] sm:$0xf0]  ;;  %v6791_v13 = vld [vmem:[#allocation2 + $0x2b8] sm:$0xf0] }
 0x628   :  { %5837 = vmatpush.bf16.msrb.mxu1 %v6586_v42  ;;  %v6807_v42 = vld [vmem:[#allocation2 + $0x2d8] sm:$0xf0]  ;;  %v6882_v3 = vor.u32 %v8664_v43, %v6879_v19  ;;  %v8658_v19 = vld [vmem:[#allocation2 + $0x334] sm:$0xf]  ;;  %v6794_v61 = vor.u32 %v8642_v8, %v6791_v13  ;;  %v6783_v11 = vld [vmem:[#allocation2 + $0x2a8] sm:$0xf0] }
 0x629   :  { %5812 = vmatpush.bf16.msrb.mxu3 %v6450_v25  ;;  %v8662_v25 = vld [vmem:[#allocation2 + $0x354] sm:$0xf]  ;;  %v6810_v44 = vor.u32 %v8646_v50, %v6807_v42  ;;  %v6719_v42 = vld [vmem:[#allocation2 + $0x228] sm:$0xf0]  ;;  %v6839_v13 = vld [vmem:[#allocation2 + $0x318] sm:$0xf0] }
 0x62a   :  { %5825 = vmatpush.bf16.msrb.mxu0 %v6514_v33  ;;  %v6735_v33 = vld [vmem:[#allocation2 + $0x248] sm:$0xf0]  ;;  %v5619_v43 = vpop.f32.mrf.mxu0  ;;  %v8654_v8 = vld [vmem:[#allocation2 + $0x314] sm:$0xf] }
 0x62b   :  { %5851 = vmatpush.bf16.msrb.mxu2 %v6642_v35  ;;  %v8644_v35 = vld [vmem:[#allocation2 + $0x2c4] sm:$0xf] }
 0x62c   :  { %5838 = vmatpush.bf16.msrb.mxu1 %v6578_v20  ;;  %5813 = vmatmul.bf16.vlgmr.msrb.gmra.mxu3 %v11913_v37  ;;  %v6874_v37 = vor.u32 %v8662_v25, %v6871_v5  ;;  %v6802_v12 = vor.u32 %v8644_v35, %v6799_v56  ;;  %v5632_v36 = vpop.f32.mrf.mxu1  ;;  %v8672_v25 = vld [vmem:[#allocation2 + $0x3a4] sm:$0xf]  ;;  %v6911_v5 = vld [vmem:[#allocation2 + $0x3a8] sm:$0xf0] }
 0x62d   :  { %5857 = vmatpush.bf16.msra.mxu3 %v6762_v34  ;;  %5826 = vmatmul.bf16.vlgmr.msrb.gmra.mxu0 %v11923_v27  ;;  %v6927_v34 = vld [vmem:[#allocation2 + $0x3c8] sm:$0xf0]  ;;  %v6738_v27 = vor.u32 %v8628_v46, %v6735_v33 }
 0x62e   :  { %5870 = vmatpush.bf16.msra.mxu0 %v6826_v39  ;;  %5852 = vmatmul.bf16.vlgmr.msrb.gmra.mxu2 %v11918_v49  ;;  %v8660_v39 = vld [vmem:[#allocation2 + $0x344] sm:$0xf]  ;;  %v6863_v49 = vld [vmem:[#allocation2 + $0x348] sm:$0xf0]  ;;  %v6930_v20 = vor.u32 %v8676_v15, %v6927_v34  ;;  %v6914_v15 = vor.u32 %v8672_v25, %v6911_v5  ;;  %v6711_v34 = vld [vmem:[#allocation2 + $0x218] sm:$0xf0] }
 0x62f   :  { %5896 = vmatpush.bf16.msra.mxu2 %v6954_v21  ;;  %5839 = vmatmul.bf16.vlgmr.msrb.gmra.mxu1 %v11927_v24  ;;  %v8626_v21 = vld [vmem:[#allocation2 + $0x234] sm:$0xf]  ;;  %v6919_v24 = vld [vmem:[#allocation2 + $0x3b8] sm:$0xf0]  ;;  %v6847_v46 = vld [vmem:[#allocation2 + $0x328] sm:$0xf0] }
 0x630   :  { %5883 = vmatpush.bf16.msra.mxu1 %v6890_v41  ;;  %v6866_v41 = vor.u32 %v8660_v39, %v6863_v49  ;;  %v6922_v50 = vor.u32 %v8674_v10, %v6919_v24  ;;  %v8638_v39 = vld [vmem:[#allocation2 + $0x294] sm:$0xf]  ;;  %v6775_v49 = vld [vmem:[#allocation2 + $0x298] sm:$0xf0]  ;;  %v8620_v24 = vld [vmem:[#allocation2 + $0x204] sm:$0xf] }
 0x631   :  { %5858 = vmatpush.bf16.msra.mxu3 %v6754_v2  ;;  %v6855_v2 = vld [vmem:[#allocation2 + $0x338] sm:$0xf0]  ;;  %v5645_v56 = vpop.f32.mrf.mxu2  ;;  %v6778_v10 = vor.u32 %v8638_v39, %v6775_v49  ;;  %v8714_v25 = vld [vmem:[#allocation2 + $0x4f4] sm:$0xf] }
 0x632   :  { %5871 = vmatpush.bf16.msra.mxu0 %v6818_v40  ;;  %v6730_v40 = vor.u32 %v8626_v21, %v6727_v22  ;;  %v6858_v31 = vor.u32 %v8658_v19, %v6855_v2  ;;  %v8670_v21 = vld [vmem:[#allocation2 + $0x394] sm:$0xf]  ;;  %v5621_v22 = vpop.f32.mrf.mxu0  ;;  %v6703_v19 = vld [vmem:[#allocation2 + $0x208] sm:$0xf0]  ;;  %v8636_v2 = vld [vmem:[#allocation2 + $0x284] sm:$0xf] }
 0x633   :  { %5897 = vmatpush.bf16.msra.mxu2 %v6946_v55  ;;  %v8624_v55 = vld [vmem:[#allocation2 + $0x224] sm:$0xf]  ;;  %v7079_v5 = vld [vmem:[#allocation2 + $0x4f8] sm:$0xf0] }
 0x634   :  { %5884 = vmatpush.bf16.msra.mxu1 %v6882_v3  ;;  %v8640_v3 = vld [vmem:[#allocation2 + $0x2a4] sm:$0xf]  ;;  %v6722_v33 = vor.u32 %v8624_v55, %v6719_v42  ;;  %v6767_v55 = vld [vmem:[#allocation2 + $0x288] sm:$0xf0]  ;;  %v7143_v39 = vld [vmem:[#allocation2 + $0x578] sm:$0xf0]  ;;  %v7082_v49 = vor.u32 %v8714_v25, %v7079_v5 }
 0x635   :  { %5859 = vmatpush.bf16.msra.mxu3 %v6746_v52  ;;  %v5606_v52 = vpop.f32.mrf.mxu3  ;;  %v6786_v35 = vor.u32 %v8640_v3, %v6783_v11  ;;  %v6842_v3 = vor.u32 %v8654_v8, %v6839_v13  ;;  %v8698_v11 = vld [vmem:[#allocation2 + $0x474] sm:$0xf]  ;;  %v7071_v8 = vld [vmem:[#allocation2 + $0x4e8] sm:$0xf0]  ;;  %v8744_v13 = vld [vmem:[#allocation2 + $0x5e4] sm:$0xf] }
 0x636   :  { %5872 = vmatpush.bf16.msra.mxu0 %v6810_v44  ;;  %v8656_v44 = vld [vmem:[#allocation2 + $0x324] sm:$0xf]  ;;  %v8726_v5 = vld [vmem:[#allocation2 + $0x554] sm:$0xf] }
 0x637   :  { %5898 = vmatpush.bf16.msra.mxu2 %v6938_v29  ;;  %v5607_v29 = vadd.f32 %v5606_v52, %v12099_v63  ;;  %v7207_v52 = vld [vmem:[#allocation2 + $0x5f8] sm:$0xf0] }
 0x638   :  { %5885 = vmatpush.bf16.msra.mxu1 %v6874_v37  ;;  %v8622_v37 = vld [vmem:[#allocation2 + $0x214] sm:$0xf] }
 0x639   :  { %5860 = vmatpush.bf16.msra.mxu3 %v6738_v27  ;;  %v5620_v27 = vadd.f32 %v5619_v43, %v5607_v29  ;;  %v6895_v43 = vld [vmem:[#allocation2 + $0x388] sm:$0xf0]  ;;  %v6770_v29 = vor.u32 %v8636_v2, %v6767_v55  ;;  %v6999_v55 = vld [vmem:[#allocation2 + $0x458] sm:$0xf0] }
 0x63a   :  { %5873 = vmatpush.bf16.msra.mxu0 %v6802_v12  ;;  %v6850_v12 = vor.u32 %v8656_v44, %v6847_v46  ;;  %v6706_v46 = vor.u32 %v8620_v24, %v6703_v19  ;;  %v8728_v24 = vld [vmem:[#allocation2 + $0x564] sm:$0xf]  ;;  %v7135_v19 = vld [vmem:[#allocation2 + $0x568] sm:$0xf0] }
 0x63b   :  { %5899 = vmatpush.bf16.msra.mxu2 %v6930_v20  ;;  %v6903_v20 = vld [vmem:[#allocation2 + $0x398] sm:$0xf0]  ;;  %v5633_v63 = vadd.f32 %v5632_v36, %v5620_v27  ;;  %v8746_v36 = vld [vmem:[#allocation2 + $0x5f4] sm:$0xf] }
 0x63c   :  { %5886 = vmatpush.bf16.msra.mxu1 %v6866_v41  ;;  %v6714_v41 = vor.u32 %v8622_v37, %v6711_v34  ;;  %v5647_v37 = vpop.f32.mrf.mxu2  ;;  %v7210_v27 = vor.u32 %v8746_v36, %v7207_v52  ;;  %v7127_v36 = vld [vmem:[#allocation2 + $0x558] sm:$0xf0] }
 0x63d   :  { %5861 = vmatpush.bf16.msra.mxu3 %v6730_v40  ;;  %v5634_v40 = vpop.f32.mrf.mxu1  ;;  %v12106_v42 = vadd.f32 %v5645_v56, %v5633_v63  ;;  %v5608_v44 = vpop.f32.mrf.mxu3  ;;  %v8730_v56 = vld [vmem:[#allocation2 + $0x574] sm:$0xf]  ;;  %v7199_v63 = vld [vmem:[#allocation2 + $0x5e8] sm:$0xf0] }
 0x63e   :  { %5874 = vmatpush.bf16.msra.mxu0 %v6794_v61  ;;  %v6906_v61 = vor.u32 %v8670_v21, %v6903_v20  ;;  %v7007_v21 = vld [vmem:[#allocation2 + $0x468] sm:$0xf0]  ;;  %v8712_v20 = vld [vmem:[#allocation2 + $0x4e4] sm:$0xf]  ;;  %v7202_v40 = vor.u32 %v8744_v13, %v7199_v63  ;;  %v8722_v63 = vld [vmem:[#allocation2 + $0x534] sm:$0xf] }
 0x63f   :  { %5900 = vmatpush.bf16.msra.mxu2 %v6922_v50  ;;  %v8668_v50 = vld [vmem:[#allocation2 + $0x384] sm:$0xf]  ;;  %v7074_v2 = vor.u32 %v8712_v20, %v7071_v8  ;;  %v7183_v37 = vld [vmem:[#allocation2 + $0x5c8] sm:$0xf0]  ;;  %v8738_v20 = vld [vmem:[#allocation2 + $0x5b4] sm:$0xf] }
 0x640   :  { %5887 = vmatpush.bf16.msra.mxu1 %v6858_v31  ;;  %v7015_v31 = vld [vmem:[#allocation2 + $0x478] sm:$0xf0] }
 0x641   :  { %5862 = vmatpush.bf16.msra.mxu3 %v6722_v33  ;;  %v8652_v33 = vld [vmem:[#allocation2 + $0x304] sm:$0xf]  ;;  %v7018_v34 = vor.u32 %v8698_v11, %v7015_v31  ;;  %v7191_v11 = vld [vmem:[#allocation2 + $0x5d8] sm:$0xf0]  ;;  %v7138_v31 = vor.u32 %v8728_v24, %v7135_v19 }
 0x642   :  { %5875 = vmatpush.bf16.msra.mxu0 %v6786_v35  ;;  %v6831_v35 = vld [vmem:[#allocation2 + $0x308] sm:$0xf0]  ;;  %v8688_v19 = vld [vmem:[#allocation2 + $0x424] sm:$0xf] }
 0x643   :  { %5901 = vmatpush.bf16.msra.mxu2 %v6914_v15  ;;  %v6898_v15 = vor.u32 %v8668_v50, %v6895_v43  ;;  %v6834_v22 = vor.u32 %v8652_v33, %v6831_v35  ;;  %v8710_v50 = vld [vmem:[#allocation2 + $0x4d4] sm:$0xf]  ;;  %v7063_v43 = vld [vmem:[#allocation2 + $0x4d8] sm:$0xf0]  ;;  %v7055_v33 = vld [vmem:[#allocation2 + $0x4c8] sm:$0xf0] }
 0x644   :  { %5888 = vmatpush.bf16.msra.mxu1 %v6850_v12  ;;  %v8696_v12 = vld [vmem:[#allocation2 + $0x464] sm:$0xf]  ;;  %v7066_v52 = vor.u32 %v8710_v50, %v7063_v43  ;;  %v7167_v43 = vld [vmem:[#allocation2 + $0x5a8] sm:$0xf0] }
 0x645   :  { %5863 = vmatpush.bf16.msra.mxu3 %v6714_v41  ;;  %v7146_v41 = vor.u32 %v8730_v56, %v7143_v39  ;;  %v8740_v35 = vld [vmem:[#allocation2 + $0x5c4] sm:$0xf]  ;;  %v7119_v56 = vld [vmem:[#allocation2 + $0x548] sm:$0xf0] }
 0x646   :  { %5876 = vmatpush.bf16.msra.mxu0 %v6778_v10  ;;  %v7010_v10 = vor.u32 %v8696_v12, %v7007_v21  ;;  %v7186_v39 = vor.u32 %v8740_v35, %v7183_v37  ;;  %v8706_v12 = vld [vmem:[#allocation2 + $0x4b4] sm:$0xf]  ;;  %v7047_v21 = vld [vmem:[#allocation2 + $0x4b8] sm:$0xf0]  ;;  %v8736_v50 = vld [vmem:[#allocation2 + $0x5a4] sm:$0xf] }
 0x647   :  { %5902 = vmatpush.bf16.msra.mxu2 %v6906_v61  ;;  %v8694_v61 = vld [vmem:[#allocation2 + $0x454] sm:$0xf]  ;;  %v7031_v37 = vld [vmem:[#allocation2 + $0x498] sm:$0xf0] }
 0x648   :  { %5889 = vmatpush.bf16.msra.mxu1 %v6842_v3  ;;  %v8742_v3 = vld [vmem:[#allocation2 + $0x5d4] sm:$0xf]  ;;  %v7002_v25 = vor.u32 %v8694_v61, %v6999_v55  ;;  %v7039_v55 = vld [vmem:[#allocation2 + $0x4a8] sm:$0xf0] }
 0x649   :  { %5864 = vmatpush.bf16.msra.mxu3 %v6706_v46  ;;  %v7194_v44 = vor.u32 %v8742_v3, %v7191_v11  ;;  %v8692_v46 = vld [vmem:[#allocation2 + $0x444] sm:$0xf] }
 0x64a   :  { %5877 = vmatpush.bf16.msra.mxu0 %v6770_v29  ;;  %v6991_v29 = vld [vmem:[#allocation2 + $0x448] sm:$0xf0]  ;;  %v5671_v13 = vpop.f32.mrf.mxu0 }
 0x64b   :  { %5903 = vmatpush.bf16.msra.mxu2 %v6898_v15  ;;  %v6994_v15 = vor.u32 %v8692_v46, %v6991_v29  ;;  %v7170_v46 = vor.u32 %v8736_v50, %v7167_v43  ;;  %v8686_v29 = vld [vmem:[#allocation2 + $0x414] sm:$0xf]  ;;  %v7463_v43 = vld [vmem:[#allocation2 + $0x7f8] sm:$0xf0] }
 0x64c   :  { %5890 = vmatpush.bf16.msra.mxu1 %v6834_v22  ;;  %5865 = vmatmul.bf16.vlgmr.msra.gmra.mxu3 %v11935_v16  ;;  %v8708_v16 = vld [vmem:[#allocation2 + $0x4c4] sm:$0xf]  ;;  %v7175_v22 = vld [vmem:[#allocation2 + $0x5b8] sm:$0xf0]  ;;  %v5684_v61 = vpop.f32.mrf.mxu1 }
 0x64d   :  { %5909 = vmatpush.bf16.msrb.mxu3 %v7018_v34  ;;  %5878 = vmatmul.bf16.vlgmr.msra.gmra.mxu0 %v11945_v18  ;;  %v8724_v34 = vld [vmem:[#allocation2 + $0x544] sm:$0xf]  ;;  %v7058_v18 = vor.u32 %v8708_v16, %v7055_v33  ;;  %v7178_v24 = vor.u32 %v8738_v20, %v7175_v22  ;;  %v6967_v16 = vld [vmem:[#allocation2 + $0x418] sm:$0xf0]  ;;  %v8702_v33 = vld [vmem:[#allocation2 + $0x494] sm:$0xf] }
 0x64e   :  { %5922 = vmatpush.bf16.msrb.mxu0 %v7082_v49  ;;  %5904 = vmatmul.bf16.vlgmr.msra.gmra.mxu2 %v11940_v60  ;;  %v7130_v60 = vor.u32 %v8726_v5, %v7127_v36  ;;  %v8690_v49 = vld [vmem:[#allocation2 + $0x434] sm:$0xf]  ;;  %v7122_v8 = vor.u32 %v8724_v34, %v7119_v56  ;;  %v8720_v5 = vld [vmem:[#allocation2 + $0x524] sm:$0xf]  ;;  %v7103_v36 = vld [vmem:[#allocation2 + $0x528] sm:$0xf0] }
 0x64f   :  { %5948 = vmatpush.bf16.msrb.mxu2 %v7210_v27  ;;  %5891 = vmatmul.bf16.vlgmr.msra.gmra.mxu1 %v11950_v30  ;;  %v6983_v27 = vld [vmem:[#allocation2 + $0x438] sm:$0xf0]  ;;  %v5658_v3 = vpop.f32.mrf.mxu3  ;;  %v7106_v34 = vor.u32 %v8720_v5, %v7103_v36  ;;  %v8718_v56 = vld [vmem:[#allocation2 + $0x514] sm:$0xf]  ;;  %v8700_v22 = vld [vmem:[#allocation2 + $0x484] sm:$0xf] }
 0x650   :  { %5935 = vmatpush.bf16.msrb.mxu1 %v7146_v41  ;;  %v6986_v30 = vor.u32 %v8690_v49, %v6983_v27  ;;  %v7111_v41 = vld [vmem:[#allocation2 + $0x538] sm:$0xf0]  ;;  %v8684_v27 = vld [vmem:[#allocation2 + $0x404] sm:$0xf]  ;;  %v8794_v36 = vld [vmem:[#allocation2 + $0x774] sm:$0xf] }
 0x651   :  { %5910 = vmatpush.bf16.msrb.mxu3 %v7010_v10  ;;  %v7050_v10 = vor.u32 %v8706_v12, %v7047_v21  ;;  %v7114_v11 = vor.u32 %v8722_v63, %v7111_v41  ;;  %v7095_v49 = vld [vmem:[#allocation2 + $0x518] sm:$0xf0]  ;;  %v6959_v12 = vld [vmem:[#allocation2 + $0x408] sm:$0xf0]  ;;  %v7034_v21 = vor.u32 %v8702_v33, %v7031_v37  ;;  %v8776_v37 = vld [vmem:[#allocation2 + $0x6e4] sm:$0xf] }
 0x652   :  { %5923 = vmatpush.bf16.msrb.mxu0 %v7074_v2  ;;  %v6975_v2 = vld [vmem:[#allocation2 + $0x428] sm:$0xf0]  ;;  %v6962_v50 = vor.u32 %v8684_v27, %v6959_v12  ;;  %v8758_v27 = vld [vmem:[#allocation2 + $0x654] sm:$0xf] }
 0x653   :  { %5949 = vmatpush.bf16.msrb.mxu2 %v7202_v40  ;;  %v8704_v40 = vld [vmem:[#allocation2 + $0x4a4] sm:$0xf]  ;;  %v7151_v41 = vld [vmem:[#allocation2 + $0x588] sm:$0xf0] }
 0x654   :  { %5936 = vmatpush.bf16.msrb.mxu1 %v7138_v31  ;;  %v5659_v31 = vadd.f32 %v5658_v3, %v12106_v42  ;;  %v8716_v3 = vld [vmem:[#allocation2 + $0x504] sm:$0xf] }
 0x655   :  { %5911 = vmatpush.bf16.msrb.mxu3 %v7002_v25  ;;  %v6978_v25 = vor.u32 %v8688_v19, %v6975_v2  ;;  %v7098_v19 = vor.u32 %v8718_v56, %v7095_v49  ;;  %v8778_v2 = vld [vmem:[#allocation2 + $0x6f4] sm:$0xf]  ;;  %v7455_v56 = vld [vmem:[#allocation2 + $0x7e8] sm:$0xf0] }
 0x656   :  { %5924 = vmatpush.bf16.msrb.mxu0 %v7066_v52  ;;  %v5697_v52 = vpop.f32.mrf.mxu2  ;;  %v5672_v35 = vadd.f32 %v5671_v13, %v5659_v31  ;;  %v8732_v13 = vld [vmem:[#allocation2 + $0x584] sm:$0xf] }
 0x657   :  { %5950 = vmatpush.bf16.msrb.mxu2 %v7194_v44  ;;  %v7042_v44 = vor.u32 %v8704_v40, %v7039_v55  ;;  %v7335_v40 = vld [vmem:[#allocation2 + $0x6f8] sm:$0xf0]  ;;  %v5660_v55 = vpop.f32.mrf.mxu3  ;;  %v7154_v5 = vor.u32 %v8732_v13, %v7151_v41  ;;  %v8806_v13 = vld [vmem:[#allocation2 + $0x7d4] sm:$0xf] }
 0x658   :  { %5937 = vmatpush.bf16.msrb.mxu1 %v7130_v60  ;;  %v8734_v60 = vld [vmem:[#allocation2 + $0x594] sm:$0xf]  ;;  %v5685_v42 = vadd.f32 %v5684_v61, %v5672_v35  ;;  %v7263_v35 = vld [vmem:[#allocation2 + $0x668] sm:$0xf0] }
 0x659   :  { %5912 = vmatpush.bf16.msrb.mxu3 %v6994_v15  ;;  %v7159_v15 = vld [vmem:[#allocation2 + $0x598] sm:$0xf0]  ;;  %v8810_v61 = vld [vmem:[#allocation2 + $0x7f4] sm:$0xf]  ;;  %v7311_v55 = vld [vmem:[#allocation2 + $0x6c8] sm:$0xf0] }
 0x65a   :  { %5925 = vmatpush.bf16.msrb.mxu0 %v7058_v18  ;;  %v5673_v18 = vpop.f32.mrf.mxu0  ;;  %v7162_v20 = vor.u32 %v8734_v60, %v7159_v15  ;;  %v12113_v63 = vadd.f32 %v5697_v52, %v5685_v42  ;;  %v7399_v52 = vld [vmem:[#allocation2 + $0x778] sm:$0xf0]  ;;  %v7327_v60 = vld [vmem:[#allocation2 + $0x6e8] sm:$0xf0]  ;;  %v8790_v41 = vld [vmem:[#allocation2 + $0x754] sm:$0xf] }
 0x65b   :  { %5951 = vmatpush.bf16.msrb.mxu2 %v7186_v39  ;;  %v6970_v39 = vor.u32 %v8686_v29, %v6967_v16  ;;  %v8760_v29 = vld [vmem:[#allocation2 + $0x664] sm:$0xf]  ;;  %v7466_v16 = vor.u32 %v8810_v61, %v7463_v43  ;;  %v7402_v15 = vor.u32 %v8794_v36, %v7399_v52  ;;  %v7391_v42 = vld [vmem:[#allocation2 + $0x768] sm:$0xf0]  ;;  %v7330_v49 = vor.u32 %v8776_v37, %v7327_v60  ;;  %v7239_v36 = vld [vmem:[#allocation2 + $0x638] sm:$0xf0] }
 0x65c   :  { %5938 = vmatpush.bf16.msrb.mxu1 %v7122_v8  ;;  %v7023_v8 = vld [vmem:[#allocation2 + $0x488] sm:$0xf0]  ;;  %v8792_v18 = vld [vmem:[#allocation2 + $0x764] sm:$0xf]  ;;  %v8770_v52 = vld [vmem:[#allocation2 + $0x6b4] sm:$0xf] }
 0x65d   :  { %5913 = vmatpush.bf16.msrb.mxu3 %v6986_v30  ;;  %v5686_v30 = vpop.f32.mrf.mxu1  ;;  %v8772_v61 = vld [vmem:[#allocation2 + $0x6c4] sm:$0xf] }
 0x65e   :  { %5926 = vmatpush.bf16.msrb.mxu0 %v7050_v10  ;;  %v8762_v10 = vld [vmem:[#allocation2 + $0x674] sm:$0xf]  ;;  %v5699_v31 = vpop.f32.mrf.mxu2  ;;  %v7447_v30 = vld [vmem:[#allocation2 + $0x7d8] sm:$0xf0]  ;;  %v8804_v43 = vld [vmem:[#allocation2 + $0x7c4] sm:$0xf] }
 0x65f   :  { %5952 = vmatpush.bf16.msrb.mxu2 %v7178_v24  ;;  %v7271_v24 = vld [vmem:[#allocation2 + $0x678] sm:$0xf0]  ;;  %v7314_v31 = vor.u32 %v8772_v61, %v7311_v55  ;;  %v8798_v55 = vld [vmem:[#allocation2 + $0x794] sm:$0xf] }
 0x660   :  { %5939 = vmatpush.bf16.msrb.mxu1 %v7114_v11  ;;  %v7087_v11 = vld [vmem:[#allocation2 + $0x508] sm:$0xf0] }
 0x661   :  { %5914 = vmatpush.bf16.msrb.mxu3 %v6978_v25  ;;  %v7026_v25 = vor.u32 %v8700_v22, %v7023_v8  ;;  %v7090_v33 = vor.u32 %v8716_v3, %v7087_v11  ;;  %v7319_v22 = vld [vmem:[#allocation2 + $0x6d8] sm:$0xf0]  ;;  %v7394_v8 = vor.u32 %v8792_v18, %v7391_v42  ;;  %v8788_v3 = vld [vmem:[#allocation2 + $0x744] sm:$0xf]  ;;  %v7231_v18 = vld [vmem:[#allocation2 + $0x628] sm:$0xf0] }
 0x662   :  { %5927 = vmatpush.bf16.msrb.mxu0 %v7042_v44  ;;  %v7274_v44 = vor.u32 %v8762_v10, %v7271_v24  ;;  %v7383_v10 = vld [vmem:[#allocation2 + $0x758] sm:$0xf0]  ;;  %v8768_v42 = vld [vmem:[#allocation2 + $0x6a4] sm:$0xf] }
 0x663   :  { %5953 = vmatpush.bf16.msrb.mxu2 %v7170_v46  ;;  %v7338_v46 = vor.u32 %v8778_v2, %v7335_v40  ;;  %v8756_v2 = vld [vmem:[#allocation2 + $0x644] sm:$0xf]  ;;  %v7450_v40 = vor.u32 %v8806_v13, %v7447_v30 }
 0x664   :  { %5940 = vmatpush.bf16.msrb.mxu1 %v7106_v34  ;;  %v8808_v34 = vld [vmem:[#allocation2 + $0x7e4] sm:$0xf] }
 0x665   :  { %5915 = vmatpush.bf16.msrb.mxu3 %v6970_v39  ;;  %v7266_v39 = vor.u32 %v8760_v29, %v7263_v35  ;;  %v7458_v12 = vor.u32 %v8808_v34, %v7455_v56  ;;  %v7431_v29 = vld [vmem:[#allocation2 + $0x7b8] sm:$0xf0] }
 0x666   :  { %5928 = vmatpush.bf16.msrb.mxu0 %v7034_v21  ;;  %v7255_v21 = vld [vmem:[#allocation2 + $0x658] sm:$0xf0] }
 0x667   :  { %5954 = vmatpush.bf16.msrb.mxu2 %v7162_v20  ;;  %v8774_v20 = vld [vmem:[#allocation2 + $0x6d4] sm:$0xf]  ;;  %v7258_v24 = vor.u32 %v8758_v27, %v7255_v21  ;;  %v7367_v35 = vld [vmem:[#allocation2 + $0x738] sm:$0xf0]  ;;  %v8800_v27 = vld [vmem:[#allocation2 + $0x7a4] sm:$0xf] }
 0x668   :  { %5941 = vmatpush.bf16.msrb.mxu1 %v7098_v19  ;;  %v7322_v19 = vor.u32 %v8774_v20, %v7319_v22  ;;  %v8784_v20 = vld [vmem:[#allocation2 + $0x724] sm:$0xf]  ;;  %v7359_v22 = vld [vmem:[#allocation2 + $0x728] sm:$0xf0] }
 0x669   :  { %5916 = vmatpush.bf16.msrb.mxu3 %v6962_v50  ;;  %v7386_v50 = vor.u32 %v8790_v41, %v7383_v10  ;;  %v8750_v10 = vld [vmem:[#allocation2 + $0x614] sm:$0xf]  ;;  %v7362_v61 = vor.u32 %v8784_v20, %v7359_v22  ;;  %v7655_v22 = vld [vmem:[#allocation2 + $0x978] sm:$0xf0] }
 0x66a   :  { %5929 = vmatpush.bf16.msrb.mxu0 %v7026_v25  ;;  %v8754_v25 = vld [vmem:[#allocation2 + $0x634] sm:$0xf] }
 0x66b   :  { %5955 = vmatpush.bf16.msrb.mxu2 %v7154_v5  ;;  %v7242_v37 = vor.u32 %v8754_v25, %v7239_v36  ;;  %v7215_v25 = vld [vmem:[#allocation2 + $0x608] sm:$0xf0]  ;;  %v8858_v20 = vld [vmem:[#allocation2 + $0x974] sm:$0xf] }
 0x66c   :  { %5942 = vmatpush.bf16.msrb.mxu1 %v7090_v33  ;;  %5917 = vmatmul.bf16.vlgmr.msrb.gmra.mxu3 %v11957_v14  ;;  %v7247_v14 = vld [vmem:[#allocation2 + $0x648] sm:$0xf0]  ;;  %v8786_v33 = vld [vmem:[#allocation2 + $0x734] sm:$0xf]  ;;  %v5736_v34 = vpop.f32.mrf.mxu1 }
 0x66d   :  { %5961 = vmatpush.bf16.msra.mxu3 %v7274_v44  ;;  %5930 = vmatmul.bf16.vlgmr.msrb.gmra.mxu0 %v11967_v47  ;;  %v7375_v47 = vld [vmem:[#allocation2 + $0x748] sm:$0xf0]  ;;  %v7250_v11 = vor.u32 %v8756_v2, %v7247_v14  ;;  %v7303_v44 = vld [vmem:[#allocation2 + $0x6b8] sm:$0xf0]  ;;  %v8766_v2 = vld [vmem:[#allocation2 + $0x694] sm:$0xf] }
 0x66e   :  { %5974 = vmatpush.bf16.msra.mxu0 %v7338_v46  ;;  %5956 = vmatmul.bf16.vlgmr.msrb.gmra.mxu2 %v11962_v23  ;;  %v7439_v23 = vld [vmem:[#allocation2 + $0x7c8] sm:$0xf0]  ;;  %v8802_v46 = vld [vmem:[#allocation2 + $0x7b4] sm:$0xf]  ;;  %v7306_v60 = vor.u32 %v8770_v52, %v7303_v44 }
 0x66f   :  { %6000 = vmatpush.bf16.msra.mxu2 %v7466_v16  ;;  %5943 = vmatmul.bf16.vlgmr.msrb.gmra.mxu1 %v11971_v48  ;;  %v7442_v5 = vor.u32 %v8804_v43, %v7439_v23  ;;  %v7378_v48 = vor.u32 %v8788_v3, %v7375_v47  ;;  %v5723_v16 = vpop.f32.mrf.mxu0  ;;  %v7434_v56 = vor.u32 %v8802_v46, %v7431_v29  ;;  %v5710_v21 = vpop.f32.mrf.mxu3  ;;  %v8782_v23 = vld [vmem:[#allocation2 + $0x714] sm:$0xf]  ;;  %v7351_v3 = vld [vmem:[#allocation2 + $0x718] sm:$0xf0]  ;;  %v7279_v44 = vld [vmem:[#allocation2 + $0x688] sm:$0xf0] }
 0x670   :  { %5987 = vmatpush.bf16.msra.mxu1 %v7402_v15  ;;  %v8752_v15 = vld [vmem:[#allocation2 + $0x624] sm:$0xf]  ;;  %v7407_v46 = vld [vmem:[#allocation2 + $0x788] sm:$0xf0] }
 0x671   :  { %5962 = vmatpush.bf16.msra.mxu3 %v7266_v39  ;;  %v7295_v39 = vld [vmem:[#allocation2 + $0x6a8] sm:$0xf0]  ;;  %v7234_v13 = vor.u32 %v8752_v15, %v7231_v18  ;;  %v5749_v41 = vpop.f32.mrf.mxu2  ;;  %v8874_v15 = vld [vmem:[#allocation2 + $0x9f4] sm:$0xf] }
 0x672   :  { %5975 = vmatpush.bf16.msra.mxu0 %v7330_v49  ;;  %v7370_v49 = vor.u32 %v8786_v33, %v7367_v35  ;;  %v7298_v30 = vor.u32 %v8768_v42, %v7295_v39  ;;  %v8826_v33 = vld [vmem:[#allocation2 + $0x874] sm:$0xf]  ;;  %v7527_v35 = vld [vmem:[#allocation2 + $0x878] sm:$0xf0]  ;;  %v8780_v39 = vld [vmem:[#allocation2 + $0x704] sm:$0xf] }
 0x673   :  { %6001 = vmatpush.bf16.msra.mxu2 %v7458_v12  ;;  %v7423_v12 = vld [vmem:[#allocation2 + $0x7a8] sm:$0xf0] }
 0x674   :  { %5988 = vmatpush.bf16.msra.mxu1 %v7394_v8  ;;  %v5711_v8 = vadd.f32 %v5710_v21, %v12113_v63  ;;  %v5738_v36 = vpop.f32.mrf.mxu1  ;;  %v7530_v21 = vor.u32 %v8826_v33, %v7527_v35  ;;  %v7503_v33 = vld [vmem:[#allocation2 + $0x848] sm:$0xf0] }
 0x675   :  { %5963 = vmatpush.bf16.msra.mxu3 %v7258_v24  ;;  %v7426_v24 = vor.u32 %v8800_v27, %v7423_v12  ;;  %v7567_v35 = vld [vmem:[#allocation2 + $0x8c8] sm:$0xf0] }
 0x676   :  { %5976 = vmatpush.bf16.msra.mxu0 %v7322_v19  ;;  %v7223_v19 = vld [vmem:[#allocation2 + $0x618] sm:$0xf0]  ;;  %v5724_v14 = vadd.f32 %v5723_v16, %v5711_v8  ;;  %v7354_v16 = vor.u32 %v8782_v23, %v7351_v3  ;;  %v8822_v3 = vld [vmem:[#allocation2 + $0x854] sm:$0xf] }
 0x677   :  { %6002 = vmatpush.bf16.msra.mxu2 %v7450_v40  ;;  %v7287_v40 = vld [vmem:[#allocation2 + $0x698] sm:$0xf0]  ;;  %v5725_v43 = vpop.f32.mrf.mxu0  ;;  %v7226_v47 = vor.u32 %v8750_v10, %v7223_v19  ;;  %v8840_v10 = vld [vmem:[#allocation2 + $0x8e4] sm:$0xf]  ;;  %v7583_v19 = vld [vmem:[#allocation2 + $0x8e8] sm:$0xf0] }
 0x678   :  { %5989 = vmatpush.bf16.msra.mxu1 %v7386_v50  ;;  %v7415_v50 = vld [vmem:[#allocation2 + $0x798] sm:$0xf0]  ;;  %v5737_v63 = vadd.f32 %v5736_v34, %v5724_v14  ;;  %v7658_v14 = vor.u32 %v8858_v20, %v7655_v22  ;;  %v7586_v43 = vor.u32 %v8840_v10, %v7583_v19  ;;  %v8816_v10 = vld [vmem:[#allocation2 + $0x824] sm:$0xf] }
 0x679   :  { %5964 = vmatpush.bf16.msra.mxu3 %v7250_v11  ;;  %v7290_v11 = vor.u32 %v8766_v2, %v7287_v40  ;;  %v7418_v52 = vor.u32 %v8798_v55, %v7415_v50  ;;  %v7719_v34 = vld [vmem:[#allocation2 + $0x9f8] sm:$0xf0]  ;;  %v5751_v27 = vpop.f32.mrf.mxu2  ;;  %v8872_v2 = vld [vmem:[#allocation2 + $0x9e4] sm:$0xf]  ;;  %v7711_v40 = vld [vmem:[#allocation2 + $0x9e8] sm:$0xf0] }
 0x67a   :  { %5977 = vmatpush.bf16.msra.mxu0 %v7314_v31  ;;  %v8748_v31 = vld [vmem:[#allocation2 + $0x604] sm:$0xf]  ;;  %v12120_v29 = vadd.f32 %v5749_v41, %v5737_v63  ;;  %v7519_v41 = vld [vmem:[#allocation2 + $0x868] sm:$0xf0]  ;;  %v7714_v23 = vor.u32 %v8872_v2, %v7711_v40  ;;  %v7511_v63 = vld [vmem:[#allocation2 + $0x858] sm:$0xf0] }
 0x67b   :  { %6003 = vmatpush.bf16.msra.mxu2 %v7442_v5  ;;  %v8764_v5 = vld [vmem:[#allocation2 + $0x684] sm:$0xf]  ;;  %v7218_v18 = vor.u32 %v8748_v31, %v7215_v25  ;;  %v7647_v50 = vld [vmem:[#allocation2 + $0x968] sm:$0xf0]  ;;  %v8870_v31 = vld [vmem:[#allocation2 + $0x9d4] sm:$0xf]  ;;  %v7514_v36 = vor.u32 %v8822_v3, %v7511_v63 }
 0x67c   :  { %5990 = vmatpush.bf16.msra.mxu1 %v7378_v48  ;;  %v8796_v48 = vld [vmem:[#allocation2 + $0x784] sm:$0xf]  ;;  %v7282_v42 = vor.u32 %v8764_v5, %v7279_v44  ;;  %v7703_v25 = vld [vmem:[#allocation2 + $0x9d8] sm:$0xf0]  ;;  %v7551_v40 = vld [vmem:[#allocation2 + $0x8a8] sm:$0xf0] }
 0x67d   :  { %5965 = vmatpush.bf16.msra.mxu3 %v7242_v37  ;;  %v8842_v37 = vld [vmem:[#allocation2 + $0x8f4] sm:$0xf]  ;;  %v7410_v12 = vor.u32 %v8796_v48, %v7407_v46  ;;  %v8856_v55 = vld [vmem:[#allocation2 + $0x964] sm:$0xf]  ;;  %v7639_v44 = vld [vmem:[#allocation2 + $0x958] sm:$0xf0]  ;;  %v7706_v46 = vor.u32 %v8870_v31, %v7703_v25 }
 0x67e   :  { %5978 = vmatpush.bf16.msra.mxu0 %v7306_v60  ;;  %v7591_v60 = vld [vmem:[#allocation2 + $0x8f8] sm:$0xf0]  ;;  %v7650_v5 = vor.u32 %v8856_v55, %v7647_v50  ;;  %v8832_v19 = vld [vmem:[#allocation2 + $0x8a4] sm:$0xf]  ;;  %v7615_v63 = vld [vmem:[#allocation2 + $0x928] sm:$0xf0] }
 0x67f   :  { %6004 = vmatpush.bf16.msra.mxu2 %v7434_v56  ;;  %v5712_v56 = vpop.f32.mrf.mxu3  ;;  %v7594_v8 = vor.u32 %v8842_v37, %v7591_v60  ;;  %v8868_v37 = vld [vmem:[#allocation2 + $0x9c4] sm:$0xf]  ;;  %v7695_v60 = vld [vmem:[#allocation2 + $0x9c8] sm:$0xf0]  ;;  %v7559_v27 = vld [vmem:[#allocation2 + $0x8b8] sm:$0xf0] }
 0x680   :  { %5991 = vmatpush.bf16.msra.mxu1 %v7370_v49  ;;  %v7343_v49 = vld [vmem:[#allocation2 + $0x708] sm:$0xf0]  ;;  %v8848_v3 = vld [vmem:[#allocation2 + $0x924] sm:$0xf]  ;;  %v8814_v25 = vld [vmem:[#allocation2 + $0x814] sm:$0xf] }
 0x681   :  { %5966 = vmatpush.bf16.msra.mxu3 %v7234_v13  ;;  %v7722_v13 = vor.u32 %v8874_v15, %v7719_v34  ;;  %v8852_v34 = vld [vmem:[#allocation2 + $0x944] sm:$0xf] }
 0x682   :  { %5979 = vmatpush.bf16.msra.mxu0 %v7298_v30  ;;  %v8824_v30 = vld [vmem:[#allocation2 + $0x864] sm:$0xf] }
 0x683   :  { %6005 = vmatpush.bf16.msra.mxu2 %v7426_v24  ;;  %v7346_v24 = vor.u32 %v8780_v39, %v7343_v49  ;;  %v7495_v39 = vld [vmem:[#allocation2 + $0x838] sm:$0xf0]  ;;  %v8834_v49 = vld [vmem:[#allocation2 + $0x8b4] sm:$0xf] }
 0x684   :  { %5992 = vmatpush.bf16.msra.mxu1 %v7362_v61  ;;  %v7522_v61 = vor.u32 %v8824_v30, %v7519_v41  ;;  %v7562_v30 = vor.u32 %v8834_v49, %v7559_v27  ;;  %v7663_v49 = vld [vmem:[#allocation2 + $0x988] sm:$0xf0]  ;;  %v8890_v27 = vld [vmem:[#allocation2 + $0xa74] sm:$0xf] }
 0x685   :  { %5967 = vmatpush.bf16.msra.mxu3 %v7226_v47  ;;  %v8838_v47 = vld [vmem:[#allocation2 + $0x8d4] sm:$0xf] }
 0x686   :  { %5980 = vmatpush.bf16.msra.mxu0 %v7290_v11  ;;  %v7575_v11 = vld [vmem:[#allocation2 + $0x8d8] sm:$0xf0] }
 0x687   :  { %6006 = vmatpush.bf16.msra.mxu2 %v7418_v52  ;;  %v8854_v52 = vld [vmem:[#allocation2 + $0x954] sm:$0xf]  ;;  %v7578_v48 = vor.u32 %v8838_v47, %v7575_v11  ;;  %v7554_v11 = vor.u32 %v8832_v19, %v7551_v40 }
 0x688   :  { %5993 = vmatpush.bf16.msra.mxu1 %v7354_v16  ;;  %v8820_v16 = vld [vmem:[#allocation2 + $0x844] sm:$0xf]  ;;  %v8922_v40 = vld [vmem:[#allocation2 + $0xb74] sm:$0xf] }
 0x689   :  { %5968 = vmatpush.bf16.msra.mxu3 %v7218_v18  ;;  %v7506_v15 = vor.u32 %v8820_v16, %v7503_v33  ;;  %v7698_v18 = vor.u32 %v8868_v37, %v7695_v60  ;;  %v7618_v16 = vor.u32 %v8848_v3, %v7615_v63  ;;  %v8846_v33 = vld [vmem:[#allocation2 + $0x914] sm:$0xf]  ;;  %v7607_v37 = vld [vmem:[#allocation2 + $0x918] sm:$0xf0]  ;;  %v8812_v60 = vld [vmem:[#allocation2 + $0x804] sm:$0xf] }
 0x68a   :  { %5981 = vmatpush.bf16.msra.mxu0 %v7282_v42  ;;  %v8818_v42 = vld [vmem:[#allocation2 + $0x834] sm:$0xf]  ;;  %v5775_v20 = vpop.f32.mrf.mxu0  ;;  %v7775_v3 = vld [vmem:[#allocation2 + $0xa68] sm:$0xf0]  ;;  %v8904_v63 = vld [vmem:[#allocation2 + $0xae4] sm:$0xf] }
 0x68b   :  { %6007 = vmatpush.bf16.msra.mxu2 %v7410_v12  ;;  %v8866_v12 = vld [vmem:[#allocation2 + $0x9b4] sm:$0xf]  ;;  %v7498_v22 = vor.u32 %v8818_v42, %v7495_v39 }
 0x68c   :  { %5994 = vmatpush.bf16.msra.mxu1 %v7346_v24  ;;  %5969 = vmatmul.bf16.vlgmr.msra.gmra.mxu3 %v11979_v26  ;;  %v8836_v26 = vld [vmem:[#allocation2 + $0x8c4] sm:$0xf]  ;;  %v7487_v24 = vld [vmem:[#allocation2 + $0x828] sm:$0xf0]  ;;  %v5788_v2 = vpop.f32.mrf.mxu1 }
 0x68d   :  { %6013 = vmatpush.bf16.msrb.mxu3 %v7530_v21  ;;  %5982 = vmatmul.bf16.vlgmr.msra.gmra.mxu0 %v11989_v1  ;;  %v7631_v1 = vld [vmem:[#allocation2 + $0x948] sm:$0xf0]  ;;  %v7570_v56 = vor.u32 %v8836_v26, %v7567_v35  ;;  %v7687_v21 = vld [vmem:[#allocation2 + $0x9b8] sm:$0xf0] }
 0x68e   :  { %6026 = vmatpush.bf16.msrb.mxu0 %v7594_v8  ;;  %6008 = vmatmul.bf16.vlgmr.msra.gmra.mxu2 %v11984_v54  ;;  %v7642_v54 = vor.u32 %v8854_v52, %v7639_v44  ;;  %v8850_v8 = vld [vmem:[#allocation2 + $0x934] sm:$0xf]  ;;  %v7690_v41 = vor.u32 %v8866_v12, %v7687_v21  ;;  %v7543_v44 = vld [vmem:[#allocation2 + $0x898] sm:$0xf0]  ;;  %v7610_v21 = vor.u32 %v8846_v33, %v7607_v37 }
 0x68f   :  { %6052 = vmatpush.bf16.msrb.mxu2 %v7722_v13  ;;  %5995 = vmatmul.bf16.vlgmr.msra.gmra.mxu1 %v11994_v45  ;;  %v7634_v45 = vor.u32 %v8852_v34, %v7631_v1  ;;  %v7623_v13 = vld [vmem:[#allocation2 + $0x938] sm:$0xf0]  ;;  %v5762_v55 = vpop.f32.mrf.mxu3  ;;  %v8828_v1 = vld [vmem:[#allocation2 + $0x884] sm:$0xf]  ;;  %v8902_v33 = vld [vmem:[#allocation2 + $0xad4] sm:$0xf] }
 0x690   :  { %6039 = vmatpush.bf16.msrb.mxu1 %v7658_v14  ;;  %v8864_v14 = vld [vmem:[#allocation2 + $0x9a4] sm:$0xf]  ;;  %v7626_v50 = vor.u32 %v8850_v8, %v7623_v13  ;;  %v7783_v12 = vld [vmem:[#allocation2 + $0xa78] sm:$0xf0] }
 0x691   :  { %6014 = vmatpush.bf16.msrb.mxu3 %v7522_v61  ;;  %v7679_v61 = vld [vmem:[#allocation2 + $0x9a8] sm:$0xf0]  ;;  %v5801_v47 = vpop.f32.mrf.mxu2  ;;  %v7959_v37 = vld [vmem:[#allocation2 + $0xbd8] sm:$0xf0] }
 0x692   :  { %6027 = vmatpush.bf16.msrb.mxu0 %v7586_v43  ;;  %v5763_v43 = vadd.f32 %v5762_v55, %v12120_v29  ;;  %v7682_v31 = vor.u32 %v8864_v14, %v7679_v61  ;;  %v5777_v26 = vpop.f32.mrf.mxu0  ;;  %v7911_v14 = vld [vmem:[#allocation2 + $0xb78] sm:$0xf0]  ;;  %v7786_v61 = vor.u32 %v8890_v27, %v7783_v12  ;;  %v8932_v27 = vld [vmem:[#allocation2 + $0xbc4] sm:$0xf] }
 0x693   :  { %6053 = vmatpush.bf16.msrb.mxu2 %v7714_v23  ;;  %v7490_v23 = vor.u32 %v8816_v10, %v7487_v24  ;;  %v7599_v10 = vld [vmem:[#allocation2 + $0x908] sm:$0xf0]  ;;  %v7831_v26 = vld [vmem:[#allocation2 + $0xad8] sm:$0xf0]  ;;  %v8916_v12 = vld [vmem:[#allocation2 + $0xb44] sm:$0xf] }
 0x694   :  { %6040 = vmatpush.bf16.msrb.mxu1 %v7650_v5  ;;  %v7479_v5 = vld [vmem:[#allocation2 + $0x818] sm:$0xf0]  ;;  %v5776_v52 = vadd.f32 %v5775_v20, %v5763_v43  ;;  %v5790_v42 = vpop.f32.mrf.mxu1 }
 0x695   :  { %6015 = vmatpush.bf16.msrb.mxu3 %v7514_v36  ;;  %v8830_v36 = vld [vmem:[#allocation2 + $0x894] sm:$0xf]  ;;  %v7482_v35 = vor.u32 %v8814_v25, %v7479_v5  ;;  %v7847_v20 = vld [vmem:[#allocation2 + $0xaf8] sm:$0xf0]  ;;  %v7967_v25 = vld [vmem:[#allocation2 + $0xbe8] sm:$0xf0] }
 0x696   :  { %6028 = vmatpush.bf16.msrb.mxu0 %v7578_v48  ;;  %v8862_v48 = vld [vmem:[#allocation2 + $0x994] sm:$0xf]  ;;  %v5789_v29 = vadd.f32 %v5788_v2, %v5776_v52  ;;  %v8920_v5 = vld [vmem:[#allocation2 + $0xb64] sm:$0xf]  ;;  %v7823_v42 = vld [vmem:[#allocation2 + $0xac8] sm:$0xf0] }
 0x697   :  { %6054 = vmatpush.bf16.msrb.mxu2 %v7706_v46  ;;  %v7671_v46 = vld [vmem:[#allocation2 + $0x998] sm:$0xf0]  ;;  %v5764_v8 = vpop.f32.mrf.mxu3 }
 0x698   :  { %6041 = vmatpush.bf16.msrb.mxu1 %v7642_v54  ;;  %v7471_v54 = vld [vmem:[#allocation2 + $0x808] sm:$0xf0]  ;;  %v7674_v34 = vor.u32 %v8862_v48, %v7671_v46  ;;  %v12127_v39 = vadd.f32 %v5801_v47, %v5789_v29  ;;  %v8886_v48 = vld [vmem:[#allocation2 + $0xa54] sm:$0xf]  ;;  %v7751_v8 = vld [vmem:[#allocation2 + $0xa38] sm:$0xf0] }
 0x699   :  { %6016 = vmatpush.bf16.msrb.mxu3 %v7506_v15  ;;  %v7546_v15 = vor.u32 %v8830_v36, %v7543_v44  ;;  %v7474_v13 = vor.u32 %v8812_v60, %v7471_v54  ;;  %v5803_v24 = vpop.f32.mrf.mxu2  ;;  %v7839_v47 = vld [vmem:[#allocation2 + $0xae8] sm:$0xf0]  ;;  %v8918_v60 = vld [vmem:[#allocation2 + $0xb54] sm:$0xf]  ;;  %v7895_v54 = vld [vmem:[#allocation2 + $0xb58] sm:$0xf0] }
 0x69a   :  { %6029 = vmatpush.bf16.msrb.mxu0 %v7570_v56  ;;  %v7535_v56 = vld [vmem:[#allocation2 + $0x888] sm:$0xf0]  ;;  %v7842_v44 = vor.u32 %v8904_v63, %v7839_v47  ;;  %v8896_v63 = vld [vmem:[#allocation2 + $0xaa4] sm:$0xf] }
 0x69b   :  { %6055 = vmatpush.bf16.msrb.mxu2 %v7698_v18  ;;  %v8860_v18 = vld [vmem:[#allocation2 + $0x984] sm:$0xf]  ;;  %v7538_v19 = vor.u32 %v8828_v1, %v7535_v56  ;;  %v7903_v36 = vld [vmem:[#allocation2 + $0xb68] sm:$0xf0] }
 0x69c   :  { %6042 = vmatpush.bf16.msrb.mxu1 %v7634_v45  ;;  %v8906_v45 = vld [vmem:[#allocation2 + $0xaf4] sm:$0xf]  ;;  %v7666_v2 = vor.u32 %v8860_v18, %v7663_v49  ;;  %v7906_v29 = vor.u32 %v8920_v5, %v7903_v36  ;;  %v8884_v1 = vld [vmem:[#allocation2 + $0xa44] sm:$0xf]  ;;  %v7898_v49 = vor.u32 %v8918_v60, %v7895_v54  ;;  %v7807_v47 = vld [vmem:[#allocation2 + $0xaa8] sm:$0xf0] }
 0x69d   :  { %6017 = vmatpush.bf16.msrb.mxu3 %v7498_v22  ;;  %v8938_v22 = vld [vmem:[#allocation2 + $0xbf4] sm:$0xf]  ;;  %v7850_v55 = vor.u32 %v8906_v45, %v7847_v20  ;;  %v8900_v18 = vld [vmem:[#allocation2 + $0xac4] sm:$0xf]  ;;  %v7871_v36 = vld [vmem:[#allocation2 + $0xb28] sm:$0xf0] }
 0x69e   :  { %6030 = vmatpush.bf16.msrb.mxu0 %v7562_v30  ;;  %v7975_v30 = vld [vmem:[#allocation2 + $0xbf8] sm:$0xf0]  ;;  %v7826_v45 = vor.u32 %v8900_v18, %v7823_v42  ;;  %v8882_v20 = vld [vmem:[#allocation2 + $0xa34] sm:$0xf]  ;;  %v8912_v5 = vld [vmem:[#allocation2 + $0xb24] sm:$0xf] }
 0x69f   :  { %6056 = vmatpush.bf16.msrb.mxu2 %v7690_v41  ;;  %v8844_v41 = vld [vmem:[#allocation2 + $0x904] sm:$0xf]  ;;  %v7978_v43 = vor.u32 %v8938_v22, %v7975_v30  ;;  %v7815_v30 = vld [vmem:[#allocation2 + $0xab8] sm:$0xf0]  ;;  %v7874_v60 = vor.u32 %v8912_v5, %v7871_v36  ;;  %v8926_v54 = vld [vmem:[#allocation2 + $0xb94] sm:$0xf] }
 0x6a0   :  { %6043 = vmatpush.bf16.msrb.mxu1 %v7626_v50  ;;  %v8888_v50 = vld [vmem:[#allocation2 + $0xa64] sm:$0xf] }
 0x6a1   :  { %6018 = vmatpush.bf16.msrb.mxu3 %v7490_v23  ;;  %v7602_v23 = vor.u32 %v8844_v41, %v7599_v10  ;;  %v7778_v52 = vor.u32 %v8888_v50, %v7775_v3  ;;  %v8930_v41 = vld [vmem:[#allocation2 + $0xbb4] sm:$0xf]  ;;  %v7943_v10 = vld [vmem:[#allocation2 + $0xbb8] sm:$0xf0]  ;;  %v7743_v3 = vld [vmem:[#allocation2 + $0xa28] sm:$0xf0] }
 0x6a2   :  { %6031 = vmatpush.bf16.msrb.mxu0 %v7554_v11  ;;  %v7914_v11 = vor.u32 %v8922_v40, %v7911_v14  ;;  %v7754_v40 = vor.u32 %v8882_v20, %v7751_v8  ;;  %v8924_v20 = vld [vmem:[#allocation2 + $0xb84] sm:$0xf] }
 0x6a3   :  { %6057 = vmatpush.bf16.msrb.mxu2 %v7682_v31  ;;  %v8936_v31 = vld [vmem:[#allocation2 + $0xbe4] sm:$0xf] }
 0x6a4   :  { %6044 = vmatpush.bf16.msrb.mxu1 %v7618_v16  ;;  %v7970_v46 = vor.u32 %v8936_v31, %v7967_v25  ;;  %v7767_v16 = vld [vmem:[#allocation2 + $0xa58] sm:$0xf0]  ;;  %v8928_v31 = vld [vmem:[#allocation2 + $0xba4] sm:$0xf]  ;;  %v7935_v25 = vld [vmem:[#allocation2 + $0xba8] sm:$0xf0] }
 0x6a5   :  { %6019 = vmatpush.bf16.msrb.mxu3 %v7482_v35  ;;  %v8934_v35 = vld [vmem:[#allocation2 + $0xbd4] sm:$0xf]  ;;  %v8968_v5 = vld [vmem:[#allocation2 + $0xce4] sm:$0xf] }
 0x6a6   :  { %6032 = vmatpush.bf16.msrb.mxu0 %v7546_v15  ;;  %v7770_v15 = vor.u32 %v8886_v48, %v7767_v16  ;;  %v7962_v56 = vor.u32 %v8934_v35, %v7959_v37  ;;  %v7810_v48 = vor.u32 %v8896_v63, %v7807_v47  ;;  %v8894_v35 = vld [vmem:[#allocation2 + $0xa94] sm:$0xf]  ;;  %v7799_v37 = vld [vmem:[#allocation2 + $0xa98] sm:$0xf0] }
 0x6a7   :  { %6058 = vmatpush.bf16.msrb.mxu2 %v7674_v34  ;;  %v7834_v34 = vor.u32 %v8902_v33, %v7831_v26  ;;  %v7938_v26 = vor.u32 %v8928_v31, %v7935_v25  ;;  %v7802_v42 = vor.u32 %v8894_v35, %v7799_v37  ;;  %v8167_v63 = vld [vmem:[#allocation2 + $0xd78] sm:$0xf0]  ;;  %v8952_v31 = vld [vmem:[#allocation2 + $0xc64] sm:$0xf]  ;;  %v8031_v25 = vld [vmem:[#allocation2 + $0xc68] sm:$0xf0] }
 0x6a8   :  { %6045 = vmatpush.bf16.msrb.mxu1 %v7610_v21  ;;  %v8950_v37 = vld [vmem:[#allocation2 + $0xc54] sm:$0xf] }
 0x6a9   :  { %6020 = vmatpush.bf16.msrb.mxu3 %v7474_v13  ;;  %v8898_v13 = vld [vmem:[#allocation2 + $0xab4] sm:$0xf] }
 0x6aa   :  { %6033 = vmatpush.bf16.msrb.mxu0 %v7538_v19  ;;  %v5827_v24 = vpop.f32.mrf.mxu0  ;;  %v8914_v19 = vld [vmem:[#allocation2 + $0xb34] sm:$0xf]  ;;  %v7818_v14 = vor.u32 %v8898_v13, %v7815_v30  ;;  %v8039_v30 = vld [vmem:[#allocation2 + $0xc78] sm:$0xf0] }
 0x6ab   :  { %6059 = vmatpush.bf16.msrb.mxu2 %v7666_v2  ;;  %v7879_v2 = vld [vmem:[#allocation2 + $0xb38] sm:$0xf0]  ;;  %v8954_v13 = vld [vmem:[#allocation2 + $0xc74] sm:$0xf] }
 0x6ac   :  { %6046 = vmatpush.bf16.msrb.mxu1 %v7602_v23  ;;  %6021 = vmatmul.bf16.vlgmr.msrb.gmra.mxu3 %v12001_v32  ;;  %v7759_v32 = vld [vmem:[#allocation2 + $0xa48] sm:$0xf0]  ;;  %v7946_v23 = vor.u32 %v8930_v41, %v7943_v10  ;;  %v8103_v10 = vld [vmem:[#allocation2 + $0xcf8] sm:$0xf0] }
 0x6ad   :  { %6065 = vmatpush.bf16.msra.mxu3 %v7786_v61  ;;  %6034 = vmatmul.bf16.vlgmr.msrb.gmra.mxu0 %v12011_v6  ;;  %v7887_v6 = vld [vmem:[#allocation2 + $0xb48] sm:$0xf0]  ;;  %v7762_v21 = vor.u32 %v8884_v1, %v7759_v32  ;;  %v8880_v61 = vld [vmem:[#allocation2 + $0xa24] sm:$0xf]  ;;  %v7863_v32 = vld [vmem:[#allocation2 + $0xb18] sm:$0xf0] }
 0x6ae   :  { %6078 = vmatpush.bf16.msra.mxu0 %v7850_v55  ;;  %6060 = vmatmul.bf16.vlgmr.msrb.gmra.mxu2 %v12006_v9  ;;  %v7951_v9 = vld [vmem:[#allocation2 + $0xbc8] sm:$0xf0]  ;;  %v9131_v55 = vld [vmem:[%s12215_s6] sm:$0x3] }
 0x6af   :  { %6104 = vmatpush.bf16.msra.mxu2 %v7978_v43  ;;  %6047 = vmatmul.bf16.vlgmr.msrb.gmra.mxu1 %v12015_v51  ;;  %v7954_v22 = vor.u32 %v8932_v27, %v7951_v9  ;;  %v7890_v51 = vor.u32 %v8916_v12, %v7887_v6  ;;  %v2826_v50 = vperm.slane %v9131_v55, 1  ;;  %v5840_v43 = vpop.f32.mrf.mxu1  ;;  %v7727_v27 = vld [vmem:[#allocation2 + $0xa08] sm:$0xf0]  ;;  %v8892_v9 = vld [vmem:[#allocation2 + $0xa84] sm:$0xf] }
 0x6b0   :  { %6091 = vmatpush.bf16.msra.mxu1 %v7914_v11  ;;  %v7882_v11 = vor.u32 %v8914_v19, %v7879_v2  ;;  %v8231_v19 = vld [vmem:[#allocation2 + $0xdf8] sm:$0xf0]  ;;  %v7855_v55 = vld [vmem:[#allocation2 + $0xb08] sm:$0xf0] }
 0x6b1   :  { %6066 = vmatpush.bf16.msra.mxu3 %v7778_v52  ;;  %v5814_v52 = vpop.f32.mrf.mxu3  ;;  %v5853_v33 = vpop.f32.mrf.mxu2 }
 0x6b2   :  { %6079 = vmatpush.bf16.msra.mxu0 %v7842_v44  ;;  %v7746_v44 = vor.u32 %v8880_v61, %v7743_v3  ;;  %v5815_v16 = vadd.f32 %v5814_v52, %v2826_v50  ;;  %v5829_v1 = vpop.f32.mrf.mxu0  ;;  %v8908_v61 = vld [vmem:[#allocation2 + $0xb04] sm:$0xf]  ;;  %v8986_v3 = vld [vmem:[#allocation2 + $0xd74] sm:$0xf]  ;;  %v8095_v52 = vld [vmem:[#allocation2 + $0xce8] sm:$0xf0] }
 0x6b3   :  { %6105 = vmatpush.bf16.msra.mxu2 %v7970_v46  ;;  %v8878_v46 = vld [vmem:[#allocation2 + $0xa14] sm:$0xf]  ;;  %v7858_v36 = vor.u32 %v8908_v61, %v7855_v55  ;;  %v8215_v1 = vld [vmem:[#allocation2 + $0xdd8] sm:$0xf0] }
 0x6b4   :  { %6092 = vmatpush.bf16.msra.mxu1 %v7906_v29  ;;  %v7735_v29 = vld [vmem:[#allocation2 + $0xa18] sm:$0xf0]  ;;  %v8978_v61 = vld [vmem:[#allocation2 + $0xd34] sm:$0xf] }
 0x6b5   :  { %6067 = vmatpush.bf16.msra.mxu3 %v7770_v15  ;;  %v7927_v15 = vld [vmem:[#allocation2 + $0xb98] sm:$0xf0]  ;;  %v7738_v18 = vor.u32 %v8878_v46, %v7735_v29  ;;  %v8170_v46 = vor.u32 %v8986_v3, %v8167_v63  ;;  %v8098_v29 = vor.u32 %v8968_v5, %v8095_v52  ;;  %v7999_v3 = vld [vmem:[#allocation2 + $0xc28] sm:$0xf0]  ;;  %v8960_v63 = vld [vmem:[#allocation2 + $0xca4] sm:$0xf] }
 0x6b6   :  { %6080 = vmatpush.bf16.msra.mxu0 %v7834_v34  ;;  %v5828_v34 = vadd.f32 %v5827_v24, %v5815_v16  ;;  %v9002_v24 = vld [vmem:[#allocation2 + $0xdf4] sm:$0xf]  ;;  %v8034_v16 = vor.u32 %v8952_v31, %v8031_v25  ;;  %v8135_v55 = vld [vmem:[#allocation2 + $0xd38] sm:$0xf0]  ;;  %v8992_v31 = vld [vmem:[#allocation2 + $0xda4] sm:$0xf] }
 0x6b7   :  { %6106 = vmatpush.bf16.msra.mxu2 %v7962_v56  ;;  %v8910_v56 = vld [vmem:[#allocation2 + $0xb14] sm:$0xf]  ;;  %v5842_v6 = vpop.f32.mrf.mxu1  ;;  %v8191_v25 = vld [vmem:[#allocation2 + $0xda8] sm:$0xf0]  ;;  %v8138_v5 = vor.u32 %v8978_v61, %v8135_v55 }
 0x6b8   :  { %6093 = vmatpush.bf16.msra.mxu1 %v7898_v49  ;;  %v8876_v49 = vld [vmem:[#allocation2 + $0xa04] sm:$0xf]  ;;  %v5841_v12 = vadd.f32 %v5840_v43, %v5828_v34  ;;  %v7866_v8 = vor.u32 %v8910_v56, %v7863_v32  ;;  %v8998_v34 = vld [vmem:[#allocation2 + $0xdd4] sm:$0xf]  ;;  %v8079_v6 = vld [vmem:[#allocation2 + $0xcc8] sm:$0xf0] }
 0x6b9   :  { %6068 = vmatpush.bf16.msra.mxu3 %v7762_v21  ;;  %v7930_v21 = vor.u32 %v8926_v54, %v7927_v15  ;;  %v5816_v2 = vpop.f32.mrf.mxu3  ;;  %v5855_v50 = vpop.f32.mrf.mxu2  ;;  %v8966_v54 = vld [vmem:[#allocation2 + $0xcd4] sm:$0xf]  ;;  %v8087_v15 = vld [vmem:[#allocation2 + $0xcd8] sm:$0xf0] }
 0x6ba   :  { %6081 = vmatpush.bf16.msra.mxu0 %v7826_v45  ;;  %v7791_v45 = vld [vmem:[#allocation2 + $0xa88] sm:$0xf0]  ;;  %v12136_v41 = vadd.f32 %v5853_v33, %v5841_v12  ;;  %v8984_v33 = vld [vmem:[#allocation2 + $0xd64] sm:$0xf]  ;;  %v8199_v2 = vld [vmem:[#allocation2 + $0xdb8] sm:$0xf0] }
 0x6bb   :  { %6107 = vmatpush.bf16.msra.mxu2 %v7954_v22  ;;  %v7919_v22 = vld [vmem:[#allocation2 + $0xb88] sm:$0xf0]  ;;  %v9050_v55 = vld [vmem:[#allocation2 + $0xf74] sm:$0xf] }
 0x6bc   :  { %6094 = vmatpush.bf16.msra.mxu1 %v7890_v51  ;;  %v8970_v51 = vld [vmem:[#allocation2 + $0xcf4] sm:$0xf]  ;;  %v7922_v43 = vor.u32 %v8924_v20, %v7919_v22  ;;  %v8015_v12 = vld [vmem:[#allocation2 + $0xc48] sm:$0xf0]  ;;  %v8980_v22 = vld [vmem:[#allocation2 + $0xd44] sm:$0xf] }
 0x6bd   :  { %6069 = vmatpush.bf16.msra.mxu3 %v7754_v40  ;;  %v7730_v40 = vor.u32 %v8876_v49, %v7727_v27  ;;  %v8106_v47 = vor.u32 %v8970_v51, %v8103_v10  ;;  %v8090_v49 = vor.u32 %v8966_v54, %v8087_v15  ;;  %v8218_v27 = vor.u32 %v8998_v34, %v8215_v1  ;;  %v8007_v51 = vld [vmem:[#allocation2 + $0xc38] sm:$0xf0]  ;;  %v8962_v10 = vld [vmem:[#allocation2 + $0xcb4] sm:$0xf] }
 0x6be   :  { %6082 = vmatpush.bf16.msra.mxu0 %v7818_v14  ;;  %v7794_v14 = vor.u32 %v8892_v9, %v7791_v45  ;;  %v8948_v9 = vld [vmem:[#allocation2 + $0xc44] sm:$0xf]  ;;  %v8207_v45 = vld [vmem:[#allocation2 + $0xdc8] sm:$0xf0]  ;;  %v8990_v54 = vld [vmem:[#allocation2 + $0xd94] sm:$0xf] }
 0x6bf   :  { %6108 = vmatpush.bf16.msra.mxu2 %v7946_v23  ;;  %v8042_v23 = vor.u32 %v8954_v13, %v8039_v30  ;;  %v8018_v20 = vor.u32 %v8948_v9, %v8015_v12  ;;  %v8946_v30 = vld [vmem:[#allocation2 + $0xc34] sm:$0xf]  ;;  %v8183_v15 = vld [vmem:[#allocation2 + $0xd98] sm:$0xf0] }
 0x6c0   :  { %6095 = vmatpush.bf16.msra.mxu1 %v7882_v11  ;;  %v8234_v11 = vor.u32 %v9002_v24, %v8231_v19  ;;  %v8071_v24 = vld [vmem:[#allocation2 + $0xcb8] sm:$0xf0]  ;;  %v8994_v19 = vld [vmem:[#allocation2 + $0xdb4] sm:$0xf]  ;;  %v8186_v12 = vor.u32 %v8990_v54, %v8183_v15 }
 0x6c1   :  { %6070 = vmatpush.bf16.msra.mxu3 %v7746_v44  ;;  %v9000_v44 = vld [vmem:[#allocation2 + $0xde4] sm:$0xf]  ;;  %v8074_v50 = vor.u32 %v8962_v10, %v8071_v24  ;;  %v9062_v54 = vld [vmem:[#allocation2 + $0xfd4] sm:$0xf]  ;;  %v8471_v15 = vld [vmem:[#allocation2 + $0xfd8] sm:$0xf0] }
 0x6c2   :  { %6083 = vmatpush.bf16.msra.mxu0 %v7810_v48  ;;  %v8223_v48 = vld [vmem:[#allocation2 + $0xde8] sm:$0xf0] }
 0x6c3   :  { %6109 = vmatpush.bf16.msra.mxu2 %v7938_v26  ;;  %v8159_v26 = vld [vmem:[#allocation2 + $0xd68] sm:$0xf0]  ;;  %v8226_v35 = vor.u32 %v9000_v44, %v8223_v48  ;;  %v8976_v44 = vld [vmem:[#allocation2 + $0xd24] sm:$0xf] }
 0x6c4   :  { %6096 = vmatpush.bf16.msra.mxu1 %v7874_v60  ;;  %v8023_v60 = vld [vmem:[#allocation2 + $0xc58] sm:$0xf0]  ;;  %v8162_v56 = vor.u32 %v8984_v33, %v8159_v26  ;;  %v8127_v48 = vld [vmem:[#allocation2 + $0xd28] sm:$0xf0]  ;;  %v8194_v26 = vor.u32 %v8992_v31, %v8191_v25  ;;  %v9032_v31 = vld [vmem:[#allocation2 + $0xee4] sm:$0xf] }
 0x6c5   :  { %6071 = vmatpush.bf16.msra.mxu3 %v7738_v18  ;;  %v8026_v32 = vor.u32 %v8950_v37, %v8023_v60  ;;  %v8982_v18 = vld [vmem:[#allocation2 + $0xd54] sm:$0xf]  ;;  %v8055_v60 = vld [vmem:[#allocation2 + $0xc98] sm:$0xf0]  ;;  %v8130_v1 = vor.u32 %v8976_v44, %v8127_v48  ;;  %v8351_v25 = vld [vmem:[#allocation2 + $0xee8] sm:$0xf0] }
 0x6c6   :  { %6084 = vmatpush.bf16.msra.mxu0 %v7802_v42  ;;  %v8151_v42 = vld [vmem:[#allocation2 + $0xd58] sm:$0xf0]  ;;  %v8958_v37 = vld [vmem:[#allocation2 + $0xc94] sm:$0xf]  ;;  %v9048_v44 = vld [vmem:[#allocation2 + $0xf64] sm:$0xf] }
 0x6c7   :  { %6110 = vmatpush.bf16.msra.mxu2 %v7930_v21  ;;  %v8996_v21 = vld [vmem:[#allocation2 + $0xdc4] sm:$0xf]  ;;  %v8058_v9 = vor.u32 %v8958_v37, %v8055_v60  ;;  %v8415_v48 = vld [vmem:[#allocation2 + $0xf68] sm:$0xf0]  ;;  %v8343_v37 = vld [vmem:[#allocation2 + $0xed8] sm:$0xf0] }
 0x6c8   :  { %6097 = vmatpush.bf16.msra.mxu1 %v7866_v8  ;;  %v8210_v13 = vor.u32 %v8996_v21, %v8207_v45  ;;  %v8988_v21 = vld [vmem:[#allocation2 + $0xd84] sm:$0xf]  ;;  %v8418_v60 = vor.u32 %v9048_v44, %v8415_v48  ;;  %v8247_v44 = vld [vmem:[#allocation2 + $0xe18] sm:$0xf0]  ;;  %v9022_v48 = vld [vmem:[#allocation2 + $0xe94] sm:$0xf] }
 0x6c9   :  { %6072 = vmatpush.bf16.msra.mxu3 %v7730_v40 }
 0x6ca   :  { %6085 = vmatpush.bf16.msra.mxu0 %v7794_v14  ;;  %v5879_v40 = vpop.f32.mrf.mxu0  ;;  %v8010_v14 = vor.u32 %v8946_v30, %v8007_v51  ;;  %v8359_v30 = vld [vmem:[#allocation2 + $0xef8] sm:$0xf0]  ;;  %v9066_v51 = vld [vmem:[#allocation2 + $0xff4] sm:$0xf] }
 0x6cb   :  { %6111 = vmatpush.bf16.msra.mxu2 %v7922_v43  ;;  %v8202_v43 = vor.u32 %v8994_v19, %v8199_v2  ;;  %v8487_v19 = vld [vmem:[#allocation2 + $0xff8] sm:$0xf0]  ;;  %v8972_v2 = vld [vmem:[#allocation2 + $0xd04] sm:$0xf] }
 0x6cc   :  { %6098 = vmatpush.bf16.msra.mxu1 %v7858_v36  ;;  %6073 = vmatmul.bf16.vlgmr.msra.gmra.mxu3 %v12028_v58  ;;  %v8964_v58 = vld [vmem:[#allocation2 + $0xcc4] sm:$0xf] }
 0x6cd   :  { %6117 = vmatpush.bf16.msrb.mxu3 %v8042_v23  ;;  %6086 = vmatmul.bf16.vlgmr.msra.gmra.mxu0 %v12038_v53  ;;  %v8143_v53 = vld [vmem:[#allocation2 + $0xd48] sm:$0xf0]  ;;  %v8082_v8 = vor.u32 %v8964_v58, %v8079_v6  ;;  %v8944_v23 = vld [vmem:[#allocation2 + $0xc24] sm:$0xf] }
 0x6ce   :  { %6130 = vmatpush.bf16.msrb.mxu0 %v8106_v47  ;;  %6112 = vmatmul.bf16.vlgmr.msra.gmra.mxu2 %v12033_v0  ;;  %v8154_v0 = vor.u32 %v8982_v18, %v8151_v42  ;;  %v5892_v47 = vpop.f32.mrf.mxu1  ;;  %v8002_v52 = vor.u32 %v8944_v23, %v7999_v3  ;;  %v8119_v42 = vld [vmem:[#allocation2 + $0xd18] sm:$0xf0]  ;;  %v8956_v58 = vld [vmem:[#allocation2 + $0xc84] sm:$0xf]  ;;  %v8047_v6 = vld [vmem:[#allocation2 + $0xc88] sm:$0xf0] }
 0x6cf   :  { %6156 = vmatpush.bf16.msrb.mxu2 %v8234_v11  ;;  %6099 = vmatmul.bf16.vlgmr.msra.gmra.mxu1 %v12043_v38  ;;  %v8146_v38 = vor.u32 %v8980_v22, %v8143_v53  ;;  %v8063_v11 = vld [vmem:[#allocation2 + $0xca8] sm:$0xf0]  ;;  %v5866_v36 = vpop.f32.mrf.mxu3  ;;  %v9018_v22 = vld [vmem:[#allocation2 + $0xe74] sm:$0xf]  ;;  %v8295_v53 = vld [vmem:[#allocation2 + $0xe78] sm:$0xf0] }
 0x6d0   :  { %6143 = vmatpush.bf16.msrb.mxu1 %v8170_v46  ;;  %v5867_v46 = vadd.f32 %v5866_v36, %v12136_v41  ;;  %v8066_v33 = vor.u32 %v8960_v63, %v8063_v11  ;;  %v9016_v3 = vld [vmem:[#allocation2 + $0xe64] sm:$0xf]  ;;  %v8490_v63 = vor.u32 %v9066_v51, %v8487_v19  ;;  %v8287_v11 = vld [vmem:[#allocation2 + $0xe68] sm:$0xf0]  ;;  %v9042_v51 = vld [vmem:[#allocation2 + $0xf34] sm:$0xf] }
 0x6d1   :  { %6118 = vmatpush.bf16.msrb.mxu3 %v8034_v16  ;;  %v5905_v16 = vpop.f32.mrf.mxu2  ;;  %v9064_v36 = vld [vmem:[#allocation2 + $0xfe4] sm:$0xf] }
 0x6d2   :  { %6131 = vmatpush.bf16.msrb.mxu0 %v8098_v29  ;;  %v8942_v29 = vld [vmem:[#allocation2 + $0xc14] sm:$0xf]  ;;  %v5880_v34 = vadd.f32 %v5879_v40, %v5867_v46  ;;  %v8290_v46 = vor.u32 %v9016_v3, %v8287_v11 }
 0x6d3   :  { %6157 = vmatpush.bf16.msrb.mxu2 %v8226_v35  ;;  %v7991_v35 = vld [vmem:[#allocation2 + $0xc18] sm:$0xf0] }
 0x6d4   :  { %6144 = vmatpush.bf16.msrb.mxu1 %v8162_v56  ;;  %v8974_v56 = vld [vmem:[#allocation2 + $0xd14] sm:$0xf]  ;;  %v7994_v18 = vor.u32 %v8942_v29, %v7991_v35  ;;  %v5893_v41 = vadd.f32 %v5892_v47, %v5880_v34  ;;  %v8279_v29 = vld [vmem:[#allocation2 + $0xe58] sm:$0xf0] }
 0x6d5   :  { %6119 = vmatpush.bf16.msrb.mxu3 %v8026_v32  ;;  %v5881_v32 = vpop.f32.mrf.mxu0  ;;  %v9030_v35 = vld [vmem:[#allocation2 + $0xed4] sm:$0xf] }
 0x6d6   :  { %6132 = vmatpush.bf16.msrb.mxu0 %v8090_v49  ;;  %v8940_v49 = vld [vmem:[#allocation2 + $0xc04] sm:$0xf]  ;;  %v5894_v45 = vpop.f32.mrf.mxu1  ;;  %v9046_v34 = vld [vmem:[#allocation2 + $0xf54] sm:$0xf]  ;;  %v8346_v32 = vor.u32 %v9030_v35, %v8343_v37 }
 0x6d7   :  { %6158 = vmatpush.bf16.msrb.mxu2 %v8218_v27  ;;  %v7983_v27 = vld [vmem:[#allocation2 + $0xc08] sm:$0xf0]  ;;  %v5868_v10 = vpop.f32.mrf.mxu3  ;;  %v9038_v37 = vld [vmem:[#allocation2 + $0xf14] sm:$0xf] }
 0x6d8   :  { %6145 = vmatpush.bf16.msrb.mxu1 %v8154_v0  ;;  %v8175_v0 = vld [vmem:[#allocation2 + $0xd88] sm:$0xf0]  ;;  %v7986_v24 = vor.u32 %v8940_v49, %v7983_v27  ;;  %v8391_v10 = vld [vmem:[#allocation2 + $0xf38] sm:$0xf0] }
 0x6d9   :  { %6120 = vmatpush.bf16.msrb.mxu3 %v8018_v20  ;;  %v12143_v20 = vadd.f32 %v5905_v16, %v5893_v41  ;;  %v5907_v40 = vpop.f32.mrf.mxu2  ;;  %v8178_v61 = vor.u32 %v8988_v21, %v8175_v0  ;;  %v8354_v16 = vor.u32 %v9032_v31, %v8351_v25  ;;  %v9028_v41 = vld [vmem:[#allocation2 + $0xec4] sm:$0xf]  ;;  %v8335_v49 = vld [vmem:[#allocation2 + $0xec8] sm:$0xf0]  ;;  %v9010_v21 = vld [vmem:[#allocation2 + $0xe34] sm:$0xf] }
 0x6da   :  { %6133 = vmatpush.bf16.msrb.mxu0 %v8082_v8  ;;  %v8122_v8 = vor.u32 %v8974_v56, %v8119_v42  ;;  %v8474_v42 = vor.u32 %v9062_v54, %v8471_v15  ;;  %v8263_v0 = vld [vmem:[#allocation2 + $0xe38] sm:$0xf0] }
 0x6db   :  { %6159 = vmatpush.bf16.msrb.mxu2 %v8210_v13  ;;  %v9034_v13 = vld [vmem:[#allocation2 + $0xef4] sm:$0xf] }
 0x6dc   :  { %6146 = vmatpush.bf16.msrb.mxu1 %v8146_v38  ;;  %v8111_v38 = vld [vmem:[#allocation2 + $0xd08] sm:$0xf0]  ;;  %v8362_v23 = vor.u32 %v9034_v13, %v8359_v30  ;;  %v8455_v13 = vld [vmem:[#allocation2 + $0xfb8] sm:$0xf0] }
 0x6dd   :  { %6121 = vmatpush.bf16.msrb.mxu3 %v8010_v14  ;;  %v8050_v14 = vor.u32 %v8956_v58, %v8047_v6  ;;  %v8114_v47 = vor.u32 %v8972_v2, %v8111_v38  ;;  %v8338_v6 = vor.u32 %v9028_v41, %v8335_v49  ;;  %v9008_v2 = vld [vmem:[#allocation2 + $0xe24] sm:$0xf] }
 0x6de   :  { %6134 = vmatpush.bf16.msrb.mxu0 %v8074_v50  ;;  %v8423_v50 = vld [vmem:[#allocation2 + $0xf78] sm:$0xf0]  ;;  %v9052_v49 = vld [vmem:[#allocation2 + $0xf84] sm:$0xf] }
 0x6df   :  { %6160 = vmatpush.bf16.msrb.mxu2 %v8202_v43  ;;  %v8298_v43 = vor.u32 %v9018_v22, %v8295_v53  ;;  %v9026_v22 = vld [vmem:[#allocation2 + $0xeb4] sm:$0xf]  ;;  %v8327_v53 = vld [vmem:[#allocation2 + $0xeb8] sm:$0xf0] }
 0x6e0   :  { %6147 = vmatpush.bf16.msrb.mxu1 %v8138_v5  ;;  %v8426_v5 = vor.u32 %v9050_v55, %v8423_v50  ;;  %v8330_v19 = vor.u32 %v9026_v22, %v8327_v53  ;;  %v8319_v55 = vld [vmem:[#allocation2 + $0xea8] sm:$0xf0]  ;;  %v8394_v50 = vor.u32 %v9042_v51, %v8391_v10  ;;  %v9074_v22 = vld [vmem:[%s12216_s7 + $0x30] sm:$0xff]  ;;  %v12223_v53 = vld [vmem:[#allocation9_spill] sm:$0xff] }
 0x6e1   :  { %6122 = vmatpush.bf16.msrb.mxu3 %v8002_v52  ;;  %v8479_v52 = vld [vmem:[#allocation2 + $0xfe8] sm:$0xf0]  ;;  %v9070_v51 = vld [vmem:[%s12216_s7 + $0x10] sm:$0xff] }
 0x6e2   :  { %6135 = vmatpush.bf16.msrb.mxu0 %v8066_v33  ;;  %v9014_v33 = vld [vmem:[#allocation2 + $0xe54] sm:$0xf] }
 0x6e3   :  { %6161 = vmatpush.bf16.msrb.mxu2 %v8194_v26  ;;  %v8482_v26 = vor.u32 %v9064_v36, %v8479_v52  ;;  %v8282_v56 = vor.u32 %v9014_v33, %v8279_v29  ;;  %v9006_v36 = vld [vmem:[#allocation2 + $0xe14] sm:$0xf]  ;;  %v8439_v29 = vld [vmem:[#allocation2 + $0xf98] sm:$0xf0] }
 0x6e4   :  { %6148 = vmatpush.bf16.msrb.mxu1 %v8130_v1  ;;  %v8407_v1 = vld [vmem:[#allocation2 + $0xf58] sm:$0xf0]  ;;  %v8250_v54 = vor.u32 %v9006_v36, %v8247_v44 }
 0x6e5   :  { %6123 = vmatpush.bf16.msrb.mxu3 %v7994_v18  ;;  %v9012_v18 = vld [vmem:[#allocation2 + $0xe44] sm:$0xf]  ;;  %v8410_v27 = vor.u32 %v9046_v34, %v8407_v1 }
 0x6e6   :  { %6136 = vmatpush.bf16.msrb.mxu0 %v8058_v9  ;;  %v9060_v9 = vld [vmem:[#allocation2 + $0xfc4] sm:$0xf] }
 0x6e7   :  { %6162 = vmatpush.bf16.msrb.mxu2 %v8186_v12  ;;  %v9044_v12 = vld [vmem:[#allocation2 + $0xf44] sm:$0xf] }
 0x6e8   :  { %6149 = vmatpush.bf16.msrb.mxu1 %v8122_v8  ;;  %v9058_v8 = vld [vmem:[#allocation2 + $0xfb4] sm:$0xf]  ;;  %v9004_v34 = vld [vmem:[#allocation2 + $0xe04] sm:$0xf] }
 0x6e9   :  { %6124 = vmatpush.bf16.msrb.mxu3 %v7986_v24  ;;  %v8266_v24 = vor.u32 %v9010_v21, %v8263_v0  ;;  %v8458_v40 = vor.u32 %v9058_v8, %v8455_v13  ;;  %v9072_v8 = vld [vmem:[%s12216_s7 + $0x20] sm:$0xff] }
 0x6ea   :  { %6137 = vmatpush.bf16.msrb.mxu0 %v8050_v14  ;;  %v5931_v30 = vpop.f32.mrf.mxu0  ;;  %v8255_v14 = vld [vmem:[#allocation2 + $0xe28] sm:$0xf0] }
 0x6eb   :  { %6163 = vmatpush.bf16.msrb.mxu2 %v8178_v61  ;;  %v9024_v61 = vld [vmem:[#allocation2 + $0xea4] sm:$0xf]  ;;  %v8258_v31 = vor.u32 %v9008_v2, %v8255_v14 }
 0x6ec   :  { %6150 = vmatpush.bf16.msrb.mxu1 %v8114_v47  ;;  %6125 = vmatmul.bf16.vlgmr.msrb.gmra.mxu3 %v12053_v62  ;;  %v8271_v62 = vld [vmem:[#allocation2 + $0xe48] sm:$0xf0]  ;;  %v5944_v38 = vpop.f32.mrf.mxu1  ;;  %v8322_v25 = vor.u32 %v9024_v61, %v8319_v55  ;;  %v9068_v55 = vld [vmem:[%s12216_s7] sm:$0xff] }
 0x6ed   :  { %6169 = vmatpush.bf16.msra.mxu3 %v8298_v43  ;;  %6138 = vmatmul.bf16.vlgmr.msrb.gmra.mxu0 %v12063_v7  ;;  %v8399_v7 = vld [vmem:[#allocation2 + $0xf48] sm:$0xf0]  ;;  %v8274_v58 = vor.u32 %v9012_v18, %v8271_v62  ;;  %v9056_v43 = vld [vmem:[#allocation2 + $0xfa4] sm:$0xf] }
 0x6ee   :  { %6182 = vmatpush.bf16.msra.mxu0 %v8362_v23  ;;  %6164 = vmatmul.bf16.vlgmr.msrb.gmra.mxu2 %v12058_v4  ;;  %v8463_v4 = vld [vmem:[#allocation2 + $0xfc8] sm:$0xf0]  ;;  %v9020_v18 = vld [vmem:[#allocation2 + $0xe84] sm:$0xf] }
 0x6ef   :  { %6208 = vmatpush.bf16.msra.mxu2 %v8490_v63  ;;  %6151 = vmatmul.bf16.vlgmr.msrb.gmra.mxu1 %v12067_v17  ;;  %v8466_v45 = vor.u32 %v9060_v9, %v8463_v4  ;;  %v8402_v17 = vor.u32 %v9044_v12, %v8399_v7  ;;  %v8447_v23 = vld [vmem:[#allocation2 + $0xfa8] sm:$0xf0]  ;;  %v5918_v3 = vpop.f32.mrf.mxu3  ;;  %v9040_v63 = vld [vmem:[#allocation2 + $0xf24] sm:$0xf] }
 0x6f0   :  { %6195 = vmatpush.bf16.msra.mxu1 %v8426_v5  ;;  %v8383_v47 = vld [vmem:[#allocation2 + $0xf28] sm:$0xf0]  ;;  %v5919_v11 = vadd.f32 %v5918_v3, %v12143_v20  ;;  %v8450_v52 = vor.u32 %v9056_v43, %v8447_v23  ;;  %v9036_v9 = vld [vmem:[#allocation2 + $0xf04] sm:$0xf]  ;;  %v6221_v43 = vmax.f32 %v12127_v39, 0.0 }
 0x6f1   :  { %6170 = vmatpush.bf16.msra.mxu3 %v8290_v46  ;;  %v5957_v5 = vpop.f32.mrf.mxu2  ;;  %v8311_v46 = vld [vmem:[#allocation2 + $0xe98] sm:$0xf0]  ;;  %v8386_v33 = vor.u32 %v9040_v63, %v8383_v47  ;;  %v8367_v4 = vld [vmem:[#allocation2 + $0xf08] sm:$0xf0] }
 0x6f2   :  { %6183 = vmatpush.bf16.msra.mxu0 %v8354_v16  ;;  %v5932_v16 = vadd.f32 %v5931_v30, %v5919_v11  ;;  %v5933_v35 = vpop.f32.mrf.mxu0  ;;  %v8314_v15 = vor.u32 %v9022_v48, %v8311_v46  ;;  %v8370_v0 = vor.u32 %v9036_v9, %v8367_v4  ;;  %v6223_v23 = vpack.c.bf16 %v6221_v43, %v6221_v43 }
 0x6f3   :  { %6209 = vmatpush.bf16.msra.mxu2 %v8482_v26  ;;  %v9054_v26 = vld [vmem:[#allocation2 + $0xf94] sm:$0xf]  ;;  %v9083_v35 = vld [vmem:[%s12216_s7 + $0x78] sm:$0xff] }
 0x6f4   :  { %6196 = vmatpush.bf16.msra.mxu1 %v8418_v60  ;;  %v8375_v60 = vld [vmem:[#allocation2 + $0xf18] sm:$0xf0]  ;;  %v5945_v20 = vadd.f32 %v5944_v38, %v5932_v16  ;;  %v5946_v1 = vpop.f32.mrf.mxu1  ;;  %v9069_v38 = vld [vmem:[%s12216_s7 + $0x8] sm:$0xff] }
 0x6f5   :  { %6171 = vmatpush.bf16.msra.mxu3 %v8282_v56  ;;  %v8442_v56 = vor.u32 %v9054_v26, %v8439_v29  ;;  %v8378_v41 = vor.u32 %v9038_v37, %v8375_v60  ;;  %v9082_v60 = vld [vmem:[%s12216_s7 + $0x70] sm:$0xff]  ;;  %v9079_v1 = vld [vmem:[%s12216_s7 + $0x58] sm:$0xff] }
 0x6f6   :  { %6184 = vmatpush.bf16.msra.mxu0 %v8346_v32  ;;  %v8239_v32 = vld [vmem:[#allocation2 + $0xe08] sm:$0xf0]  ;;  %v5958_v62 = vadd.f32 %v5957_v5, %v5945_v20 }
 0x6f7   :  { %6210 = vmatpush.bf16.msra.mxu2 %v8474_v42  ;;  %v8303_v42 = vld [vmem:[#allocation2 + $0xe88] sm:$0xf0]  ;;  %v5920_v12 = vpop.f32.mrf.mxu3  ;;  %v8242_v7 = vor.u32 %v9004_v34, %v8239_v32  ;;  %v9080_v34 = vld [vmem:[%s12216_s7 + $0x60] sm:$0xff] }
 0x6f8   :  { %6197 = vmatpush.bf16.msra.mxu1 %v8410_v27  ;;  %v8431_v27 = vld [vmem:[#allocation2 + $0xf88] sm:$0xf0]  ;;  %v9076_v12 = vld [vmem:[%s12216_s7 + $0x40] sm:$0xff] }
 0x6f9   :  { %6172 = vmatpush.bf16.msra.mxu3 %v8274_v58  ;;  %v8306_v58 = vor.u32 %v9020_v18, %v8303_v42  ;;  %v8434_v21 = vor.u32 %v9052_v49, %v8431_v27  ;;  %v9078_v18 = vld [vmem:[%s12216_s7 + $0x50] sm:$0xff]  ;;  %v9077_v49 = vld [vmem:[%s12216_s7 + $0x48] sm:$0xff] }
 0x6fa   :  { %6185 = vmatpush.bf16.msra.mxu0 %v8338_v6  ;;  %v5959_v6 = vpop.f32.mrf.mxu2 }
 0x6fb   :  { %6211 = vmatpush.bf16.msra.mxu2 %v8466_v45  ;;  %v9075_v45 = vld [vmem:[%s12216_s7 + $0x38] sm:$0xff] }
 0x6fc   :  { %6198 = vmatpush.bf16.msra.mxu1 %v8402_v17  ;;  %v9073_v17 = vld [vmem:[%s12216_s7 + $0x28] sm:$0xff] }
 0x6fd   :  { %6173 = vmatpush.bf16.msra.mxu3 %v8266_v24 }
 0x6fe   :  { %6186 = vmatpush.bf16.msra.mxu0 %v8330_v19 }
 0x6ff   :  { %6212 = vmatpush.bf16.msra.mxu2 %v8458_v40 }
 0x700   :  { %6199 = vmatpush.bf16.msra.mxu1 %v8394_v50 }
 0x701   :  { %6174 = vmatpush.bf16.msra.mxu3 %v8258_v31 }
 0x702   :  { %6187 = vmatpush.bf16.msra.mxu0 %v8322_v25 }
 0x703   :  { %6213 = vmatpush.bf16.msra.mxu2 %v8450_v52 }
 0x704   :  { %6200 = vmatpush.bf16.msra.mxu1 %v8386_v33 }
 0x705   :  { %6175 = vmatpush.bf16.msra.mxu3 %v8250_v54 }
 0x706   :  { %6188 = vmatpush.bf16.msra.mxu0 %v8314_v15  ;;  %v9081_v15 = vld [vmem:[%s12216_s7 + $0x68] sm:$0xff] }
 0x707   :  { %6214 = vmatpush.bf16.msra.mxu2 %v8442_v56 }
 0x708   :  { %6201 = vmatpush.bf16.msra.mxu1 %v8378_v41 }
 0x709   :  { %6176 = vmatpush.bf16.msra.mxu3 %v8242_v7 }
 0x70a   :  { %6189 = vmatpush.bf16.msra.mxu0 %v8306_v58  ;;  %v5983_v13 = vpop.f32.mrf.mxu0 }
 0x70b   :  { %6215 = vmatpush.bf16.msra.mxu2 %v8434_v21 }
 0x70c   :  { %6202 = vmatpush.bf16.msra.mxu1 %v8370_v0  ;;  %6177 = vmatmul.bf16.vlgmr.msra.gmra.mxu3 %v12078_v28  ;;  %v9071_v28 = vld [vmem:[%s12216_s7 + $0x18] sm:$0xff] }
 0x70d   :  { %6357 = vmatpush.bf16.msrb.mxu3 %v9075_v45  ;;  %6190 = vmatmul.bf16.vlgmr.msra.gmra.mxu0 %v12088_v59  ;;  %v5996_v59 = vpop.f32.mrf.mxu1 }
 0x70e   :  { %6216 = vmatmul.bf16.vlgmr.msra.gmra.mxu2 %v12083_v57  ;;  %6370 = vmatpush.bf16.msrb.mxu0 %v9083_v35 }
 0x70f   :  { %6203 = vmatmul.bf16.vlgmr.msra.gmra.mxu1 %v12223_v53  ;;  %v5970_v57 = vpop.f32.mrf.mxu3 }
 0x710   :  { %v5971_v30 = vadd.f32 %v5970_v57, %v5958_v62 }
 0x711   :  { %6358 = vmatpush.bf16.msrb.mxu3 %v9074_v22  ;;  %v6009_v10 = vpop.f32.mrf.mxu2 }
 0x712   :  { %v5984_v24 = vadd.f32 %v5983_v13, %v5971_v30  ;;  %v5985_v19 = vpop.f32.mrf.mxu0  ;;  %6371 = vmatpush.bf16.msrb.mxu0 %v9082_v60 }
 0x714   :  { %v5997_v2 = vadd.f32 %v5996_v59, %v5984_v24 }
 0x715   :  { %6359 = vmatpush.bf16.msrb.mxu3 %v9073_v17  ;;  %v5998_v40 = vpop.f32.mrf.mxu1 }
 0x716   :  { %v6010_v14 = vadd.f32 %v6009_v10, %v5997_v2  ;;  %6372 = vmatpush.bf16.msrb.mxu0 %v9081_v15 }
 0x717   :  { %v5972_v61 = vpop.f32.mrf.mxu3 }
 0x719   :  { %6360 = vmatpush.bf16.msrb.mxu3 %v9072_v8  ;;  %v6011_v50 = vpop.f32.mrf.mxu2 }
 0x71a   :  { %6373 = vmatpush.bf16.msrb.mxu0 %v9080_v34 }
 0x71d   :  { %6361 = vmatpush.bf16.msrb.mxu3 %v9071_v28 }
 0x71e   :  { %6374 = vmatpush.bf16.msrb.mxu0 %v9079_v1 }
 0x721   :  { %6362 = vmatpush.bf16.msrb.mxu3 %v9070_v51 }
 0x722   :  { %6375 = vmatpush.bf16.msrb.mxu0 %v9078_v18 }
 0x725   :  { %6363 = vmatpush.bf16.msrb.mxu3 %v9069_v38 }
 0x726   :  { %6376 = vmatpush.bf16.msrb.mxu0 %v9077_v49 }
 0x729   :  { %6364 = vmatpush.bf16.msrb.mxu3 %v9068_v55  ;;  %v9130_v55 = vld [vmem:[%s12217_s8] ss:$0 sm:$0xff] }
 0x72a   :  { %v6035_v3 = vpop.f32.mrf.mxu0  ;;  %6377 = vmatpush.bf16.msrb.mxu0 %v9076_v12 }
 0x72c   :  { %6365 = vmatmul.bf16.vlgmr.msrb.gmra.mxu3 %v6223_v23  ;;  %v6048_v63 = vpop.f32.mrf.mxu1 }
 0x72f   :  { %v6022_v47 = vpop.f32.mrf.mxu3 }
 0x730   :  { %v6023_v11 = vadd.f32 %v6022_v47, %v6010_v14 }
 0x731   :  { %v6061_v31 = vpop.f32.mrf.mxu2 }
 0x732   :  { %v6036_v25 = vadd.f32 %v6035_v3, %v6023_v11  ;;  %v6037_v5 = vpop.f32.mrf.mxu0 }
 0x734   :  { %v6049_v36 = vadd.f32 %v6048_v63, %v6036_v25  ;;  %v6050_v52 = vpop.f32.mrf.mxu1 }
 0x736   :  { %v6062_v44 = vadd.f32 %v6061_v31, %v6049_v36 }
 0x737   :  { %v6024_v48 = vpop.f32.mrf.mxu3 }
 0x739   :  { %v6063_v46 = vpop.f32.mrf.mxu2 }
 0x74a   :  { %v6087_v16 = vpop.f32.mrf.mxu0 }
 0x74c   :  { %v6100_v33 = vpop.f32.mrf.mxu1 }
 0x74f   :  { %v6074_v26 = vpop.f32.mrf.mxu3 }
 0x750   :  { %v6075_v41 = vadd.f32 %v6074_v26, %v6062_v44 }
 0x751   :  { %v6113_v29 = vpop.f32.mrf.mxu2 }
 0x752   :  { %v6089_v39 = vpop.f32.mrf.mxu0  ;;  %v6088_v4 = vadd.f32 %v6087_v16, %v6075_v41 }
 0x754   :  { %v6102_v37 = vpop.f32.mrf.mxu1  ;;  %v6101_v6 = vadd.f32 %v6100_v33, %v6088_v4 }
 0x756   :  { %v6114_v21 = vadd.f32 %v6113_v29, %v6101_v6 }
 0x757   :  { %v6076_v20 = vpop.f32.mrf.mxu3 }
 0x759   :  { %v6115_v54 = vpop.f32.mrf.mxu2 }
 0x76a   :  { %v6139_v56 = vpop.f32.mrf.mxu0 }
 0x76c   :  { %v6152_v32 = vpop.f32.mrf.mxu1 }
 0x76f   :  { %v6126_v42 = vpop.f32.mrf.mxu3 }
 0x770   :  { %v6127_v45 = vadd.f32 %v6126_v42, %v6114_v21 }
 0x771   :  { %v6165_v62 = vpop.f32.mrf.mxu2 }
 0x772   :  { %v6141_v27 = vpop.f32.mrf.mxu0  ;;  %v6140_v0 = vadd.f32 %v6139_v56, %v6127_v45 }
 0x774   :  { %v6154_v9 = vpop.f32.mrf.mxu1  ;;  %v6153_v53 = vadd.f32 %v6152_v32, %v6140_v0 }
 0x776   :  { %v6166_v8 = vadd.f32 %v6165_v62, %v6153_v53 }
 0x777   :  { %v6128_v7 = vpop.f32.mrf.mxu3 }
 0x779   :  { %v6167_v58 = vpop.f32.mrf.mxu2 }
 0x78a   :  { %v6191_v22 = vpop.f32.mrf.mxu0 }
 0x78c   :  { %v6204_v17 = vpop.f32.mrf.mxu1 }
 0x78f   :  { %v6178_v13 = vpop.f32.mrf.mxu3 }
 0x790   :  { %v6179_v28 = vadd.f32 %v6178_v13, %v6166_v8 }
 0x791   :  { %v6217_v59 = vpop.f32.mrf.mxu2 }
 0x792   :  { %v6193_v57 = vpop.f32.mrf.mxu0  ;;  %v6192_v30 = vadd.f32 %v6191_v22, %v6179_v28 }
 0x794   :  { %v6206_v51 = vpop.f32.mrf.mxu1  ;;  %v6205_v10 = vadd.f32 %v6204_v17, %v6192_v30 }
 0x796   :  { %v6218_v24 = vadd.f32 %v6217_v59, %v6205_v10 }
 0x797   :  { %v6180_v19 = vpop.f32.mrf.mxu3 }
 0x798   :  { %v6222_v2 = vmax.f32 %v6218_v24, 0.0 }
 0x799   :  { %v6219_v38 = vpop.f32.mrf.mxu2 }
 0x79a   :  { %v6224_v40 = vpack.c.bf16 %v6222_v2, %v6222_v2 }
 0x79c   :  { %6378 = vmatmul.bf16.vlgmr.msrb.gmra.mxu0 %v6224_v40 }
 0x7af   :  { %v6366_v14 = vpop.f32.mrf.mxu3 }
 0x7b0   :  { %v6367_v50 = vadd.f32 %v9130_v55, %v6366_v14 }
 0x7b7   :  { %v6368_v61 = vpop.f32.mrf.mxu3 }
 0x819   :  { %v6379_v43 = vpop.f32.mrf.mxu0 }
 0x81a   :  { %v6380_v23 = vadd.f32 %v6379_v43, %v6367_v50 }
 0x81c   :  { %6383 = vst [vmem:[#allocation4] sm:$0x3] %v6380_v23 }
 0x81d   :  { %6394 = dma.vmem_to_hbm [thread:$0]  %s6390_s16, 32, %s6392_s19, [#allocation5]  }
 0x821   :  { %v6381_v3 = vpop.f32.mrf.mxu0 }
 0x822   :  { %9158 = dma.done.wait [#allocation5], 32  }
 0x823   :  { %9159 = vsyncadd [#allocation5], 4294967264 }
 0x824   :  { %6399 = vsyncpa [#allocation5], 1 }
 0x825   :  { %6400 = vsyncmov [#allocation3] }
 0x828   :  { %s6401_s20 = vpop.sfrf %6400 }
 0x829   :  { %p8555_p0 = scmp.ne.s32.totalorder %s6401_s20, 0 }
 0x82b   :  { %6405 = shalt.err (%p8555_p0)  }

</bundles_post_ra>
